<compile_context>
chip_gen: v7x
topology: tpu7x:2x2x1
jax: 0.10.0
libtpu: 0.0.40
codegen_flags: <defaults>
</compile_context>

<pallas_src>
import jax
import jax.numpy as jnp
import numpy as np
from jax import lax
from jax.experimental import pallas as pl
from jax.experimental.pallas import tpu as pltpu


def _make_masks(offsets, Hs, Ws):
    """One (Hs*Ws,) validity row per tap read at flat offset dh*Ws + dw."""
    r = np.arange(Hs)[:, None]
    c = np.arange(Ws)[None, :]
    rows = []
    for dh, dw in offsets:
        ok = (r + dh >= 0) & (r + dh < Hs) & (c + dw >= 0) & (c + dw < Ws)
        rows.append(ok.reshape(-1).astype(np.float32))
    return np.stack(rows)


def nlmask_branch_forward(x_nchw, p):
    """Forward pass of NLMaskBranchDownUp. x_nchw: (N, C, H, W); p: param dict."""
    N, C, H, W = x_nchw.shape
    CI = C // 2
    assert H % 2 == 0 and W % 2 == 0, "spatial dims must be even (down/up sampling)"
    HW = H * W
    f32 = jnp.float32

    OFFS3 = [(dh, dw) for dh in (-1, 0, 1) for dw in (-1, 0, 1)]            # 3x3, pad 1
    KU, PU = 6, 2
    OFFS_UP = [(PU - kh, PU - kw) for kh in range(KU) for kw in range(KU)]  # transposed 6x6, pad 2
    S3 = [dh * W + dw for dh, dw in OFFS3]                                  # flat tap offsets
    SUP = [dh * W + dw for dh, dw in OFFS_UP]
    NT3, NTU = len(S3), len(SUP)

    # ---------------- wrapper-side layout plumbing (weight packing / constants) ----
    x_c = x_nchw.reshape(N, C, HW).astype(f32)                     # (N, C, H*W) lane-dense

    (wt, bt), (wp, bp), (wg, bg) = p["theta"], p["phi"], p["g"]
    wz, bz = p["Wz"]
    w_tpg = jnp.concatenate([wt, wp, wg], axis=0).astype(f32)      # (3*CI, C): theta|phi|g rows
    b_tpg = jnp.concatenate([bt, bp, bg]).reshape(3 * CI, 1).astype(f32)
    w_W = wz.astype(f32)                                           # (C, CI)
    b_W = bz.reshape(C, 1).astype(f32)

    convs3 = [p["rb1"][0], p["rb1"][1], p["down"],
              p["rb2"][0], p["rb2"][1], p["rb2"][2], p["rb2"][3],
              p["rb3"][0], p["rb3"][1]]
    # im2col weights: w3[k, co, t*C + ci] = torch_w[co, ci, kh, kw],  t = kh*3 + kw
    w3 = jnp.stack([jnp.transpose(w.reshape(C, C, NT3), (0, 2, 1)).reshape(C, NT3 * C)
                    for (w, _) in convs3]).astype(f32)             # (9, C, 9*C)
    b3 = jnp.stack([b for (_, b) in convs3]).reshape(len(convs3), C, 1).astype(f32)

    wu, bu = p["up"]                                               # torch layout (Cin, Cout, 6, 6)
    # w_up[co, t*C + ci] = wu[ci, co, kh, kw],  t = kh*6 + kw
    w_up = jnp.transpose(wu.reshape(C, C, NTU), (1, 2, 0)).reshape(C, NTU * C).astype(f32)
    b_up = bu.reshape(C, 1).astype(f32)

    w11, b11 = p["last"]
    w_11 = w11.reshape(C, C).astype(f32)
    b_11 = b11.reshape(C, 1).astype(f32)

    m_hi = jnp.asarray(_make_masks(OFFS3, H, W))                                   # (9, HW)
    m_lo = jnp.asarray(_make_masks([(2 * dh, 2 * dw) for dh, dw in OFFS3], H, W))  # (9, HW)
    m_up = jnp.asarray(_make_masks(OFFS_UP, H, W))                                 # (36, HW)
    r_i = np.arange(H)[:, None]
    c_i = np.arange(W)[None, :]
    emb = jnp.asarray((((r_i % 2) == 0) & ((c_i % 2) == 0)).reshape(1, HW).astype(np.float32))

    # ---------------- fused kernel: one image per grid step ------------------------
    def kernel(x_ref, wtpg_ref, btpg_ref, ww_ref, bw_ref,
               w3_ref, b3_ref, wu_ref, bu_ref, w11_ref, b11_ref,
               mhi_ref, mlo_ref, mup_ref, emb_ref, o_ref, col3_ref, colu_ref):
        xf = x_ref[0]                                              # (C, HW)

        def im2col(v, offs, mask_ref, scale, col_ref):
            # Stack the masked, shifted taps along the sublane axis: (n_tap*C, HW).
            # roll() uses the otherwise-idle XLU slot; the masks zero wrapped /
            # out-of-image positions (same masks as the old padded-scratch version).
            for t, s0 in enumerate(offs):
                s = scale * s0
                tap = v if s == 0 else pltpu.roll(v, shift=(-s) % HW, axis=1)
                col_ref[t * C:(t + 1) * C, :] = tap * mask_ref[t:t + 1, :]
            return col_ref[...]

        def conv3x3(v, k, mask_ref, scale):
            """'same' 3x3 conv as ONE (C, 9C) @ (9C, HW) MXU dot; scale=2 runs it on
            the even-embedded (downsampled) grid."""
            col = im2col(v, S3, mask_ref, scale, col3_ref)
            return jnp.dot(w3_ref[k], col, preferred_element_type=f32) + b3_ref[k]

        def res_block(v, k, mask_ref, scale):
            h = jnp.maximum(conv3x3(v, k, mask_ref, scale), 0.0)   # conv -> ReLU
            return conv3x3(h, k + 1, mask_ref, scale) + v          # conv -> + residual

        # ---- NonLocalBlock2D: fused theta|phi|g 1x1, attention on the MXU ----
        tpg = jnp.dot(wtpg_ref[...], xf, preferred_element_type=f32) + btpg_ref[...]  # (3*CI, HW)
        theta = tpg[0:CI, :]
        phi = tpg[CI:2 * CI, :]
        g_x = tpg[2 * CI:3 * CI, :]
        # f_t[j, i] = sum_c phi[c, j] * theta[c, i]  ==  torch f[i, j]
        f_t = lax.dot_general(phi, theta, (((0,), (0,)), ((), ())),
                              preferred_element_type=f32)                             # (HW, HW)
        f_t = f_t - jnp.max(f_t, axis=1, keepdims=True)
        e = jnp.exp(f_t)
        attn = e * pl.reciprocal(jnp.sum(e, axis=1, keepdims=True), approx=True)      # softmax over i
        y = jnp.dot(g_x, attn, preferred_element_type=f32)                            # (CI, HW)
        z = jnp.dot(ww_ref[...], y, preferred_element_type=f32) + bw_ref[...] + xf    # W(y) + x

        # ---- MB_RB1 ----
        x_rb1 = res_block(z, 0, mhi_ref, 1)

        # ---- MB_Down: stride-2 conv == stride-1 conv sampled at even positions ----
        x_dn = conv3x3(x_rb1, 2, mhi_ref, 1) * emb_ref[...]        # low-res embedded at even (h, w)

        # ---- MB_RB2: two residual blocks on the embedded low-res grid ----
        r2 = res_block(x_dn, 3, mlo_ref, 2)
        r2 = res_block(r2, 5, mlo_ref, 2)

        # ---- MB_Up: ConvTranspose2d(6, stride 2, pad 2) on the zero-stuffed grid ----
        ux = r2 * emb_ref[...]                                     # re-zero the odd (unused) slots
        col_u = im2col(ux, SUP, mup_ref, 1, colu_ref)              # (36*C, HW)
        up = jnp.dot(wu_ref[...], col_u, preferred_element_type=f32) + bu_ref[...]

        # ---- MB_RB3 + 1x1 conv + sigmoid ----
        x_rb3 = res_block(x_rb1 + up, 7, mhi_ref, 1)
        o = jnp.dot(w11_ref[...], x_rb3, preferred_element_type=f32) + b11_ref[...]
        o_ref[0] = 1.0 / (1.0 + jnp.exp(-o))                       # tiny (C, HW) slab: keep exact

    const_args = [w_tpg, b_tpg, w_W, b_W, w3, b3, w_up, b_up,
                  w_11, b_11, m_hi, m_lo, m_up, emb]

    def _resident(a):
        nd = a.ndim
        return pl.BlockSpec(a.shape, lambda n, _nd=nd: (0,) * _nd)

    x_spec = pl.BlockSpec((1, C, HW), lambda n: (n, 0, 0))

    # NOTE: on the single-TensorCore chips (v5e/v6e) packing 2 images per grid step
    # along the sublane axis (block-diagonal weights) would fill the half-empty
    # C=4 sublanes; kept at one image per step so the v7x megacore can split the
    # batch across its 2 cores.
    out = pl.pallas_call(
        kernel,
        out_shape=jax.ShapeDtypeStruct((N, C, HW), f32),
        grid_spec=pltpu.PrefetchScalarGridSpec(
            num_scalar_prefetch=0,
            grid=(N,),
            in_specs=[x_spec] + [_resident(a) for a in const_args],
            out_specs=x_spec,
            scratch_shapes=[pltpu.VMEM((NT3 * C, HW), f32),
                            pltpu.VMEM((NTU * C, HW), f32)],
        ),
        compiler_params=pltpu.CompilerParams(
            dimension_semantics=("parallel",)),
    )(x_c, *const_args)

    return out.reshape(N, C, H, W)


def jax_reference(x, p):
    """Pure-JAX NCHW replica of the PyTorch NLMaskBranchDownUp forward."""
    dn = ("NCHW", "OIHW", "NCHW")
    prec = jax.lax.Precision.HIGHEST

    def conv3(v, w, b, stride=1):
        out = jax.lax.conv_general_dilated(v, w, (stride, stride), ((1, 1), (1, 1)),
                                           dimension_numbers=dn, precision=prec)
        return out + b.reshape(1, -1, 1, 1)

    def conv1x1(v, w, b):
        return jnp.einsum("oc,bchw->bohw", w, v, precision=prec) + b.reshape(1, -1, 1, 1)

    def res_block(v, c1, c2):
        h = jax.nn.relu(conv3(v, *c1))
        return conv3(h, *c2) + v

    def nonlocal_block(v):
        B, C, H, W = v.shape
        CI = p["theta"][0].shape[0]
        th = conv1x1(v, *p["theta"]).reshape(B, CI, H * W)
        ph = conv1x1(v, *p["phi"]).reshape(B, CI, H * W)
        gx = conv1x1(v, *p["g"]).reshape(B, CI, H * W)
        f = jnp.einsum("bci,bcj->bij", th, ph, precision=prec)
        a = jax.nn.softmax(f, axis=1)                    # torch: F.softmax(f, dim=1)
        y = jnp.einsum("bij,bcj->bci", a, gx, precision=prec).reshape(B, CI, H, W)
        return conv1x1(y, *p["Wz"]) + v

    def conv_transpose6(v, w, b):
        # PyTorch ConvTranspose2d(k=6, stride=2, padding=2); w: (Cin, Cout, 6, 6)
        wf = jnp.transpose(jnp.flip(w, (2, 3)), (1, 0, 2, 3))
        out = jax.lax.conv_general_dilated(v, wf, (1, 1), ((3, 3), (3, 3)),
                                           lhs_dilation=(2, 2),
                                           dimension_numbers=dn, precision=prec)
        return out + b.reshape(1, -1, 1, 1)

    x_rb1 = res_block(nonlocal_block(x), p["rb1"][0], p["rb1"][1])
    x_dn = conv3(x_rb1, *p["down"], stride=2)
    x_rb2 = res_block(res_block(x_dn, p["rb2"][0], p["rb2"][1]), p["rb2"][2], p["rb2"][3])
    x_up = conv_transpose6(x_rb2, *p["up"])
    x_rb3 = res_block(x_rb1 + x_up, p["rb3"][0], p["rb3"][1])
    o = conv1x1(x_rb3, *p["last"])
    return jax.nn.sigmoid(o)


if __name__ == "__main__":
    N, C, H, W = 2, 4, 16, 16          # n_feat = 4 -> inter_channels = 2
    CI = C // 2

    keys = list(jax.random.split(jax.random.PRNGKey(0), 40))
    _k = iter(keys)

    def nrm(shape, scale=0.1):
        return scale * jax.random.normal(next(_k), shape, jnp.float32)

    x = jax.random.normal(next(_k), (N, C, H, W), jnp.float32)

    # NOTE: PyTorch initializes the non-local W conv to zero; random weights are used
    # here to exercise the full forward path (forward semantics do not depend on init).
    params = {
        "theta": (nrm((CI, C)), nrm((CI,))),
        "phi":   (nrm((CI, C)), nrm((CI,))),
        "g":     (nrm((CI, C)), nrm((CI,))),
        "Wz":    (nrm((C, CI)), nrm((C,))),
        "rb1":   [(nrm((C, C, 3, 3)), nrm((C,))) for _ in range(2)],
        "down":  (nrm((C, C, 3, 3)), nrm((C,))),
        "rb2":   [(nrm((C, C, 3, 3)), nrm((C,))) for _ in range(4)],
        "up":    (nrm((C, C, 6, 6)), nrm((C,))),
        "rb3":   [(nrm((C, C, 3, 3)), nrm((C,))) for _ in range(2)],
        "last":  (nrm((C, C)), nrm((C,))),
    }

    out = nlmask_branch_forward(x, params)
    out = jax.block_until_ready(out)

    ref = jax_reference(x, params)
    assert out.shape == (N, C, H, W), out.shape
    max_err = float(jnp.max(jnp.abs(out - ref)))
    assert max_err < 2e-3, f"max abs error {max_err}"

    print("KERNEL_OK")
</pallas_src>

<mosaic_0001>
module attributes {stable_mosaic.version = 11 : i64} {
  func.func @kernel(%arg0: i32, %arg1: memref<1x4x256xf32, #tpu.memory_space<vmem>>, %arg2: memref<6x4xf32, #tpu.memory_space<vmem>>, %arg3: memref<6x1xf32, #tpu.memory_space<vmem>>, %arg4: memref<4x2xf32, #tpu.memory_space<vmem>>, %arg5: memref<4x1xf32, #tpu.memory_space<vmem>>, %arg6: memref<9x4x36xf32, #tpu.memory_space<vmem>>, %arg7: memref<9x4x1xf32, #tpu.memory_space<vmem>>, %arg8: memref<4x144xf32, #tpu.memory_space<vmem>>, %arg9: memref<4x1xf32, #tpu.memory_space<vmem>>, %arg10: memref<4x4xf32, #tpu.memory_space<vmem>>, %arg11: memref<4x1xf32, #tpu.memory_space<vmem>>, %arg12: memref<9x256xf32, #tpu.memory_space<vmem>>, %arg13: memref<9x256xf32, #tpu.memory_space<vmem>>, %arg14: memref<36x256xf32, #tpu.memory_space<vmem>>, %arg15: memref<1x256xf32, #tpu.memory_space<vmem>>, %arg16: memref<1x4x256xf32, #tpu.memory_space<vmem>>, %arg17: memref<36x256xf32, #tpu.memory_space<vmem>>, %arg18: memref<144x256xf32, #tpu.memory_space<vmem>>) attributes {dimension_semantics = [#tpu.dimension_semantics<parallel>], iteration_bounds = array<i64: 2>, scalar_prefetch = 0 : i64, scratch_operands = 2 : i64, tpu.core_type = #tpu.core_type<tc>, window_params = [{transform_indices = @transform_0, window_bounds = array<i64: 1, 4, 256>}, {pipeline_mode = #tpu.pipeline_mode<synchronous>, transform_indices = @transform_1, window_bounds = array<i64: 6, 4>}, {pipeline_mode = #tpu.pipeline_mode<synchronous>, transform_indices = @transform_2, window_bounds = array<i64: 6, 1>}, {pipeline_mode = #tpu.pipeline_mode<synchronous>, transform_indices = @transform_3, window_bounds = array<i64: 4, 2>}, {pipeline_mode = #tpu.pipeline_mode<synchronous>, transform_indices = @transform_4, window_bounds = array<i64: 4, 1>}, {pipeline_mode = #tpu.pipeline_mode<synchronous>, transform_indices = @transform_5, window_bounds = array<i64: 9, 4, 36>}, {pipeline_mode = #tpu.pipeline_mode<synchronous>, transform_indices = @transform_6, window_bounds = array<i64: 9, 4, 1>}, {pipeline_mode = #tpu.pipeline_mode<synchronous>, transform_indices = @transform_7, window_bounds = array<i64: 4, 144>}, {pipeline_mode = #tpu.pipeline_mode<synchronous>, transform_indices = @transform_8, window_bounds = array<i64: 4, 1>}, {pipeline_mode = #tpu.pipeline_mode<synchronous>, transform_indices = @transform_9, window_bounds = array<i64: 4, 4>}, {pipeline_mode = #tpu.pipeline_mode<synchronous>, transform_indices = @transform_10, window_bounds = array<i64: 4, 1>}, {pipeline_mode = #tpu.pipeline_mode<synchronous>, transform_indices = @transform_11, window_bounds = array<i64: 9, 256>}, {pipeline_mode = #tpu.pipeline_mode<synchronous>, transform_indices = @transform_12, window_bounds = array<i64: 9, 256>}, {pipeline_mode = #tpu.pipeline_mode<synchronous>, transform_indices = @transform_13, window_bounds = array<i64: 36, 256>}, {pipeline_mode = #tpu.pipeline_mode<synchronous>, transform_indices = @transform_14, window_bounds = array<i64: 1, 256>}, {transform_indices = @transform_15, window_bounds = array<i64: 1, 4, 256>}]} {
    %c0 = arith.constant 0 : index
    %c0_0 = arith.constant 0 : index
    %c0_1 = arith.constant 0 : index
    %0 = vector.load %arg1[%c0, %c0_0, %c0_1] : memref<1x4x256xf32, #tpu.memory_space<vmem>>, vector<1x4x256xf32>
    %1 = vector.shape_cast %0 : vector<1x4x256xf32> to vector<4x256xf32>
    %c0_2 = arith.constant 0 : index
    %c0_3 = arith.constant 0 : index
    %2 = vector.load %arg2[%c0_2, %c0_3] : memref<6x4xf32, #tpu.memory_space<vmem>>, vector<6x4xf32>
    %cst = arith.constant dense<0.000000e+00> : vector<6x256xf32>
    %3 = tpu.matmul %2, %1, %cst {dimension_numbers = #tpu.dot_dimension_numbers<[1], [0], [0], [1], [0, 0, 1, 1], [], []>} : vector<6x4xf32>, vector<4x256xf32>, vector<6x256xf32> -> vector<6x256xf32>
    %c0_4 = arith.constant 0 : index
    %c0_5 = arith.constant 0 : index
    %4 = vector.load %arg3[%c0_4, %c0_5] : memref<6x1xf32, #tpu.memory_space<vmem>>, vector<6x1xf32>
    %5 = vector.broadcast %4 : vector<6x1xf32> to vector<6x256xf32>
    %6 = arith.addf %3, %5 : vector<6x256xf32>
    %7 = vector.extract_strided_slice %6 {offsets = [0, 0], sizes = [2, 256], strides = [1, 1]} : vector<6x256xf32> to vector<2x256xf32>
    %8 = vector.extract_strided_slice %6 {offsets = [2, 0], sizes = [2, 256], strides = [1, 1]} : vector<6x256xf32> to vector<2x256xf32>
    %9 = vector.extract_strided_slice %6 {offsets = [4, 0], sizes = [2, 256], strides = [1, 1]} : vector<6x256xf32> to vector<2x256xf32>
    %cst_6 = arith.constant dense<0.000000e+00> : vector<256x256xf32>
    %10 = tpu.matmul %8, %7, %cst_6 {dimension_numbers = #tpu.dot_dimension_numbers<[0], [0], [1], [1], [0, 1, 1, 1], [], []>} : vector<2x256xf32>, vector<2x256xf32>, vector<256x256xf32> -> vector<256x256xf32>
    %cst_7 = arith.constant dense<0xFF800000> : vector<256xf32>
    %11 = vector.multi_reduction <maximumf>, %10, %cst_7 [1] : vector<256x256xf32> to vector<256xf32>
    %12 = vector.shape_cast %11 : vector<256xf32> to vector<256x1xf32>
    %13 = vector.broadcast %12 : vector<256x1xf32> to vector<256x256xf32>
    %14 = arith.subf %10, %13 : vector<256x256xf32>
    %15 = math.exp %14 : vector<256x256xf32>
    %cst_8 = arith.constant dense<0.000000e+00> : vector<256xf32>
    %16 = vector.multi_reduction <add>, %15, %cst_8 [1] : vector<256x256xf32> to vector<256xf32>
    %17 = vector.shape_cast %16 : vector<256xf32> to vector<256x1xf32>
    %18 = tpu.reciprocal %17 {approx = true} : vector<256x1xf32> -> vector<256x1xf32>
    %19 = vector.broadcast %18 : vector<256x1xf32> to vector<256x256xf32>
    %20 = arith.mulf %15, %19 : vector<256x256xf32>
    %cst_9 = arith.constant dense<0.000000e+00> : vector<2x256xf32>
    %21 = tpu.matmul %9, %20, %cst_9 {dimension_numbers = #tpu.dot_dimension_numbers<[1], [0], [0], [1], [0, 0, 1, 1], [], []>} : vector<2x256xf32>, vector<256x256xf32>, vector<2x256xf32> -> vector<2x256xf32>
    %c0_10 = arith.constant 0 : index
    %c0_11 = arith.constant 0 : index
    %22 = vector.load %arg4[%c0_10, %c0_11] : memref<4x2xf32, #tpu.memory_space<vmem>>, vector<4x2xf32>
    %cst_12 = arith.constant dense<0.000000e+00> : vector<4x256xf32>
    %23 = tpu.matmul %22, %21, %cst_12 {dimension_numbers = #tpu.dot_dimension_numbers<[1], [0], [0], [1], [0, 0, 1, 1], [], []>} : vector<4x2xf32>, vector<2x256xf32>, vector<4x256xf32> -> vector<4x256xf32>
    %c0_13 = arith.constant 0 : index
    %c0_14 = arith.constant 0 : index
    %24 = vector.load %arg5[%c0_13, %c0_14] : memref<4x1xf32, #tpu.memory_space<vmem>>, vector<4x1xf32>
    %25 = vector.broadcast %24 : vector<4x1xf32> to vector<4x256xf32>
    %26 = arith.addf %23, %25 : vector<4x256xf32>
    %27 = arith.addf %26, %1 : vector<4x256xf32>
    %c17_i32 = arith.constant 17 : i32
    %28 = tpu.dynamic_rotate %27 by %c17_i32 dim 1 : vector<4x256xf32>, i32 -> vector<4x256xf32>
    %c0_15 = arith.constant 0 : index
    %c0_16 = arith.constant 0 : index
    %29 = vector.load %arg12[%c0_15, %c0_16] : memref<9x256xf32, #tpu.memory_space<vmem>>, vector<1x256xf32>
    %30 = vector.broadcast %29 : vector<1x256xf32> to vector<4x256xf32>
    %31 = arith.mulf %28, %30 : vector<4x256xf32>
    %c0_17 = arith.constant 0 : index
    %c0_18 = arith.constant 0 : index
    %32 = vector.load %arg17[%c0_17, %c0_18] : memref<36x256xf32, #tpu.memory_space<vmem>>, vector<4x256xf32>
    tpu.vector_store %arg17[%c0_17, %c0_18], %31 {strides = array<i32>} : memref<36x256xf32, #tpu.memory_space<vmem>>, vector<4x256xf32>,
    %c16_i32 = arith.constant 16 : i32
    %33 = tpu.dynamic_rotate %27 by %c16_i32 dim 1 : vector<4x256xf32>, i32 -> vector<4x256xf32>
    %c1 = arith.constant 1 : index
    %c0_19 = arith.constant 0 : index
    %34 = vector.load %arg12[%c1, %c0_19] : memref<9x256xf32, #tpu.memory_space<vmem>>, vector<1x256xf32>
    %35 = vector.broadcast %34 : vector<1x256xf32> to vector<4x256xf32>
    %36 = arith.mulf %33, %35 : vector<4x256xf32>
    %c4 = arith.constant 4 : index
    %c0_20 = arith.constant 0 : index
    %37 = vector.load %arg17[%c4, %c0_20] : memref<36x256xf32, #tpu.memory_space<vmem>>, vector<4x256xf32>
    tpu.vector_store %arg17[%c4, %c0_20], %36 {strides = array<i32>} : memref<36x256xf32, #tpu.memory_space<vmem>>, vector<4x256xf32>,
    %c15_i32 = arith.constant 15 : i32
    %38 = tpu.dynamic_rotate %27 by %c15_i32 dim 1 : vector<4x256xf32>, i32 -> vector<4x256xf32>
    %c2 = arith.constant 2 : index
    %c0_21 = arith.constant 0 : index
    %39 = vector.load %arg12[%c2, %c0_21] : memref<9x256xf32, #tpu.memory_space<vmem>>, vector<1x256xf32>
    %40 = vector.broadcast %39 : vector<1x256xf32> to vector<4x256xf32>
    %41 = arith.mulf %38, %40 : vector<4x256xf32>
    %c8 = arith.constant 8 : index
    %c0_22 = arith.constant 0 : index
    %42 = vector.load %arg17[%c8, %c0_22] : memref<36x256xf32, #tpu.memory_space<vmem>>, vector<4x256xf32>
    tpu.vector_store %arg17[%c8, %c0_22], %41 {strides = array<i32>} : memref<36x256xf32, #tpu.memory_space<vmem>>, vector<4x256xf32>,
    %c1_i32 = arith.constant 1 : i32
    %43 = tpu.dynamic_rotate %27 by %c1_i32 dim 1 : vector<4x256xf32>, i32 -> vector<4x256xf32>
    %c3 = arith.constant 3 : index
    %c0_23 = arith.constant 0 : index
    %44 = vector.load %arg12[%c3, %c0_23] : memref<9x256xf32, #tpu.memory_space<vmem>>, vector<1x256xf32>
    %45 = vector.broadcast %44 : vector<1x256xf32> to vector<4x256xf32>
    %46 = arith.mulf %43, %45 : vector<4x256xf32>
    %c12 = arith.constant 12 : index
    %c0_24 = arith.constant 0 : index
    %47 = vector.load %arg17[%c12, %c0_24] : memref<36x256xf32, #tpu.memory_space<vmem>>, vector<4x256xf32>
    tpu.vector_store %arg17[%c12, %c0_24], %46 {strides = array<i32>} : memref<36x256xf32, #tpu.memory_space<vmem>>, vector<4x256xf32>,
    %c4_25 = arith.constant 4 : index
    %c0_26 = arith.constant 0 : index
    %48 = vector.load %arg12[%c4_25, %c0_26] : memref<9x256xf32, #tpu.memory_space<vmem>>, vector<1x256xf32>
    %49 = vector.broadcast %48 : vector<1x256xf32> to vector<4x256xf32>
    %50 = arith.mulf %27, %49 : vector<4x256xf32>
    %c16 = arith.constant 16 : index
    %c0_27 = arith.constant 0 : index
    %51 = vector.load %arg17[%c16, %c0_27] : memref<36x256xf32, #tpu.memory_space<vmem>>, vector<4x256xf32>
    tpu.vector_store %arg17[%c16, %c0_27], %50 {strides = array<i32>} : memref<36x256xf32, #tpu.memory_space<vmem>>, vector<4x256xf32>,
    %c255_i32 = arith.constant 255 : i32
    %52 = tpu.dynamic_rotate %27 by %c255_i32 dim 1 : vector<4x256xf32>, i32 -> vector<4x256xf32>
    %c5 = arith.constant 5 : index
    %c0_28 = arith.constant 0 : index
    %53 = vector.load %arg12[%c5, %c0_28] : memref<9x256xf32, #tpu.memory_space<vmem>>, vector<1x256xf32>
    %54 = vector.broadcast %53 : vector<1x256xf32> to vector<4x256xf32>
    %55 = arith.mulf %52, %54 : vector<4x256xf32>
    %c20 = arith.constant 20 : index
    %c0_29 = arith.constant 0 : index
    %56 = vector.load %arg17[%c20, %c0_29] : memref<36x256xf32, #tpu.memory_space<vmem>>, vector<4x256xf32>
    tpu.vector_store %arg17[%c20, %c0_29], %55 {strides = array<i32>} : memref<36x256xf32, #tpu.memory_space<vmem>>, vector<4x256xf32>,
    %c241_i32 = arith.constant 241 : i32
    %57 = tpu.dynamic_rotate %27 by %c241_i32 dim 1 : vector<4x256xf32>, i32 -> vector<4x256xf32>
    %c6 = arith.constant 6 : index
    %c0_30 = arith.constant 0 : index
    %58 = vector.load %arg12[%c6, %c0_30] : memref<9x256xf32, #tpu.memory_space<vmem>>, vector<1x256xf32>
    %59 = vector.broadcast %58 : vector<1x256xf32> to vector<4x256xf32>
    %60 = arith.mulf %57, %59 : vector<4x256xf32>
    %c24 = arith.constant 24 : index
    %c0_31 = arith.constant 0 : index
    %61 = vector.load %arg17[%c24, %c0_31] : memref<36x256xf32, #tpu.memory_space<vmem>>, vector<4x256xf32>
    tpu.vector_store %arg17[%c24, %c0_31], %60 {strides = array<i32>} : memref<36x256xf32, #tpu.memory_space<vmem>>, vector<4x256xf32>,
    %c240_i32 = arith.constant 240 : i32
    %62 = tpu.dynamic_rotate %27 by %c240_i32 dim 1 : vector<4x256xf32>, i32 -> vector<4x256xf32>
    %c7 = arith.constant 7 : index
    %c0_32 = arith.constant 0 : index
    %63 = vector.load %arg12[%c7, %c0_32] : memref<9x256xf32, #tpu.memory_space<vmem>>, vector<1x256xf32>
    %64 = vector.broadcast %63 : vector<1x256xf32> to vector<4x256xf32>
    %65 = arith.mulf %62, %64 : vector<4x256xf32>
    %c28 = arith.constant 28 : index
    %c0_33 = arith.constant 0 : index
    %66 = vector.load %arg17[%c28, %c0_33] : memref<36x256xf32, #tpu.memory_space<vmem>>, vector<4x256xf32>
    tpu.vector_store %arg17[%c28, %c0_33], %65 {strides = array<i32>} : memref<36x256xf32, #tpu.memory_space<vmem>>, vector<4x256xf32>,
    %c239_i32 = arith.constant 239 : i32
    %67 = tpu.dynamic_rotate %27 by %c239_i32 dim 1 : vector<4x256xf32>, i32 -> vector<4x256xf32>
    %c8_34 = arith.constant 8 : index
    %c0_35 = arith.constant 0 : index
    %68 = vector.load %arg12[%c8_34, %c0_35] : memref<9x256xf32, #tpu.memory_space<vmem>>, vector<1x256xf32>
    %69 = vector.broadcast %68 : vector<1x256xf32> to vector<4x256xf32>
    %70 = arith.mulf %67, %69 : vector<4x256xf32>
    %c32 = arith.constant 32 : index
    %c0_36 = arith.constant 0 : index
    %71 = vector.load %arg17[%c32, %c0_36] : memref<36x256xf32, #tpu.memory_space<vmem>>, vector<4x256xf32>
    tpu.vector_store %arg17[%c32, %c0_36], %70 {strides = array<i32>} : memref<36x256xf32, #tpu.memory_space<vmem>>, vector<4x256xf32>,
    %c0_37 = arith.constant 0 : index
    %c0_38 = arith.constant 0 : index
    %72 = vector.load %arg17[%c0_37, %c0_38] : memref<36x256xf32, #tpu.memory_space<vmem>>, vector<36x256xf32>
    %c0_39 = arith.constant 0 : index
    %c0_40 = arith.constant 0 : index
    %c0_41 = arith.constant 0 : index
    %73 = vector.load %arg6[%c0_39, %c0_40, %c0_41] : memref<9x4x36xf32, #tpu.memory_space<vmem>>, vector<1x4x36xf32>
    %74 = vector.shape_cast %73 : vector<1x4x36xf32> to vector<4x36xf32>
    %cst_42 = arith.constant dense<0.000000e+00> : vector<4x256xf32>
    %75 = tpu.matmul %74, %72, %cst_42 {dimension_numbers = #tpu.dot_dimension_numbers<[1], [0], [0], [1], [0, 0, 1, 1], [], []>} : vector<4x36xf32>, vector<36x256xf32>, vector<4x256xf32> -> vector<4x256xf32>
    %c0_43 = arith.constant 0 : index
    %c0_44 = arith.constant 0 : index
    %c0_45 = arith.constant 0 : index
    %76 = vector.load %arg7[%c0_43, %c0_44, %c0_45] : memref<9x4x1xf32, #tpu.memory_space<vmem>>, vector<1x4x1xf32>
    %77 = vector.shape_cast %76 : vector<1x4x1xf32> to vector<4x1xf32>
    %78 = vector.broadcast %77 : vector<4x1xf32> to vector<4x256xf32>
    %79 = arith.addf %75, %78 : vector<4x256xf32>
    %cst_46 = arith.constant 0.000000e+00 : f32
    %80 = vector.broadcast %cst_46 : f32 to vector<4x256xf32>
    %81 = arith.maximumf %79, %80 : vector<4x256xf32>
    %c17_i32_47 = arith.constant 17 : i32
    %82 = tpu.dynamic_rotate %81 by %c17_i32_47 dim 1 : vector<4x256xf32>, i32 -> vector<4x256xf32>
    %c0_48 = arith.constant 0 : index
    %c0_49 = arith.constant 0 : index
    %83 = vector.load %arg12[%c0_48, %c0_49] : memref<9x256xf32, #tpu.memory_space<vmem>>, vector<1x256xf32>
    %84 = vector.broadcast %83 : vector<1x256xf32> to vector<4x256xf32>
    %85 = arith.mulf %82, %84 : vector<4x256xf32>
    %c0_50 = arith.constant 0 : index
    %c0_51 = arith.constant 0 : index
    %86 = vector.load %arg17[%c0_50, %c0_51] : memref<36x256xf32, #tpu.memory_space<vmem>>, vector<4x256xf32>
    tpu.vector_store %arg17[%c0_50, %c0_51], %85 {strides = array<i32>} : memref<36x256xf32, #tpu.memory_space<vmem>>, vector<4x256xf32>,
    %c16_i32_52 = arith.constant 16 : i32
    %87 = tpu.dynamic_rotate %81 by %c16_i32_52 dim 1 : vector<4x256xf32>, i32 -> vector<4x256xf32>
    %c1_53 = arith.constant 1 : index
    %c0_54 = arith.constant 0 : index
    %88 = vector.load %arg12[%c1_53, %c0_54] : memref<9x256xf32, #tpu.memory_space<vmem>>, vector<1x256xf32>
    %89 = vector.broadcast %88 : vector<1x256xf32> to vector<4x256xf32>
    %90 = arith.mulf %87, %89 : vector<4x256xf32>
    %c4_55 = arith.constant 4 : index
    %c0_56 = arith.constant 0 : index
    %91 = vector.load %arg17[%c4_55, %c0_56] : memref<36x256xf32, #tpu.memory_space<vmem>>, vector<4x256xf32>
    tpu.vector_store %arg17[%c4_55, %c0_56], %90 {strides = array<i32>} : memref<36x256xf32, #tpu.memory_space<vmem>>, vector<4x256xf32>,
    %c15_i32_57 = arith.constant 15 : i32
    %92 = tpu.dynamic_rotate %81 by %c15_i32_57 dim 1 : vector<4x256xf32>, i32 -> vector<4x256xf32>
    %c2_58 = arith.constant 2 : index
    %c0_59 = arith.constant 0 : index
    %93 = vector.load %arg12[%c2_58, %c0_59] : memref<9x256xf32, #tpu.memory_space<vmem>>, vector<1x256xf32>
    %94 = vector.broadcast %93 : vector<1x256xf32> to vector<4x256xf32>
    %95 = arith.mulf %92, %94 : vector<4x256xf32>
    %c8_60 = arith.constant 8 : index
    %c0_61 = arith.constant 0 : index
    %96 = vector.load %arg17[%c8_60, %c0_61] : memref<36x256xf32, #tpu.memory_space<vmem>>, vector<4x256xf32>
    tpu.vector_store %arg17[%c8_60, %c0_61], %95 {strides = array<i32>} : memref<36x256xf32, #tpu.memory_space<vmem>>, vector<4x256xf32>,
    %c1_i32_62 = arith.constant 1 : i32
    %97 = tpu.dynamic_rotate %81 by %c1_i32_62 dim 1 : vector<4x256xf32>, i32 -> vector<4x256xf32>
    %c3_63 = arith.constant 3 : index
    %c0_64 = arith.constant 0 : index
    %98 = vector.load %arg12[%c3_63, %c0_64] : memref<9x256xf32, #tpu.memory_space<vmem>>, vector<1x256xf32>
    %99 = vector.broadcast %98 : vector<1x256xf32> to vector<4x256xf32>
    %100 = arith.mulf %97, %99 : vector<4x256xf32>
    %c12_65 = arith.constant 12 : index
    %c0_66 = arith.constant 0 : index
    %101 = vector.load %arg17[%c12_65, %c0_66] : memref<36x256xf32, #tpu.memory_space<vmem>>, vector<4x256xf32>
    tpu.vector_store %arg17[%c12_65, %c0_66], %100 {strides = array<i32>} : memref<36x256xf32, #tpu.memory_space<vmem>>, vector<4x256xf32>,
    %c4_67 = arith.constant 4 : index
    %c0_68 = arith.constant 0 : index
    %102 = vector.load %arg12[%c4_67, %c0_68] : memref<9x256xf32, #tpu.memory_space<vmem>>, vector<1x256xf32>
    %103 = vector.broadcast %102 : vector<1x256xf32> to vector<4x256xf32>
    %104 = arith.mulf %81, %103 : vector<4x256xf32>
    %c16_69 = arith.constant 16 : index
    %c0_70 = arith.constant 0 : index
    %105 = vector.load %arg17[%c16_69, %c0_70] : memref<36x256xf32, #tpu.memory_space<vmem>>, vector<4x256xf32>
    tpu.vector_store %arg17[%c16_69, %c0_70], %104 {strides = array<i32>} : memref<36x256xf32, #tpu.memory_space<vmem>>, vector<4x256xf32>,
    %c255_i32_71 = arith.constant 255 : i32
    %106 = tpu.dynamic_rotate %81 by %c255_i32_71 dim 1 : vector<4x256xf32>, i32 -> vector<4x256xf32>
    %c5_72 = arith.constant 5 : index
    %c0_73 = arith.constant 0 : index
    %107 = vector.load %arg12[%c5_72, %c0_73] : memref<9x256xf32, #tpu.memory_space<vmem>>, vector<1x256xf32>
    %108 = vector.broadcast %107 : vector<1x256xf32> to vector<4x256xf32>
    %109 = arith.mulf %106, %108 : vector<4x256xf32>
    %c20_74 = arith.constant 20 : index
    %c0_75 = arith.constant 0 : index
    %110 = vector.load %arg17[%c20_74, %c0_75] : memref<36x256xf32, #tpu.memory_space<vmem>>, vector<4x256xf32>
    tpu.vector_store %arg17[%c20_74, %c0_75], %109 {strides = array<i32>} : memref<36x256xf32, #tpu.memory_space<vmem>>, vector<4x256xf32>,
    %c241_i32_76 = arith.constant 241 : i32
    %111 = tpu.dynamic_rotate %81 by %c241_i32_76 dim 1 : vector<4x256xf32>, i32 -> vector<4x256xf32>
    %c6_77 = arith.constant 6 : index
    %c0_78 = arith.constant 0 : index
    %112 = vector.load %arg12[%c6_77, %c0_78] : memref<9x256xf32, #tpu.memory_space<vmem>>, vector<1x256xf32>
    %113 = vector.broadcast %112 : vector<1x256xf32> to vector<4x256xf32>
    %114 = arith.mulf %111, %113 : vector<4x256xf32>
    %c24_79 = arith.constant 24 : index
    %c0_80 = arith.constant 0 : index
    %115 = vector.load %arg17[%c24_79, %c0_80] : memref<36x256xf32, #tpu.memory_space<vmem>>, vector<4x256xf32>
    tpu.vector_store %arg17[%c24_79, %c0_80], %114 {strides = array<i32>} : memref<36x256xf32, #tpu.memory_space<vmem>>, vector<4x256xf32>,
    %c240_i32_81 = arith.constant 240 : i32
    %116 = tpu.dynamic_rotate %81 by %c240_i32_81 dim 1 : vector<4x256xf32>, i32 -> vector<4x256xf32>
    %c7_82 = arith.constant 7 : index
    %c0_83 = arith.constant 0 : index
    %117 = vector.load %arg12[%c7_82, %c0_83] : memref<9x256xf32, #tpu.memory_space<vmem>>, vector<1x256xf32>
    %118 = vector.broadcast %117 : vector<1x256xf32> to vector<4x256xf32>
    %119 = arith.mulf %116, %118 : vector<4x256xf32>
    %c28_84 = arith.constant 28 : index
    %c0_85 = arith.constant 0 : index
    %120 = vector.load %arg17[%c28_84, %c0_85] : memref<36x256xf32, #tpu.memory_space<vmem>>, vector<4x256xf32>
    tpu.vector_store %arg17[%c28_84, %c0_85], %119 {strides = array<i32>} : memref<36x256xf32, #tpu.memory_space<vmem>>, vector<4x256xf32>,
    %c239_i32_86 = arith.constant 239 : i32
    %121 = tpu.dynamic_rotate %81 by %c239_i32_86 dim 1 : vector<4x256xf32>, i32 -> vector<4x256xf32>
    %c8_87 = arith.constant 8 : index
    %c0_88 = arith.constant 0 : index
    %122 = vector.load %arg12[%c8_87, %c0_88] : memref<9x256xf32, #tpu.memory_space<vmem>>, vector<1x256xf32>
    %123 = vector.broadcast %122 : vector<1x256xf32> to vector<4x256xf32>
    %124 = arith.mulf %121, %123 : vector<4x256xf32>
    %c32_89 = arith.constant 32 : index
    %c0_90 = arith.constant 0 : index
    %125 = vector.load %arg17[%c32_89, %c0_90] : memref<36x256xf32, #tpu.memory_space<vmem>>, vector<4x256xf32>
    tpu.vector_store %arg17[%c32_89, %c0_90], %124 {strides = array<i32>} : memref<36x256xf32, #tpu.memory_space<vmem>>, vector<4x256xf32>,
    %c0_91 = arith.constant 0 : index
    %c0_92 = arith.constant 0 : index
    %126 = vector.load %arg17[%c0_91, %c0_92] : memref<36x256xf32, #tpu.memory_space<vmem>>, vector<36x256xf32>
    %c1_93 = arith.constant 1 : index
    %c0_94 = arith.constant 0 : index
    %c0_95 = arith.constant 0 : index
    %127 = vector.load %arg6[%c1_93, %c0_94, %c0_95] : memref<9x4x36xf32, #tpu.memory_space<vmem>>, vector<1x4x36xf32>
    %128 = vector.shape_cast %127 : vector<1x4x36xf32> to vector<4x36xf32>
    %cst_96 = arith.constant dense<0.000000e+00> : vector<4x256xf32>
    %129 = tpu.matmul %128, %126, %cst_96 {dimension_numbers = #tpu.dot_dimension_numbers<[1], [0], [0], [1], [0, 0, 1, 1], [], []>} : vector<4x36xf32>, vector<36x256xf32>, vector<4x256xf32> -> vector<4x256xf32>
    %c1_97 = arith.constant 1 : index
    %c0_98 = arith.constant 0 : index
    %c0_99 = arith.constant 0 : index
    %130 = vector.load %arg7[%c1_97, %c0_98, %c0_99] : memref<9x4x1xf32, #tpu.memory_space<vmem>>, vector<1x4x1xf32>
    %131 = vector.shape_cast %130 : vector<1x4x1xf32> to vector<4x1xf32>
    %132 = vector.broadcast %131 : vector<4x1xf32> to vector<4x256xf32>
    %133 = arith.addf %129, %132 : vector<4x256xf32>
    %134 = arith.addf %133, %27 : vector<4x256xf32>
    %c17_i32_100 = arith.constant 17 : i32
    %135 = tpu.dynamic_rotate %134 by %c17_i32_100 dim 1 : vector<4x256xf32>, i32 -> vector<4x256xf32>
    %c0_101 = arith.constant 0 : index
    %c0_102 = arith.constant 0 : index
    %136 = vector.load %arg12[%c0_101, %c0_102] : memref<9x256xf32, #tpu.memory_space<vmem>>, vector<1x256xf32>
    %137 = vector.broadcast %136 : vector<1x256xf32> to vector<4x256xf32>
    %138 = arith.mulf %135, %137 : vector<4x256xf32>
    %c0_103 = arith.constant 0 : index
    %c0_104 = arith.constant 0 : index
    %139 = vector.load %arg17[%c0_103, %c0_104] : memref<36x256xf32, #tpu.memory_space<vmem>>, vector<4x256xf32>
    tpu.vector_store %arg17[%c0_103, %c0_104], %138 {strides = array<i32>} : memref<36x256xf32, #tpu.memory_space<vmem>>, vector<4x256xf32>,
    %c16_i32_105 = arith.constant 16 : i32
    %140 = tpu.dynamic_rotate %134 by %c16_i32_105 dim 1 : vector<4x256xf32>, i32 -> vector<4x256xf32>
    %c1_106 = arith.constant 1 : index
    %c0_107 = arith.constant 0 : index
    %141 = vector.load %arg12[%c1_106, %c0_107] : memref<9x256xf32, #tpu.memory_space<vmem>>, vector<1x256xf32>
    %142 = vector.broadcast %141 : vector<1x256xf32> to vector<4x256xf32>
    %143 = arith.mulf %140, %142 : vector<4x256xf32>
    %c4_108 = arith.constant 4 : index
    %c0_109 = arith.constant 0 : index
    %144 = vector.load %arg17[%c4_108, %c0_109] : memref<36x256xf32, #tpu.memory_space<vmem>>, vector<4x256xf32>
    tpu.vector_store %arg17[%c4_108, %c0_109], %143 {strides = array<i32>} : memref<36x256xf32, #tpu.memory_space<vmem>>, vector<4x256xf32>,
    %c15_i32_110 = arith.constant 15 : i32
    %145 = tpu.dynamic_rotate %134 by %c15_i32_110 dim 1 : vector<4x256xf32>, i32 -> vector<4x256xf32>
    %c2_111 = arith.constant 2 : index
    %c0_112 = arith.constant 0 : index
    %146 = vector.load %arg12[%c2_111, %c0_112] : memref<9x256xf32, #tpu.memory_space<vmem>>, vector<1x256xf32>
    %147 = vector.broadcast %146 : vector<1x256xf32> to vector<4x256xf32>
    %148 = arith.mulf %145, %147 : vector<4x256xf32>
    %c8_113 = arith.constant 8 : index
    %c0_114 = arith.constant 0 : index
    %149 = vector.load %arg17[%c8_113, %c0_114] : memref<36x256xf32, #tpu.memory_space<vmem>>, vector<4x256xf32>
    tpu.vector_store %arg17[%c8_113, %c0_114], %148 {strides = array<i32>} : memref<36x256xf32, #tpu.memory_space<vmem>>, vector<4x256xf32>,
    %c1_i32_115 = arith.constant 1 : i32
    %150 = tpu.dynamic_rotate %134 by %c1_i32_115 dim 1 : vector<4x256xf32>, i32 -> vector<4x256xf32>
    %c3_116 = arith.constant 3 : index
    %c0_117 = arith.constant 0 : index
    %151 = vector.load %arg12[%c3_116, %c0_117] : memref<9x256xf32, #tpu.memory_space<vmem>>, vector<1x256xf32>
    %152 = vector.broadcast %151 : vector<1x256xf32> to vector<4x256xf32>
    %153 = arith.mulf %150, %152 : vector<4x256xf32>
    %c12_118 = arith.constant 12 : index
    %c0_119 = arith.constant 0 : index
    %154 = vector.load %arg17[%c12_118, %c0_119] : memref<36x256xf32, #tpu.memory_space<vmem>>, vector<4x256xf32>
    tpu.vector_store %arg17[%c12_118, %c0_119], %153 {strides = array<i32>} : memref<36x256xf32, #tpu.memory_space<vmem>>, vector<4x256xf32>,
    %c4_120 = arith.constant 4 : index
    %c0_121 = arith.constant 0 : index
    %155 = vector.load %arg12[%c4_120, %c0_121] : memref<9x256xf32, #tpu.memory_space<vmem>>, vector<1x256xf32>
    %156 = vector.broadcast %155 : vector<1x256xf32> to vector<4x256xf32>
    %157 = arith.mulf %134, %156 : vector<4x256xf32>
    %c16_122 = arith.constant 16 : index
    %c0_123 = arith.constant 0 : index
    %158 = vector.load %arg17[%c16_122, %c0_123] : memref<36x256xf32, #tpu.memory_space<vmem>>, vector<4x256xf32>
    tpu.vector_store %arg17[%c16_122, %c0_123], %157 {strides = array<i32>} : memref<36x256xf32, #tpu.memory_space<vmem>>, vector<4x256xf32>,
    %c255_i32_124 = arith.constant 255 : i32
    %159 = tpu.dynamic_rotate %134 by %c255_i32_124 dim 1 : vector<4x256xf32>, i32 -> vector<4x256xf32>
    %c5_125 = arith.constant 5 : index
    %c0_126 = arith.constant 0 : index
    %160 = vector.load %arg12[%c5_125, %c0_126] : memref<9x256xf32, #tpu.memory_space<vmem>>, vector<1x256xf32>
    %161 = vector.broadcast %160 : vector<1x256xf32> to vector<4x256xf32>
    %162 = arith.mulf %159, %161 : vector<4x256xf32>
    %c20_127 = arith.constant 20 : index
    %c0_128 = arith.constant 0 : index
    %163 = vector.load %arg17[%c20_127, %c0_128] : memref<36x256xf32, #tpu.memory_space<vmem>>, vector<4x256xf32>
    tpu.vector_store %arg17[%c20_127, %c0_128], %162 {strides = array<i32>} : memref<36x256xf32, #tpu.memory_space<vmem>>, vector<4x256xf32>,
    %c241_i32_129 = arith.constant 241 : i32
    %164 = tpu.dynamic_rotate %134 by %c241_i32_129 dim 1 : vector<4x256xf32>, i32 -> vector<4x256xf32>
    %c6_130 = arith.constant 6 : index
    %c0_131 = arith.constant 0 : index
    %165 = vector.load %arg12[%c6_130, %c0_131] : memref<9x256xf32, #tpu.memory_space<vmem>>, vector<1x256xf32>
    %166 = vector.broadcast %165 : vector<1x256xf32> to vector<4x256xf32>
    %167 = arith.mulf %164, %166 : vector<4x256xf32>
    %c24_132 = arith.constant 24 : index
    %c0_133 = arith.constant 0 : index
    %168 = vector.load %arg17[%c24_132, %c0_133] : memref<36x256xf32, #tpu.memory_space<vmem>>, vector<4x256xf32>
    tpu.vector_store %arg17[%c24_132, %c0_133], %167 {strides = array<i32>} : memref<36x256xf32, #tpu.memory_space<vmem>>, vector<4x256xf32>,
    %c240_i32_134 = arith.constant 240 : i32
    %169 = tpu.dynamic_rotate %134 by %c240_i32_134 dim 1 : vector<4x256xf32>, i32 -> vector<4x256xf32>
    %c7_135 = arith.constant 7 : index
    %c0_136 = arith.constant 0 : index
    %170 = vector.load %arg12[%c7_135, %c0_136] : memref<9x256xf32, #tpu.memory_space<vmem>>, vector<1x256xf32>
    %171 = vector.broadcast %170 : vector<1x256xf32> to vector<4x256xf32>
    %172 = arith.mulf %169, %171 : vector<4x256xf32>
    %c28_137 = arith.constant 28 : index
    %c0_138 = arith.constant 0 : index
    %173 = vector.load %arg17[%c28_137, %c0_138] : memref<36x256xf32, #tpu.memory_space<vmem>>, vector<4x256xf32>
    tpu.vector_store %arg17[%c28_137, %c0_138], %172 {strides = array<i32>} : memref<36x256xf32, #tpu.memory_space<vmem>>, vector<4x256xf32>,
    %c239_i32_139 = arith.constant 239 : i32
    %174 = tpu.dynamic_rotate %134 by %c239_i32_139 dim 1 : vector<4x256xf32>, i32 -> vector<4x256xf32>
    %c8_140 = arith.constant 8 : index
    %c0_141 = arith.constant 0 : index
    %175 = vector.load %arg12[%c8_140, %c0_141] : memref<9x256xf32, #tpu.memory_space<vmem>>, vector<1x256xf32>
    %176 = vector.broadcast %175 : vector<1x256xf32> to vector<4x256xf32>
    %177 = arith.mulf %174, %176 : vector<4x256xf32>
    %c32_142 = arith.constant 32 : index
    %c0_143 = arith.constant 0 : index
    %178 = vector.load %arg17[%c32_142, %c0_143] : memref<36x256xf32, #tpu.memory_space<vmem>>, vector<4x256xf32>
    tpu.vector_store %arg17[%c32_142, %c0_143], %177 {strides = array<i32>} : memref<36x256xf32, #tpu.memory_space<vmem>>, vector<4x256xf32>,
    %c0_144 = arith.constant 0 : index
    %c0_145 = arith.constant 0 : index
    %179 = vector.load %arg17[%c0_144, %c0_145] : memref<36x256xf32, #tpu.memory_space<vmem>>, vector<36x256xf32>
    %c2_146 = arith.constant 2 : index
    %c0_147 = arith.constant 0 : index
    %c0_148 = arith.constant 0 : index
    %180 = vector.load %arg6[%c2_146, %c0_147, %c0_148] : memref<9x4x36xf32, #tpu.memory_space<vmem>>, vector<1x4x36xf32>
    %181 = vector.shape_cast %180 : vector<1x4x36xf32> to vector<4x36xf32>
    %cst_149 = arith.constant dense<0.000000e+00> : vector<4x256xf32>
    %182 = tpu.matmul %181, %179, %cst_149 {dimension_numbers = #tpu.dot_dimension_numbers<[1], [0], [0], [1], [0, 0, 1, 1], [], []>} : vector<4x36xf32>, vector<36x256xf32>, vector<4x256xf32> -> vector<4x256xf32>
    %c2_150 = arith.constant 2 : index
    %c0_151 = arith.constant 0 : index
    %c0_152 = arith.constant 0 : index
    %183 = vector.load %arg7[%c2_150, %c0_151, %c0_152] : memref<9x4x1xf32, #tpu.memory_space<vmem>>, vector<1x4x1xf32>
    %184 = vector.shape_cast %183 : vector<1x4x1xf32> to vector<4x1xf32>
    %185 = vector.broadcast %184 : vector<4x1xf32> to vector<4x256xf32>
    %186 = arith.addf %182, %185 : vector<4x256xf32>
    %c0_153 = arith.constant 0 : index
    %c0_154 = arith.constant 0 : index
    %187 = vector.load %arg15[%c0_153, %c0_154] : memref<1x256xf32, #tpu.memory_space<vmem>>, vector<1x256xf32>
    %188 = vector.broadcast %187 : vector<1x256xf32> to vector<4x256xf32>
    %189 = arith.mulf %186, %188 : vector<4x256xf32>
    %c34_i32 = arith.constant 34 : i32
    %190 = tpu.dynamic_rotate %189 by %c34_i32 dim 1 : vector<4x256xf32>, i32 -> vector<4x256xf32>
    %c0_155 = arith.constant 0 : index
    %c0_156 = arith.constant 0 : index
    %191 = vector.load %arg13[%c0_155, %c0_156] : memref<9x256xf32, #tpu.memory_space<vmem>>, vector<1x256xf32>
    %192 = vector.broadcast %191 : vector<1x256xf32> to vector<4x256xf32>
    %193 = arith.mulf %190, %192 : vector<4x256xf32>
    %c0_157 = arith.constant 0 : index
    %c0_158 = arith.constant 0 : index
    %194 = vector.load %arg17[%c0_157, %c0_158] : memref<36x256xf32, #tpu.memory_space<vmem>>, vector<4x256xf32>
    tpu.vector_store %arg17[%c0_157, %c0_158], %193 {strides = array<i32>} : memref<36x256xf32, #tpu.memory_space<vmem>>, vector<4x256xf32>,
    %c32_i32 = arith.constant 32 : i32
    %195 = tpu.dynamic_rotate %189 by %c32_i32 dim 1 : vector<4x256xf32>, i32 -> vector<4x256xf32>
    %c1_159 = arith.constant 1 : index
    %c0_160 = arith.constant 0 : index
    %196 = vector.load %arg13[%c1_159, %c0_160] : memref<9x256xf32, #tpu.memory_space<vmem>>, vector<1x256xf32>
    %197 = vector.broadcast %196 : vector<1x256xf32> to vector<4x256xf32>
    %198 = arith.mulf %195, %197 : vector<4x256xf32>
    %c4_161 = arith.constant 4 : index
    %c0_162 = arith.constant 0 : index
    %199 = vector.load %arg17[%c4_161, %c0_162] : memref<36x256xf32, #tpu.memory_space<vmem>>, vector<4x256xf32>
    tpu.vector_store %arg17[%c4_161, %c0_162], %198 {strides = array<i32>} : memref<36x256xf32, #tpu.memory_space<vmem>>, vector<4x256xf32>,
    %c30_i32 = arith.constant 30 : i32
    %200 = tpu.dynamic_rotate %189 by %c30_i32 dim 1 : vector<4x256xf32>, i32 -> vector<4x256xf32>
    %c2_163 = arith.constant 2 : index
    %c0_164 = arith.constant 0 : index
    %201 = vector.load %arg13[%c2_163, %c0_164] : memref<9x256xf32, #tpu.memory_space<vmem>>, vector<1x256xf32>
    %202 = vector.broadcast %201 : vector<1x256xf32> to vector<4x256xf32>
    %203 = arith.mulf %200, %202 : vector<4x256xf32>
    %c8_165 = arith.constant 8 : index
    %c0_166 = arith.constant 0 : index
    %204 = vector.load %arg17[%c8_165, %c0_166] : memref<36x256xf32, #tpu.memory_space<vmem>>, vector<4x256xf32>
    tpu.vector_store %arg17[%c8_165, %c0_166], %203 {strides = array<i32>} : memref<36x256xf32, #tpu.memory_space<vmem>>, vector<4x256xf32>,
    %c2_i32 = arith.constant 2 : i32
    %205 = tpu.dynamic_rotate %189 by %c2_i32 dim 1 : vector<4x256xf32>, i32 -> vector<4x256xf32>
    %c3_167 = arith.constant 3 : index
    %c0_168 = arith.constant 0 : index
    %206 = vector.load %arg13[%c3_167, %c0_168] : memref<9x256xf32, #tpu.memory_space<vmem>>, vector<1x256xf32>
    %207 = vector.broadcast %206 : vector<1x256xf32> to vector<4x256xf32>
    %208 = arith.mulf %205, %207 : vector<4x256xf32>
    %c12_169 = arith.constant 12 : index
    %c0_170 = arith.constant 0 : index
    %209 = vector.load %arg17[%c12_169, %c0_170] : memref<36x256xf32, #tpu.memory_space<vmem>>, vector<4x256xf32>
    tpu.vector_store %arg17[%c12_169, %c0_170], %208 {strides = array<i32>} : memref<36x256xf32, #tpu.memory_space<vmem>>, vector<4x256xf32>,
    %c4_171 = arith.constant 4 : index
    %c0_172 = arith.constant 0 : index
    %210 = vector.load %arg13[%c4_171, %c0_172] : memref<9x256xf32, #tpu.memory_space<vmem>>, vector<1x256xf32>
    %211 = vector.broadcast %210 : vector<1x256xf32> to vector<4x256xf32>
    %212 = arith.mulf %189, %211 : vector<4x256xf32>
    %c16_173 = arith.constant 16 : index
    %c0_174 = arith.constant 0 : index
    %213 = vector.load %arg17[%c16_173, %c0_174] : memref<36x256xf32, #tpu.memory_space<vmem>>, vector<4x256xf32>
    tpu.vector_store %arg17[%c16_173, %c0_174], %212 {strides = array<i32>} : memref<36x256xf32, #tpu.memory_space<vmem>>, vector<4x256xf32>,
    %c254_i32 = arith.constant 254 : i32
    %214 = tpu.dynamic_rotate %189 by %c254_i32 dim 1 : vector<4x256xf32>, i32 -> vector<4x256xf32>
    %c5_175 = arith.constant 5 : index
    %c0_176 = arith.constant 0 : index
    %215 = vector.load %arg13[%c5_175, %c0_176] : memref<9x256xf32, #tpu.memory_space<vmem>>, vector<1x256xf32>
    %216 = vector.broadcast %215 : vector<1x256xf32> to vector<4x256xf32>
    %217 = arith.mulf %214, %216 : vector<4x256xf32>
    %c20_177 = arith.constant 20 : index
    %c0_178 = arith.constant 0 : index
    %218 = vector.load %arg17[%c20_177, %c0_178] : memref<36x256xf32, #tpu.memory_space<vmem>>, vector<4x256xf32>
    tpu.vector_store %arg17[%c20_177, %c0_178], %217 {strides = array<i32>} : memref<36x256xf32, #tpu.memory_space<vmem>>, vector<4x256xf32>,
    %c226_i32 = arith.constant 226 : i32
    %219 = tpu.dynamic_rotate %189 by %c226_i32 dim 1 : vector<4x256xf32>, i32 -> vector<4x256xf32>
    %c6_179 = arith.constant 6 : index
    %c0_180 = arith.constant 0 : index
    %220 = vector.load %arg13[%c6_179, %c0_180] : memref<9x256xf32, #tpu.memory_space<vmem>>, vector<1x256xf32>
    %221 = vector.broadcast %220 : vector<1x256xf32> to vector<4x256xf32>
    %222 = arith.mulf %219, %221 : vector<4x256xf32>
    %c24_181 = arith.constant 24 : index
    %c0_182 = arith.constant 0 : index
    %223 = vector.load %arg17[%c24_181, %c0_182] : memref<36x256xf32, #tpu.memory_space<vmem>>, vector<4x256xf32>
    tpu.vector_store %arg17[%c24_181, %c0_182], %222 {strides = array<i32>} : memref<36x256xf32, #tpu.memory_space<vmem>>, vector<4x256xf32>,
    %c224_i32 = arith.constant 224 : i32
    %224 = tpu.dynamic_rotate %189 by %c224_i32 dim 1 : vector<4x256xf32>, i32 -> vector<4x256xf32>
    %c7_183 = arith.constant 7 : index
    %c0_184 = arith.constant 0 : index
    %225 = vector.load %arg13[%c7_183, %c0_184] : memref<9x256xf32, #tpu.memory_space<vmem>>, vector<1x256xf32>
    %226 = vector.broadcast %225 : vector<1x256xf32> to vector<4x256xf32>
    %227 = arith.mulf %224, %226 : vector<4x256xf32>
    %c28_185 = arith.constant 28 : index
    %c0_186 = arith.constant 0 : index
    %228 = vector.load %arg17[%c28_185, %c0_186] : memref<36x256xf32, #tpu.memory_space<vmem>>, vector<4x256xf32>
    tpu.vector_store %arg17[%c28_185, %c0_186], %227 {strides = array<i32>} : memref<36x256xf32, #tpu.memory_space<vmem>>, vector<4x256xf32>,
    %c222_i32 = arith.constant 222 : i32
    %229 = tpu.dynamic_rotate %189 by %c222_i32 dim 1 : vector<4x256xf32>, i32 -> vector<4x256xf32>
    %c8_187 = arith.constant 8 : index
    %c0_188 = arith.constant 0 : index
    %230 = vector.load %arg13[%c8_187, %c0_188] : memref<9x256xf32, #tpu.memory_space<vmem>>, vector<1x256xf32>
    %231 = vector.broadcast %230 : vector<1x256xf32> to vector<4x256xf32>
    %232 = arith.mulf %229, %231 : vector<4x256xf32>
    %c32_189 = arith.constant 32 : index
    %c0_190 = arith.constant 0 : index
    %233 = vector.load %arg17[%c32_189, %c0_190] : memref<36x256xf32, #tpu.memory_space<vmem>>, vector<4x256xf32>
    tpu.vector_store %arg17[%c32_189, %c0_190], %232 {strides = array<i32>} : memref<36x256xf32, #tpu.memory_space<vmem>>, vector<4x256xf32>,
    %c0_191 = arith.constant 0 : index
    %c0_192 = arith.constant 0 : index
    %234 = vector.load %arg17[%c0_191, %c0_192] : memref<36x256xf32, #tpu.memory_space<vmem>>, vector<36x256xf32>
    %c3_193 = arith.constant 3 : index
    %c0_194 = arith.constant 0 : index
    %c0_195 = arith.constant 0 : index
    %235 = vector.load %arg6[%c3_193, %c0_194, %c0_195] : memref<9x4x36xf32, #tpu.memory_space<vmem>>, vector<1x4x36xf32>
    %236 = vector.shape_cast %235 : vector<1x4x36xf32> to vector<4x36xf32>
    %cst_196 = arith.constant dense<0.000000e+00> : vector<4x256xf32>
    %237 = tpu.matmul %236, %234, %cst_196 {dimension_numbers = #tpu.dot_dimension_numbers<[1], [0], [0], [1], [0, 0, 1, 1], [], []>} : vector<4x36xf32>, vector<36x256xf32>, vector<4x256xf32> -> vector<4x256xf32>
    %c3_197 = arith.constant 3 : index
    %c0_198 = arith.constant 0 : index
    %c0_199 = arith.constant 0 : index
    %238 = vector.load %arg7[%c3_197, %c0_198, %c0_199] : memref<9x4x1xf32, #tpu.memory_space<vmem>>, vector<1x4x1xf32>
    %239 = vector.shape_cast %238 : vector<1x4x1xf32> to vector<4x1xf32>
    %240 = vector.broadcast %239 : vector<4x1xf32> to vector<4x256xf32>
    %241 = arith.addf %237, %240 : vector<4x256xf32>
    %cst_200 = arith.constant 0.000000e+00 : f32
    %242 = vector.broadcast %cst_200 : f32 to vector<4x256xf32>
    %243 = arith.maximumf %241, %242 : vector<4x256xf32>
    %c34_i32_201 = arith.constant 34 : i32
    %244 = tpu.dynamic_rotate %243 by %c34_i32_201 dim 1 : vector<4x256xf32>, i32 -> vector<4x256xf32>
    %c0_202 = arith.constant 0 : index
    %c0_203 = arith.constant 0 : index
    %245 = vector.load %arg13[%c0_202, %c0_203] : memref<9x256xf32, #tpu.memory_space<vmem>>, vector<1x256xf32>
    %246 = vector.broadcast %245 : vector<1x256xf32> to vector<4x256xf32>
    %247 = arith.mulf %244, %246 : vector<4x256xf32>
    %c0_204 = arith.constant 0 : index
    %c0_205 = arith.constant 0 : index
    %248 = vector.load %arg17[%c0_204, %c0_205] : memref<36x256xf32, #tpu.memory_space<vmem>>, vector<4x256xf32>
    tpu.vector_store %arg17[%c0_204, %c0_205], %247 {strides = array<i32>} : memref<36x256xf32, #tpu.memory_space<vmem>>, vector<4x256xf32>,
    %c32_i32_206 = arith.constant 32 : i32
    %249 = tpu.dynamic_rotate %243 by %c32_i32_206 dim 1 : vector<4x256xf32>, i32 -> vector<4x256xf32>
    %c1_207 = arith.constant 1 : index
    %c0_208 = arith.constant 0 : index
    %250 = vector.load %arg13[%c1_207, %c0_208] : memref<9x256xf32, #tpu.memory_space<vmem>>, vector<1x256xf32>
    %251 = vector.broadcast %250 : vector<1x256xf32> to vector<4x256xf32>
    %252 = arith.mulf %249, %251 : vector<4x256xf32>
    %c4_209 = arith.constant 4 : index
    %c0_210 = arith.constant 0 : index
    %253 = vector.load %arg17[%c4_209, %c0_210] : memref<36x256xf32, #tpu.memory_space<vmem>>, vector<4x256xf32>
    tpu.vector_store %arg17[%c4_209, %c0_210], %252 {strides = array<i32>} : memref<36x256xf32, #tpu.memory_space<vmem>>, vector<4x256xf32>,
    %c30_i32_211 = arith.constant 30 : i32
    %254 = tpu.dynamic_rotate %243 by %c30_i32_211 dim 1 : vector<4x256xf32>, i32 -> vector<4x256xf32>
    %c2_212 = arith.constant 2 : index
    %c0_213 = arith.constant 0 : index
    %255 = vector.load %arg13[%c2_212, %c0_213] : memref<9x256xf32, #tpu.memory_space<vmem>>, vector<1x256xf32>
    %256 = vector.broadcast %255 : vector<1x256xf32> to vector<4x256xf32>
    %257 = arith.mulf %254, %256 : vector<4x256xf32>
    %c8_214 = arith.constant 8 : index
    %c0_215 = arith.constant 0 : index
    %258 = vector.load %arg17[%c8_214, %c0_215] : memref<36x256xf32, #tpu.memory_space<vmem>>, vector<4x256xf32>
    tpu.vector_store %arg17[%c8_214, %c0_215], %257 {strides = array<i32>} : memref<36x256xf32, #tpu.memory_space<vmem>>, vector<4x256xf32>,
    %c2_i32_216 = arith.constant 2 : i32
    %259 = tpu.dynamic_rotate %243 by %c2_i32_216 dim 1 : vector<4x256xf32>, i32 -> vector<4x256xf32>
    %c3_217 = arith.constant 3 : index
    %c0_218 = arith.constant 0 : index
    %260 = vector.load %arg13[%c3_217, %c0_218] : memref<9x256xf32, #tpu.memory_space<vmem>>, vector<1x256xf32>
    %261 = vector.broadcast %260 : vector<1x256xf32> to vector<4x256xf32>
    %262 = arith.mulf %259, %261 : vector<4x256xf32>
    %c12_219 = arith.constant 12 : index
    %c0_220 = arith.constant 0 : index
    %263 = vector.load %arg17[%c12_219, %c0_220] : memref<36x256xf32, #tpu.memory_space<vmem>>, vector<4x256xf32>
    tpu.vector_store %arg17[%c12_219, %c0_220], %262 {strides = array<i32>} : memref<36x256xf32, #tpu.memory_space<vmem>>, vector<4x256xf32>,
    %c4_221 = arith.constant 4 : index
    %c0_222 = arith.constant 0 : index
    %264 = vector.load %arg13[%c4_221, %c0_222] : memref<9x256xf32, #tpu.memory_space<vmem>>, vector<1x256xf32>
    %265 = vector.broadcast %264 : vector<1x256xf32> to vector<4x256xf32>
    %266 = arith.mulf %243, %265 : vector<4x256xf32>
    %c16_223 = arith.constant 16 : index
    %c0_224 = arith.constant 0 : index
    %267 = vector.load %arg17[%c16_223, %c0_224] : memref<36x256xf32, #tpu.memory_space<vmem>>, vector<4x256xf32>
    tpu.vector_store %arg17[%c16_223, %c0_224], %266 {strides = array<i32>} : memref<36x256xf32, #tpu.memory_space<vmem>>, vector<4x256xf32>,
    %c254_i32_225 = arith.constant 254 : i32
    %268 = tpu.dynamic_rotate %243 by %c254_i32_225 dim 1 : vector<4x256xf32>, i32 -> vector<4x256xf32>
    %c5_226 = arith.constant 5 : index
    %c0_227 = arith.constant 0 : index
    %269 = vector.load %arg13[%c5_226, %c0_227] : memref<9x256xf32, #tpu.memory_space<vmem>>, vector<1x256xf32>
    %270 = vector.broadcast %269 : vector<1x256xf32> to vector<4x256xf32>
    %271 = arith.mulf %268, %270 : vector<4x256xf32>
    %c20_228 = arith.constant 20 : index
    %c0_229 = arith.constant 0 : index
    %272 = vector.load %arg17[%c20_228, %c0_229] : memref<36x256xf32, #tpu.memory_space<vmem>>, vector<4x256xf32>
    tpu.vector_store %arg17[%c20_228, %c0_229], %271 {strides = array<i32>} : memref<36x256xf32, #tpu.memory_space<vmem>>, vector<4x256xf32>,
    %c226_i32_230 = arith.constant 226 : i32
    %273 = tpu.dynamic_rotate %243 by %c226_i32_230 dim 1 : vector<4x256xf32>, i32 -> vector<4x256xf32>
    %c6_231 = arith.constant 6 : index
    %c0_232 = arith.constant 0 : index
    %274 = vector.load %arg13[%c6_231, %c0_232] : memref<9x256xf32, #tpu.memory_space<vmem>>, vector<1x256xf32>
    %275 = vector.broadcast %274 : vector<1x256xf32> to vector<4x256xf32>
    %276 = arith.mulf %273, %275 : vector<4x256xf32>
    %c24_233 = arith.constant 24 : index
    %c0_234 = arith.constant 0 : index
    %277 = vector.load %arg17[%c24_233, %c0_234] : memref<36x256xf32, #tpu.memory_space<vmem>>, vector<4x256xf32>
    tpu.vector_store %arg17[%c24_233, %c0_234], %276 {strides = array<i32>} : memref<36x256xf32, #tpu.memory_space<vmem>>, vector<4x256xf32>,
    %c224_i32_235 = arith.constant 224 : i32
    %278 = tpu.dynamic_rotate %243 by %c224_i32_235 dim 1 : vector<4x256xf32>, i32 -> vector<4x256xf32>
    %c7_236 = arith.constant 7 : index
    %c0_237 = arith.constant 0 : index
    %279 = vector.load %arg13[%c7_236, %c0_237] : memref<9x256xf32, #tpu.memory_space<vmem>>, vector<1x256xf32>
    %280 = vector.broadcast %279 : vector<1x256xf32> to vector<4x256xf32>
    %281 = arith.mulf %278, %280 : vector<4x256xf32>
    %c28_238 = arith.constant 28 : index
    %c0_239 = arith.constant 0 : index
    %282 = vector.load %arg17[%c28_238, %c0_239] : memref<36x256xf32, #tpu.memory_space<vmem>>, vector<4x256xf32>
    tpu.vector_store %arg17[%c28_238, %c0_239], %281 {strides = array<i32>} : memref<36x256xf32, #tpu.memory_space<vmem>>, vector<4x256xf32>,
    %c222_i32_240 = arith.constant 222 : i32
    %283 = tpu.dynamic_rotate %243 by %c222_i32_240 dim 1 : vector<4x256xf32>, i32 -> vector<4x256xf32>
    %c8_241 = arith.constant 8 : index
    %c0_242 = arith.constant 0 : index
    %284 = vector.load %arg13[%c8_241, %c0_242] : memref<9x256xf32, #tpu.memory_space<vmem>>, vector<1x256xf32>
    %285 = vector.broadcast %284 : vector<1x256xf32> to vector<4x256xf32>
    %286 = arith.mulf %283, %285 : vector<4x256xf32>
    %c32_243 = arith.constant 32 : index
    %c0_244 = arith.constant 0 : index
    %287 = vector.load %arg17[%c32_243, %c0_244] : memref<36x256xf32, #tpu.memory_space<vmem>>, vector<4x256xf32>
    tpu.vector_store %arg17[%c32_243, %c0_244], %286 {strides = array<i32>} : memref<36x256xf32, #tpu.memory_space<vmem>>, vector<4x256xf32>,
    %c0_245 = arith.constant 0 : index
    %c0_246 = arith.constant 0 : index
    %288 = vector.load %arg17[%c0_245, %c0_246] : memref<36x256xf32, #tpu.memory_space<vmem>>, vector<36x256xf32>
    %c4_247 = arith.constant 4 : index
    %c0_248 = arith.constant 0 : index
    %c0_249 = arith.constant 0 : index
    %289 = vector.load %arg6[%c4_247, %c0_248, %c0_249] : memref<9x4x36xf32, #tpu.memory_space<vmem>>, vector<1x4x36xf32>
    %290 = vector.shape_cast %289 : vector<1x4x36xf32> to vector<4x36xf32>
    %cst_250 = arith.constant dense<0.000000e+00> : vector<4x256xf32>
    %291 = tpu.matmul %290, %288, %cst_250 {dimension_numbers = #tpu.dot_dimension_numbers<[1], [0], [0], [1], [0, 0, 1, 1], [], []>} : vector<4x36xf32>, vector<36x256xf32>, vector<4x256xf32> -> vector<4x256xf32>
    %c4_251 = arith.constant 4 : index
    %c0_252 = arith.constant 0 : index
    %c0_253 = arith.constant 0 : index
    %292 = vector.load %arg7[%c4_251, %c0_252, %c0_253] : memref<9x4x1xf32, #tpu.memory_space<vmem>>, vector<1x4x1xf32>
    %293 = vector.shape_cast %292 : vector<1x4x1xf32> to vector<4x1xf32>
    %294 = vector.broadcast %293 : vector<4x1xf32> to vector<4x256xf32>
    %295 = arith.addf %291, %294 : vector<4x256xf32>
    %296 = arith.addf %295, %189 : vector<4x256xf32>
    %c34_i32_254 = arith.constant 34 : i32
    %297 = tpu.dynamic_rotate %296 by %c34_i32_254 dim 1 : vector<4x256xf32>, i32 -> vector<4x256xf32>
    %c0_255 = arith.constant 0 : index
    %c0_256 = arith.constant 0 : index
    %298 = vector.load %arg13[%c0_255, %c0_256] : memref<9x256xf32, #tpu.memory_space<vmem>>, vector<1x256xf32>
    %299 = vector.broadcast %298 : vector<1x256xf32> to vector<4x256xf32>
    %300 = arith.mulf %297, %299 : vector<4x256xf32>
    %c0_257 = arith.constant 0 : index
    %c0_258 = arith.constant 0 : index
    %301 = vector.load %arg17[%c0_257, %c0_258] : memref<36x256xf32, #tpu.memory_space<vmem>>, vector<4x256xf32>
    tpu.vector_store %arg17[%c0_257, %c0_258], %300 {strides = array<i32>} : memref<36x256xf32, #tpu.memory_space<vmem>>, vector<4x256xf32>,
    %c32_i32_259 = arith.constant 32 : i32
    %302 = tpu.dynamic_rotate %296 by %c32_i32_259 dim 1 : vector<4x256xf32>, i32 -> vector<4x256xf32>
    %c1_260 = arith.constant 1 : index
    %c0_261 = arith.constant 0 : index
    %303 = vector.load %arg13[%c1_260, %c0_261] : memref<9x256xf32, #tpu.memory_space<vmem>>, vector<1x256xf32>
    %304 = vector.broadcast %303 : vector<1x256xf32> to vector<4x256xf32>
    %305 = arith.mulf %302, %304 : vector<4x256xf32>
    %c4_262 = arith.constant 4 : index
    %c0_263 = arith.constant 0 : index
    %306 = vector.load %arg17[%c4_262, %c0_263] : memref<36x256xf32, #tpu.memory_space<vmem>>, vector<4x256xf32>
    tpu.vector_store %arg17[%c4_262, %c0_263], %305 {strides = array<i32>} : memref<36x256xf32, #tpu.memory_space<vmem>>, vector<4x256xf32>,
    %c30_i32_264 = arith.constant 30 : i32
    %307 = tpu.dynamic_rotate %296 by %c30_i32_264 dim 1 : vector<4x256xf32>, i32 -> vector<4x256xf32>
    %c2_265 = arith.constant 2 : index
    %c0_266 = arith.constant 0 : index
    %308 = vector.load %arg13[%c2_265, %c0_266] : memref<9x256xf32, #tpu.memory_space<vmem>>, vector<1x256xf32>
    %309 = vector.broadcast %308 : vector<1x256xf32> to vector<4x256xf32>
    %310 = arith.mulf %307, %309 : vector<4x256xf32>
    %c8_267 = arith.constant 8 : index
    %c0_268 = arith.constant 0 : index
    %311 = vector.load %arg17[%c8_267, %c0_268] : memref<36x256xf32, #tpu.memory_space<vmem>>, vector<4x256xf32>
    tpu.vector_store %arg17[%c8_267, %c0_268], %310 {strides = array<i32>} : memref<36x256xf32, #tpu.memory_space<vmem>>, vector<4x256xf32>,
    %c2_i32_269 = arith.constant 2 : i32
    %312 = tpu.dynamic_rotate %296 by %c2_i32_269 dim 1 : vector<4x256xf32>, i32 -> vector<4x256xf32>
    %c3_270 = arith.constant 3 : index
    %c0_271 = arith.constant 0 : index
    %313 = vector.load %arg13[%c3_270, %c0_271] : memref<9x256xf32, #tpu.memory_space<vmem>>, vector<1x256xf32>
    %314 = vector.broadcast %313 : vector<1x256xf32> to vector<4x256xf32>
    %315 = arith.mulf %312, %314 : vector<4x256xf32>
    %c12_272 = arith.constant 12 : index
    %c0_273 = arith.constant 0 : index
    %316 = vector.load %arg17[%c12_272, %c0_273] : memref<36x256xf32, #tpu.memory_space<vmem>>, vector<4x256xf32>
    tpu.vector_store %arg17[%c12_272, %c0_273], %315 {strides = array<i32>} : memref<36x256xf32, #tpu.memory_space<vmem>>, vector<4x256xf32>,
    %c4_274 = arith.constant 4 : index
    %c0_275 = arith.constant 0 : index
    %317 = vector.load %arg13[%c4_274, %c0_275] : memref<9x256xf32, #tpu.memory_space<vmem>>, vector<1x256xf32>
    %318 = vector.broadcast %317 : vector<1x256xf32> to vector<4x256xf32>
    %319 = arith.mulf %296, %318 : vector<4x256xf32>
    %c16_276 = arith.constant 16 : index
    %c0_277 = arith.constant 0 : index
    %320 = vector.load %arg17[%c16_276, %c0_277] : memref<36x256xf32, #tpu.memory_space<vmem>>, vector<4x256xf32>
    tpu.vector_store %arg17[%c16_276, %c0_277], %319 {strides = array<i32>} : memref<36x256xf32, #tpu.memory_space<vmem>>, vector<4x256xf32>,
    %c254_i32_278 = arith.constant 254 : i32
    %321 = tpu.dynamic_rotate %296 by %c254_i32_278 dim 1 : vector<4x256xf32>, i32 -> vector<4x256xf32>
    %c5_279 = arith.constant 5 : index
    %c0_280 = arith.constant 0 : index
    %322 = vector.load %arg13[%c5_279, %c0_280] : memref<9x256xf32, #tpu.memory_space<vmem>>, vector<1x256xf32>
    %323 = vector.broadcast %322 : vector<1x256xf32> to vector<4x256xf32>
    %324 = arith.mulf %321, %323 : vector<4x256xf32>
    %c20_281 = arith.constant 20 : index
    %c0_282 = arith.constant 0 : index
    %325 = vector.load %arg17[%c20_281, %c0_282] : memref<36x256xf32, #tpu.memory_space<vmem>>, vector<4x256xf32>
    tpu.vector_store %arg17[%c20_281, %c0_282], %324 {strides = array<i32>} : memref<36x256xf32, #tpu.memory_space<vmem>>, vector<4x256xf32>,
    %c226_i32_283 = arith.constant 226 : i32
    %326 = tpu.dynamic_rotate %296 by %c226_i32_283 dim 1 : vector<4x256xf32>, i32 -> vector<4x256xf32>
    %c6_284 = arith.constant 6 : index
    %c0_285 = arith.constant 0 : index
    %327 = vector.load %arg13[%c6_284, %c0_285] : memref<9x256xf32, #tpu.memory_space<vmem>>, vector<1x256xf32>
    %328 = vector.broadcast %327 : vector<1x256xf32> to vector<4x256xf32>
    %329 = arith.mulf %326, %328 : vector<4x256xf32>
    %c24_286 = arith.constant 24 : index
    %c0_287 = arith.constant 0 : index
    %330 = vector.load %arg17[%c24_286, %c0_287] : memref<36x256xf32, #tpu.memory_space<vmem>>, vector<4x256xf32>
    tpu.vector_store %arg17[%c24_286, %c0_287], %329 {strides = array<i32>} : memref<36x256xf32, #tpu.memory_space<vmem>>, vector<4x256xf32>,
    %c224_i32_288 = arith.constant 224 : i32
    %331 = tpu.dynamic_rotate %296 by %c224_i32_288 dim 1 : vector<4x256xf32>, i32 -> vector<4x256xf32>
    %c7_289 = arith.constant 7 : index
    %c0_290 = arith.constant 0 : index
    %332 = vector.load %arg13[%c7_289, %c0_290] : memref<9x256xf32, #tpu.memory_space<vmem>>, vector<1x256xf32>
    %333 = vector.broadcast %332 : vector<1x256xf32> to vector<4x256xf32>
    %334 = arith.mulf %331, %333 : vector<4x256xf32>
    %c28_291 = arith.constant 28 : index
    %c0_292 = arith.constant 0 : index
    %335 = vector.load %arg17[%c28_291, %c0_292] : memref<36x256xf32, #tpu.memory_space<vmem>>, vector<4x256xf32>
    tpu.vector_store %arg17[%c28_291, %c0_292], %334 {strides = array<i32>} : memref<36x256xf32, #tpu.memory_space<vmem>>, vector<4x256xf32>,
    %c222_i32_293 = arith.constant 222 : i32
    %336 = tpu.dynamic_rotate %296 by %c222_i32_293 dim 1 : vector<4x256xf32>, i32 -> vector<4x256xf32>
    %c8_294 = arith.constant 8 : index
    %c0_295 = arith.constant 0 : index
    %337 = vector.load %arg13[%c8_294, %c0_295] : memref<9x256xf32, #tpu.memory_space<vmem>>, vector<1x256xf32>
    %338 = vector.broadcast %337 : vector<1x256xf32> to vector<4x256xf32>
    %339 = arith.mulf %336, %338 : vector<4x256xf32>
    %c32_296 = arith.constant 32 : index
    %c0_297 = arith.constant 0 : index
    %340 = vector.load %arg17[%c32_296, %c0_297] : memref<36x256xf32, #tpu.memory_space<vmem>>, vector<4x256xf32>
    tpu.vector_store %arg17[%c32_296, %c0_297], %339 {strides = array<i32>} : memref<36x256xf32, #tpu.memory_space<vmem>>, vector<4x256xf32>,
    %c0_298 = arith.constant 0 : index
    %c0_299 = arith.constant 0 : index
    %341 = vector.load %arg17[%c0_298, %c0_299] : memref<36x256xf32, #tpu.memory_space<vmem>>, vector<36x256xf32>
    %c5_300 = arith.constant 5 : index
    %c0_301 = arith.constant 0 : index
    %c0_302 = arith.constant 0 : index
    %342 = vector.load %arg6[%c5_300, %c0_301, %c0_302] : memref<9x4x36xf32, #tpu.memory_space<vmem>>, vector<1x4x36xf32>
    %343 = vector.shape_cast %342 : vector<1x4x36xf32> to vector<4x36xf32>
    %cst_303 = arith.constant dense<0.000000e+00> : vector<4x256xf32>
    %344 = tpu.matmul %343, %341, %cst_303 {dimension_numbers = #tpu.dot_dimension_numbers<[1], [0], [0], [1], [0, 0, 1, 1], [], []>} : vector<4x36xf32>, vector<36x256xf32>, vector<4x256xf32> -> vector<4x256xf32>
    %c5_304 = arith.constant 5 : index
    %c0_305 = arith.constant 0 : index
    %c0_306 = arith.constant 0 : index
    %345 = vector.load %arg7[%c5_304, %c0_305, %c0_306] : memref<9x4x1xf32, #tpu.memory_space<vmem>>, vector<1x4x1xf32>
    %346 = vector.shape_cast %345 : vector<1x4x1xf32> to vector<4x1xf32>
    %347 = vector.broadcast %346 : vector<4x1xf32> to vector<4x256xf32>
    %348 = arith.addf %344, %347 : vector<4x256xf32>
    %cst_307 = arith.constant 0.000000e+00 : f32
    %349 = vector.broadcast %cst_307 : f32 to vector<4x256xf32>
    %350 = arith.maximumf %348, %349 : vector<4x256xf32>
    %c34_i32_308 = arith.constant 34 : i32
    %351 = tpu.dynamic_rotate %350 by %c34_i32_308 dim 1 : vector<4x256xf32>, i32 -> vector<4x256xf32>
    %c0_309 = arith.constant 0 : index
    %c0_310 = arith.constant 0 : index
    %352 = vector.load %arg13[%c0_309, %c0_310] : memref<9x256xf32, #tpu.memory_space<vmem>>, vector<1x256xf32>
    %353 = vector.broadcast %352 : vector<1x256xf32> to vector<4x256xf32>
    %354 = arith.mulf %351, %353 : vector<4x256xf32>
    %c0_311 = arith.constant 0 : index
    %c0_312 = arith.constant 0 : index
    %355 = vector.load %arg17[%c0_311, %c0_312] : memref<36x256xf32, #tpu.memory_space<vmem>>, vector<4x256xf32>
    tpu.vector_store %arg17[%c0_311, %c0_312], %354 {strides = array<i32>} : memref<36x256xf32, #tpu.memory_space<vmem>>, vector<4x256xf32>,
    %c32_i32_313 = arith.constant 32 : i32
    %356 = tpu.dynamic_rotate %350 by %c32_i32_313 dim 1 : vector<4x256xf32>, i32 -> vector<4x256xf32>
    %c1_314 = arith.constant 1 : index
    %c0_315 = arith.constant 0 : index
    %357 = vector.load %arg13[%c1_314, %c0_315] : memref<9x256xf32, #tpu.memory_space<vmem>>, vector<1x256xf32>
    %358 = vector.broadcast %357 : vector<1x256xf32> to vector<4x256xf32>
    %359 = arith.mulf %356, %358 : vector<4x256xf32>
    %c4_316 = arith.constant 4 : index
    %c0_317 = arith.constant 0 : index
    %360 = vector.load %arg17[%c4_316, %c0_317] : memref<36x256xf32, #tpu.memory_space<vmem>>, vector<4x256xf32>
    tpu.vector_store %arg17[%c4_316, %c0_317], %359 {strides = array<i32>} : memref<36x256xf32, #tpu.memory_space<vmem>>, vector<4x256xf32>,
    %c30_i32_318 = arith.constant 30 : i32
    %361 = tpu.dynamic_rotate %350 by %c30_i32_318 dim 1 : vector<4x256xf32>, i32 -> vector<4x256xf32>
    %c2_319 = arith.constant 2 : index
    %c0_320 = arith.constant 0 : index
    %362 = vector.load %arg13[%c2_319, %c0_320] : memref<9x256xf32, #tpu.memory_space<vmem>>, vector<1x256xf32>
    %363 = vector.broadcast %362 : vector<1x256xf32> to vector<4x256xf32>
    %364 = arith.mulf %361, %363 : vector<4x256xf32>
    %c8_321 = arith.constant 8 : index
    %c0_322 = arith.constant 0 : index
    %365 = vector.load %arg17[%c8_321, %c0_322] : memref<36x256xf32, #tpu.memory_space<vmem>>, vector<4x256xf32>
    tpu.vector_store %arg17[%c8_321, %c0_322], %364 {strides = array<i32>} : memref<36x256xf32, #tpu.memory_space<vmem>>, vector<4x256xf32>,
    %c2_i32_323 = arith.constant 2 : i32
    %366 = tpu.dynamic_rotate %350 by %c2_i32_323 dim 1 : vector<4x256xf32>, i32 -> vector<4x256xf32>
    %c3_324 = arith.constant 3 : index
    %c0_325 = arith.constant 0 : index
    %367 = vector.load %arg13[%c3_324, %c0_325] : memref<9x256xf32, #tpu.memory_space<vmem>>, vector<1x256xf32>
    %368 = vector.broadcast %367 : vector<1x256xf32> to vector<4x256xf32>
    %369 = arith.mulf %366, %368 : vector<4x256xf32>
    %c12_326 = arith.constant 12 : index
    %c0_327 = arith.constant 0 : index
    %370 = vector.load %arg17[%c12_326, %c0_327] : memref<36x256xf32, #tpu.memory_space<vmem>>, vector<4x256xf32>
    tpu.vector_store %arg17[%c12_326, %c0_327], %369 {strides = array<i32>} : memref<36x256xf32, #tpu.memory_space<vmem>>, vector<4x256xf32>,
    %c4_328 = arith.constant 4 : index
    %c0_329 = arith.constant 0 : index
    %371 = vector.load %arg13[%c4_328, %c0_329] : memref<9x256xf32, #tpu.memory_space<vmem>>, vector<1x256xf32>
    %372 = vector.broadcast %371 : vector<1x256xf32> to vector<4x256xf32>
    %373 = arith.mulf %350, %372 : vector<4x256xf32>
    %c16_330 = arith.constant 16 : index
    %c0_331 = arith.constant 0 : index
    %374 = vector.load %arg17[%c16_330, %c0_331] : memref<36x256xf32, #tpu.memory_space<vmem>>, vector<4x256xf32>
    tpu.vector_store %arg17[%c16_330, %c0_331], %373 {strides = array<i32>} : memref<36x256xf32, #tpu.memory_space<vmem>>, vector<4x256xf32>,
    %c254_i32_332 = arith.constant 254 : i32
    %375 = tpu.dynamic_rotate %350 by %c254_i32_332 dim 1 : vector<4x256xf32>, i32 -> vector<4x256xf32>
    %c5_333 = arith.constant 5 : index
    %c0_334 = arith.constant 0 : index
    %376 = vector.load %arg13[%c5_333, %c0_334] : memref<9x256xf32, #tpu.memory_space<vmem>>, vector<1x256xf32>
    %377 = vector.broadcast %376 : vector<1x256xf32> to vector<4x256xf32>
    %378 = arith.mulf %375, %377 : vector<4x256xf32>
    %c20_335 = arith.constant 20 : index
    %c0_336 = arith.constant 0 : index
    %379 = vector.load %arg17[%c20_335, %c0_336] : memref<36x256xf32, #tpu.memory_space<vmem>>, vector<4x256xf32>
    tpu.vector_store %arg17[%c20_335, %c0_336], %378 {strides = array<i32>} : memref<36x256xf32, #tpu.memory_space<vmem>>, vector<4x256xf32>,
    %c226_i32_337 = arith.constant 226 : i32
    %380 = tpu.dynamic_rotate %350 by %c226_i32_337 dim 1 : vector<4x256xf32>, i32 -> vector<4x256xf32>
    %c6_338 = arith.constant 6 : index
    %c0_339 = arith.constant 0 : index
    %381 = vector.load %arg13[%c6_338, %c0_339] : memref<9x256xf32, #tpu.memory_space<vmem>>, vector<1x256xf32>
    %382 = vector.broadcast %381 : vector<1x256xf32> to vector<4x256xf32>
    %383 = arith.mulf %380, %382 : vector<4x256xf32>
    %c24_340 = arith.constant 24 : index
    %c0_341 = arith.constant 0 : index
    %384 = vector.load %arg17[%c24_340, %c0_341] : memref<36x256xf32, #tpu.memory_space<vmem>>, vector<4x256xf32>
    tpu.vector_store %arg17[%c24_340, %c0_341], %383 {strides = array<i32>} : memref<36x256xf32, #tpu.memory_space<vmem>>, vector<4x256xf32>,
    %c224_i32_342 = arith.constant 224 : i32
    %385 = tpu.dynamic_rotate %350 by %c224_i32_342 dim 1 : vector<4x256xf32>, i32 -> vector<4x256xf32>
    %c7_343 = arith.constant 7 : index
    %c0_344 = arith.constant 0 : index
    %386 = vector.load %arg13[%c7_343, %c0_344] : memref<9x256xf32, #tpu.memory_space<vmem>>, vector<1x256xf32>
    %387 = vector.broadcast %386 : vector<1x256xf32> to vector<4x256xf32>
    %388 = arith.mulf %385, %387 : vector<4x256xf32>
    %c28_345 = arith.constant 28 : index
    %c0_346 = arith.constant 0 : index
    %389 = vector.load %arg17[%c28_345, %c0_346] : memref<36x256xf32, #tpu.memory_space<vmem>>, vector<4x256xf32>
    tpu.vector_store %arg17[%c28_345, %c0_346], %388 {strides = array<i32>} : memref<36x256xf32, #tpu.memory_space<vmem>>, vector<4x256xf32>,
    %c222_i32_347 = arith.constant 222 : i32
    %390 = tpu.dynamic_rotate %350 by %c222_i32_347 dim 1 : vector<4x256xf32>, i32 -> vector<4x256xf32>
    %c8_348 = arith.constant 8 : index
    %c0_349 = arith.constant 0 : index
    %391 = vector.load %arg13[%c8_348, %c0_349] : memref<9x256xf32, #tpu.memory_space<vmem>>, vector<1x256xf32>
    %392 = vector.broadcast %391 : vector<1x256xf32> to vector<4x256xf32>
    %393 = arith.mulf %390, %392 : vector<4x256xf32>
    %c32_350 = arith.constant 32 : index
    %c0_351 = arith.constant 0 : index
    %394 = vector.load %arg17[%c32_350, %c0_351] : memref<36x256xf32, #tpu.memory_space<vmem>>, vector<4x256xf32>
    tpu.vector_store %arg17[%c32_350, %c0_351], %393 {strides = array<i32>} : memref<36x256xf32, #tpu.memory_space<vmem>>, vector<4x256xf32>,
    %c0_352 = arith.constant 0 : index
    %c0_353 = arith.constant 0 : index
    %395 = vector.load %arg17[%c0_352, %c0_353] : memref<36x256xf32, #tpu.memory_space<vmem>>, vector<36x256xf32>
    %c6_354 = arith.constant 6 : index
    %c0_355 = arith.constant 0 : index
    %c0_356 = arith.constant 0 : index
    %396 = vector.load %arg6[%c6_354, %c0_355, %c0_356] : memref<9x4x36xf32, #tpu.memory_space<vmem>>, vector<1x4x36xf32>
    %397 = vector.shape_cast %396 : vector<1x4x36xf32> to vector<4x36xf32>
    %cst_357 = arith.constant dense<0.000000e+00> : vector<4x256xf32>
    %398 = tpu.matmul %397, %395, %cst_357 {dimension_numbers = #tpu.dot_dimension_numbers<[1], [0], [0], [1], [0, 0, 1, 1], [], []>} : vector<4x36xf32>, vector<36x256xf32>, vector<4x256xf32> -> vector<4x256xf32>
    %c6_358 = arith.constant 6 : index
    %c0_359 = arith.constant 0 : index
    %c0_360 = arith.constant 0 : index
    %399 = vector.load %arg7[%c6_358, %c0_359, %c0_360] : memref<9x4x1xf32, #tpu.memory_space<vmem>>, vector<1x4x1xf32>
    %400 = vector.shape_cast %399 : vector<1x4x1xf32> to vector<4x1xf32>
    %401 = vector.broadcast %400 : vector<4x1xf32> to vector<4x256xf32>
    %402 = arith.addf %398, %401 : vector<4x256xf32>
    %403 = arith.addf %402, %296 : vector<4x256xf32>
    %c0_361 = arith.constant 0 : index
    %c0_362 = arith.constant 0 : index
    %404 = vector.load %arg15[%c0_361, %c0_362] : memref<1x256xf32, #tpu.memory_space<vmem>>, vector<1x256xf32>
    %405 = vector.broadcast %404 : vector<1x256xf32> to vector<4x256xf32>
    %406 = arith.mulf %403, %405 : vector<4x256xf32>
    %c222_i32_363 = arith.constant 222 : i32
    %407 = tpu.dynamic_rotate %406 by %c222_i32_363 dim 1 : vector<4x256xf32>, i32 -> vector<4x256xf32>
    %c0_364 = arith.constant 0 : index
    %c0_365 = arith.constant 0 : index
    %408 = vector.load %arg14[%c0_364, %c0_365] : memref<36x256xf32, #tpu.memory_space<vmem>>, vector<1x256xf32>
    %409 = vector.broadcast %408 : vector<1x256xf32> to vector<4x256xf32>
    %410 = arith.mulf %407, %409 : vector<4x256xf32>
    %c0_366 = arith.constant 0 : index
    %c0_367 = arith.constant 0 : index
    %411 = vector.load %arg18[%c0_366, %c0_367] : memref<144x256xf32, #tpu.memory_space<vmem>>, vector<4x256xf32>
    tpu.vector_store %arg18[%c0_366, %c0_367], %410 {strides = array<i32>} : memref<144x256xf32, #tpu.memory_space<vmem>>, vector<4x256xf32>,
    %c223_i32 = arith.constant 223 : i32
    %412 = tpu.dynamic_rotate %406 by %c223_i32 dim 1 : vector<4x256xf32>, i32 -> vector<4x256xf32>
    %c1_368 = arith.constant 1 : index
    %c0_369 = arith.constant 0 : index
    %413 = vector.load %arg14[%c1_368, %c0_369] : memref<36x256xf32, #tpu.memory_space<vmem>>, vector<1x256xf32>
    %414 = vector.broadcast %413 : vector<1x256xf32> to vector<4x256xf32>
    %415 = arith.mulf %412, %414 : vector<4x256xf32>
    %c4_370 = arith.constant 4 : index
    %c0_371 = arith.constant 0 : index
    %416 = vector.load %arg18[%c4_370, %c0_371] : memref<144x256xf32, #tpu.memory_space<vmem>>, vector<4x256xf32>
    tpu.vector_store %arg18[%c4_370, %c0_371], %415 {strides = array<i32>} : memref<144x256xf32, #tpu.memory_space<vmem>>, vector<4x256xf32>,
    %c224_i32_372 = arith.constant 224 : i32
    %417 = tpu.dynamic_rotate %406 by %c224_i32_372 dim 1 : vector<4x256xf32>, i32 -> vector<4x256xf32>
    %c2_373 = arith.constant 2 : index
    %c0_374 = arith.constant 0 : index
    %418 = vector.load %arg14[%c2_373, %c0_374] : memref<36x256xf32, #tpu.memory_space<vmem>>, vector<1x256xf32>
    %419 = vector.broadcast %418 : vector<1x256xf32> to vector<4x256xf32>
    %420 = arith.mulf %417, %419 : vector<4x256xf32>
    %c8_375 = arith.constant 8 : index
    %c0_376 = arith.constant 0 : index
    %421 = vector.load %arg18[%c8_375, %c0_376] : memref<144x256xf32, #tpu.memory_space<vmem>>, vector<4x256xf32>
    tpu.vector_store %arg18[%c8_375, %c0_376], %420 {strides = array<i32>} : memref<144x256xf32, #tpu.memory_space<vmem>>, vector<4x256xf32>,
    %c225_i32 = arith.constant 225 : i32
    %422 = tpu.dynamic_rotate %406 by %c225_i32 dim 1 : vector<4x256xf32>, i32 -> vector<4x256xf32>
    %c3_377 = arith.constant 3 : index
    %c0_378 = arith.constant 0 : index
    %423 = vector.load %arg14[%c3_377, %c0_378] : memref<36x256xf32, #tpu.memory_space<vmem>>, vector<1x256xf32>
    %424 = vector.broadcast %423 : vector<1x256xf32> to vector<4x256xf32>
    %425 = arith.mulf %422, %424 : vector<4x256xf32>
    %c12_379 = arith.constant 12 : index
    %c0_380 = arith.constant 0 : index
    %426 = vector.load %arg18[%c12_379, %c0_380] : memref<144x256xf32, #tpu.memory_space<vmem>>, vector<4x256xf32>
    tpu.vector_store %arg18[%c12_379, %c0_380], %425 {strides = array<i32>} : memref<144x256xf32, #tpu.memory_space<vmem>>, vector<4x256xf32>,
    %c226_i32_381 = arith.constant 226 : i32
    %427 = tpu.dynamic_rotate %406 by %c226_i32_381 dim 1 : vector<4x256xf32>, i32 -> vector<4x256xf32>
    %c4_382 = arith.constant 4 : index
    %c0_383 = arith.constant 0 : index
    %428 = vector.load %arg14[%c4_382, %c0_383] : memref<36x256xf32, #tpu.memory_space<vmem>>, vector<1x256xf32>
    %429 = vector.broadcast %428 : vector<1x256xf32> to vector<4x256xf32>
    %430 = arith.mulf %427, %429 : vector<4x256xf32>
    %c16_384 = arith.constant 16 : index
    %c0_385 = arith.constant 0 : index
    %431 = vector.load %arg18[%c16_384, %c0_385] : memref<144x256xf32, #tpu.memory_space<vmem>>, vector<4x256xf32>
    tpu.vector_store %arg18[%c16_384, %c0_385], %430 {strides = array<i32>} : memref<144x256xf32, #tpu.memory_space<vmem>>, vector<4x256xf32>,
    %c227_i32 = arith.constant 227 : i32
    %432 = tpu.dynamic_rotate %406 by %c227_i32 dim 1 : vector<4x256xf32>, i32 -> vector<4x256xf32>
    %c5_386 = arith.constant 5 : index
    %c0_387 = arith.constant 0 : index
    %433 = vector.load %arg14[%c5_386, %c0_387] : memref<36x256xf32, #tpu.memory_space<vmem>>, vector<1x256xf32>
    %434 = vector.broadcast %433 : vector<1x256xf32> to vector<4x256xf32>
    %435 = arith.mulf %432, %434 : vector<4x256xf32>
    %c20_388 = arith.constant 20 : index
    %c0_389 = arith.constant 0 : index
    %436 = vector.load %arg18[%c20_388, %c0_389] : memref<144x256xf32, #tpu.memory_space<vmem>>, vector<4x256xf32>
    tpu.vector_store %arg18[%c20_388, %c0_389], %435 {strides = array<i32>} : memref<144x256xf32, #tpu.memory_space<vmem>>, vector<4x256xf32>,
    %c238_i32 = arith.constant 238 : i32
    %437 = tpu.dynamic_rotate %406 by %c238_i32 dim 1 : vector<4x256xf32>, i32 -> vector<4x256xf32>
    %c6_390 = arith.constant 6 : index
    %c0_391 = arith.constant 0 : index
    %438 = vector.load %arg14[%c6_390, %c0_391] : memref<36x256xf32, #tpu.memory_space<vmem>>, vector<1x256xf32>
    %439 = vector.broadcast %438 : vector<1x256xf32> to vector<4x256xf32>
    %440 = arith.mulf %437, %439 : vector<4x256xf32>
    %c24_392 = arith.constant 24 : index
    %c0_393 = arith.constant 0 : index
    %441 = vector.load %arg18[%c24_392, %c0_393] : memref<144x256xf32, #tpu.memory_space<vmem>>, vector<4x256xf32>
    tpu.vector_store %arg18[%c24_392, %c0_393], %440 {strides = array<i32>} : memref<144x256xf32, #tpu.memory_space<vmem>>, vector<4x256xf32>,
    %c239_i32_394 = arith.constant 239 : i32
    %442 = tpu.dynamic_rotate %406 by %c239_i32_394 dim 1 : vector<4x256xf32>, i32 -> vector<4x256xf32>
    %c7_395 = arith.constant 7 : index
    %c0_396 = arith.constant 0 : index
    %443 = vector.load %arg14[%c7_395, %c0_396] : memref<36x256xf32, #tpu.memory_space<vmem>>, vector<1x256xf32>
    %444 = vector.broadcast %443 : vector<1x256xf32> to vector<4x256xf32>
    %445 = arith.mulf %442, %444 : vector<4x256xf32>
    %c28_397 = arith.constant 28 : index
    %c0_398 = arith.constant 0 : index
    %446 = vector.load %arg18[%c28_397, %c0_398] : memref<144x256xf32, #tpu.memory_space<vmem>>, vector<4x256xf32>
    tpu.vector_store %arg18[%c28_397, %c0_398], %445 {strides = array<i32>} : memref<144x256xf32, #tpu.memory_space<vmem>>, vector<4x256xf32>,
    %c240_i32_399 = arith.constant 240 : i32
    %447 = tpu.dynamic_rotate %406 by %c240_i32_399 dim 1 : vector<4x256xf32>, i32 -> vector<4x256xf32>
    %c8_400 = arith.constant 8 : index
    %c0_401 = arith.constant 0 : index
    %448 = vector.load %arg14[%c8_400, %c0_401] : memref<36x256xf32, #tpu.memory_space<vmem>>, vector<1x256xf32>
    %449 = vector.broadcast %448 : vector<1x256xf32> to vector<4x256xf32>
    %450 = arith.mulf %447, %449 : vector<4x256xf32>
    %c32_402 = arith.constant 32 : index
    %c0_403 = arith.constant 0 : index
    %451 = vector.load %arg18[%c32_402, %c0_403] : memref<144x256xf32, #tpu.memory_space<vmem>>, vector<4x256xf32>
    tpu.vector_store %arg18[%c32_402, %c0_403], %450 {strides = array<i32>} : memref<144x256xf32, #tpu.memory_space<vmem>>, vector<4x256xf32>,
    %c241_i32_404 = arith.constant 241 : i32
    %452 = tpu.dynamic_rotate %406 by %c241_i32_404 dim 1 : vector<4x256xf32>, i32 -> vector<4x256xf32>
    %c9 = arith.constant 9 : index
    %c0_405 = arith.constant 0 : index
    %453 = vector.load %arg14[%c9, %c0_405] : memref<36x256xf32, #tpu.memory_space<vmem>>, vector<1x256xf32>
    %454 = vector.broadcast %453 : vector<1x256xf32> to vector<4x256xf32>
    %455 = arith.mulf %452, %454 : vector<4x256xf32>
    %c36 = arith.constant 36 : index
    %c0_406 = arith.constant 0 : index
    %456 = vector.load %arg18[%c36, %c0_406] : memref<144x256xf32, #tpu.memory_space<vmem>>, vector<4x256xf32>
    tpu.vector_store %arg18[%c36, %c0_406], %455 {strides = array<i32>} : memref<144x256xf32, #tpu.memory_space<vmem>>, vector<4x256xf32>,
    %c242_i32 = arith.constant 242 : i32
    %457 = tpu.dynamic_rotate %406 by %c242_i32 dim 1 : vector<4x256xf32>, i32 -> vector<4x256xf32>
    %c10 = arith.constant 10 : index
    %c0_407 = arith.constant 0 : index
    %458 = vector.load %arg14[%c10, %c0_407] : memref<36x256xf32, #tpu.memory_space<vmem>>, vector<1x256xf32>
    %459 = vector.broadcast %458 : vector<1x256xf32> to vector<4x256xf32>
    %460 = arith.mulf %457, %459 : vector<4x256xf32>
    %c40 = arith.constant 40 : index
    %c0_408 = arith.constant 0 : index
    %461 = vector.load %arg18[%c40, %c0_408] : memref<144x256xf32, #tpu.memory_space<vmem>>, vector<4x256xf32>
    tpu.vector_store %arg18[%c40, %c0_408], %460 {strides = array<i32>} : memref<144x256xf32, #tpu.memory_space<vmem>>, vector<4x256xf32>,
    %c243_i32 = arith.constant 243 : i32
    %462 = tpu.dynamic_rotate %406 by %c243_i32 dim 1 : vector<4x256xf32>, i32 -> vector<4x256xf32>
    %c11 = arith.constant 11 : index
    %c0_409 = arith.constant 0 : index
    %463 = vector.load %arg14[%c11, %c0_409] : memref<36x256xf32, #tpu.memory_space<vmem>>, vector<1x256xf32>
    %464 = vector.broadcast %463 : vector<1x256xf32> to vector<4x256xf32>
    %465 = arith.mulf %462, %464 : vector<4x256xf32>
    %c44 = arith.constant 44 : index
    %c0_410 = arith.constant 0 : index
    %466 = vector.load %arg18[%c44, %c0_410] : memref<144x256xf32, #tpu.memory_space<vmem>>, vector<4x256xf32>
    tpu.vector_store %arg18[%c44, %c0_410], %465 {strides = array<i32>} : memref<144x256xf32, #tpu.memory_space<vmem>>, vector<4x256xf32>,
    %c254_i32_411 = arith.constant 254 : i32
    %467 = tpu.dynamic_rotate %406 by %c254_i32_411 dim 1 : vector<4x256xf32>, i32 -> vector<4x256xf32>
    %c12_412 = arith.constant 12 : index
    %c0_413 = arith.constant 0 : index
    %468 = vector.load %arg14[%c12_412, %c0_413] : memref<36x256xf32, #tpu.memory_space<vmem>>, vector<1x256xf32>
    %469 = vector.broadcast %468 : vector<1x256xf32> to vector<4x256xf32>
    %470 = arith.mulf %467, %469 : vector<4x256xf32>
    %c48 = arith.constant 48 : index
    %c0_414 = arith.constant 0 : index
    %471 = vector.load %arg18[%c48, %c0_414] : memref<144x256xf32, #tpu.memory_space<vmem>>, vector<4x256xf32>
    tpu.vector_store %arg18[%c48, %c0_414], %470 {strides = array<i32>} : memref<144x256xf32, #tpu.memory_space<vmem>>, vector<4x256xf32>,
    %c255_i32_415 = arith.constant 255 : i32
    %472 = tpu.dynamic_rotate %406 by %c255_i32_415 dim 1 : vector<4x256xf32>, i32 -> vector<4x256xf32>
    %c13 = arith.constant 13 : index
    %c0_416 = arith.constant 0 : index
    %473 = vector.load %arg14[%c13, %c0_416] : memref<36x256xf32, #tpu.memory_space<vmem>>, vector<1x256xf32>
    %474 = vector.broadcast %473 : vector<1x256xf32> to vector<4x256xf32>
    %475 = arith.mulf %472, %474 : vector<4x256xf32>
    %c52 = arith.constant 52 : index
    %c0_417 = arith.constant 0 : index
    %476 = vector.load %arg18[%c52, %c0_417] : memref<144x256xf32, #tpu.memory_space<vmem>>, vector<4x256xf32>
    tpu.vector_store %arg18[%c52, %c0_417], %475 {strides = array<i32>} : memref<144x256xf32, #tpu.memory_space<vmem>>, vector<4x256xf32>,
    %c14 = arith.constant 14 : index
    %c0_418 = arith.constant 0 : index
    %477 = vector.load %arg14[%c14, %c0_418] : memref<36x256xf32, #tpu.memory_space<vmem>>, vector<1x256xf32>
    %478 = vector.broadcast %477 : vector<1x256xf32> to vector<4x256xf32>
    %479 = arith.mulf %406, %478 : vector<4x256xf32>
    %c56 = arith.constant 56 : index
    %c0_419 = arith.constant 0 : index
    %480 = vector.load %arg18[%c56, %c0_419] : memref<144x256xf32, #tpu.memory_space<vmem>>, vector<4x256xf32>
    tpu.vector_store %arg18[%c56, %c0_419], %479 {strides = array<i32>} : memref<144x256xf32, #tpu.memory_space<vmem>>, vector<4x256xf32>,
    %c1_i32_420 = arith.constant 1 : i32
    %481 = tpu.dynamic_rotate %406 by %c1_i32_420 dim 1 : vector<4x256xf32>, i32 -> vector<4x256xf32>
    %c15 = arith.constant 15 : index
    %c0_421 = arith.constant 0 : index
    %482 = vector.load %arg14[%c15, %c0_421] : memref<36x256xf32, #tpu.memory_space<vmem>>, vector<1x256xf32>
    %483 = vector.broadcast %482 : vector<1x256xf32> to vector<4x256xf32>
    %484 = arith.mulf %481, %483 : vector<4x256xf32>
    %c60 = arith.constant 60 : index
    %c0_422 = arith.constant 0 : index
    %485 = vector.load %arg18[%c60, %c0_422] : memref<144x256xf32, #tpu.memory_space<vmem>>, vector<4x256xf32>
    tpu.vector_store %arg18[%c60, %c0_422], %484 {strides = array<i32>} : memref<144x256xf32, #tpu.memory_space<vmem>>, vector<4x256xf32>,
    %c2_i32_423 = arith.constant 2 : i32
    %486 = tpu.dynamic_rotate %406 by %c2_i32_423 dim 1 : vector<4x256xf32>, i32 -> vector<4x256xf32>
    %c16_424 = arith.constant 16 : index
    %c0_425 = arith.constant 0 : index
    %487 = vector.load %arg14[%c16_424, %c0_425] : memref<36x256xf32, #tpu.memory_space<vmem>>, vector<1x256xf32>
    %488 = vector.broadcast %487 : vector<1x256xf32> to vector<4x256xf32>
    %489 = arith.mulf %486, %488 : vector<4x256xf32>
    %c64 = arith.constant 64 : index
    %c0_426 = arith.constant 0 : index
    %490 = vector.load %arg18[%c64, %c0_426] : memref<144x256xf32, #tpu.memory_space<vmem>>, vector<4x256xf32>
    tpu.vector_store %arg18[%c64, %c0_426], %489 {strides = array<i32>} : memref<144x256xf32, #tpu.memory_space<vmem>>, vector<4x256xf32>,
    %c3_i32 = arith.constant 3 : i32
    %491 = tpu.dynamic_rotate %406 by %c3_i32 dim 1 : vector<4x256xf32>, i32 -> vector<4x256xf32>
    %c17 = arith.constant 17 : index
    %c0_427 = arith.constant 0 : index
    %492 = vector.load %arg14[%c17, %c0_427] : memref<36x256xf32, #tpu.memory_space<vmem>>, vector<1x256xf32>
    %493 = vector.broadcast %492 : vector<1x256xf32> to vector<4x256xf32>
    %494 = arith.mulf %491, %493 : vector<4x256xf32>
    %c68 = arith.constant 68 : index
    %c0_428 = arith.constant 0 : index
    %495 = vector.load %arg18[%c68, %c0_428] : memref<144x256xf32, #tpu.memory_space<vmem>>, vector<4x256xf32>
    tpu.vector_store %arg18[%c68, %c0_428], %494 {strides = array<i32>} : memref<144x256xf32, #tpu.memory_space<vmem>>, vector<4x256xf32>,
    %c14_i32 = arith.constant 14 : i32
    %496 = tpu.dynamic_rotate %406 by %c14_i32 dim 1 : vector<4x256xf32>, i32 -> vector<4x256xf32>
    %c18 = arith.constant 18 : index
    %c0_429 = arith.constant 0 : index
    %497 = vector.load %arg14[%c18, %c0_429] : memref<36x256xf32, #tpu.memory_space<vmem>>, vector<1x256xf32>
    %498 = vector.broadcast %497 : vector<1x256xf32> to vector<4x256xf32>
    %499 = arith.mulf %496, %498 : vector<4x256xf32>
    %c72 = arith.constant 72 : index
    %c0_430 = arith.constant 0 : index
    %500 = vector.load %arg18[%c72, %c0_430] : memref<144x256xf32, #tpu.memory_space<vmem>>, vector<4x256xf32>
    tpu.vector_store %arg18[%c72, %c0_430], %499 {strides = array<i32>} : memref<144x256xf32, #tpu.memory_space<vmem>>, vector<4x256xf32>,
    %c15_i32_431 = arith.constant 15 : i32
    %501 = tpu.dynamic_rotate %406 by %c15_i32_431 dim 1 : vector<4x256xf32>, i32 -> vector<4x256xf32>
    %c19 = arith.constant 19 : index
    %c0_432 = arith.constant 0 : index
    %502 = vector.load %arg14[%c19, %c0_432] : memref<36x256xf32, #tpu.memory_space<vmem>>, vector<1x256xf32>
    %503 = vector.broadcast %502 : vector<1x256xf32> to vector<4x256xf32>
    %504 = arith.mulf %501, %503 : vector<4x256xf32>
    %c76 = arith.constant 76 : index
    %c0_433 = arith.constant 0 : index
    %505 = vector.load %arg18[%c76, %c0_433] : memref<144x256xf32, #tpu.memory_space<vmem>>, vector<4x256xf32>
    tpu.vector_store %arg18[%c76, %c0_433], %504 {strides = array<i32>} : memref<144x256xf32, #tpu.memory_space<vmem>>, vector<4x256xf32>,
    %c16_i32_434 = arith.constant 16 : i32
    %506 = tpu.dynamic_rotate %406 by %c16_i32_434 dim 1 : vector<4x256xf32>, i32 -> vector<4x256xf32>
    %c20_435 = arith.constant 20 : index
    %c0_436 = arith.constant 0 : index
    %507 = vector.load %arg14[%c20_435, %c0_436] : memref<36x256xf32, #tpu.memory_space<vmem>>, vector<1x256xf32>
    %508 = vector.broadcast %507 : vector<1x256xf32> to vector<4x256xf32>
    %509 = arith.mulf %506, %508 : vector<4x256xf32>
    %c80 = arith.constant 80 : index
    %c0_437 = arith.constant 0 : index
    %510 = vector.load %arg18[%c80, %c0_437] : memref<144x256xf32, #tpu.memory_space<vmem>>, vector<4x256xf32>
    tpu.vector_store %arg18[%c80, %c0_437], %509 {strides = array<i32>} : memref<144x256xf32, #tpu.memory_space<vmem>>, vector<4x256xf32>,
    %c17_i32_438 = arith.constant 17 : i32
    %511 = tpu.dynamic_rotate %406 by %c17_i32_438 dim 1 : vector<4x256xf32>, i32 -> vector<4x256xf32>
    %c21 = arith.constant 21 : index
    %c0_439 = arith.constant 0 : index
    %512 = vector.load %arg14[%c21, %c0_439] : memref<36x256xf32, #tpu.memory_space<vmem>>, vector<1x256xf32>
    %513 = vector.broadcast %512 : vector<1x256xf32> to vector<4x256xf32>
    %514 = arith.mulf %511, %513 : vector<4x256xf32>
    %c84 = arith.constant 84 : index
    %c0_440 = arith.constant 0 : index
    %515 = vector.load %arg18[%c84, %c0_440] : memref<144x256xf32, #tpu.memory_space<vmem>>, vector<4x256xf32>
    tpu.vector_store %arg18[%c84, %c0_440], %514 {strides = array<i32>} : memref<144x256xf32, #tpu.memory_space<vmem>>, vector<4x256xf32>,
    %c18_i32 = arith.constant 18 : i32
    %516 = tpu.dynamic_rotate %406 by %c18_i32 dim 1 : vector<4x256xf32>, i32 -> vector<4x256xf32>
    %c22 = arith.constant 22 : index
    %c0_441 = arith.constant 0 : index
    %517 = vector.load %arg14[%c22, %c0_441] : memref<36x256xf32, #tpu.memory_space<vmem>>, vector<1x256xf32>
    %518 = vector.broadcast %517 : vector<1x256xf32> to vector<4x256xf32>
    %519 = arith.mulf %516, %518 : vector<4x256xf32>
    %c88 = arith.constant 88 : index
    %c0_442 = arith.constant 0 : index
    %520 = vector.load %arg18[%c88, %c0_442] : memref<144x256xf32, #tpu.memory_space<vmem>>, vector<4x256xf32>
    tpu.vector_store %arg18[%c88, %c0_442], %519 {strides = array<i32>} : memref<144x256xf32, #tpu.memory_space<vmem>>, vector<4x256xf32>,
    %c19_i32 = arith.constant 19 : i32
    %521 = tpu.dynamic_rotate %406 by %c19_i32 dim 1 : vector<4x256xf32>, i32 -> vector<4x256xf32>
    %c23 = arith.constant 23 : index
    %c0_443 = arith.constant 0 : index
    %522 = vector.load %arg14[%c23, %c0_443] : memref<36x256xf32, #tpu.memory_space<vmem>>, vector<1x256xf32>
    %523 = vector.broadcast %522 : vector<1x256xf32> to vector<4x256xf32>
    %524 = arith.mulf %521, %523 : vector<4x256xf32>
    %c92 = arith.constant 92 : index
    %c0_444 = arith.constant 0 : index
    %525 = vector.load %arg18[%c92, %c0_444] : memref<144x256xf32, #tpu.memory_space<vmem>>, vector<4x256xf32>
    tpu.vector_store %arg18[%c92, %c0_444], %524 {strides = array<i32>} : memref<144x256xf32, #tpu.memory_space<vmem>>, vector<4x256xf32>,
    %c30_i32_445 = arith.constant 30 : i32
    %526 = tpu.dynamic_rotate %406 by %c30_i32_445 dim 1 : vector<4x256xf32>, i32 -> vector<4x256xf32>
    %c24_446 = arith.constant 24 : index
    %c0_447 = arith.constant 0 : index
    %527 = vector.load %arg14[%c24_446, %c0_447] : memref<36x256xf32, #tpu.memory_space<vmem>>, vector<1x256xf32>
    %528 = vector.broadcast %527 : vector<1x256xf32> to vector<4x256xf32>
    %529 = arith.mulf %526, %528 : vector<4x256xf32>
    %c96 = arith.constant 96 : index
    %c0_448 = arith.constant 0 : index
    %530 = vector.load %arg18[%c96, %c0_448] : memref<144x256xf32, #tpu.memory_space<vmem>>, vector<4x256xf32>
    tpu.vector_store %arg18[%c96, %c0_448], %529 {strides = array<i32>} : memref<144x256xf32, #tpu.memory_space<vmem>>, vector<4x256xf32>,
    %c31_i32 = arith.constant 31 : i32
    %531 = tpu.dynamic_rotate %406 by %c31_i32 dim 1 : vector<4x256xf32>, i32 -> vector<4x256xf32>
    %c25 = arith.constant 25 : index
    %c0_449 = arith.constant 0 : index
    %532 = vector.load %arg14[%c25, %c0_449] : memref<36x256xf32, #tpu.memory_space<vmem>>, vector<1x256xf32>
    %533 = vector.broadcast %532 : vector<1x256xf32> to vector<4x256xf32>
    %534 = arith.mulf %531, %533 : vector<4x256xf32>
    %c100 = arith.constant 100 : index
    %c0_450 = arith.constant 0 : index
    %535 = vector.load %arg18[%c100, %c0_450] : memref<144x256xf32, #tpu.memory_space<vmem>>, vector<4x256xf32>
    tpu.vector_store %arg18[%c100, %c0_450], %534 {strides = array<i32>} : memref<144x256xf32, #tpu.memory_space<vmem>>, vector<4x256xf32>,
    %c32_i32_451 = arith.constant 32 : i32
    %536 = tpu.dynamic_rotate %406 by %c32_i32_451 dim 1 : vector<4x256xf32>, i32 -> vector<4x256xf32>
    %c26 = arith.constant 26 : index
    %c0_452 = arith.constant 0 : index
    %537 = vector.load %arg14[%c26, %c0_452] : memref<36x256xf32, #tpu.memory_space<vmem>>, vector<1x256xf32>
    %538 = vector.broadcast %537 : vector<1x256xf32> to vector<4x256xf32>
    %539 = arith.mulf %536, %538 : vector<4x256xf32>
    %c104 = arith.constant 104 : index
    %c0_453 = arith.constant 0 : index
    %540 = vector.load %arg18[%c104, %c0_453] : memref<144x256xf32, #tpu.memory_space<vmem>>, vector<4x256xf32>
    tpu.vector_store %arg18[%c104, %c0_453], %539 {strides = array<i32>} : memref<144x256xf32, #tpu.memory_space<vmem>>, vector<4x256xf32>,
    %c33_i32 = arith.constant 33 : i32
    %541 = tpu.dynamic_rotate %406 by %c33_i32 dim 1 : vector<4x256xf32>, i32 -> vector<4x256xf32>
    %c27 = arith.constant 27 : index
    %c0_454 = arith.constant 0 : index
    %542 = vector.load %arg14[%c27, %c0_454] : memref<36x256xf32, #tpu.memory_space<vmem>>, vector<1x256xf32>
    %543 = vector.broadcast %542 : vector<1x256xf32> to vector<4x256xf32>
    %544 = arith.mulf %541, %543 : vector<4x256xf32>
    %c108 = arith.constant 108 : index
    %c0_455 = arith.constant 0 : index
    %545 = vector.load %arg18[%c108, %c0_455] : memref<144x256xf32, #tpu.memory_space<vmem>>, vector<4x256xf32>
    tpu.vector_store %arg18[%c108, %c0_455], %544 {strides = array<i32>} : memref<144x256xf32, #tpu.memory_space<vmem>>, vector<4x256xf32>,
    %c34_i32_456 = arith.constant 34 : i32
    %546 = tpu.dynamic_rotate %406 by %c34_i32_456 dim 1 : vector<4x256xf32>, i32 -> vector<4x256xf32>
    %c28_457 = arith.constant 28 : index
    %c0_458 = arith.constant 0 : index
    %547 = vector.load %arg14[%c28_457, %c0_458] : memref<36x256xf32, #tpu.memory_space<vmem>>, vector<1x256xf32>
    %548 = vector.broadcast %547 : vector<1x256xf32> to vector<4x256xf32>
    %549 = arith.mulf %546, %548 : vector<4x256xf32>
    %c112 = arith.constant 112 : index
    %c0_459 = arith.constant 0 : index
    %550 = vector.load %arg18[%c112, %c0_459] : memref<144x256xf32, #tpu.memory_space<vmem>>, vector<4x256xf32>
    tpu.vector_store %arg18[%c112, %c0_459], %549 {strides = array<i32>} : memref<144x256xf32, #tpu.memory_space<vmem>>, vector<4x256xf32>,
    %c35_i32 = arith.constant 35 : i32
    %551 = tpu.dynamic_rotate %406 by %c35_i32 dim 1 : vector<4x256xf32>, i32 -> vector<4x256xf32>
    %c29 = arith.constant 29 : index
    %c0_460 = arith.constant 0 : index
    %552 = vector.load %arg14[%c29, %c0_460] : memref<36x256xf32, #tpu.memory_space<vmem>>, vector<1x256xf32>
    %553 = vector.broadcast %552 : vector<1x256xf32> to vector<4x256xf32>
    %554 = arith.mulf %551, %553 : vector<4x256xf32>
    %c116 = arith.constant 116 : index
    %c0_461 = arith.constant 0 : index
    %555 = vector.load %arg18[%c116, %c0_461] : memref<144x256xf32, #tpu.memory_space<vmem>>, vector<4x256xf32>
    tpu.vector_store %arg18[%c116, %c0_461], %554 {strides = array<i32>} : memref<144x256xf32, #tpu.memory_space<vmem>>, vector<4x256xf32>,
    %c46_i32 = arith.constant 46 : i32
    %556 = tpu.dynamic_rotate %406 by %c46_i32 dim 1 : vector<4x256xf32>, i32 -> vector<4x256xf32>
    %c30 = arith.constant 30 : index
    %c0_462 = arith.constant 0 : index
    %557 = vector.load %arg14[%c30, %c0_462] : memref<36x256xf32, #tpu.memory_space<vmem>>, vector<1x256xf32>
    %558 = vector.broadcast %557 : vector<1x256xf32> to vector<4x256xf32>
    %559 = arith.mulf %556, %558 : vector<4x256xf32>
    %c120 = arith.constant 120 : index
    %c0_463 = arith.constant 0 : index
    %560 = vector.load %arg18[%c120, %c0_463] : memref<144x256xf32, #tpu.memory_space<vmem>>, vector<4x256xf32>
    tpu.vector_store %arg18[%c120, %c0_463], %559 {strides = array<i32>} : memref<144x256xf32, #tpu.memory_space<vmem>>, vector<4x256xf32>,
    %c47_i32 = arith.constant 47 : i32
    %561 = tpu.dynamic_rotate %406 by %c47_i32 dim 1 : vector<4x256xf32>, i32 -> vector<4x256xf32>
    %c31 = arith.constant 31 : index
    %c0_464 = arith.constant 0 : index
    %562 = vector.load %arg14[%c31, %c0_464] : memref<36x256xf32, #tpu.memory_space<vmem>>, vector<1x256xf32>
    %563 = vector.broadcast %562 : vector<1x256xf32> to vector<4x256xf32>
    %564 = arith.mulf %561, %563 : vector<4x256xf32>
    %c124 = arith.constant 124 : index
    %c0_465 = arith.constant 0 : index
    %565 = vector.load %arg18[%c124, %c0_465] : memref<144x256xf32, #tpu.memory_space<vmem>>, vector<4x256xf32>
    tpu.vector_store %arg18[%c124, %c0_465], %564 {strides = array<i32>} : memref<144x256xf32, #tpu.memory_space<vmem>>, vector<4x256xf32>,
    %c48_i32 = arith.constant 48 : i32
    %566 = tpu.dynamic_rotate %406 by %c48_i32 dim 1 : vector<4x256xf32>, i32 -> vector<4x256xf32>
    %c32_466 = arith.constant 32 : index
    %c0_467 = arith.constant 0 : index
    %567 = vector.load %arg14[%c32_466, %c0_467] : memref<36x256xf32, #tpu.memory_space<vmem>>, vector<1x256xf32>
    %568 = vector.broadcast %567 : vector<1x256xf32> to vector<4x256xf32>
    %569 = arith.mulf %566, %568 : vector<4x256xf32>
    %c128 = arith.constant 128 : index
    %c0_468 = arith.constant 0 : index
    %570 = vector.load %arg18[%c128, %c0_468] : memref<144x256xf32, #tpu.memory_space<vmem>>, vector<4x256xf32>
    tpu.vector_store %arg18[%c128, %c0_468], %569 {strides = array<i32>} : memref<144x256xf32, #tpu.memory_space<vmem>>, vector<4x256xf32>,
    %c49_i32 = arith.constant 49 : i32
    %571 = tpu.dynamic_rotate %406 by %c49_i32 dim 1 : vector<4x256xf32>, i32 -> vector<4x256xf32>
    %c33 = arith.constant 33 : index
    %c0_469 = arith.constant 0 : index
    %572 = vector.load %arg14[%c33, %c0_469] : memref<36x256xf32, #tpu.memory_space<vmem>>, vector<1x256xf32>
    %573 = vector.broadcast %572 : vector<1x256xf32> to vector<4x256xf32>
    %574 = arith.mulf %571, %573 : vector<4x256xf32>
    %c132 = arith.constant 132 : index
    %c0_470 = arith.constant 0 : index
    %575 = vector.load %arg18[%c132, %c0_470] : memref<144x256xf32, #tpu.memory_space<vmem>>, vector<4x256xf32>
    tpu.vector_store %arg18[%c132, %c0_470], %574 {strides = array<i32>} : memref<144x256xf32, #tpu.memory_space<vmem>>, vector<4x256xf32>,
    %c50_i32 = arith.constant 50 : i32
    %576 = tpu.dynamic_rotate %406 by %c50_i32 dim 1 : vector<4x256xf32>, i32 -> vector<4x256xf32>
    %c34 = arith.constant 34 : index
    %c0_471 = arith.constant 0 : index
    %577 = vector.load %arg14[%c34, %c0_471] : memref<36x256xf32, #tpu.memory_space<vmem>>, vector<1x256xf32>
    %578 = vector.broadcast %577 : vector<1x256xf32> to vector<4x256xf32>
    %579 = arith.mulf %576, %578 : vector<4x256xf32>
    %c136 = arith.constant 136 : index
    %c0_472 = arith.constant 0 : index
    %580 = vector.load %arg18[%c136, %c0_472] : memref<144x256xf32, #tpu.memory_space<vmem>>, vector<4x256xf32>
    tpu.vector_store %arg18[%c136, %c0_472], %579 {strides = array<i32>} : memref<144x256xf32, #tpu.memory_space<vmem>>, vector<4x256xf32>,
    %c51_i32 = arith.constant 51 : i32
    %581 = tpu.dynamic_rotate %406 by %c51_i32 dim 1 : vector<4x256xf32>, i32 -> vector<4x256xf32>
    %c35 = arith.constant 35 : index
    %c0_473 = arith.constant 0 : index
    %582 = vector.load %arg14[%c35, %c0_473] : memref<36x256xf32, #tpu.memory_space<vmem>>, vector<1x256xf32>
    %583 = vector.broadcast %582 : vector<1x256xf32> to vector<4x256xf32>
    %584 = arith.mulf %581, %583 : vector<4x256xf32>
    %c140 = arith.constant 140 : index
    %c0_474 = arith.constant 0 : index
    %585 = vector.load %arg18[%c140, %c0_474] : memref<144x256xf32, #tpu.memory_space<vmem>>, vector<4x256xf32>
    tpu.vector_store %arg18[%c140, %c0_474], %584 {strides = array<i32>} : memref<144x256xf32, #tpu.memory_space<vmem>>, vector<4x256xf32>,
    %c0_475 = arith.constant 0 : index
    %c0_476 = arith.constant 0 : index
    %586 = vector.load %arg18[%c0_475, %c0_476] : memref<144x256xf32, #tpu.memory_space<vmem>>, vector<144x256xf32>
    %c0_477 = arith.constant 0 : index
    %c0_478 = arith.constant 0 : index
    %587 = vector.load %arg8[%c0_477, %c0_478] : memref<4x144xf32, #tpu.memory_space<vmem>>, vector<4x144xf32>
    %cst_479 = arith.constant dense<0.000000e+00> : vector<4x256xf32>
    %588 = tpu.matmul %587, %586, %cst_479 {dimension_numbers = #tpu.dot_dimension_numbers<[1], [0], [0], [1], [0, 0, 1, 1], [], []>} : vector<4x144xf32>, vector<144x256xf32>, vector<4x256xf32> -> vector<4x256xf32>
    %c0_480 = arith.constant 0 : index
    %c0_481 = arith.constant 0 : index
    %589 = vector.load %arg9[%c0_480, %c0_481] : memref<4x1xf32, #tpu.memory_space<vmem>>, vector<4x1xf32>
    %590 = vector.broadcast %589 : vector<4x1xf32> to vector<4x256xf32>
    %591 = arith.addf %588, %590 : vector<4x256xf32>
    %592 = arith.addf %134, %591 : vector<4x256xf32>
    %c17_i32_482 = arith.constant 17 : i32
    %593 = tpu.dynamic_rotate %592 by %c17_i32_482 dim 1 : vector<4x256xf32>, i32 -> vector<4x256xf32>
    %c0_483 = arith.constant 0 : index
    %c0_484 = arith.constant 0 : index
    %594 = vector.load %arg12[%c0_483, %c0_484] : memref<9x256xf32, #tpu.memory_space<vmem>>, vector<1x256xf32>
    %595 = vector.broadcast %594 : vector<1x256xf32> to vector<4x256xf32>
    %596 = arith.mulf %593, %595 : vector<4x256xf32>
    %c0_485 = arith.constant 0 : index
    %c0_486 = arith.constant 0 : index
    %597 = vector.load %arg17[%c0_485, %c0_486] : memref<36x256xf32, #tpu.memory_space<vmem>>, vector<4x256xf32>
    tpu.vector_store %arg17[%c0_485, %c0_486], %596 {strides = array<i32>} : memref<36x256xf32, #tpu.memory_space<vmem>>, vector<4x256xf32>,
    %c16_i32_487 = arith.constant 16 : i32
    %598 = tpu.dynamic_rotate %592 by %c16_i32_487 dim 1 : vector<4x256xf32>, i32 -> vector<4x256xf32>
    %c1_488 = arith.constant 1 : index
    %c0_489 = arith.constant 0 : index
    %599 = vector.load %arg12[%c1_488, %c0_489] : memref<9x256xf32, #tpu.memory_space<vmem>>, vector<1x256xf32>
    %600 = vector.broadcast %599 : vector<1x256xf32> to vector<4x256xf32>
    %601 = arith.mulf %598, %600 : vector<4x256xf32>
    %c4_490 = arith.constant 4 : index
    %c0_491 = arith.constant 0 : index
    %602 = vector.load %arg17[%c4_490, %c0_491] : memref<36x256xf32, #tpu.memory_space<vmem>>, vector<4x256xf32>
    tpu.vector_store %arg17[%c4_490, %c0_491], %601 {strides = array<i32>} : memref<36x256xf32, #tpu.memory_space<vmem>>, vector<4x256xf32>,
    %c15_i32_492 = arith.constant 15 : i32
    %603 = tpu.dynamic_rotate %592 by %c15_i32_492 dim 1 : vector<4x256xf32>, i32 -> vector<4x256xf32>
    %c2_493 = arith.constant 2 : index
    %c0_494 = arith.constant 0 : index
    %604 = vector.load %arg12[%c2_493, %c0_494] : memref<9x256xf32, #tpu.memory_space<vmem>>, vector<1x256xf32>
    %605 = vector.broadcast %604 : vector<1x256xf32> to vector<4x256xf32>
    %606 = arith.mulf %603, %605 : vector<4x256xf32>
    %c8_495 = arith.constant 8 : index
    %c0_496 = arith.constant 0 : index
    %607 = vector.load %arg17[%c8_495, %c0_496] : memref<36x256xf32, #tpu.memory_space<vmem>>, vector<4x256xf32>
    tpu.vector_store %arg17[%c8_495, %c0_496], %606 {strides = array<i32>} : memref<36x256xf32, #tpu.memory_space<vmem>>, vector<4x256xf32>,
    %c1_i32_497 = arith.constant 1 : i32
    %608 = tpu.dynamic_rotate %592 by %c1_i32_497 dim 1 : vector<4x256xf32>, i32 -> vector<4x256xf32>
    %c3_498 = arith.constant 3 : index
    %c0_499 = arith.constant 0 : index
    %609 = vector.load %arg12[%c3_498, %c0_499] : memref<9x256xf32, #tpu.memory_space<vmem>>, vector<1x256xf32>
    %610 = vector.broadcast %609 : vector<1x256xf32> to vector<4x256xf32>
    %611 = arith.mulf %608, %610 : vector<4x256xf32>
    %c12_500 = arith.constant 12 : index
    %c0_501 = arith.constant 0 : index
    %612 = vector.load %arg17[%c12_500, %c0_501] : memref<36x256xf32, #tpu.memory_space<vmem>>, vector<4x256xf32>
    tpu.vector_store %arg17[%c12_500, %c0_501], %611 {strides = array<i32>} : memref<36x256xf32, #tpu.memory_space<vmem>>, vector<4x256xf32>,
    %c4_502 = arith.constant 4 : index
    %c0_503 = arith.constant 0 : index
    %613 = vector.load %arg12[%c4_502, %c0_503] : memref<9x256xf32, #tpu.memory_space<vmem>>, vector<1x256xf32>
    %614 = vector.broadcast %613 : vector<1x256xf32> to vector<4x256xf32>
    %615 = arith.mulf %592, %614 : vector<4x256xf32>
    %c16_504 = arith.constant 16 : index
    %c0_505 = arith.constant 0 : index
    %616 = vector.load %arg17[%c16_504, %c0_505] : memref<36x256xf32, #tpu.memory_space<vmem>>, vector<4x256xf32>
    tpu.vector_store %arg17[%c16_504, %c0_505], %615 {strides = array<i32>} : memref<36x256xf32, #tpu.memory_space<vmem>>, vector<4x256xf32>,
    %c255_i32_506 = arith.constant 255 : i32
    %617 = tpu.dynamic_rotate %592 by %c255_i32_506 dim 1 : vector<4x256xf32>, i32 -> vector<4x256xf32>
    %c5_507 = arith.constant 5 : index
    %c0_508 = arith.constant 0 : index
    %618 = vector.load %arg12[%c5_507, %c0_508] : memref<9x256xf32, #tpu.memory_space<vmem>>, vector<1x256xf32>
    %619 = vector.broadcast %618 : vector<1x256xf32> to vector<4x256xf32>
    %620 = arith.mulf %617, %619 : vector<4x256xf32>
    %c20_509 = arith.constant 20 : index
    %c0_510 = arith.constant 0 : index
    %621 = vector.load %arg17[%c20_509, %c0_510] : memref<36x256xf32, #tpu.memory_space<vmem>>, vector<4x256xf32>
    tpu.vector_store %arg17[%c20_509, %c0_510], %620 {strides = array<i32>} : memref<36x256xf32, #tpu.memory_space<vmem>>, vector<4x256xf32>,
    %c241_i32_511 = arith.constant 241 : i32
    %622 = tpu.dynamic_rotate %592 by %c241_i32_511 dim 1 : vector<4x256xf32>, i32 -> vector<4x256xf32>
    %c6_512 = arith.constant 6 : index
    %c0_513 = arith.constant 0 : index
    %623 = vector.load %arg12[%c6_512, %c0_513] : memref<9x256xf32, #tpu.memory_space<vmem>>, vector<1x256xf32>
    %624 = vector.broadcast %623 : vector<1x256xf32> to vector<4x256xf32>
    %625 = arith.mulf %622, %624 : vector<4x256xf32>
    %c24_514 = arith.constant 24 : index
    %c0_515 = arith.constant 0 : index
    %626 = vector.load %arg17[%c24_514, %c0_515] : memref<36x256xf32, #tpu.memory_space<vmem>>, vector<4x256xf32>
    tpu.vector_store %arg17[%c24_514, %c0_515], %625 {strides = array<i32>} : memref<36x256xf32, #tpu.memory_space<vmem>>, vector<4x256xf32>,
    %c240_i32_516 = arith.constant 240 : i32
    %627 = tpu.dynamic_rotate %592 by %c240_i32_516 dim 1 : vector<4x256xf32>, i32 -> vector<4x256xf32>
    %c7_517 = arith.constant 7 : index
    %c0_518 = arith.constant 0 : index
    %628 = vector.load %arg12[%c7_517, %c0_518] : memref<9x256xf32, #tpu.memory_space<vmem>>, vector<1x256xf32>
    %629 = vector.broadcast %628 : vector<1x256xf32> to vector<4x256xf32>
    %630 = arith.mulf %627, %629 : vector<4x256xf32>
    %c28_519 = arith.constant 28 : index
    %c0_520 = arith.constant 0 : index
    %631 = vector.load %arg17[%c28_519, %c0_520] : memref<36x256xf32, #tpu.memory_space<vmem>>, vector<4x256xf32>
    tpu.vector_store %arg17[%c28_519, %c0_520], %630 {strides = array<i32>} : memref<36x256xf32, #tpu.memory_space<vmem>>, vector<4x256xf32>,
    %c239_i32_521 = arith.constant 239 : i32
    %632 = tpu.dynamic_rotate %592 by %c239_i32_521 dim 1 : vector<4x256xf32>, i32 -> vector<4x256xf32>
    %c8_522 = arith.constant 8 : index
    %c0_523 = arith.constant 0 : index
    %633 = vector.load %arg12[%c8_522, %c0_523] : memref<9x256xf32, #tpu.memory_space<vmem>>, vector<1x256xf32>
    %634 = vector.broadcast %633 : vector<1x256xf32> to vector<4x256xf32>
    %635 = arith.mulf %632, %634 : vector<4x256xf32>
    %c32_524 = arith.constant 32 : index
    %c0_525 = arith.constant 0 : index
    %636 = vector.load %arg17[%c32_524, %c0_525] : memref<36x256xf32, #tpu.memory_space<vmem>>, vector<4x256xf32>
    tpu.vector_store %arg17[%c32_524, %c0_525], %635 {strides = array<i32>} : memref<36x256xf32, #tpu.memory_space<vmem>>, vector<4x256xf32>,
    %c0_526 = arith.constant 0 : index
    %c0_527 = arith.constant 0 : index
    %637 = vector.load %arg17[%c0_526, %c0_527] : memref<36x256xf32, #tpu.memory_space<vmem>>, vector<36x256xf32>
    %c7_528 = arith.constant 7 : index
    %c0_529 = arith.constant 0 : index
    %c0_530 = arith.constant 0 : index
    %638 = vector.load %arg6[%c7_528, %c0_529, %c0_530] : memref<9x4x36xf32, #tpu.memory_space<vmem>>, vector<1x4x36xf32>
    %639 = vector.shape_cast %638 : vector<1x4x36xf32> to vector<4x36xf32>
    %cst_531 = arith.constant dense<0.000000e+00> : vector<4x256xf32>
    %640 = tpu.matmul %639, %637, %cst_531 {dimension_numbers = #tpu.dot_dimension_numbers<[1], [0], [0], [1], [0, 0, 1, 1], [], []>} : vector<4x36xf32>, vector<36x256xf32>, vector<4x256xf32> -> vector<4x256xf32>
    %c7_532 = arith.constant 7 : index
    %c0_533 = arith.constant 0 : index
    %c0_534 = arith.constant 0 : index
    %641 = vector.load %arg7[%c7_532, %c0_533, %c0_534] : memref<9x4x1xf32, #tpu.memory_space<vmem>>, vector<1x4x1xf32>
    %642 = vector.shape_cast %641 : vector<1x4x1xf32> to vector<4x1xf32>
    %643 = vector.broadcast %642 : vector<4x1xf32> to vector<4x256xf32>
    %644 = arith.addf %640, %643 : vector<4x256xf32>
    %cst_535 = arith.constant 0.000000e+00 : f32
    %645 = vector.broadcast %cst_535 : f32 to vector<4x256xf32>
    %646 = arith.maximumf %644, %645 : vector<4x256xf32>
    %c17_i32_536 = arith.constant 17 : i32
    %647 = tpu.dynamic_rotate %646 by %c17_i32_536 dim 1 : vector<4x256xf32>, i32 -> vector<4x256xf32>
    %c0_537 = arith.constant 0 : index
    %c0_538 = arith.constant 0 : index
    %648 = vector.load %arg12[%c0_537, %c0_538] : memref<9x256xf32, #tpu.memory_space<vmem>>, vector<1x256xf32>
    %649 = vector.broadcast %648 : vector<1x256xf32> to vector<4x256xf32>
    %650 = arith.mulf %647, %649 : vector<4x256xf32>
    %c0_539 = arith.constant 0 : index
    %c0_540 = arith.constant 0 : index
    %651 = vector.load %arg17[%c0_539, %c0_540] : memref<36x256xf32, #tpu.memory_space<vmem>>, vector<4x256xf32>
    tpu.vector_store %arg17[%c0_539, %c0_540], %650 {strides = array<i32>} : memref<36x256xf32, #tpu.memory_space<vmem>>, vector<4x256xf32>,
    %c16_i32_541 = arith.constant 16 : i32
    %652 = tpu.dynamic_rotate %646 by %c16_i32_541 dim 1 : vector<4x256xf32>, i32 -> vector<4x256xf32>
    %c1_542 = arith.constant 1 : index
    %c0_543 = arith.constant 0 : index
    %653 = vector.load %arg12[%c1_542, %c0_543] : memref<9x256xf32, #tpu.memory_space<vmem>>, vector<1x256xf32>
    %654 = vector.broadcast %653 : vector<1x256xf32> to vector<4x256xf32>
    %655 = arith.mulf %652, %654 : vector<4x256xf32>
    %c4_544 = arith.constant 4 : index
    %c0_545 = arith.constant 0 : index
    %656 = vector.load %arg17[%c4_544, %c0_545] : memref<36x256xf32, #tpu.memory_space<vmem>>, vector<4x256xf32>
    tpu.vector_store %arg17[%c4_544, %c0_545], %655 {strides = array<i32>} : memref<36x256xf32, #tpu.memory_space<vmem>>, vector<4x256xf32>,
    %c15_i32_546 = arith.constant 15 : i32
    %657 = tpu.dynamic_rotate %646 by %c15_i32_546 dim 1 : vector<4x256xf32>, i32 -> vector<4x256xf32>
    %c2_547 = arith.constant 2 : index
    %c0_548 = arith.constant 0 : index
    %658 = vector.load %arg12[%c2_547, %c0_548] : memref<9x256xf32, #tpu.memory_space<vmem>>, vector<1x256xf32>
    %659 = vector.broadcast %658 : vector<1x256xf32> to vector<4x256xf32>
    %660 = arith.mulf %657, %659 : vector<4x256xf32>
    %c8_549 = arith.constant 8 : index
    %c0_550 = arith.constant 0 : index
    %661 = vector.load %arg17[%c8_549, %c0_550] : memref<36x256xf32, #tpu.memory_space<vmem>>, vector<4x256xf32>
    tpu.vector_store %arg17[%c8_549, %c0_550], %660 {strides = array<i32>} : memref<36x256xf32, #tpu.memory_space<vmem>>, vector<4x256xf32>,
    %c1_i32_551 = arith.constant 1 : i32
    %662 = tpu.dynamic_rotate %646 by %c1_i32_551 dim 1 : vector<4x256xf32>, i32 -> vector<4x256xf32>
    %c3_552 = arith.constant 3 : index
    %c0_553 = arith.constant 0 : index
    %663 = vector.load %arg12[%c3_552, %c0_553] : memref<9x256xf32, #tpu.memory_space<vmem>>, vector<1x256xf32>
    %664 = vector.broadcast %663 : vector<1x256xf32> to vector<4x256xf32>
    %665 = arith.mulf %662, %664 : vector<4x256xf32>
    %c12_554 = arith.constant 12 : index
    %c0_555 = arith.constant 0 : index
    %666 = vector.load %arg17[%c12_554, %c0_555] : memref<36x256xf32, #tpu.memory_space<vmem>>, vector<4x256xf32>
    tpu.vector_store %arg17[%c12_554, %c0_555], %665 {strides = array<i32>} : memref<36x256xf32, #tpu.memory_space<vmem>>, vector<4x256xf32>,
    %c4_556 = arith.constant 4 : index
    %c0_557 = arith.constant 0 : index
    %667 = vector.load %arg12[%c4_556, %c0_557] : memref<9x256xf32, #tpu.memory_space<vmem>>, vector<1x256xf32>
    %668 = vector.broadcast %667 : vector<1x256xf32> to vector<4x256xf32>
    %669 = arith.mulf %646, %668 : vector<4x256xf32>
    %c16_558 = arith.constant 16 : index
    %c0_559 = arith.constant 0 : index
    %670 = vector.load %arg17[%c16_558, %c0_559] : memref<36x256xf32, #tpu.memory_space<vmem>>, vector<4x256xf32>
    tpu.vector_store %arg17[%c16_558, %c0_559], %669 {strides = array<i32>} : memref<36x256xf32, #tpu.memory_space<vmem>>, vector<4x256xf32>,
    %c255_i32_560 = arith.constant 255 : i32
    %671 = tpu.dynamic_rotate %646 by %c255_i32_560 dim 1 : vector<4x256xf32>, i32 -> vector<4x256xf32>
    %c5_561 = arith.constant 5 : index
    %c0_562 = arith.constant 0 : index
    %672 = vector.load %arg12[%c5_561, %c0_562] : memref<9x256xf32, #tpu.memory_space<vmem>>, vector<1x256xf32>
    %673 = vector.broadcast %672 : vector<1x256xf32> to vector<4x256xf32>
    %674 = arith.mulf %671, %673 : vector<4x256xf32>
    %c20_563 = arith.constant 20 : index
    %c0_564 = arith.constant 0 : index
    %675 = vector.load %arg17[%c20_563, %c0_564] : memref<36x256xf32, #tpu.memory_space<vmem>>, vector<4x256xf32>
    tpu.vector_store %arg17[%c20_563, %c0_564], %674 {strides = array<i32>} : memref<36x256xf32, #tpu.memory_space<vmem>>, vector<4x256xf32>,
    %c241_i32_565 = arith.constant 241 : i32
    %676 = tpu.dynamic_rotate %646 by %c241_i32_565 dim 1 : vector<4x256xf32>, i32 -> vector<4x256xf32>
    %c6_566 = arith.constant 6 : index
    %c0_567 = arith.constant 0 : index
    %677 = vector.load %arg12[%c6_566, %c0_567] : memref<9x256xf32, #tpu.memory_space<vmem>>, vector<1x256xf32>
    %678 = vector.broadcast %677 : vector<1x256xf32> to vector<4x256xf32>
    %679 = arith.mulf %676, %678 : vector<4x256xf32>
    %c24_568 = arith.constant 24 : index
    %c0_569 = arith.constant 0 : index
    %680 = vector.load %arg17[%c24_568, %c0_569] : memref<36x256xf32, #tpu.memory_space<vmem>>, vector<4x256xf32>
    tpu.vector_store %arg17[%c24_568, %c0_569], %679 {strides = array<i32>} : memref<36x256xf32, #tpu.memory_space<vmem>>, vector<4x256xf32>,
    %c240_i32_570 = arith.constant 240 : i32
    %681 = tpu.dynamic_rotate %646 by %c240_i32_570 dim 1 : vector<4x256xf32>, i32 -> vector<4x256xf32>
    %c7_571 = arith.constant 7 : index
    %c0_572 = arith.constant 0 : index
    %682 = vector.load %arg12[%c7_571, %c0_572] : memref<9x256xf32, #tpu.memory_space<vmem>>, vector<1x256xf32>
    %683 = vector.broadcast %682 : vector<1x256xf32> to vector<4x256xf32>
    %684 = arith.mulf %681, %683 : vector<4x256xf32>
    %c28_573 = arith.constant 28 : index
    %c0_574 = arith.constant 0 : index
    %685 = vector.load %arg17[%c28_573, %c0_574] : memref<36x256xf32, #tpu.memory_space<vmem>>, vector<4x256xf32>
    tpu.vector_store %arg17[%c28_573, %c0_574], %684 {strides = array<i32>} : memref<36x256xf32, #tpu.memory_space<vmem>>, vector<4x256xf32>,
    %c239_i32_575 = arith.constant 239 : i32
    %686 = tpu.dynamic_rotate %646 by %c239_i32_575 dim 1 : vector<4x256xf32>, i32 -> vector<4x256xf32>
    %c8_576 = arith.constant 8 : index
    %c0_577 = arith.constant 0 : index
    %687 = vector.load %arg12[%c8_576, %c0_577] : memref<9x256xf32, #tpu.memory_space<vmem>>, vector<1x256xf32>
    %688 = vector.broadcast %687 : vector<1x256xf32> to vector<4x256xf32>
    %689 = arith.mulf %686, %688 : vector<4x256xf32>
    %c32_578 = arith.constant 32 : index
    %c0_579 = arith.constant 0 : index
    %690 = vector.load %arg17[%c32_578, %c0_579] : memref<36x256xf32, #tpu.memory_space<vmem>>, vector<4x256xf32>
    tpu.vector_store %arg17[%c32_578, %c0_579], %689 {strides = array<i32>} : memref<36x256xf32, #tpu.memory_space<vmem>>, vector<4x256xf32>,
    %c0_580 = arith.constant 0 : index
    %c0_581 = arith.constant 0 : index
    %691 = vector.load %arg17[%c0_580, %c0_581] : memref<36x256xf32, #tpu.memory_space<vmem>>, vector<36x256xf32>
    %c8_582 = arith.constant 8 : index
    %c0_583 = arith.constant 0 : index
    %c0_584 = arith.constant 0 : index
    %692 = vector.load %arg6[%c8_582, %c0_583, %c0_584] : memref<9x4x36xf32, #tpu.memory_space<vmem>>, vector<1x4x36xf32>
    %693 = vector.shape_cast %692 : vector<1x4x36xf32> to vector<4x36xf32>
    %cst_585 = arith.constant dense<0.000000e+00> : vector<4x256xf32>
    %694 = tpu.matmul %693, %691, %cst_585 {dimension_numbers = #tpu.dot_dimension_numbers<[1], [0], [0], [1], [0, 0, 1, 1], [], []>} : vector<4x36xf32>, vector<36x256xf32>, vector<4x256xf32> -> vector<4x256xf32>
    %c8_586 = arith.constant 8 : index
    %c0_587 = arith.constant 0 : index
    %c0_588 = arith.constant 0 : index
    %695 = vector.load %arg7[%c8_586, %c0_587, %c0_588] : memref<9x4x1xf32, #tpu.memory_space<vmem>>, vector<1x4x1xf32>
    %696 = vector.shape_cast %695 : vector<1x4x1xf32> to vector<4x1xf32>
    %697 = vector.broadcast %696 : vector<4x1xf32> to vector<4x256xf32>
    %698 = arith.addf %694, %697 : vector<4x256xf32>
    %699 = arith.addf %698, %592 : vector<4x256xf32>
    %c0_589 = arith.constant 0 : index
    %c0_590 = arith.constant 0 : index
    %700 = vector.load %arg10[%c0_589, %c0_590] : memref<4x4xf32, #tpu.memory_space<vmem>>, vector<4x4xf32>
    %cst_591 = arith.constant dense<0.000000e+00> : vector<4x256xf32>
    %701 = tpu.matmul %700, %699, %cst_591 {dimension_numbers = #tpu.dot_dimension_numbers<[1], [0], [0], [1], [0, 0, 1, 1], [], []>} : vector<4x4xf32>, vector<4x256xf32>, vector<4x256xf32> -> vector<4x256xf32>
    %c0_592 = arith.constant 0 : index
    %c0_593 = arith.constant 0 : index
    %702 = vector.load %arg11[%c0_592, %c0_593] : memref<4x1xf32, #tpu.memory_space<vmem>>, vector<4x1xf32>
    %703 = vector.broadcast %702 : vector<4x1xf32> to vector<4x256xf32>
    %704 = arith.addf %701, %703 : vector<4x256xf32>
    %cst_594 = arith.constant 0.000000e+00 : f32
    %705 = vector.broadcast %cst_594 : f32 to vector<4x256xf32>
    %706 = arith.subf %705, %704 : vector<4x256xf32>
    %707 = math.exp %706 : vector<4x256xf32>
    %cst_595 = arith.constant 1.000000e+00 : f32
    %708 = vector.broadcast %cst_595 : f32 to vector<4x256xf32>
    %709 = arith.addf %708, %707 : vector<4x256xf32>
    %cst_596 = arith.constant 1.000000e+00 : f32
    %710 = vector.broadcast %cst_596 : f32 to vector<4x256xf32>
    %711 = arith.divf %710, %709 : vector<4x256xf32>
    %c0_597 = arith.constant 0 : index
    %c0_598 = arith.constant 0 : index
    %c0_599 = arith.constant 0 : index
    %712 = vector.load %arg16[%c0_597, %c0_598, %c0_599] : memref<1x4x256xf32, #tpu.memory_space<vmem>>, vector<1x4x256xf32>
    %713 = vector.shape_cast %712 : vector<1x4x256xf32> to vector<4x256xf32>
    %714 = vector.shape_cast %711 : vector<4x256xf32> to vector<1x4x256xf32>
    tpu.vector_store %arg16[%c0_597, %c0_598, %c0_599], %714 {strides = array<i32>} : memref<1x4x256xf32, #tpu.memory_space<vmem>>, vector<1x4x256xf32>,
    return
  }
  func.func @transform_0(%arg0: i32) -> (i32, i32, i32) {
    %c0_i32 = arith.constant 0 : i32
    %c0_i32_0 = arith.constant 0 : i32
    %c0_i32_1 = arith.constant 0 : i32
    return %arg0, %c0_i32, %c0_i32_0 : i32, i32, i32
  }
  func.func @transform_1(%arg0: i32) -> (i32, i32) {
    %c0_i32 = arith.constant 0 : i32
    %c0_i32_0 = arith.constant 0 : i32
    %c0_i32_1 = arith.constant 0 : i32
    return %c0_i32, %c0_i32_0 : i32, i32
  }
  func.func @transform_2(%arg0: i32) -> (i32, i32) {
    %c0_i32 = arith.constant 0 : i32
    %c0_i32_0 = arith.constant 0 : i32
    %c0_i32_1 = arith.constant 0 : i32
    return %c0_i32, %c0_i32_0 : i32, i32
  }
  func.func @transform_3(%arg0: i32) -> (i32, i32) {
    %c0_i32 = arith.constant 0 : i32
    %c0_i32_0 = arith.constant 0 : i32
    %c0_i32_1 = arith.constant 0 : i32
    return %c0_i32, %c0_i32_0 : i32, i32
  }
  func.func @transform_4(%arg0: i32) -> (i32, i32) {
    %c0_i32 = arith.constant 0 : i32
    %c0_i32_0 = arith.constant 0 : i32
    %c0_i32_1 = arith.constant 0 : i32
    return %c0_i32, %c0_i32_0 : i32, i32
  }
  func.func @transform_5(%arg0: i32) -> (i32, i32, i32) {
    %c0_i32 = arith.constant 0 : i32
    %c0_i32_0 = arith.constant 0 : i32
    %c0_i32_1 = arith.constant 0 : i32
    %c0_i32_2 = arith.constant 0 : i32
    return %c0_i32, %c0_i32_0, %c0_i32_1 : i32, i32, i32
  }
  func.func @transform_6(%arg0: i32) -> (i32, i32, i32) {
    %c0_i32 = arith.constant 0 : i32
    %c0_i32_0 = arith.constant 0 : i32
    %c0_i32_1 = arith.constant 0 : i32
    %c0_i32_2 = arith.constant 0 : i32
    return %c0_i32, %c0_i32_0, %c0_i32_1 : i32, i32, i32
  }
  func.func @transform_7(%arg0: i32) -> (i32, i32) {
    %c0_i32 = arith.constant 0 : i32
    %c0_i32_0 = arith.constant 0 : i32
    %c0_i32_1 = arith.constant 0 : i32
    return %c0_i32, %c0_i32_0 : i32, i32
  }
  func.func @transform_8(%arg0: i32) -> (i32, i32) {
    %c0_i32 = arith.constant 0 : i32
    %c0_i32_0 = arith.constant 0 : i32
    %c0_i32_1 = arith.constant 0 : i32
    return %c0_i32, %c0_i32_0 : i32, i32
  }
  func.func @transform_9(%arg0: i32) -> (i32, i32) {
    %c0_i32 = arith.constant 0 : i32
    %c0_i32_0 = arith.constant 0 : i32
    %c0_i32_1 = arith.constant 0 : i32
    return %c0_i32, %c0_i32_0 : i32, i32
  }
  func.func @transform_10(%arg0: i32) -> (i32, i32) {
    %c0_i32 = arith.constant 0 : i32
    %c0_i32_0 = arith.constant 0 : i32
    %c0_i32_1 = arith.constant 0 : i32
    return %c0_i32, %c0_i32_0 : i32, i32
  }
  func.func @transform_11(%arg0: i32) -> (i32, i32) {
    %c0_i32 = arith.constant 0 : i32
    %c0_i32_0 = arith.constant 0 : i32
    %c0_i32_1 = arith.constant 0 : i32
    return %c0_i32, %c0_i32_0 : i32, i32
  }
  func.func @transform_12(%arg0: i32) -> (i32, i32) {
    %c0_i32 = arith.constant 0 : i32
    %c0_i32_0 = arith.constant 0 : i32
    %c0_i32_1 = arith.constant 0 : i32
    return %c0_i32, %c0_i32_0 : i32, i32
  }
  func.func @transform_13(%arg0: i32) -> (i32, i32) {
    %c0_i32 = arith.constant 0 : i32
    %c0_i32_0 = arith.constant 0 : i32
    %c0_i32_1 = arith.constant 0 : i32
    return %c0_i32, %c0_i32_0 : i32, i32
  }
  func.func @transform_14(%arg0: i32) -> (i32, i32) {
    %c0_i32 = arith.constant 0 : i32
    %c0_i32_0 = arith.constant 0 : i32
    %c0_i32_1 = arith.constant 0 : i32
    return %c0_i32, %c0_i32_0 : i32, i32
  }
  func.func @transform_15(%arg0: i32) -> (i32, i32, i32) {
    %c0_i32 = arith.constant 0 : i32
    %c0_i32_0 = arith.constant 0 : i32
    %c0_i32_1 = arith.constant 0 : i32
    return %arg0, %c0_i32, %c0_i32_0 : i32, i32, i32
  }
}

</mosaic_0001>

<bundles_post_ra>
// kernel: tpu_custom_call.1
= control target key start
LH: loop header
LB: loop body
LE: loop exit
PB: predicated region body
PF: predicated region fallthrough
CT: control target
= control target key end

     0   :  { %s8875_s0 = inlined_call_operand.hbm [shape: f32[2,4,256], index: 0, kind: input, shape index: {}]   ;;  %s8876_s1 = inlined_call_operand.vmem [shape: f32[6,4], index: 1, kind: input, shape index: {}]   ;;  %s8877_s2 = inlined_call_operand.vmem [shape: f32[6,1], index: 2, kind: input, shape index: {}]   ;;  %s8878_s3 = inlined_call_operand.vmem [shape: f32[4,2], index: 3, kind: input, shape index: {}]   ;;  %s8879_s4 = inlined_call_operand.vmem [shape: f32[4,1], index: 4, kind: input, shape index: {}]   ;;  %s8880_s5 = inlined_call_operand.vmem [shape: f32[9,4,36], index: 5, kind: input, shape index: {}]   ;;  %s8881_s6 = inlined_call_operand.vmem [shape: f32[9,4,1], index: 6, kind: input, shape index: {}]   ;;  %s8882_s7 = inlined_call_operand.vmem [shape: f32[4,144], index: 7, kind: input, shape index: {}]   ;;  %s8883_s8 = inlined_call_operand.vmem [shape: f32[4,1], index: 8, kind: input, shape index: {}]   ;;  %s8884_s9 = inlined_call_operand.vmem [shape: f32[4,4], index: 9, kind: input, shape index: {}]   ;;  %s8885_s10 = inlined_call_operand.vmem [shape: f32[4,1], index: 10, kind: input, shape index: {}]   ;;  %s8886_s11 = inlined_call_operand.hbm [shape: f32[9,256], index: 11, kind: input, shape index: {}]   ;;  %s8887_s12 = inlined_call_operand.hbm [shape: f32[9,256], index: 12, kind: input, shape index: {}]   ;;  %s8888_s13 = inlined_call_operand.vmem [shape: f32[36,256], index: 13, kind: input, shape index: {}]   ;;  %s8889_s14 = inlined_call_operand.vmem [shape: f32[1,256], index: 14, kind: input, shape index: {}]   ;;  %s8890_s15 = inlined_call_operand.hbm [shape: f32[2,4,256], index: 15, kind: output, shape index: {}]  }
   0x1   :  { %8958 = sst [smem:[#allocation32_spill]] %s8875_s0 }
   0x2   :  { %8959 = sst [smem:[#allocation33_spill]] %s8876_s1 }
   0x3   :  { %8960 = sst [smem:[#allocation34_spill]] %s8877_s2 }
   0x4   :  { %8961 = sst [smem:[#allocation35_spill]] %s8882_s7 }
   0x5   :  { %8962 = sst [smem:[#allocation36_spill]] %s8883_s8 }
   0x6   :  { %8963 = sst [smem:[#allocation37_spill]] %s8884_s9 }
   0x7   :  { %8964 = sst [smem:[#allocation38_spill]] %s8885_s10 }
   0x8   :  { %8965 = sst [smem:[#allocation39_spill]] %s8890_s15 }
   0x9   :  { %20 = vsyncpa [#allocation5], 0 }
   0xa   :  { %22 = vsyncpa [#allocation5 + $0x1], 0 }
   0xb   :  { %23 = vsyncpa [#allocation8], 0 }
   0xc   :  { %24 = vsyncpa [#allocation6], 0 }
   0xd   :  { %26 = vsyncpa [#allocation6 + $0x1], 0  ;;  %s6799_s18 = smov 0   ;;  %s6801_s19 = smov 0  }
   0xe   :  { %s6803_s20 = smov 0   ;;  %s6805_s21 = smov 0  }
   0xf LB: > { %8966 = sst [smem:[#allocation14_spill]] %s6662_s18  ;;  %s6820_s22 = sadd.s32 4294967295, %s6674_s21   ;;  %s6674_s21 = sphi %s6805_s21, %s9087_s21   ;;  %s6670_s20 = sphi %s6803_s20, %s9086_s20   ;;  %s6666_s19 = sphi %s6801_s19, %s9085_s19   ;;  %s6662_s18 = sphi %s6799_s18, %s9084_s18  }
  0x10   : > { %s5893_s23 = sadd.s32 4294967294, %s6674_s21   ;;  %p52_p0 = scmp.ne.s32.totalorder %s6666_s19, %s6662_s18 }
  0x11   : > { %p8894_p1 = scmp.eq.s32.totalorder %s6820_s22, 0  ;;  %p376_p3 = scmp.eq.s32.totalorder %s5893_s23, 1 }
  0x12   : > { %p5894_p5 = scmp.ge.s32.totalorder %s6674_s21, 1  ;;  %p383_p7 = scmp.lt.s32.totalorder %s6674_s21, 3 }
  0x13   : > { %p6829_p4 = por %p8894_p1, %p52_p0  ;;  %p6834_p6 = por %p376_p3, %p52_p0 }
  0x14   : > { %p6839_p8 = pnand %p5894_p5, %p383_p7  ;;  %s6676_s27 = smov [#allocation7]  }
  0x15   : > { %s8967_s24 = scalar_select %p6829_p4, 1, 0 }
  0x16   : > { %s8968_s25 = scalar_select %p6834_p6, 1, 0 }
  0x17   : > { %s425_s28 = sshll.u32 %s6676_s27, 4  ;;  %p6219_p9 = pneg %p6839_p8  ;;  %s6843_s28 = int_to_ptr.vmem [resolvable:$true] %s425_s28 }
  0x18   : > { %8969 = sst [smem:[#allocation15_spill]] %s8968_s25  ;;  %s6677_s30 = smov [#allocation9]  }
  0x19   : > { %p6850_p11 = pnand %p6219_p9, %p8894_p1  ;;  %s438_s16 = sshll.u32 %s6677_s30, 4  ;;  %s6854_s16 = int_to_ptr.vmem [resolvable:$true] %s438_s16 }
  0x1a   : > { %s6518_s27 = scalar_lea.hbm %s8886_s11, 512 }
  0x1b   : > { %p6519_p12 = scmp.ne.s32.totalorder %s8886_s11, %s6518_s27  ;;  %p6520_p13 = pneg %p6850_p11 }
  0x1c   : > { %p6525_p5 = scmp.lt.u32.totalorder %s6518_s27, %s8886_s11 }
  0x1d   : > { %p6521_p0 = pnand %p6520_p13, %p6519_p12 }
  0x1f   : > { %p6522_p3 = pneg %p6521_p0 }
  0x21   : > { %p6527_p7 = pnand %p6525_p5, %p6522_p3 }
  0x23   : > { %6530 = shalt.err (!%p6527_p7)
}
  0x24   : > { %s6531_s30 = scalar_lea.vmem %s6843_s28, 512  ;;  %p6539_p2 = scmp.lt.s32.totalorder %s6843_s28, %s6843_s28 }
  0x25   : > { %p6532_p9 = scmp.ne.s32.totalorder %s6843_s28, %s6531_s30  ;;  %p6540_p12 = scmp.lt.s32.totalorder %s6531_s30, %s6531_s30 }
  0x27   : > { %p6534_p10 = pnand %p6532_p9, %p6520_p13  ;;  %p6541_p0 = por %p6540_p12, %p6539_p2 }
  0x29   : > { %p6535_p1 = pneg %p6534_p10 }
  0x2b   : > { %p6542_p6 = pnand %p6541_p0, %p6535_p1 }
  0x2d   : > { %6545 = shalt.err (!%p6542_p6)
}
  0x2e   : > { %s6678_s9 = smov 256   ;;  %s6679_s15 = smov 16  }
  0x2f   : > { %6222 = dma.hbm_to_vmem [thread:$0]  (!%p6850_p11), %s8886_s11, 512, %s6843_s28, [#allocation8], %s6678_s9, %s6678_s9, %s6679_s15  }
  0x30   : > { %s6546_s27 = scalar_lea.hbm %s8887_s12, 512 }
  0x31   : > { %p6547_p2 = scmp.ne.s32.totalorder %s8887_s12, %s6546_s27  ;;  %p6553_p10 = scmp.lt.u32.totalorder %s6546_s27, %s8887_s12 }
  0x33   : > { %p6549_p1 = pnand %p6547_p2, %p6520_p13 }
  0x35   : > { %p6550_p6 = pneg %p6549_p1 }
  0x37   : > { %p6555_p3 = pnand %p6553_p10, %p6550_p6 }
  0x39   : > { %6558 = shalt.err (!%p6555_p3)
}
  0x3a   : > { %s6559_s28 = scalar_lea.vmem %s6854_s16, 512  ;;  %p6567_p12 = scmp.lt.s32.totalorder %s6854_s16, %s6854_s16 }
  0x3b   : > { %p6560_p5 = scmp.ne.s32.totalorder %s6854_s16, %s6559_s28  ;;  %p6568_p0 = scmp.lt.s32.totalorder %s6559_s28, %s6559_s28 }
  0x3d   : > { %p6562_p7 = pnand %p6560_p5, %p6520_p13  ;;  %p6569_p2 = por %p6568_p0, %p6567_p12 }
  0x3f   : > { %p6563_p9 = pneg %p6562_p7 }
  0x41   : > { %p6570_p1 = pnand %p6569_p2, %p6563_p9 }
  0x43   : > { %6573 = shalt.err (!%p6570_p1)
}
  0x44   : > { %6225 = dma.hbm_to_vmem [thread:$0]  (!%p6850_p11), %s8887_s12, 512, %s6854_s16, [#allocation8], %s6678_s9, %s6678_s9, %s6679_s15  }
  0x45   : > { %s6909_s10 = sadd.s32 1, %s6674_s21   ;;  %s39_s29 = sadd.s32 1, %s6670_s20 }
  0x46   : > { %s36_s18 = ssub.s32 %s6674_s21, %s6909_s10  ;;  %p46_p13 = scmp.ne.s32.totalorder %s6670_s20, %s6666_s19 }
  0x47   : > { %p37_p6 = scmp.eq.s32.totalorder %s36_s18, 0  ;;  %p47_p10 = scmp.eq.s32.totalorder %s6674_s21, 0 }
  0x48   : > { %p8972_p3 = scmp.eq.s32.totalorder %s6820_s22, 1  ;;  %p6236_p7 = scmp.lt.s32.totalorder %s6674_s21, 2 }
  0x49   : > { %s6925_s17 = scalar_select %p37_p6, %s6670_s20, %s39_s29  }
  0x4a   : > { %p6919_p5 = por %p8972_p3, %p46_p13  ;;  %p48_p9 = por %p47_p10, %p46_p13 }
  0x4b   : > { %s458_s23 = sand.u32 1, %s6670_s20   ;;  %s6033_s16 = sshll.u32 %s6674_s21, 7 }
  0x4c   : > { %s8973_s25 = scalar_select %p6919_p5, 1, 0 }
  0x4d   : > { %s5898_s27 = sshll.u32 %s458_s23, 3  ;;  %s8974_s0 = sld [smem:[#allocation32_spill]] }
  0x4e   : > { %s462_s28 = scalar_lea.vmem [#allocation4], %s5898_s27  ;;  %p6936_p11 = pnand %p6236_p7, %p48_p9 }
  0x4f   : > { %s470_s7 = sshll.u32 %s462_s28, 4  ;;  %s459_s29 = scalar_lea.sflag [#allocation5], %s458_s23  ;;  %s6934_s7 = int_to_ptr.vmem [resolvable:$true] %s470_s7 }
  0x50   : > { %p6576_p0 = pneg %p6936_p11 }
  0x53   : > { %s6932_s30 = scalar_lea.hbm %s8974_s0, %s6033_s16  ;;  %s6579_s9 = scalar_lea.hbm %s8974_s0, 256 }
  0x54   : > { %s6574_s18 = scalar_lea.hbm %s6932_s30, 128  ;;  %p6580_p13 = scmp.lt.u32.totalorder %s6932_s30, %s8974_s0 }
  0x55   : > { %p6575_p12 = scmp.ne.s32.totalorder %s6932_s30, %s6574_s18  ;;  %p6581_p6 = scmp.lt.u32.totalorder %s6579_s9, %s6574_s18 }
  0x56   : > { %p6583_p3 = scmp.lt.u32.totalorder %s6574_s18, %s6932_s30 }
  0x57   : > { %p6577_p2 = pnand %p6576_p0, %p6575_p12  ;;  %p6582_p10 = por %p6581_p6, %p6580_p13 }
  0x59   : > { %p6578_p1 = pneg %p6577_p2  ;;  %p6584_p7 = por %p6583_p3, %p6582_p10 }
  0x5b   : > { %p6585_p9 = pnand %p6584_p7, %p6578_p1 }
  0x5d   : > { %6588 = shalt.err (!%p6585_p9)
}
  0x5e   : > { %s6589_s23 = scalar_lea.vmem %s6934_s7, 128  ;;  %s6680_s16 = smov [#allocation4]  }
  0x5f   : > { %p6590_p12 = scmp.ne.s32.totalorder %s6934_s7, %s6589_s23  ;;  %s6594_s27 = sshll.u32 %s6680_s16, 4  ;;  %s6595_s27 = int_to_ptr.vmem [resolvable:$false] %s6594_s27 }
  0x60   : > { %s6596_s15 = scalar_lea.vmem %s6595_s27, 256  ;;  %p6597_p4 = scmp.lt.s32.totalorder %s6934_s7, %s6595_s27 }
  0x61   : > { %p6592_p2 = pnand %p6590_p12, %p6576_p0  ;;  %p6598_p13 = scmp.lt.s32.totalorder %s6596_s15, %s6589_s23 }
  0x63   : > { %p6593_p5 = pneg %p6592_p2  ;;  %p6599_p6 = por %p6598_p13, %p6597_p4 }
  0x65   : > { %p6600_p10 = pnand %p6599_p6, %p6593_p5 }
  0x67   : > { %6603 = shalt.err (!%p6600_p10)
}
  0x68   : > { %6229 = dma.hbm_to_vmem [thread:$0]  (!%p6936_p11), %s6932_s30, 128, %s6934_s7, %s459_s29  }
  0x69   : > { %479 = sbr.rel (%p6839_p8) target bundleno = 5690 (0x163a), region = 80 }
  0x70   : > { %s6968_s18 = sand.u32 1, %s6666_s19   ;;  %p8976_p4 = scmp.ne.s32.totalorder %s8967_s24, 0 }
  0x71   : > { %s8928_s9 = sshll.u32 %s6968_s18, 3  ;;  %s482_s28 = scalar_lea.sflag [#allocation5], %s6968_s18 }
  0x72   : > { %s6974_s23 = scalar_lea.vmem [#allocation4], %s8928_s9 }
  0x73   : > { %6649 = dma.done.wait (%p8976_p4), %s482_s28, 128  }
  0x74   : > { %6651 = vsyncadd (%p8976_p4), %s482_s28, 4294967168  ;;  %p8977_p5 = scmp.eq.s32.totalorder %s6820_s22, 0 }
  0x76   : > { %6653 = dma.done.wait (%p8977_p5), [#allocation8], 1024   ;;  %p8978_p8 = pmov %p8977_p5 }
  0x77   : > { %v8897_v0 = vmov 0.0   ;;  %v6682_v1 = vmov 0   ;;  %v540_v2 = vld [vmem:[%s6974_s23] sm:$0xff]  ;;  %vm8957_vm0 = vcmask 1043456   ;;  %s8979_s2 = sld [smem:[#allocation34_spill]]  ;;  %s8981_s1 = sld [smem:[#allocation33_spill]] }
  0x78   : > { %6655 = vsyncadd (%p8978_p8), [#allocation8], 4294966272  ;;  %623 = vmatprep.mubr.f32.mxu1 %v8897_v0  ;;  %6313 = vset.pattern.permute.xlu0 %v6682_v1  ;;  %v6989_v4 = vcombine.high %v540_v2, %v540_v2  ;;  %vm8941_vm1 = vcmask 31744   ;;  %vm797_vm2 = vcmask 1041408   ;;  %vm700_vm3 = vcmask 15360   ;;  %s8935_s15 = smov 1  }
  0x79   : > { %s8929_s28 = smov 16   ;;  %s8933_s26 = smov 15   ;;  %vm8956_vm12 = vcmask 293888  }
  0x7a   : > { %8980 = vst [vmem:[#allocation16_spill] sm:$0xff] %v6989_v4  ;;  %5906 = vmatprep.subr.msk.mxu1 %vm8957_vm0, %v6989_v4  ;;  %s8937_s30 = smov 127   ;;  %s8939_s24 = smov 112  }
  0x7b   : > { %5907 = vmatpush1.msk.msra.mxu1 %vm8957_vm0, %v540_v2  ;;  %s8954_s7 = smov 113   ;;  %s8952_s8 = smov 111  }
  0x7c   : > { %s8946_s9 = smov 32   ;;  %s8950_s16 = smov 2  }
  0x7d   : > { %v542_v3 = vld [vmem:[%s8979_s2] sm:$0x3f]  ;;  %s8944_s27 = smov 34   ;;  %s8948_s29 = smov 30  }
  0x7e   : > { %545 = vperm.xlu0 %6313, %v542_v3   ;;  %v541_v5 = vld [vmem:[%s8981_s1] sm:$0x3f]  ;;  %s9051_s2 = sld [smem:[#allocation35_spill]]  ;;  %s9056_s0 = smov 113  }
  0x7f   : > { %5908 = vmatmul.mubr.msk.f32.vlgmr.msra.gmra.mrb[0].mxu1 %vm8941_vm1, %v541_v5  ;;  %s9057_s1 = smov 111   ;;  %p9079_p0 = scmp.ne.s32.totalorder %s8973_s25, 0 }
  0x80   : > { %866 = vmatprep.mubr.f32.mxu1 %v8897_v0 }
  0xfd   : > { %v546_v6 = vpop.permute.xlu0 %545 }
 0x152   : > { %v625_v7 = vpop.f32.mrb[0].mxu1 }
 0x153   : > { %v6999_v8 = vadd.f32 %v625_v7, %v546_v6  ;;  %v627_v9 = vpop.f32.mrb[1].mxu1 }
 0x154   : > { %v628_v10 = vadd.f32 %v627_v9, %v546_v6 }
 0x155   : > { %8982 = vst [vmem:[#allocation17_spill] sm:$0xff] %v6999_v8  ;;  %v632_v11 = vrot.slane %v6999_v8, 2 }
 0x156   : > { %5909 = vmatprep.subr.msk.mxu1 %vm797_vm2, %v628_v10  ;;  %v1540_v12 = vrot.slane %v628_v10, 4  ;;  %v633_v13 = vrot.slane %v628_v10, 2 }
 0x157   : > { %5910 = vmatpush1.msk.msra.mxu1 %vm797_vm2, %v6999_v8  ;;  %636 = vxpose.xlu0.b32.start.end [1/1] (short) %v632_v11, 128 }
 0x158   : > { %1607 = vmatprep.mubr.f32.mxu0 %v1540_v12  ;;  %668 = vxpose.xlu1.b32.start.end [1/1] (short) %v633_v13, 128 }
 0x176   : > { %6314 = vset.pattern.permute.xlu1 %v6682_v1 }
 0x1d7   : > { %v652_v14 = vpop.trf.xlu0 }
 0x1d8   : > { %5911 = vmatmul.mubr.msk.f32.vlgmr.msra.gmra.mrb[2].mxu1 %vm700_vm3, %v652_v14  ;;  %v684_v23 = vpop.trf.xlu1 }
 0x1d9   : > { %872 = vmatprep.mubr.f32.mxu1 %v8897_v0 }
 0x1db   : > { %v653_v15 = vpop.trf.xlu0 }
 0x1dc   : > { %5912 = vmatmul.mubr.msk.f32.gmra.mrb[4].mxu1 %vm700_vm3, %v653_v15  ;;  %v685_v25 = vpop.trf.xlu1 }
 0x1dd   : > { %878 = vmatprep.mubr.f32.mxu1 %v8897_v0 }
 0x1df   : > { %v654_v16 = vpop.trf.xlu0 }
 0x1e0   : > { %5913 = vmatmul.mubr.msk.f32.gmra.mrb[6].mxu1 %vm700_vm3, %v654_v16  ;;  %v686_v28 = vpop.trf.xlu1 }
 0x1e1   : > { %884 = vmatprep.mubr.f32.mxu1 %v8897_v0 }
 0x1e3   : > { %v655_v17 = vpop.trf.xlu0 }
 0x1e4   : > { %5914 = vmatmul.mubr.msk.f32.gmra.mrb[8].mxu1 %vm700_vm3, %v655_v17  ;;  %v687_v30 = vpop.trf.xlu1 }
 0x1e5   : > { %890 = vmatprep.mubr.f32.mxu1 %v8897_v0 }
 0x1e7   : > { %v656_v18 = vpop.trf.xlu0 }
 0x1e8   : > { %5915 = vmatmul.mubr.msk.f32.gmra.mrb[10].mxu1 %vm700_vm3, %v656_v18  ;;  %v688_v33 = vpop.trf.xlu1 }
 0x1e9   : > { %896 = vmatprep.mubr.f32.mxu1 %v8897_v0 }
 0x1eb   : > { %v657_v19 = vpop.trf.xlu0 }
 0x1ec   : > { %5916 = vmatmul.mubr.msk.f32.gmra.mrb[12].mxu1 %vm700_vm3, %v657_v19  ;;  %v689_v35 = vpop.trf.xlu1 }
 0x1ed   : > { %902 = vmatprep.mubr.f32.mxu1 %v8897_v0 }
 0x1ef   : > { %v658_v20 = vpop.trf.xlu0 }
 0x1f0   : > { %5917 = vmatmul.mubr.msk.f32.gmra.mrb[14].mxu1 %vm700_vm3, %v658_v20  ;;  %v690_v36 = vpop.trf.xlu1 }
 0x1f1   : > { %908 = vmatprep.mubr.f32.mxu1 %v8897_v0 }
 0x1f3   : > { %v659_v21 = vpop.trf.xlu0 }
 0x1f4   : > { %5918 = vmatmul.mubr.msk.f32.gmra.mrb[16].mxu1 %vm700_vm3, %v659_v21  ;;  %v691_v37 = vpop.trf.xlu1 }
 0x1f5   : > { %914 = vmatprep.mubr.f32.mxu1 %v8897_v0 }
 0x1f7   : > { %v660_v22 = vpop.trf.xlu0 }
 0x1f8   : > { %5919 = vmatmul.mubr.msk.f32.gmra.mrb[18].mxu1 %vm700_vm3, %v660_v22  ;;  %v692_v38 = vpop.trf.xlu1 }
 0x1f9   : > { %920 = vmatprep.mubr.f32.mxu1 %v8897_v0 }
 0x1fb   : > { %v661_v24 = vpop.trf.xlu0 }
 0x1fc   : > { %5920 = vmatmul.mubr.msk.f32.gmra.mrb[20].mxu1 %vm700_vm3, %v661_v24  ;;  %v693_v39 = vpop.trf.xlu1 }
 0x1fd   : > { %926 = vmatprep.mubr.f32.mxu1 %v8897_v0 }
 0x1ff   : > { %v662_v26 = vpop.trf.xlu0 }
 0x200   : > { %5921 = vmatmul.mubr.msk.f32.gmra.mrb[22].mxu1 %vm700_vm3, %v662_v26  ;;  %v694_v40 = vpop.trf.xlu1 }
 0x201   : > { %932 = vmatprep.mubr.f32.mxu1 %v8897_v0 }
 0x203   : > { %v663_v27 = vpop.trf.xlu0 }
 0x204   : > { %5922 = vmatmul.mubr.msk.f32.gmra.mrb[24].mxu1 %vm700_vm3, %v663_v27  ;;  %v695_v41 = vpop.trf.xlu1 }
 0x205   : > { %938 = vmatprep.mubr.f32.mxu1 %v8897_v0 }
 0x207   : > { %v664_v29 = vpop.trf.xlu0 }
 0x208   : > { %5923 = vmatmul.mubr.msk.f32.gmra.mrb[26].mxu1 %vm700_vm3, %v664_v29  ;;  %v696_v42 = vpop.trf.xlu1 }
 0x209   : > { %944 = vmatprep.mubr.f32.mxu1 %v8897_v0 }
 0x20b   : > { %v665_v31 = vpop.trf.xlu0 }
 0x20c   : > { %5924 = vmatmul.mubr.msk.f32.gmra.mrb[28].mxu1 %vm700_vm3, %v665_v31  ;;  %v697_v43 = vpop.trf.xlu1 }
 0x20d   : > { %950 = vmatprep.mubr.f32.mxu1 %v8897_v0 }
 0x20f   : > { %v666_v32 = vpop.trf.xlu0 }
 0x210   : > { %5925 = vmatmul.mubr.msk.f32.gmra.mrb[30].mxu1 %vm700_vm3, %v666_v32  ;;  %v698_v44 = vpop.trf.xlu1 }
 0x211   : > { %956 = vmatprep.mubr.f32.mxu1 %v8897_v0 }
 0x213   : > { %v667_v34 = vpop.trf.xlu0 }
 0x214   : > { %5926 = vmatmul.mubr.msk.f32.gmra.mrb[32].mxu1 %vm700_vm3, %v667_v34  ;;  %v699_v45 = vpop.trf.xlu1 }
 0x215   : > { %962 = vmatprep.mubr.f32.mxu1 %v8897_v0 }
 0x218   : > { %5927 = vmatmul.mubr.msk.f32.gmra.mrb[34].mxu1 %vm700_vm3, %v684_v23 }
 0x219   : > { %968 = vmatprep.mubr.f32.mxu1 %v8897_v0 }
 0x21c   : > { %5928 = vmatmul.mubr.msk.f32.gmra.mrb[36].mxu1 %vm700_vm3, %v685_v25 }
 0x21d   : > { %974 = vmatprep.mubr.f32.mxu1 %v8897_v0 }
 0x220   : > { %5929 = vmatmul.mubr.msk.f32.gmra.mrb[38].mxu1 %vm700_vm3, %v686_v28 }
 0x221   : > { %980 = vmatprep.mubr.f32.mxu1 %v8897_v0 }
 0x224   : > { %5930 = vmatmul.mubr.msk.f32.gmra.mrb[40].mxu1 %vm700_vm3, %v687_v30 }
 0x225   : > { %986 = vmatprep.mubr.f32.mxu1 %v8897_v0 }
 0x228   : > { %5931 = vmatmul.mubr.msk.f32.gmra.mrb[42].mxu1 %vm700_vm3, %v688_v33 }
 0x229   : > { %992 = vmatprep.mubr.f32.mxu1 %v8897_v0 }
 0x22c   : > { %5932 = vmatmul.mubr.msk.f32.gmra.mrb[44].mxu1 %vm700_vm3, %v689_v35 }
 0x22d   : > { %998 = vmatprep.mubr.f32.mxu1 %v8897_v0 }
 0x230   : > { %5933 = vmatmul.mubr.msk.f32.gmra.mrb[46].mxu1 %vm700_vm3, %v690_v36 }
 0x231   : > { %1004 = vmatprep.mubr.f32.mxu1 %v8897_v0 }
 0x234   : > { %5934 = vmatmul.mubr.msk.f32.gmra.mrb[48].mxu1 %vm700_vm3, %v691_v37 }
 0x235   : > { %1010 = vmatprep.mubr.f32.mxu1 %v8897_v0 }
 0x238   : > { %5935 = vmatmul.mubr.msk.f32.gmra.mrb[50].mxu1 %vm700_vm3, %v692_v38 }
 0x239   : > { %1016 = vmatprep.mubr.f32.mxu1 %v8897_v0 }
 0x23c   : > { %5936 = vmatmul.mubr.msk.f32.gmra.mrb[52].mxu1 %vm700_vm3, %v693_v39 }
 0x23d   : > { %1022 = vmatprep.mubr.f32.mxu1 %v8897_v0 }
 0x240   : > { %5937 = vmatmul.mubr.msk.f32.gmra.mrb[54].mxu1 %vm700_vm3, %v694_v40 }
 0x241   : > { %1028 = vmatprep.mubr.f32.mxu1 %v8897_v0 }
 0x244   : > { %5938 = vmatmul.mubr.msk.f32.gmra.mrb[56].mxu1 %vm700_vm3, %v695_v41 }
 0x245   : > { %1034 = vmatprep.mubr.f32.mxu1 %v8897_v0 }
 0x248   : > { %5939 = vmatmul.mubr.msk.f32.gmra.mrb[58].mxu1 %vm700_vm3, %v696_v42 }
 0x249   : > { %1040 = vmatprep.mubr.f32.mxu1 %v8897_v0 }
 0x24c   : > { %5940 = vmatmul.mubr.msk.f32.gmra.mrb[60].mxu1 %vm700_vm3, %v697_v43 }
 0x24d   : > { %1046 = vmatprep.mubr.f32.mxu1 %v8897_v0 }
 0x250   : > { %5941 = vmatmul.mubr.msk.f32.gmra.mrb[62].mxu1 %vm700_vm3, %v698_v44 }
 0x251   : > { %1052 = vmatprep.mubr.f32.mxu1 %v8897_v0 }
 0x254   : > { %5942 = vmatmul.mubr.msk.f32.gmra.mrb[64].mxu1 %vm700_vm3, %v699_v45 }
 0x255   : > { %3959 = vmatprep.mubr.f32.mxu1 %v8897_v0 }
 0x2ab   : > { %v7069_v46 = vpop.f32.mrb[2].mxu1 }
 0x2ac   : > { %v7071_v47 = vpop.f32.mrb[3].mxu1 }
 0x2ad   : > { %v1059_v48 = vmax.f32 %v7069_v46, %v7071_v47 }
 0x2af   : > { %1060 = vmax.xlane.f32.xlu1 %v1059_v48  ;;  %v7075_v49 = vpop.f32.mrb[4].mxu1 }
 0x2b0   : > { %v7077_v50 = vpop.f32.mrb[5].mxu1 }
 0x2b1   : > { %v1062_v51 = vmax.f32 %v7075_v49, %v7077_v50 }
 0x2b3   : > { %1063 = vmax.xlane.f32.xlu0 %v1062_v51  ;;  %v7081_v52 = vpop.f32.mrb[6].mxu1 }
 0x2b4   : > { %v7083_v53 = vpop.f32.mrb[7].mxu1 }
 0x2b5   : > { %v1065_v54 = vmax.f32 %v7081_v52, %v7083_v53 }
 0x2b7   : > { %1066 = vmax.xlane.f32.xlu1 %v1065_v54  ;;  %v7087_v55 = vpop.f32.mrb[8].mxu1 }
 0x2b8   : > { %v7089_v56 = vpop.f32.mrb[9].mxu1 }
 0x2b9   : > { %v1068_v57 = vmax.f32 %v7087_v55, %v7089_v56 }
 0x2bb   : > { %1069 = vmax.xlane.f32.xlu1 %v1068_v57  ;;  %v7093_v58 = vpop.f32.mrb[10].mxu1 }
 0x2bc   : > { %v7095_v59 = vpop.f32.mrb[11].mxu1 }
 0x2bd   : > { %v1071_v60 = vmax.f32 %v7093_v58, %v7095_v59 }
 0x2bf   : > { %1072 = vmax.xlane.f32.xlu1 %v1071_v60  ;;  %v7099_v61 = vpop.f32.mrb[12].mxu1 }
 0x2c0   : > { %v7101_v62 = vpop.f32.mrb[13].mxu1 }
 0x2c1   : > { %v1074_v63 = vmax.f32 %v7099_v61, %v7101_v62 }
 0x2c3   : > { %1075 = vmax.xlane.f32.xlu1 %v1074_v63  ;;  %v7105_v1 = vpop.f32.mrb[14].mxu1 }
 0x2c4   : > { %v7107_v2 = vpop.f32.mrb[15].mxu1 }
 0x2c5   : > { %v1077_v3 = vmax.f32 %v7105_v1, %v7107_v2 }
 0x2c7   : > { %1078 = vmax.xlane.f32.xlu1 %v1077_v3  ;;  %v7111_v5 = vpop.f32.mrb[16].mxu1 }
 0x2c8   : > { %v7113_v6 = vpop.f32.mrb[17].mxu1 }
 0x2c9   : > { %v1080_v7 = vmax.f32 %v7111_v5, %v7113_v6 }
 0x2cb   : > { %1081 = vmax.xlane.f32.xlu1 %v1080_v7  ;;  %v7117_v9 = vpop.f32.mrb[18].mxu1 }
 0x2cc   : > { %v7119_v10 = vpop.f32.mrb[19].mxu1 }
 0x2cd   : > { %v1083_v11 = vmax.f32 %v7117_v9, %v7119_v10 }
 0x2cf   : > { %1084 = vmax.xlane.f32.xlu1 %v1083_v11  ;;  %v7123_v12 = vpop.f32.mrb[20].mxu1 }
 0x2d0   : > { %v7125_v13 = vpop.f32.mrb[21].mxu1 }
 0x2d1   : > { %v1086_v14 = vmax.f32 %v7123_v12, %v7125_v13 }
 0x2d3   : > { %1087 = vmax.xlane.f32.xlu1 %v1086_v14  ;;  %v7129_v15 = vpop.f32.mrb[22].mxu1 }
 0x2d4   : > { %v7131_v16 = vpop.f32.mrb[23].mxu1 }
 0x2d5   : > { %v1089_v17 = vmax.f32 %v7129_v15, %v7131_v16 }
 0x2d7   : > { %1090 = vmax.xlane.f32.xlu1 %v1089_v17  ;;  %v7135_v18 = vpop.f32.mrb[24].mxu1 }
 0x2d8   : > { %v7137_v19 = vpop.f32.mrb[25].mxu1 }
 0x2d9   : > { %v1092_v20 = vmax.f32 %v7135_v18, %v7137_v19 }
 0x2db   : > { %1093 = vmax.xlane.f32.xlu0 %v1092_v20  ;;  %v7141_v21 = vpop.f32.mrb[26].mxu1 }
 0x2dc   : > { %v7143_v22 = vpop.f32.mrb[27].mxu1 }
 0x2dd   : > { %v1095_v23 = vmax.f32 %v7141_v21, %v7143_v22 }
 0x2df   : > { %1096 = vmax.xlane.f32.xlu1 %v1095_v23  ;;  %v7147_v24 = vpop.f32.mrb[28].mxu1 }
 0x2e0   : > { %v7149_v25 = vpop.f32.mrb[29].mxu1 }
 0x2e1   : > { %v1098_v26 = vmax.f32 %v7147_v24, %v7149_v25 }
 0x2e3   : > { %1099 = vmax.xlane.f32.xlu0 %v1098_v26  ;;  %v7153_v27 = vpop.f32.mrb[30].mxu1 }
 0x2e4   : > { %v7155_v28 = vpop.f32.mrb[31].mxu1 }
 0x2e5   : > { %v1101_v29 = vmax.f32 %v7153_v27, %v7155_v28 }
 0x2e7   : > { %1102 = vmax.xlane.f32.xlu1 %v1101_v29  ;;  %v7159_v30 = vpop.f32.mrb[32].mxu1 }
 0x2e8   : > { %v7161_v31 = vpop.f32.mrb[33].mxu1 }
 0x2e9   : > { %v1104_v32 = vmax.f32 %v7159_v30, %v7161_v31 }
 0x2eb   : > { %1105 = vmax.xlane.f32.xlu0 %v1104_v32  ;;  %v7165_v33 = vpop.f32.mrb[34].mxu1 }
 0x2ec   : > { %v7167_v34 = vpop.f32.mrb[35].mxu1 }
 0x2ed   : > { %v1107_v35 = vmax.f32 %v7165_v33, %v7167_v34 }
 0x2ef   : > { %1108 = vmax.xlane.f32.xlu1 %v1107_v35  ;;  %v7171_v36 = vpop.f32.mrb[36].mxu1 }
 0x2f0   : > { %v7173_v37 = vpop.f32.mrb[37].mxu1 }
 0x2f1   : > { %v1110_v38 = vmax.f32 %v7171_v36, %v7173_v37 }
 0x2f3   : > { %1111 = vmax.xlane.f32.xlu0 %v1110_v38  ;;  %v7177_v39 = vpop.f32.mrb[38].mxu1 }
 0x2f4   : > { %v7179_v40 = vpop.f32.mrb[39].mxu1 }
 0x2f5   : > { %v1113_v41 = vmax.f32 %v7177_v39, %v7179_v40 }
 0x2f7   : > { %1114 = vmax.xlane.f32.xlu1 %v1113_v41  ;;  %v7183_v42 = vpop.f32.mrb[40].mxu1 }
 0x2f8   : > { %v7185_v43 = vpop.f32.mrb[41].mxu1 }
 0x2f9   : > { %v1116_v44 = vmax.f32 %v7183_v42, %v7185_v43 }
 0x2fb   : > { %1117 = vmax.xlane.f32.xlu0 %v1116_v44  ;;  %v7189_v45 = vpop.f32.mrb[42].mxu1 }
 0x2fc   : > { %v7191_v48 = vpop.f32.mrb[43].mxu1 }
 0x2fd   : > { %v1119_v51 = vmax.f32 %v7189_v45, %v7191_v48 }
 0x2ff   : > { %1120 = vmax.xlane.f32.xlu1 %v1119_v51  ;;  %v7195_v54 = vpop.f32.mrb[44].mxu1 }
 0x300   : > { %v7197_v57 = vpop.f32.mrb[45].mxu1 }
 0x301   : > { %v1122_v60 = vmax.f32 %v7195_v54, %v7197_v57 }
 0x303   : > { %1123 = vmax.xlane.f32.xlu0 %v1122_v60  ;;  %v7201_v63 = vpop.f32.mrb[46].mxu1 }
 0x304   : > { %v7203_v3 = vpop.f32.mrb[47].mxu1 }
 0x305   : > { %v1125_v7 = vmax.f32 %v7201_v63, %v7203_v3 }
 0x307   : > { %1126 = vmax.xlane.f32.xlu1 %v1125_v7  ;;  %v7207_v11 = vpop.f32.mrb[48].mxu1 }
 0x308   : > { %v7209_v14 = vpop.f32.mrb[49].mxu1 }
 0x309   : > { %v1128_v17 = vmax.f32 %v7207_v11, %v7209_v14 }
 0x30b   : > { %1129 = vmax.xlane.f32.xlu0 %v1128_v17  ;;  %v7213_v20 = vpop.f32.mrb[50].mxu1 }
 0x30c   : > { %v7215_v23 = vpop.f32.mrb[51].mxu1 }
 0x30d   : > { %v1131_v26 = vmax.f32 %v7213_v20, %v7215_v23 }
 0x30f   : > { %1132 = vmax.xlane.f32.xlu1 %v1131_v26  ;;  %v7219_v29 = vpop.f32.mrb[52].mxu1 }
 0x310   : > { %8983 = vst [vmem:[#allocation18_spill] sm:$0xff] %v7219_v29  ;;  %v7221_v32 = vpop.f32.mrb[53].mxu1 }
 0x311   : > { %8984 = vst [vmem:[#allocation19_spill] sm:$0xff] %v7221_v32  ;;  %v1134_v35 = vmax.f32 %v7219_v29, %v7221_v32 }
 0x313   : > { %1135 = vmax.xlane.f32.xlu0 %v1134_v35  ;;  %v7225_v38 = vpop.f32.mrb[54].mxu1 }
 0x314   : > { %8985 = vst [vmem:[#allocation20_spill] sm:$0xff] %v7225_v38  ;;  %v7227_v41 = vpop.f32.mrb[55].mxu1 }
 0x315   : > { %8986 = vst [vmem:[#allocation21_spill] sm:$0xff] %v7227_v41  ;;  %v1137_v44 = vmax.f32 %v7225_v38, %v7227_v41 }
 0x317   : > { %1138 = vmax.xlane.f32.xlu1 %v1137_v44  ;;  %v7231_v51 = vpop.f32.mrb[56].mxu1 }
 0x318   : > { %8987 = vst [vmem:[#allocation22_spill] sm:$0xff] %v7231_v51  ;;  %v7233_v60 = vpop.f32.mrb[57].mxu1 }
 0x319   : > { %8988 = vst [vmem:[#allocation23_spill] sm:$0xff] %v7233_v60  ;;  %v1140_v7 = vmax.f32 %v7231_v51, %v7233_v60 }
 0x31b   : > { %1141 = vmax.xlane.f32.xlu0 %v1140_v7  ;;  %v7237_v17 = vpop.f32.mrb[58].mxu1 }
 0x31c   : > { %8989 = vst [vmem:[#allocation24_spill] sm:$0xff] %v7237_v17  ;;  %v7239_v26 = vpop.f32.mrb[59].mxu1 }
 0x31d   : > { %8990 = vst [vmem:[#allocation25_spill] sm:$0xff] %v7239_v26  ;;  %v1143_v35 = vmax.f32 %v7237_v17, %v7239_v26 }
 0x31f   : > { %1144 = vmax.xlane.f32.xlu1 %v1143_v35  ;;  %v7243_v0 = vpop.f32.mrb[60].mxu1 }
 0x320   : > { %8991 = vst [vmem:[#allocation26_spill] sm:$0xff] %v7243_v0  ;;  %v7245_v4 = vpop.f32.mrb[61].mxu1 }
 0x321   : > { %8992 = vst [vmem:[#allocation27_spill] sm:$0xff] %v7245_v4  ;;  %v1146_v44 = vmax.f32 %v7243_v0, %v7245_v4 }
 0x323   : > { %1147 = vmax.xlane.f32.xlu0 %v1146_v44  ;;  %v7249_v8 = vpop.f32.mrb[62].mxu1 }
 0x324   : > { %8993 = vst [vmem:[#allocation28_spill] sm:$0xff] %v7249_v8  ;;  %v7251_v60 = vpop.f32.mrb[63].mxu1 }
 0x325   : > { %8994 = vst [vmem:[#allocation29_spill] sm:$0xff] %v7251_v60  ;;  %v1149_v7 = vmax.f32 %v7249_v8, %v7251_v60 }
 0x327   : > { %1150 = vmax.xlane.f32.xlu1 %v1149_v7  ;;  %v7255_v51 = vpop.f32.mrb[64].mxu1 }
 0x328   : > { %v7257_v26 = vpop.f32.mrb[65].mxu1 }
 0x329   : > { %8995 = vst [vmem:[#allocation30_spill] sm:$0xff] %v7257_v26  ;;  %v1152_v35 = vmax.f32 %v7255_v51, %v7257_v26 }
 0x32b   : > { %1153 = vmax.xlane.f32.xlu0 %v1152_v35 }
 0x33c   : > { %v1061_v17 = vpop.xlane.xlu1 %1060 }
 0x33d   : > { %v1155_v4 = vsub.f32 %v7069_v46, %v1061_v17  ;;  %v1156_v44 = vsub.f32 %v7071_v47, %v1061_v17 }
 0x33f   : > { %v1219_v0 = vmul.f32 1.442695, %v1155_v4  ;;  %v1221_v41 = vmul.f32 1.442695, %v1156_v44 }
 0x340   : > { %v1064_v38 = vpop.xlane.xlu0 %1063 }
 0x341   : > { %6317 = vpow2.f32 %v1219_v0  ;;  %v1157_v60 = vsub.f32 %v7075_v49, %v1064_v38  ;;  %v1158_v7 = vsub.f32 %v7077_v50, %v1064_v38 }
 0x342   : > { %6319 = vpow2.f32 %v1221_v41 }
 0x343   : > { %v1223_v8 = vmul.f32 1.442695, %v1157_v60  ;;  %v1225_v32 = vmul.f32 1.442695, %v1158_v7 }
 0x344   : > { %v1067_v29 = vpop.xlane.xlu1 %1066 }
 0x345   : > { %6321 = vpow2.f32 %v1223_v8  ;;  %v1159_v35 = vsub.f32 %v7081_v52, %v1067_v29  ;;  %v1160_v26 = vsub.f32 %v7083_v53, %v1067_v29 }
 0x346   : > { %6323 = vpow2.f32 %v1225_v32 }
 0x347   : > { %v1227_v46 = vmul.f32 1.442695, %v1159_v35  ;;  %v1229_v47 = vmul.f32 1.442695, %v1160_v26 }
 0x348   : > { %v1070_v4 = vpop.xlane.xlu1 %1069 }
 0x349   : > { %6325 = vpow2.f32 %v1227_v46  ;;  %v1161_v0 = vsub.f32 %v7087_v55, %v1070_v4  ;;  %v1162_v49 = vsub.f32 %v7089_v56, %v1070_v4 }
 0x34a   : > { %6327 = vpow2.f32 %v1229_v47 }
 0x34b   : > { %v7269_v50 = vpop.eup %6317  ;;  %v1231_v38 = vmul.f32 1.442695, %v1161_v0  ;;  %v1233_v41 = vmul.f32 1.442695, %v1162_v49 }
 0x34c   : > { %v7271_v60 = vpop.eup %6319  ;;  %v1073_v8 = vpop.xlane.xlu1 %1072 }
 0x34d   : > { %6329 = vpow2.f32 %v1231_v38  ;;  %v1163_v52 = vsub.f32 %v7093_v58, %v1073_v8  ;;  %v1164_v53 = vsub.f32 %v7095_v59, %v1073_v8  ;;  %v1347_v29 = vadd.f32 %v7271_v60, %v7269_v50 }
 0x34e   : > { %6331 = vpow2.f32 %v1233_v41 }
 0x34f   : > { %v7277_v55 = vpop.eup %6321  ;;  %v1235_v56 = vmul.f32 1.442695, %v1163_v52  ;;  %v1237_v32 = vmul.f32 1.442695, %v1164_v53  ;;  %1348 = vadd.xlane.f32.xlu1 %v1347_v29 }
 0x350   : > { %v7279_v17 = vpop.eup %6323  ;;  %v1076_v26 = vpop.xlane.xlu1 %1075 }
 0x351   : > { %6333 = vpow2.f32 %v1235_v56  ;;  %v1165_v44 = vsub.f32 %v7099_v61, %v1076_v26  ;;  %v1166_v7 = vsub.f32 %v7101_v62, %v1076_v26  ;;  %v1350_v58 = vadd.f32 %v7279_v17, %v7277_v55 }
 0x352   : > { %6335 = vpow2.f32 %v1237_v32 }
 0x353   : > { %v7285_v59 = vpop.eup %6325  ;;  %v1239_v35 = vmul.f32 1.442695, %v1165_v44  ;;  %v1241_v46 = vmul.f32 1.442695, %v1166_v7  ;;  %1351 = vadd.xlane.f32.xlu0 %v1350_v58 }
 0x354   : > { %v7287_v47 = vpop.eup %6327  ;;  %v1079_v4 = vpop.xlane.xlu1 %1078 }
 0x355   : > { %6337 = vpow2.f32 %v1239_v35  ;;  %v1167_v0 = vsub.f32 %v7105_v1, %v1079_v4  ;;  %v1168_v49 = vsub.f32 %v7107_v2, %v1079_v4  ;;  %v1353_v61 = vadd.f32 %v7287_v47, %v7285_v59 }
 0x356   : > { %6339 = vpow2.f32 %v1241_v46 }
 0x357   : > { %v7293_v62 = vpop.eup %6329  ;;  %v1243_v38 = vmul.f32 1.442695, %v1167_v0  ;;  %v1245_v41 = vmul.f32 1.442695, %v1168_v49  ;;  %1354 = vadd.xlane.f32.xlu1 %v1353_v61 }
 0x358   : > { %v7295_v8 = vpop.eup %6331  ;;  %v1082_v52 = vpop.xlane.xlu1 %1081 }
 0x359   : > { %6341 = vpow2.f32 %v1243_v38  ;;  %v1169_v53 = vsub.f32 %v7111_v5, %v1082_v52  ;;  %v1170_v29 = vsub.f32 %v7113_v6, %v1082_v52  ;;  %v1356_v1 = vadd.f32 %v7295_v8, %v7293_v62 }
 0x35a   : > { %6343 = vpow2.f32 %v1245_v41 }
 0x35b   : > { %v7301_v2 = vpop.eup %6333  ;;  %v1247_v56 = vmul.f32 1.442695, %v1169_v53  ;;  %v1249_v32 = vmul.f32 1.442695, %v1170_v29  ;;  %1357 = vadd.xlane.f32.xlu0 %v1356_v1 }
 0x35c   : > { %v7303_v26 = vpop.eup %6335  ;;  %v1085_v44 = vpop.xlane.xlu1 %1084 }
 0x35d   : > { %6345 = vpow2.f32 %v1247_v56  ;;  %v1171_v7 = vsub.f32 %v7117_v9, %v1085_v44  ;;  %v1172_v58 = vsub.f32 %v7119_v10, %v1085_v44  ;;  %v1359_v5 = vadd.f32 %v7303_v26, %v7301_v2 }
 0x35e   : > { %6347 = vpow2.f32 %v1249_v32 }
 0x35f   : > { %v7309_v6 = vpop.eup %6337  ;;  %v1251_v35 = vmul.f32 1.442695, %v1171_v7  ;;  %v1253_v46 = vmul.f32 1.442695, %v1172_v58  ;;  %1360 = vadd.xlane.f32.xlu1 %v1359_v5 }
 0x360   : > { %v7311_v4 = vpop.eup %6339  ;;  %v1088_v0 = vpop.xlane.xlu1 %1087 }
 0x361   : > { %6349 = vpow2.f32 %v1251_v35  ;;  %v1173_v49 = vsub.f32 %v7123_v12, %v1088_v0  ;;  %v1174_v61 = vsub.f32 %v7125_v13, %v1088_v0  ;;  %v1362_v9 = vadd.f32 %v7311_v4, %v7309_v6 }
 0x362   : > { %6351 = vpow2.f32 %v1253_v46 }
 0x363   : > { %v7317_v10 = vpop.eup %6341  ;;  %v1255_v38 = vmul.f32 1.442695, %v1173_v49  ;;  %v1257_v41 = vmul.f32 1.442695, %v1174_v61  ;;  %1363 = vadd.xlane.f32.xlu0 %v1362_v9 }
 0x364   : > { %v7319_v52 = vpop.eup %6343  ;;  %v1091_v53 = vpop.xlane.xlu1 %1090 }
 0x365   : > { %6353 = vpow2.f32 %v1255_v38  ;;  %v1175_v29 = vsub.f32 %v7129_v15, %v1091_v53  ;;  %v1176_v1 = vsub.f32 %v7131_v16, %v1091_v53  ;;  %v1365_v12 = vadd.f32 %v7319_v52, %v7317_v10 }
 0x366   : > { %6355 = vpow2.f32 %v1257_v41 }
 0x367   : > { %v7325_v13 = vpop.eup %6345  ;;  %v1259_v56 = vmul.f32 1.442695, %v1175_v29  ;;  %v1261_v32 = vmul.f32 1.442695, %v1176_v1  ;;  %1366 = vadd.xlane.f32.xlu1 %v1365_v12 }
 0x368   : > { %v7327_v44 = vpop.eup %6347  ;;  %v1094_v7 = vpop.xlane.xlu0 %1093 }
 0x369   : > { %6357 = vpow2.f32 %v1259_v56  ;;  %v1177_v58 = vsub.f32 %v7135_v18, %v1094_v7  ;;  %v1178_v5 = vsub.f32 %v7137_v19, %v1094_v7  ;;  %v1368_v15 = vadd.f32 %v7327_v44, %v7325_v13 }
 0x36a   : > { %6359 = vpow2.f32 %v1261_v32 }
 0x36b   : > { %v7333_v16 = vpop.eup %6349  ;;  %v1263_v35 = vmul.f32 1.442695, %v1177_v58  ;;  %v1265_v46 = vmul.f32 1.442695, %v1178_v5  ;;  %1369 = vadd.xlane.f32.xlu0 %v1368_v15 }
 0x36c   : > { %v7335_v0 = vpop.eup %6351  ;;  %v1097_v49 = vpop.xlane.xlu1 %1096 }
 0x36d   : > { %6361 = vpow2.f32 %v1263_v35  ;;  %v1179_v61 = vsub.f32 %v7141_v21, %v1097_v49  ;;  %v1180_v9 = vsub.f32 %v7143_v22, %v1097_v49  ;;  %v1371_v18 = vadd.f32 %v7335_v0, %v7333_v16 }
 0x36e   : > { %6363 = vpow2.f32 %v1265_v46 }
 0x36f   : > { %v7341_v19 = vpop.eup %6353  ;;  %v1267_v38 = vmul.f32 1.442695, %v1179_v61  ;;  %v1269_v41 = vmul.f32 1.442695, %v1180_v9  ;;  %1372 = vadd.xlane.f32.xlu1 %v1371_v18 }
 0x370   : > { %v7343_v53 = vpop.eup %6355  ;;  %v1100_v29 = vpop.xlane.xlu0 %1099 }
 0x371   : > { %6365 = vpow2.f32 %v1267_v38  ;;  %v1181_v1 = vsub.f32 %v7147_v24, %v1100_v29  ;;  %v1182_v12 = vsub.f32 %v7149_v25, %v1100_v29  ;;  %v1374_v21 = vadd.f32 %v7343_v53, %v7341_v19 }
 0x372   : > { %6367 = vpow2.f32 %v1269_v41 }
 0x373   : > { %v7349_v22 = vpop.eup %6357  ;;  %v1271_v56 = vmul.f32 1.442695, %v1181_v1  ;;  %v1273_v32 = vmul.f32 1.442695, %v1182_v12  ;;  %1375 = vadd.xlane.f32.xlu0 %v1374_v21 }
 0x374   : > { %v7351_v7 = vpop.eup %6359  ;;  %v1103_v58 = vpop.xlane.xlu1 %1102 }
 0x375   : > { %6369 = vpow2.f32 %v1271_v56  ;;  %v1183_v5 = vsub.f32 %v7153_v27, %v1103_v58  ;;  %v1184_v15 = vsub.f32 %v7155_v28, %v1103_v58  ;;  %v1377_v24 = vadd.f32 %v7351_v7, %v7349_v22 }
 0x376   : > { %6371 = vpow2.f32 %v1273_v32 }
 0x377   : > { %v7357_v25 = vpop.eup %6361  ;;  %v1275_v35 = vmul.f32 1.442695, %v1183_v5  ;;  %v1277_v46 = vmul.f32 1.442695, %v1184_v15  ;;  %1378 = vadd.xlane.f32.xlu1 %v1377_v24 }
 0x378   : > { %v7359_v49 = vpop.eup %6363  ;;  %v1106_v61 = vpop.xlane.xlu0 %1105 }
 0x379   : > { %6373 = vpow2.f32 %v1275_v35  ;;  %v1185_v9 = vsub.f32 %v7159_v30, %v1106_v61  ;;  %v1186_v18 = vsub.f32 %v7161_v31, %v1106_v61  ;;  %v1380_v27 = vadd.f32 %v7359_v49, %v7357_v25 }
 0x37a   : > { %6375 = vpow2.f32 %v1277_v46 }
 0x37b   : > { %v7365_v28 = vpop.eup %6365  ;;  %v1279_v38 = vmul.f32 1.442695, %v1185_v9  ;;  %v1281_v41 = vmul.f32 1.442695, %v1186_v18  ;;  %1381 = vadd.xlane.f32.xlu0 %v1380_v27 }
 0x37c   : > { %v7367_v29 = vpop.eup %6367  ;;  %v1109_v1 = vpop.xlane.xlu1 %1108 }
 0x37d   : > { %6377 = vpow2.f32 %v1279_v38  ;;  %v1187_v12 = vsub.f32 %v7165_v33, %v1109_v1  ;;  %v1188_v21 = vsub.f32 %v7167_v34, %v1109_v1  ;;  %v1383_v30 = vadd.f32 %v7367_v29, %v7365_v28 }
 0x37e   : > { %6379 = vpow2.f32 %v1281_v41 }
 0x37f   : > { %v7373_v31 = vpop.eup %6369  ;;  %v1283_v56 = vmul.f32 1.442695, %v1187_v12  ;;  %v1285_v32 = vmul.f32 1.442695, %v1188_v21  ;;  %1384 = vadd.xlane.f32.xlu1 %v1383_v30 }
 0x380   : > { %v7375_v58 = vpop.eup %6371  ;;  %v1112_v5 = vpop.xlane.xlu0 %1111 }
 0x381   : > { %6381 = vpow2.f32 %v1283_v56  ;;  %v1189_v15 = vsub.f32 %v7171_v36, %v1112_v5  ;;  %v1190_v24 = vsub.f32 %v7173_v37, %v1112_v5  ;;  %v1386_v33 = vadd.f32 %v7375_v58, %v7373_v31 }
 0x382   : > { %6383 = vpow2.f32 %v1285_v32 }
 0x383   : > { %v7381_v34 = vpop.eup %6373  ;;  %v1287_v35 = vmul.f32 1.442695, %v1189_v15  ;;  %v1289_v46 = vmul.f32 1.442695, %v1190_v24  ;;  %1387 = vadd.xlane.f32.xlu0 %v1386_v33 }
 0x384   : > { %v7383_v61 = vpop.eup %6375  ;;  %v1115_v9 = vpop.xlane.xlu1 %1114 }
 0x385   : > { %6385 = vpow2.f32 %v1287_v35  ;;  %v1191_v18 = vsub.f32 %v7177_v39, %v1115_v9  ;;  %v1192_v27 = vsub.f32 %v7179_v40, %v1115_v9  ;;  %v1389_v36 = vadd.f32 %v7383_v61, %v7381_v34 }
 0x386   : > { %6387 = vpow2.f32 %v1289_v46 }
 0x387   : > { %v7389_v37 = vpop.eup %6377  ;;  %v1291_v38 = vmul.f32 1.442695, %v1191_v18  ;;  %v1293_v41 = vmul.f32 1.442695, %v1192_v27  ;;  %1390 = vadd.xlane.f32.xlu1 %v1389_v36 }
 0x388   : > { %v7391_v1 = vpop.eup %6379  ;;  %v1118_v12 = vpop.xlane.xlu0 %1117 }
 0x389   : > { %6389 = vpow2.f32 %v1291_v38  ;;  %v1193_v21 = vsub.f32 %v7183_v42, %v1118_v12  ;;  %v1194_v30 = vsub.f32 %v7185_v43, %v1118_v12  ;;  %v1392_v39 = vadd.f32 %v7391_v1, %v7389_v37 }
 0x38a   : > { %6391 = vpow2.f32 %v1293_v41 }
 0x38b   : > { %v7397_v40 = vpop.eup %6381  ;;  %v1295_v56 = vmul.f32 1.442695, %v1193_v21  ;;  %v1297_v32 = vmul.f32 1.442695, %v1194_v30  ;;  %1393 = vadd.xlane.f32.xlu0 %v1392_v39 }
 0x38c   : > { %v7399_v5 = vpop.eup %6383  ;;  %v1121_v15 = vpop.xlane.xlu1 %1120 }
 0x38d   : > { %6393 = vpow2.f32 %v1295_v56  ;;  %v1195_v24 = vsub.f32 %v7189_v45, %v1121_v15  ;;  %v1196_v33 = vsub.f32 %v7191_v48, %v1121_v15  ;;  %v1395_v42 = vadd.f32 %v7399_v5, %v7397_v40 }
 0x38e   : > { %6395 = vpow2.f32 %v1297_v32 }
 0x38f   : > { %v7405_v43 = vpop.eup %6385  ;;  %v1299_v35 = vmul.f32 1.442695, %v1195_v24  ;;  %v1301_v46 = vmul.f32 1.442695, %v1196_v33  ;;  %1396 = vadd.xlane.f32.xlu1 %v1395_v42 }
 0x390   : > { %v7407_v9 = vpop.eup %6387  ;;  %v1124_v18 = vpop.xlane.xlu0 %1123 }
 0x391   : > { %6397 = vpow2.f32 %v1299_v35  ;;  %v1197_v27 = vsub.f32 %v7195_v54, %v1124_v18  ;;  %v1198_v36 = vsub.f32 %v7197_v57, %v1124_v18  ;;  %v1398_v45 = vadd.f32 %v7407_v9, %v7405_v43 }
 0x392   : > { %6399 = vpow2.f32 %v1301_v46 }
 0x393   : > { %v7413_v48 = vpop.eup %6389  ;;  %v1303_v38 = vmul.f32 1.442695, %v1197_v27  ;;  %v1305_v41 = vmul.f32 1.442695, %v1198_v36  ;;  %1399 = vadd.xlane.f32.xlu0 %v1398_v45 }
 0x394   : > { %v7415_v12 = vpop.eup %6391  ;;  %v1127_v21 = vpop.xlane.xlu1 %1126 }
 0x395   : > { %6401 = vpow2.f32 %v1303_v38  ;;  %v1199_v30 = vsub.f32 %v7201_v63, %v1127_v21  ;;  %v1200_v39 = vsub.f32 %v7203_v3, %v1127_v21  ;;  %v1401_v54 = vadd.f32 %v7415_v12, %v7413_v48 }
 0x396   : > { %6403 = vpow2.f32 %v1305_v41 }
 0x397   : > { %v7421_v57 = vpop.eup %6393  ;;  %v1307_v56 = vmul.f32 1.442695, %v1199_v30  ;;  %v1309_v32 = vmul.f32 1.442695, %v1200_v39  ;;  %1402 = vadd.xlane.f32.xlu1 %v1401_v54  ;;  %v8996_v39 = vld [vmem:[#allocation18_spill] sm:$0xff] }
 0x398   : > { %v7423_v15 = vpop.eup %6395  ;;  %v1130_v24 = vpop.xlane.xlu0 %1129 }
 0x399   : > { %6405 = vpow2.f32 %v1307_v56  ;;  %v1201_v33 = vsub.f32 %v7207_v11, %v1130_v24  ;;  %v1202_v42 = vsub.f32 %v7209_v14, %v1130_v24  ;;  %v1404_v63 = vadd.f32 %v7423_v15, %v7421_v57  ;;  %v8997_v56 = vld [vmem:[#allocation19_spill] sm:$0xff] }
 0x39a   : > { %6407 = vpow2.f32 %v1309_v32 }
 0x39b   : > { %v7429_v3 = vpop.eup %6397  ;;  %v1311_v35 = vmul.f32 1.442695, %v1201_v33  ;;  %v1313_v46 = vmul.f32 1.442695, %v1202_v42  ;;  %1405 = vadd.xlane.f32.xlu0 %v1404_v63 }
 0x39c   : > { %v7431_v18 = vpop.eup %6399  ;;  %v1133_v27 = vpop.xlane.xlu1 %1132 }
 0x39d   : > { %6409 = vpow2.f32 %v1311_v35  ;;  %v1203_v36 = vsub.f32 %v7213_v20, %v1133_v27  ;;  %v1204_v45 = vsub.f32 %v7215_v23, %v1133_v27  ;;  %v1407_v11 = vadd.f32 %v7431_v18, %v7429_v3  ;;  %v8999_v35 = vld [vmem:[#allocation20_spill] sm:$0xff]  ;;  %v9000_v27 = vld [vmem:[#allocation21_spill] sm:$0xff] }
 0x39e   : > { %6411 = vpow2.f32 %v1313_v46 }
 0x39f   : > { %v7437_v14 = vpop.eup %6401  ;;  %v1315_v38 = vmul.f32 1.442695, %v1203_v36  ;;  %v1317_v41 = vmul.f32 1.442695, %v1204_v45  ;;  %1408 = vadd.xlane.f32.xlu1 %v1407_v11 }
 0x3a0   : > { %v7439_v21 = vpop.eup %6403  ;;  %v1136_v30 = vpop.xlane.xlu0 %1135 }
 0x3a1   : > { %6413 = vpow2.f32 %v1315_v38  ;;  %v1205_v54 = vsub.f32 %v8996_v39, %v1136_v30  ;;  %v1206_v32 = vsub.f32 %v8997_v56, %v1136_v30  ;;  %v1410_v20 = vadd.f32 %v7439_v21, %v7437_v14 }
 0x3a2   : > { %6415 = vpow2.f32 %v1317_v41 }
 0x3a3   : > { %v7445_v23 = vpop.eup %6405  ;;  %v1319_v24 = vmul.f32 1.442695, %v1205_v54  ;;  %v1321_v33 = vmul.f32 1.442695, %v1206_v32  ;;  %1411 = vadd.xlane.f32.xlu0 %v1410_v20  ;;  %v9003_v54 = vld [vmem:[#allocation22_spill] sm:$0xff]  ;;  %v9004_v32 = vld [vmem:[#allocation23_spill] sm:$0xff] }
 0x3a4   : > { %8998 = vst [vmem:[#allocation18_spill] sm:$0xff] %v7445_v23  ;;  %v7447_v42 = vpop.eup %6407  ;;  %v1139_v63 = vpop.xlane.xlu1 %1138 }
 0x3a5   : > { %6417 = vpow2.f32 %v1319_v24  ;;  %v1207_v46 = vsub.f32 %v8999_v35, %v1139_v63  ;;  %v1208_v36 = vsub.f32 %v9000_v27, %v1139_v63  ;;  %v1413_v45 = vadd.f32 %v7447_v42, %v7445_v23 }
 0x3a6   : > { %6419 = vpow2.f32 %v1321_v33 }
 0x3a7   : > { %v7453_v11 = vpop.eup %6409  ;;  %v1323_v38 = vmul.f32 1.442695, %v1207_v46  ;;  %v1325_v41 = vmul.f32 1.442695, %v1208_v36  ;;  %1414 = vadd.xlane.f32.xlu1 %v1413_v45  ;;  %v9007_v36 = vld [vmem:[#allocation24_spill] sm:$0xff] }
 0x3a8   : > { %9001 = vst [vmem:[#allocation19_spill] sm:$0xff] %v7453_v11  ;;  %v7455_v30 = vpop.eup %6411  ;;  %v1142_v39 = vpop.xlane.xlu0 %1141 }
 0x3a9   : > { %9002 = vst [vmem:[#allocation20_spill] sm:$0xff] %v7455_v30  ;;  %6421 = vpow2.f32 %v1323_v38  ;;  %v1209_v56 = vsub.f32 %v9003_v54, %v1142_v39  ;;  %v1210_v20 = vsub.f32 %v9004_v32, %v1142_v39  ;;  %v1416_v24 = vadd.f32 %v7455_v30, %v7453_v11  ;;  %v9008_v38 = vld [vmem:[#allocation25_spill] sm:$0xff] }
 0x3aa   : > { %6423 = vpow2.f32 %v1325_v41 }
 0x3ab   : > { %v7461_v63 = vpop.eup %6413  ;;  %v1327_v33 = vmul.f32 1.442695, %v1209_v56  ;;  %v1329_v35 = vmul.f32 1.442695, %v1210_v20  ;;  %1417 = vadd.xlane.f32.xlu0 %v1416_v24  ;;  %v9010_v24 = vld [vmem:[#allocation26_spill] sm:$0xff] }
 0x3ac   : > { %9005 = vst [vmem:[#allocation21_spill] sm:$0xff] %v7461_v63  ;;  %v7463_v46 = vpop.eup %6415  ;;  %v1145_v27 = vpop.xlane.xlu1 %1144 }
 0x3ad   : > { %9006 = vst [vmem:[#allocation22_spill] sm:$0xff] %v7463_v46  ;;  %6425 = vpow2.f32 %v1327_v33  ;;  %v1211_v45 = vsub.f32 %v9007_v36, %v1145_v27  ;;  %v1212_v23 = vsub.f32 %v9008_v38, %v1145_v27  ;;  %v1419_v39 = vadd.f32 %v7463_v46, %v7461_v63  ;;  %v9011_v33 = vld [vmem:[#allocation27_spill] sm:$0xff] }
 0x3ae   : > { %6427 = vpow2.f32 %v1329_v35 }
 0x3af   : > { %v7469_v54 = vpop.eup %6417  ;;  %v1331_v41 = vmul.f32 1.442695, %v1211_v45  ;;  %v1333_v32 = vmul.f32 1.442695, %v1212_v23  ;;  %1420 = vadd.xlane.f32.xlu1 %v1419_v39  ;;  %v9012_v39 = vld [vmem:[#allocation28_spill] sm:$0xff] }
 0x3b0   : > { %9009 = vst [vmem:[#allocation23_spill] sm:$0xff] %v7469_v54  ;;  %v7471_v56 = vpop.eup %6419  ;;  %v1148_v20 = vpop.xlane.xlu0 %1147 }
 0x3b1   : > { %6429 = vpow2.f32 %v1331_v41  ;;  %v1213_v11 = vsub.f32 %v9010_v24, %v1148_v20  ;;  %v1214_v30 = vsub.f32 %v9011_v33, %v1148_v20  ;;  %v1422_v27 = vadd.f32 %v7471_v56, %v7469_v54  ;;  %v9013_v41 = vld [vmem:[#allocation29_spill] sm:$0xff] }
 0x3b2   : > { %6431 = vpow2.f32 %v1333_v32 }
 0x3b3   : > { %v7477_v36 = vpop.eup %6421  ;;  %v1335_v35 = vmul.f32 1.442695, %v1213_v11  ;;  %v1337_v38 = vmul.f32 1.442695, %v1214_v30  ;;  %1423 = vadd.xlane.f32.xlu0 %v1422_v27 }
 0x3b4   : > { %v7479_v45 = vpop.eup %6423  ;;  %v1151_v23 = vpop.xlane.xlu1 %1150 }
 0x3b5   : > { %6433 = vpow2.f32 %v1335_v35  ;;  %v1215_v63 = vsub.f32 %v9012_v39, %v1151_v23  ;;  %v1216_v46 = vsub.f32 %v9013_v41, %v1151_v23  ;;  %v1425_v20 = vadd.f32 %v7479_v45, %v7477_v36  ;;  %v9014_v35 = vld [vmem:[#allocation30_spill] sm:$0xff] }
 0x3b6   : > { %6435 = vpow2.f32 %v1337_v38 }
 0x3b7   : > { %v7485_v24 = vpop.eup %6425  ;;  %v1339_v32 = vmul.f32 1.442695, %v1215_v63  ;;  %v1341_v33 = vmul.f32 1.442695, %v1216_v46  ;;  %1426 = vadd.xlane.f32.xlu1 %v1425_v20 }
 0x3b8   : > { %v7487_v11 = vpop.eup %6427  ;;  %v1154_v30 = vpop.xlane.xlu0 %1153 }
 0x3b9   : > { %6437 = vpow2.f32 %v1339_v32  ;;  %v1217_v27 = vsub.f32 %v7255_v51, %v1154_v30  ;;  %v1218_v54 = vsub.f32 %v9014_v35, %v1154_v30  ;;  %v1428_v23 = vadd.f32 %v7487_v11, %v7485_v24 }
 0x3ba   : > { %6439 = vpow2.f32 %v1341_v33 }
 0x3bb   : > { %v7493_v39 = vpop.eup %6429  ;;  %v1343_v38 = vmul.f32 1.442695, %v1217_v27  ;;  %v1345_v41 = vmul.f32 1.442695, %v1218_v54  ;;  %1429 = vadd.xlane.f32.xlu0 %v1428_v23 }
 0x3bc   : > { %9015 = vst [vmem:[#allocation24_spill] sm:$0xff] %v7493_v39  ;;  %v7495_v63 = vpop.eup %6431 }
 0x3bd   : > { %9016 = vst [vmem:[#allocation25_spill] sm:$0xff] %v7495_v63  ;;  %6441 = vpow2.f32 %v1343_v38  ;;  %v1431_v46 = vadd.f32 %v7495_v63, %v7493_v39 }
 0x3be   : > { %6443 = vpow2.f32 %v1345_v41 }
 0x3bf   : > { %v7499_v20 = vpop.eup %6433  ;;  %1432 = vadd.xlane.f32.xlu1 %v1431_v46 }
 0x3c0   : > { %9017 = vst [vmem:[#allocation26_spill] sm:$0xff] %v7499_v20  ;;  %v7501_v51 = vpop.eup %6435 }
 0x3c1   : > { %9018 = vst [vmem:[#allocation27_spill] sm:$0xff] %v7501_v51  ;;  %v1434_v32 = vadd.f32 %v7501_v51, %v7499_v20 }
 0x3c3   : > { %v7505_v33 = vpop.eup %6437  ;;  %1435 = vadd.xlane.f32.xlu0 %v1434_v32 }
 0x3c4   : > { %9019 = vst [vmem:[#allocation28_spill] sm:$0xff] %v7505_v33  ;;  %v7507_v54 = vpop.eup %6439 }
 0x3c5   : > { %9020 = vst [vmem:[#allocation29_spill] sm:$0xff] %v7507_v54  ;;  %v1437_v30 = vadd.f32 %v7507_v54, %v7505_v33 }
 0x3c7   : > { %v7511_v27 = vpop.eup %6441  ;;  %1438 = vadd.xlane.f32.xlu1 %v1437_v30 }
 0x3c8   : > { %9021 = vst [vmem:[#allocation30_spill] sm:$0xff] %v7511_v27  ;;  %v7513_v35 = vpop.eup %6443 }
 0x3c9   : > { %9022 = vst [vmem:[#allocation31_spill] sm:$0xff] %v7513_v35  ;;  %v1440_v23 = vadd.f32 %v7513_v35, %v7511_v27 }
 0x3cb   : > { %1441 = vadd.xlane.f32.xlu0 %v1440_v23 }
 0x3dc   : > { %v1349_v38 = vpop.xlane.xlu1 %1348 }
 0x3dd   : > { %6445 = vrcp.f32 %v1349_v38 }
 0x3e0   : > { %v1352_v41 = vpop.xlane.xlu0 %1351 }
 0x3e1   : > { %6447 = vrcp.f32 %v1352_v41 }
 0x3e4   : > { %v1355_v46 = vpop.xlane.xlu1 %1354 }
 0x3e5   : > { %6449 = vrcp.f32 %v1355_v46 }
 0x3e7   : > { %v6446_v20 = vpop.eup %6445 }
 0x3e8   : > { %v1358_v32 = vpop.xlane.xlu0 %1357  ;;  %v1476_v54 = vmul.f32 %v6446_v20, %v7271_v60  ;;  %v1475_v51 = vmul.f32 %v6446_v20, %v7269_v50 }
 0x3e9   : > { %6451 = vrcp.f32 %v1358_v32 }
 0x3eb   : > { %v6448_v39 = vpop.eup %6447 }
 0x3ec   : > { %v1361_v33 = vpop.xlane.xlu1 %1360  ;;  %v1478_v30 = vmul.f32 %v6448_v39, %v7279_v17  ;;  %v1477_v27 = vmul.f32 %v6448_v39, %v7277_v55 }
 0x3ed   : > { %6453 = vrcp.f32 %v1361_v33 }
 0x3ee   : > { %v6035_v23 = vpack.c.bf16 %v1478_v30, %v1476_v54  ;;  %v6037_v35 = vpack.c.bf16 %v1477_v27, %v1475_v51 }
 0x3ef   : > { %v6450_v41 = vpop.eup %6449 }
 0x3f0   : > { %6036 = vmatprep.subr.bf16.mxu0 %v6035_v23  ;;  %v1364_v38 = vpop.xlane.xlu0 %1363  ;;  %v1480_v63 = vmul.f32 %v6450_v41, %v7287_v47  ;;  %v1479_v17 = vmul.f32 %v6450_v41, %v7285_v59 }
 0x3f1   : > { %6455 = vrcp.f32 %v1364_v38  ;;  %6038 = vmatpush1.bf16.msra.mxu0 %v6037_v35 }
 0x3f3   : > { %v6452_v46 = vpop.eup %6451 }
 0x3f4   : > { %v1367_v32 = vpop.xlane.xlu1 %1366  ;;  %v1482_v60 = vmul.f32 %v6452_v46, %v7295_v8  ;;  %v1481_v50 = vmul.f32 %v6452_v46, %v7293_v62 }
 0x3f5   : > { %6457 = vrcp.f32 %v1367_v32 }
 0x3f6   : > { %v6039_v20 = vpack.c.bf16 %v1482_v60, %v1480_v63  ;;  %v6041_v55 = vpack.c.bf16 %v1481_v50, %v1479_v17 }
 0x3f7   : > { %v6454_v51 = vpop.eup %6453 }
 0x3f8   : > { %6040 = vmatprep.subr.bf16.mxu0 %v6039_v20  ;;  %v1370_v39 = vpop.xlane.xlu0 %1369  ;;  %v1484_v27 = vmul.f32 %v6454_v51, %v7303_v26  ;;  %v1483_v8 = vmul.f32 %v6454_v51, %v7301_v2 }
 0x3f9   : > { %6459 = vrcp.f32 %v1370_v39  ;;  %6042 = vmatpush1.bf16.msra.mxu0 %v6041_v55 }
 0x3fb   : > { %v6456_v33 = vpop.eup %6455 }
 0x3fc   : > { %v1373_v54 = vpop.xlane.xlu1 %1372  ;;  %v1486_v47 = vmul.f32 %v6456_v33, %v7311_v4  ;;  %v1485_v59 = vmul.f32 %v6456_v33, %v7309_v6 }
 0x3fd   : > { %6461 = vrcp.f32 %v1373_v54 }
 0x3fe   : > { %v6043_v35 = vpack.c.bf16 %v1486_v47, %v1484_v27  ;;  %v6045_v62 = vpack.c.bf16 %v1485_v59, %v1483_v8 }
 0x3ff   : > { %v6458_v30 = vpop.eup %6457 }
 0x400   : > { %6044 = vmatprep.subr.bf16.mxu0 %v6043_v35  ;;  %v1376_v63 = vpop.xlane.xlu0 %1375  ;;  %v1488_v41 = vmul.f32 %v6458_v30, %v7319_v52  ;;  %v1487_v4 = vmul.f32 %v6458_v30, %v7317_v10 }
 0x401   : > { %6463 = vrcp.f32 %v1376_v63  ;;  %6046 = vmatpush1.bf16.msra.mxu0 %v6045_v62 }
 0x403   : > { %v6460_v23 = vpop.eup %6459 }
 0x404   : > { %v1379_v38 = vpop.xlane.xlu1 %1378  ;;  %v1490_v26 = vmul.f32 %v6460_v23, %v7327_v44  ;;  %v1489_v2 = vmul.f32 %v6460_v23, %v7325_v13 }
 0x405   : > { %6465 = vrcp.f32 %v1379_v38 }
 0x406   : > { %v6047_v46 = vpack.c.bf16 %v1490_v26, %v1488_v41  ;;  %v6049_v6 = vpack.c.bf16 %v1489_v2, %v1487_v4 }
 0x407   : > { %v6462_v60 = vpop.eup %6461 }
 0x408   : > { %6048 = vmatprep.subr.bf16.mxu0 %v6047_v46  ;;  %v1382_v32 = vpop.xlane.xlu0 %1381  ;;  %v1492_v20 = vmul.f32 %v6462_v60, %v7335_v0  ;;  %v1491_v44 = vmul.f32 %v6462_v60, %v7333_v16 }
 0x409   : > { %6467 = vrcp.f32 %v1382_v32  ;;  %6050 = vmatpush1.bf16.msra.mxu0 %v6049_v6 }
 0x40b   : > { %v6464_v17 = vpop.eup %6463 }
 0x40c   : > { %v1385_v50 = vpop.xlane.xlu1 %1384  ;;  %v1494_v52 = vmul.f32 %v6464_v17, %v7343_v53  ;;  %v1493_v10 = vmul.f32 %v6464_v17, %v7341_v19 }
 0x40d   : > { %6469 = vrcp.f32 %v1385_v50 }
 0x40e   : > { %v6051_v55 = vpack.c.bf16 %v1494_v52, %v1492_v20  ;;  %v6053_v13 = vpack.c.bf16 %v1493_v10, %v1491_v44 }
 0x40f   : > { %v6466_v51 = vpop.eup %6465 }
 0x410   : > { %6052 = vmatprep.subr.bf16.mxu0 %v6051_v55  ;;  %v1388_v39 = vpop.xlane.xlu0 %1387  ;;  %v1496_v27 = vmul.f32 %v6466_v51, %v7351_v7  ;;  %v1495_v53 = vmul.f32 %v6466_v51, %v7349_v22 }
 0x411   : > { %6471 = vrcp.f32 %v1388_v39  ;;  %6054 = vmatpush1.bf16.msra.mxu0 %v6053_v13 }
 0x413   : > { %v6468_v33 = vpop.eup %6467 }
 0x414   : > { %v1391_v54 = vpop.xlane.xlu1 %1390  ;;  %v1498_v0 = vmul.f32 %v6468_v33, %v7359_v49  ;;  %v1497_v16 = vmul.f32 %v6468_v33, %v7357_v25 }
 0x415   : > { %6473 = vrcp.f32 %v1391_v54 }
 0x416   : > { %v6055_v47 = vpack.c.bf16 %v1498_v0, %v1496_v27  ;;  %v6057_v19 = vpack.c.bf16 %v1497_v16, %v1495_v53 }
 0x417   : > { %v6470_v59 = vpop.eup %6469 }
 0x418   : > { %6056 = vmatprep.subr.bf16.mxu0 %v6055_v47  ;;  %v1394_v8 = vpop.xlane.xlu0 %1393  ;;  %v1500_v63 = vmul.f32 %v6470_v59, %v7367_v29  ;;  %v1499_v49 = vmul.f32 %v6470_v59, %v7365_v28  ;;  %v9023_v59 = vld [vmem:[#allocation20_spill] sm:$0xff] }
 0x419   : > { %6475 = vrcp.f32 %v1394_v8  ;;  %6058 = vmatpush1.bf16.msra.mxu0 %v6057_v19 }
 0x41b   : > { %v6472_v35 = vpop.eup %6471 }
 0x41c   : > { %v1397_v62 = vpop.xlane.xlu1 %1396  ;;  %v1502_v7 = vmul.f32 %v6472_v35, %v7375_v58  ;;  %v1501_v22 = vmul.f32 %v6472_v35, %v7373_v31  ;;  %v9024_v35 = vld [vmem:[#allocation18_spill] sm:$0xff] }
 0x41d   : > { %6477 = vrcp.f32 %v1397_v62  ;;  %v9025_v62 = vld [vmem:[#allocation19_spill] sm:$0xff] }
 0x41e   : > { %v6059_v30 = vpack.c.bf16 %v1502_v7, %v1500_v63  ;;  %v6061_v25 = vpack.c.bf16 %v1501_v22, %v1499_v49 }
 0x41f   : > { %v6474_v38 = vpop.eup %6473 }
 0x420   : > { %6060 = vmatprep.subr.bf16.mxu0 %v6059_v30  ;;  %v1400_v23 = vpop.xlane.xlu0 %1399  ;;  %v1504_v4 = vmul.f32 %v6474_v38, %v7383_v61  ;;  %v1503_v58 = vmul.f32 %v6474_v38, %v7381_v34  ;;  %v9027_v38 = vld [vmem:[#allocation21_spill] sm:$0xff] }
 0x421   : > { %6479 = vrcp.f32 %v1400_v23  ;;  %6062 = vmatpush1.bf16.msra.mxu0 %v6061_v25  ;;  %v9026_v25 = vld [vmem:[#allocation22_spill] sm:$0xff] }
 0x423   : > { %v6476_v41 = vpop.eup %6475 }
 0x424   : > { %v1403_v26 = vpop.xlane.xlu1 %1402  ;;  %v1506_v29 = vmul.f32 %v6476_v41, %v7391_v1  ;;  %v1505_v28 = vmul.f32 %v6476_v41, %v7389_v37 }
 0x425   : > { %6481 = vrcp.f32 %v1403_v26  ;;  %v9028_v26 = vld [vmem:[#allocation23_spill] sm:$0xff] }
 0x426   : > { %v6063_v2 = vpack.c.bf16 %v1506_v29, %v1504_v4  ;;  %v6065_v31 = vpack.c.bf16 %v1505_v28, %v1503_v58 }
 0x427   : > { %v6478_v6 = vpop.eup %6477 }
 0x428   : > { %6064 = vmatprep.subr.bf16.mxu0 %v6063_v2  ;;  %v1406_v46 = vpop.xlane.xlu0 %1405  ;;  %v1508_v17 = vmul.f32 %v6478_v6, %v7399_v5  ;;  %v1507_v1 = vmul.f32 %v6478_v6, %v7397_v40 }
 0x429   : > { %6483 = vrcp.f32 %v1406_v46  ;;  %6066 = vmatpush1.bf16.msra.mxu0 %v6065_v31 }
 0x42b   : > { %v6480_v32 = vpop.eup %6479 }
 0x42c   : > { %v1409_v60 = vpop.xlane.xlu1 %1408  ;;  %v1510_v61 = vmul.f32 %v6480_v32, %v7407_v9  ;;  %v1509_v34 = vmul.f32 %v6480_v32, %v7405_v43 }
 0x42d   : > { %6485 = vrcp.f32 %v1409_v60 }
 0x42e   : > { %v6067_v50 = vpack.c.bf16 %v1510_v61, %v1508_v17  ;;  %v6069_v37 = vpack.c.bf16 %v1509_v34, %v1507_v1 }
 0x42f   : > { %v6482_v52 = vpop.eup %6481 }
 0x430   : > { %6068 = vmatprep.subr.bf16.mxu0 %v6067_v50  ;;  %v1412_v20 = vpop.xlane.xlu0 %1411  ;;  %v1512_v55 = vmul.f32 %v6482_v52, %v7415_v12  ;;  %v1511_v9 = vmul.f32 %v6482_v52, %v7413_v48  ;;  %v9030_v52 = vld [vmem:[#allocation27_spill] sm:$0xff] }
 0x431   : > { %6487 = vrcp.f32 %v1412_v20  ;;  %6070 = vmatpush1.bf16.msra.mxu0 %v6069_v37  ;;  %v9029_v37 = vld [vmem:[#allocation25_spill] sm:$0xff] }
 0x433   : > { %v6484_v44 = vpop.eup %6483 }
 0x434   : > { %v1415_v10 = vpop.xlane.xlu1 %1414  ;;  %v1514_v5 = vmul.f32 %v6484_v44, %v7423_v15  ;;  %v1513_v40 = vmul.f32 %v6484_v44, %v7421_v57 }
 0x435   : > { %6489 = vrcp.f32 %v1415_v10 }
 0x436   : > { %v6071_v13 = vpack.c.bf16 %v1514_v5, %v1512_v55  ;;  %v6073_v43 = vpack.c.bf16 %v1513_v40, %v1511_v9  ;;  %v9033_v40 = vld [vmem:[#allocation29_spill] sm:$0xff] }
 0x437   : > { %v6486_v51 = vpop.eup %6485 }
 0x438   : > { %6072 = vmatprep.subr.bf16.mxu0 %v6071_v13  ;;  %v1418_v39 = vpop.xlane.xlu0 %1417  ;;  %v1516_v27 = vmul.f32 %v6486_v51, %v7431_v18  ;;  %v1515_v15 = vmul.f32 %v6486_v51, %v7429_v3  ;;  %v9035_v51 = vld [vmem:[#allocation28_spill] sm:$0xff] }
 0x439   : > { %6491 = vrcp.f32 %v1418_v39  ;;  %6074 = vmatpush1.bf16.msra.mxu0 %v6073_v43  ;;  %v9034_v43 = vld [vmem:[#allocation31_spill] sm:$0xff] }
 0x43b   : > { %v6488_v33 = vpop.eup %6487 }
 0x43c   : > { %v1421_v54 = vpop.xlane.xlu1 %1420  ;;  %v1518_v12 = vmul.f32 %v6488_v33, %v7439_v21  ;;  %v1517_v48 = vmul.f32 %v6488_v33, %v7437_v14 }
 0x43d   : > { %6493 = vrcp.f32 %v1421_v54  ;;  %v9036_v54 = vld [vmem:[#allocation30_spill] sm:$0xff] }
 0x43e   : > { %v6075_v0 = vpack.c.bf16 %v1518_v12, %v1516_v27  ;;  %v6077_v57 = vpack.c.bf16 %v1517_v48, %v1515_v15  ;;  %v9037_v48 = vld [vmem:[#allocation17_spill] sm:$0xff] }
 0x43f   : > { %v6490_v16 = vpop.eup %6489 }
 0x440   : > { %6076 = vmatprep.subr.bf16.mxu0 %v6075_v0  ;;  %v1424_v53 = vpop.xlane.xlu0 %1423  ;;  %v1520_v8 = vmul.f32 %v6490_v16, %v7447_v42  ;;  %v1519_v21 = vmul.f32 %v6490_v16, %v9024_v35  ;;  %v1539_v0 = vrot.slane %v9037_v48, 4 }
 0x441   : > { %6495 = vrcp.f32 %v1424_v53  ;;  %6078 = vmatpush1.bf16.msra.mxu0 %v6077_v57  ;;  %v9038_v57 = vmov 0.0   ;;  %v1615_v53 = vld [vmem:[%s8879_s4] sm:$0xf] }
 0x442   : > { %1618 = vperm.xlu1 %6314, %v1615_v53  }
 0x443   : > { %v6492_v47 = vpop.eup %6491 }
 0x444   : > { %v1427_v19 = vpop.xlane.xlu1 %1426  ;;  %v1522_v18 = vmul.f32 %v6492_v47, %v9023_v59  ;;  %v1521_v3 = vmul.f32 %v6492_v47, %v9025_v62 }
 0x445   : > { %6497 = vrcp.f32 %v1427_v19  ;;  %v1614_v19 = vld [vmem:[%s8878_s3] sm:$0xf] }
 0x446   : > { %v6079_v63 = vpack.c.bf16 %v1522_v18, %v1520_v8  ;;  %v6081_v14 = vpack.c.bf16 %v1521_v3, %v1519_v21  ;;  %v1708_v8 = vlaneseq  ;;  %v1814_v21 = vld [vmem:[#allocation7 + $0x4] ss:$8 sm:$0x3] }
 0x447   : > { %v6494_v49 = vpop.eup %6493 }
 0x448   : > { %6080 = vmatprep.subr.bf16.mxu0 %v6079_v63  ;;  %v1430_v7 = vpop.xlane.xlu0 %1429  ;;  %v1524_v23 = vmul.f32 %v6494_v49, %v9026_v25  ;;  %v1523_v41 = vmul.f32 %v6494_v49, %v9027_v38  ;;  %v1716_v59 = vshrl.u32 %v1708_v8, 7 }
 0x449   : > { %6499 = vrcp.f32 %v1430_v7  ;;  %6082 = vmatpush1.bf16.msra.mxu0 %v6081_v14 }
 0x44a   : > { %v7593_v18 = vsub.s32 0, %v1716_v59  ;;  %v7595_v62 = vsub.s32 1, %v1716_v59  ;;  %v1892_v59 = vld [vmem:[#allocation7 + $0x7] ss:$8 sm:$0x3] }
 0x44b   : > { %v6496_v22 = vpop.eup %6495 }
 0x44c   : > { %v1433_v30 = vpop.xlane.xlu1 %1432  ;;  %v1526_v42 = vmul.f32 %v6496_v22, %v7471_v56  ;;  %v1525_v4 = vmul.f32 %v6496_v22, %v9028_v26  ;;  %v1819_v14 = vrot.slane %v1814_v21, %v7593_v18  ;;  %v1823_v22 = vrot.slane %v1814_v21, %v7595_v62  ;;  %v1949_v26 = vld [vmem:[%s8881_s6] sm:$0xf] }
 0x44d   : > { %6501 = vrcp.f32 %v1433_v30  ;;  %v6517_v30 = vld [vmem:[%s6974_s23] sm:$0xff]  ;;  %s8931_s23 = smov 17  }
 0x44e   : > { %v6083_v29 = vpack.c.bf16 %v1526_v42, %v1524_v23  ;;  %v6085_v58 = vpack.c.bf16 %v1525_v4, %v1523_v41  ;;  %v9039_v23 = vld [vmem:[#allocation16_spill] sm:$0xff]  ;;  %v7642_v4 = vand.u32 127, %v1708_v8 }
 0x44f   : > { %v6498_v2 = vpop.eup %6497 }
 0x450   : > { %6084 = vmatprep.subr.bf16.mxu0 %v6083_v29  ;;  %v1436_v28 = vpop.xlane.xlu0 %1435  ;;  %v1528_v6 = vmul.f32 %v6498_v2, %v7479_v45  ;;  %v1527_v56 = vmul.f32 %v6498_v2, %v7477_v36  ;;  %v9031_v45 = vld [vmem:[#allocation24_spill] sm:$0xff]  ;;  %v1737_v29 = vld [vmem:[#allocation7 + $0x1] ss:$8 sm:$0x3]  ;;  %vm8942_vm4 = vcmp.lt.s32.totalorder %v7642_v4, 16  ;;  %vm1787_vm5 = vcmp.lt.s32.totalorder %v7642_v4, 1 }
 0x451   : > { %6503 = vrcp.f32 %v1436_v28  ;;  %6086 = vmatpush1.bf16.msra.mxu0 %v6085_v58  ;;  %v1742_v2 = vrot.slane %v1737_v29, %v7593_v18  ;;  %vm8943_vm6 = vcmp.lt.s32.totalorder %v7642_v4, 17  ;;  %vm1763_vm7 = vcmp.lt.s32.totalorder %v7642_v4, 15 }
 0x452   : > { %vm1834_vm8 = vcmp.lt.s32.totalorder %v7642_v4, 127  ;;  %vm1888_vm9 = vcmp.lt.s32.totalorder %v7642_v4, 112  ;;  %vm1864_vm10 = vcmp.lt.s32.totalorder %v7642_v4, 113  ;;  %vm1918_vm11 = vcmp.lt.s32.totalorder %v7642_v4, 111 }
 0x453   : > { %v6500_v31 = vpop.eup %6499  ;;  %vm2711_vm13 = vcmp.lt.s32.totalorder %v7642_v4, 32  ;;  %vm2765_vm14 = vcmp.lt.s32.totalorder %v7642_v4, 2  ;;  %vm2688_vm15 = vcmp.lt.s32.totalorder %v7642_v4, 34  ;;  %vm2866_vm1 = vcmp.lt.s32.totalorder %v7642_v4, 96 }
 0x454   : > { %v1439_v46 = vpop.xlane.xlu1 %1438  ;;  %v1530_v32 = vmul.f32 %v6500_v31, %v7487_v11  ;;  %v1529_v60 = vmul.f32 %v6500_v31, %v7485_v24  ;;  %v9032_v11 = vld [vmem:[#allocation26_spill] sm:$0xff]  ;;  %v1746_v31 = vrot.slane %v1737_v29, %v7595_v62 }
 0x455   : > { %6505 = vrcp.f32 %v1439_v46  ;;  %v1791_v46 = vld [vmem:[#allocation7 + $0x3] ss:$8 sm:$0x3] }
 0x456   : > { %v6087_v17 = vpack.c.bf16 %v1530_v32, %v1528_v6  ;;  %v6089_v61 = vpack.c.bf16 %v1529_v60, %v1527_v56 }
 0x457   : > { %v6502_v34 = vpop.eup %6501 }
 0x458   : > { %6088 = vmatprep.subr.bf16.mxu0 %v6087_v17  ;;  %v1442_v1 = vpop.xlane.xlu0 %1441  ;;  %v1532_v20 = vmul.f32 %v6502_v34, %v9029_v37  ;;  %v1531_v10 = vmul.f32 %v6502_v34, %v9031_v45  ;;  %v1800_v34 = vrot.slane %v1791_v46, %v7595_v62 }
 0x459   : > { %6507 = vrcp.f32 %v1442_v1  ;;  %6090 = vmatpush1.bf16.msra.mxu0 %v6089_v61  ;;  %v1796_v1 = vrot.slane %v1791_v46, %v7593_v18 }
 0x45b   : > { %v6504_v50 = vpop.eup %6503 }
 0x45c   : > { %v1534_v44 = vmul.f32 %v6504_v50, %v9030_v52  ;;  %v1533_v55 = vmul.f32 %v6504_v50, %v9032_v11  ;;  %v1713_v50 = vld [vmem:[#allocation7] ss:$8 sm:$0x3] }
 0x45e   : > { %v6091_v36 = vpack.c.bf16 %v1534_v44, %v1532_v20  ;;  %v6093_v5 = vpack.c.bf16 %v1533_v55, %v1531_v10 }
 0x45f   : > { %v6506_v24 = vpop.eup %6505 }
 0x460   : > { %6092 = vmatprep.subr.bf16.mxu0 %v6091_v36  ;;  %v1536_v13 = vmul.f32 %v6506_v24, %v9033_v40  ;;  %v1535_v33 = vmul.f32 %v6506_v24, %v9035_v51  ;;  %v1718_v36 = vrot.slane %v1713_v50, %v7593_v18  ;;  %v1767_v24 = vld [vmem:[#allocation7 + $0x2] ss:$8 sm:$0x3] }
 0x461   : > { %6094 = vmatpush1.bf16.msra.mxu0 %v6093_v5  ;;  %v1722_v5 = vrot.slane %v1713_v50, %v7595_v62 }
 0x463   : > { %v6508_v9 = vpop.eup %6507 }
 0x464   : > { %v1538_v39 = vmul.f32 %v6508_v9, %v9034_v43  ;;  %v1537_v27 = vmul.f32 %v6508_v9, %v9036_v54 }
 0x466   : > { %v6095_v12 = vpack.c.bf16 %v1538_v39, %v1536_v13  ;;  %v6097_v15 = vpack.c.bf16 %v1537_v27, %v1535_v33  ;;  %v1772_v27 = vrot.slane %v1767_v24, %v7593_v18 }
 0x468   : > { %6096 = vmatprep.subr.bf16.mxu0 %v6095_v12  ;;  %v1776_v12 = vrot.slane %v1767_v24, %v7595_v62 }
 0x469   : > { %6098 = vmatpush1.bf16.msra.mxu0 %v6097_v15  ;;  %v1838_v15 = vld [vmem:[#allocation7 + $0x5] ss:$8 sm:$0x3] }
 0x46a   : > { %v1847_v8 = vrot.slane %v1838_v15, %v7595_v62 }
 0x46c   : > { %1608 = vmatmul.mubr.f32.vlgmr.msra.gmra.mrb[0].mxu0 %v1539_v0 }
 0x46d   : > { %1694 = vmatprep.mubr.f32.mxu0 %v9038_v57 }
 0x4c1   : > { %v1619_v35 = vpop.permute.xlu1 %1618 }
 0x53f   : > { %v1609_v16 = vpop.f32.mrb[0].mxu0 }
 0x540   : > { %v1611_v47 = vpop.f32.mrb[1].mxu0 }
 0x541   : > { %5943 = vmatprep.subr.msk.mxu0 %vm797_vm2, %v1611_v47 }
 0x542   : > { %5944 = vmatpush1.msk.msra.mxu0 %vm797_vm2, %v1609_v16  ;;  %vm2741_vm2 = vcmp.lt.s32.totalorder %v7642_v4, 30 }
 0x543   : > { %5945 = vmatmul.mubr.msk.f32.vlgmr.msra.gmra.mrb[2].mxu0 %vm700_vm3, %v1614_v19  ;;  %v1843_v19 = vrot.slane %v1838_v15, %v7593_v18  ;;  %vm2812_vm3 = vcmp.lt.s32.totalorder %v7642_v4, 126 }
 0x544   : > { %2029 = vmatprep.mubr.f32.mxu0 %v9038_v57 }
 0x616   : > { %v1696_v3 = vpop.f32.mrb[2].mxu0 }
 0x617   : > { %v1697_v63 = vadd.f32 %v1696_v3, %v1619_v35  ;;  %v1698_v7 = vpop.f32.mrb[3].mxu0 }
 0x618   : > { %v1699_v49 = vadd.f32 %v1698_v7, %v1619_v35 }
 0x619   : > { %v7600_v25 = vadd.f32 %v6517_v30, %v1697_v63  ;;  %v1868_v30 = vld [vmem:[#allocation7 + $0x6] ss:$8 sm:$0x3] }
 0x61a   : > { %v7603_v42 = vadd.f32 %v1699_v49, %v9039_v23  ;;  %v1897_v49 = vrot.slane %v1892_v59, %v7593_v18  ;;  %v1873_v46 = vrot.slane %v1868_v30, %v7593_v18 }
 0x61b   : > { %v1826_v38 = vmul.f32 %v1819_v14, %v7600_v25  ;;  %1783 = vrot.lane.b32.xlu1 %v7600_v25, %s8935_s15  ;;  %1729 = vrot.lane.b32.xlu0 %v7600_v25, %s8929_s28 }
 0x61c   : > { %v1827_v41 = vmul.f32 %v1823_v22, %v7603_v42  ;;  %v1901_v22 = vrot.slane %v1892_v59, %v7595_v62 }
 0x61d   : > { %1828 = vst [vmem:[#allocation2 + $0x20] sm:$0xf] %v1826_v38 }
 0x61e   : > { %1829 = vst [vmem:[#allocation2 + $0x28] sm:$0xf] %v1827_v41 }
 0x61f   : > { %1731 = vrot.lane.b32.xlu1 %v7603_v42, %s8929_s28  ;;  %1704 = vrot.lane.b32.xlu0 %v7600_v25, %s8931_s23 }
 0x623   : > { %1785 = vrot.lane.b32.xlu1 %v7603_v42, %s8935_s15  ;;  %1759 = vrot.lane.b32.xlu0 %v7600_v25, %s8933_s26 }
 0x627   : > { %1706 = vrot.lane.b32.xlu1 %v7603_v42, %s8931_s23  ;;  %1830 = vrot.lane.b32.xlu0 %v7600_v25, %s8937_s30 }
 0x62b   : > { %1761 = vrot.lane.b32.xlu1 %v7603_v42, %s8933_s26  ;;  %1884 = vrot.lane.b32.xlu0 %v7600_v25, %s8939_s24 }
 0x62f   : > { %1832 = vrot.lane.b32.xlu1 %v7603_v42, %s8937_s30  ;;  %1860 = vrot.lane.b32.xlu0 %v7600_v25, %s8954_s7 }
 0x633   : > { %1886 = vrot.lane.b32.xlu1 %v7603_v42, %s8939_s24  ;;  %1914 = vrot.lane.b32.xlu0 %v7600_v25, %s8952_s8 }
 0x637   : > { %1862 = vrot.lane.b32.xlu1 %v7603_v42, %s8954_s7  ;;  %1952 = vperm.xlu0 %6313, %v1949_v26  }
 0x63b   : > { %1916 = vrot.lane.b32.xlu1 %v7603_v42, %s8952_s8 }
 0x68d   : > { %v1784_v58 = vpop.permute.xlu1 %1783  ;;  %v1730_v28 = vpop.permute.xlu0 %1729 }
 0x691   : > { %v1732_v6 = vpop.permute.xlu1 %1731  ;;  %v1705_v32 = vpop.permute.xlu0 %1704 }
 0x692   : > { %v1734_v56 = vsel %vm8942_vm4, %v1730_v28, %v1732_v6  ;;  %v1735_v60 = vsel %vm8942_vm4, %v1732_v6, %v1730_v28  ;;  %v1877_v6 = vrot.slane %v1868_v30, %v7595_v62 }
 0x693   : > { %v1749_v17 = vmul.f32 %v1742_v2, %v1735_v60  ;;  %v1750_v61 = vmul.f32 %v1746_v31, %v1734_v56 }
 0x695   : > { %v1753_v37 = vrot.slane %v1749_v17, 4  ;;  %v1754_v20 = vrot.slane %v1750_v61, 4  ;;  %v1786_v52 = vpop.permute.xlu1 %1785  ;;  %v1760_v44 = vpop.permute.xlu0 %1759 }
 0x696   : > { %v1788_v45 = vsel %vm1787_vm5, %v1784_v58, %v1786_v52  ;;  %v1789_v10 = vsel %vm1787_vm5, %v1786_v52, %v1784_v58 }
 0x697   : > { %1757 = vst [vmem:[#allocation2] sm:$0xf0] %v1753_v37  ;;  %1758 = vst [vmem:[#allocation2 + $0x8] sm:$0xf0] %v1754_v20  ;;  %v1803_v11 = vmul.f32 %v1796_v1, %v1789_v10  ;;  %v1804_v55 = vmul.f32 %v1800_v34, %v1788_v45 }
 0x699   : > { %v1807_v9 = vrot.slane %v1803_v11, 4  ;;  %v1808_v40 = vrot.slane %v1804_v55, 4  ;;  %v1707_v13 = vpop.permute.xlu1 %1706  ;;  %v1831_v54 = vpop.permute.xlu0 %1830 }
 0x69a   : > { %v1711_v43 = vsel %vm8943_vm6, %v1705_v32, %v1707_v13  ;;  %v1712_v39 = vsel %vm8943_vm6, %v1707_v13, %v1705_v32  ;;  %v1922_v32 = vld [vmem:[#allocation7 + $0x10] ss:$8 sm:$0x3] }
 0x69b   : > { %1811 = vst [vmem:[#allocation2 + $0x10] sm:$0xf0] %v1807_v9  ;;  %1812 = vst [vmem:[#allocation2 + $0x18] sm:$0xf0] %v1808_v40  ;;  %v1725_v51 = vmul.f32 %v1718_v36, %v1712_v39  ;;  %v1726_v33 = vmul.f32 %v1722_v5, %v1711_v43  ;;  %v1927_v10 = vrot.slane %v1922_v32, %v7593_v18 }
 0x69c   : > { %v1931_v11 = vrot.slane %v1922_v32, %v7595_v62 }
 0x69d   : > { %1727 = vst [vmem:[#allocation2] sm:$0xf] %v1725_v51  ;;  %1728 = vst [vmem:[#allocation2 + $0x8] sm:$0xf] %v1726_v33  ;;  %v1762_v48 = vpop.permute.xlu1 %1761  ;;  %v1885_v35 = vpop.permute.xlu0 %1884 }
 0x69e   : > { %v1764_v0 = vsel %vm1763_vm7, %v1760_v44, %v1762_v48  ;;  %v1765_v53 = vsel %vm1763_vm7, %v1762_v48, %v1760_v44  ;;  %v2138_v48 = vld [vmem:[#allocation7 + $0x4] ss:$8 sm:$0x3] }
 0x69f   : > { %v1779_v16 = vmul.f32 %v1772_v27, %v1765_v53  ;;  %v1780_v47 = vmul.f32 %v1776_v12, %v1764_v0  ;;  %v1948_v12 = vld [vmem:[%s8880_s5] sm:$0xf]  ;;  %v2147_v59 = vrot.slane %v2138_v48, %v7595_v62 }
 0x6a1   : > { %1781 = vst [vmem:[#allocation2 + $0x10] sm:$0xf] %v1779_v16  ;;  %1782 = vst [vmem:[#allocation2 + $0x18] sm:$0xf] %v1780_v47  ;;  %v1833_v21 = vpop.permute.xlu1 %1832  ;;  %v1861_v28 = vpop.permute.xlu0 %1860  ;;  %v2143_v47 = vrot.slane %v2138_v48, %v7593_v18 }
 0x6a2   : > { %v1835_v3 = vsel %vm1834_vm8, %v1831_v54, %v1833_v21  ;;  %v1836_v63 = vsel %vm1834_vm8, %v1833_v21, %v1831_v54 }
 0x6a3   : > { %v1850_v14 = vmul.f32 %v1843_v19, %v1835_v3  ;;  %v1851_v7 = vmul.f32 %v1847_v8, %v1836_v63 }
 0x6a4   : > { %v1938_v58 = vld [vmem:[#allocation2] sm:$0xff]  ;;  %v1939_v56 = vld [vmem:[#allocation2 + $0x8] sm:$0xff] }
 0x6a5   : > { %v1854_v23 = vrot.slane %v1850_v14, 4  ;;  %v1855_v38 = vrot.slane %v1851_v7, 4  ;;  %v1887_v41 = vpop.permute.xlu1 %1886  ;;  %v1915_v55 = vpop.permute.xlu0 %1914  ;;  %v5950_v14 = vld [vmem:[%s8881_s6 + $0x4] sm:$0xf] }
 0x6a6   : > { %v1889_v26 = vsel %vm1888_vm9, %v1885_v35, %v1887_v41  ;;  %v1890_v29 = vsel %vm1888_vm9, %v1887_v41, %v1885_v35  ;;  %v2066_v7 = vld [vmem:[#allocation7 + $0x1] ss:$8 sm:$0x3] }
 0x6a7   : > { %1858 = vst [vmem:[#allocation2 + $0x20] sm:$0xf0] %v1854_v23  ;;  %1859 = vst [vmem:[#allocation2 + $0x28] sm:$0xf0] %v1855_v38  ;;  %v1904_v2 = vmul.f32 %v1897_v49, %v1889_v26  ;;  %v1905_v31 = vmul.f32 %v1901_v22, %v1890_v29  ;;  %v2071_v49 = vrot.slane %v2066_v7, %v7593_v18 }
 0x6a8   : > { %v1940_v60 = vld [vmem:[#allocation2 + $0x10] sm:$0xff]  ;;  %v1941_v17 = vld [vmem:[#allocation2 + $0x18] sm:$0xff]  ;;  %v2075_v22 = vrot.slane %v2066_v7, %v7595_v62  ;;  %v2116_v23 = vld [vmem:[#allocation7 + $0x3] ss:$8 sm:$0x3] }
 0x6a9   : > { %v1908_v61 = vrot.slane %v1904_v2, 4  ;;  %v1909_v1 = vrot.slane %v1905_v31, 4  ;;  %v1863_v34 = vpop.permute.xlu1 %1862  ;;  %v6099_v50 = vpack.c.bf16 %v1941_v17, %v1939_v56  ;;  %v6101_v37 = vpack.c.bf16 %v1940_v60, %v1938_v58 }
 0x6aa   : > { %v1865_v20 = vsel %vm1864_vm10, %v1861_v28, %v1863_v34  ;;  %v1866_v52 = vsel %vm1864_vm10, %v1863_v34, %v1861_v28  ;;  %v2121_v28 = vrot.slane %v2116_v23, %v7593_v18  ;;  %v2125_v2 = vrot.slane %v2116_v23, %v7595_v62 }
 0x6ab   : > { %1912 = vst [vmem:[#allocation2 + $0x30] sm:$0xf0] %v1908_v61  ;;  %1913 = vst [vmem:[#allocation2 + $0x38] sm:$0xf0] %v1909_v1  ;;  %v1880_v44 = vmul.f32 %v1873_v46, %v1865_v20  ;;  %v1881_v45 = vmul.f32 %v1877_v6, %v1866_v52  ;;  %6100 = vmatprep.subr.bf16.mxu0 %v6099_v50 }
 0x6ac   : > { %6102 = vmatpush1.bf16.msra.mxu0 %v6101_v37  ;;  %v2044_v46 = vld [vmem:[#allocation7] ss:$8 sm:$0x3]  ;;  %v2094_v20 = vld [vmem:[#allocation7 + $0x2] ss:$8 sm:$0x3] }
 0x6ad   : > { %1882 = vst [vmem:[#allocation2 + $0x30] sm:$0xf] %v1880_v44  ;;  %1883 = vst [vmem:[#allocation2 + $0x38] sm:$0xf] %v1881_v45  ;;  %v1917_v36 = vpop.permute.xlu1 %1916  ;;  %v2049_v34 = vrot.slane %v2044_v46, %v7593_v18  ;;  %v2053_v50 = vrot.slane %v2044_v46, %v7595_v62 }
 0x6ae   : > { %v1919_v5 = vsel %vm1918_vm11, %v1915_v55, %v1917_v36  ;;  %v1920_v24 = vsel %vm1918_vm11, %v1917_v36, %v1915_v55  ;;  %v1942_v13 = vld [vmem:[#allocation2 + $0x20] sm:$0xff]  ;;  %v1943_v43 = vld [vmem:[#allocation2 + $0x28] sm:$0xff] }
 0x6af   : > { %v1934_v9 = vmul.f32 %v1927_v10, %v1919_v5  ;;  %v1935_v40 = vmul.f32 %v1931_v11, %v1920_v24  ;;  %v2099_v5 = vrot.slane %v2094_v20, %v7593_v18  ;;  %v2103_v24 = vrot.slane %v2094_v20, %v7595_v62 }
 0x6b1   : > { %1936 = vst [vmem:[#allocation2 + $0x40] sm:$0xf] %v1934_v9  ;;  %1937 = vst [vmem:[#allocation2 + $0x48] sm:$0xf] %v1935_v40 }
 0x6b2   : > { %v2160_v40 = vld [vmem:[#allocation7 + $0x5] ss:$8 sm:$0x3] }
 0x6b4   : > { %v1944_v39 = vld [vmem:[#allocation2 + $0x30] sm:$0xff]  ;;  %v1945_v51 = vld [vmem:[#allocation2 + $0x38] sm:$0xff] }
 0x6b5   : > { %v6103_v33 = vpack.c.bf16 %v1945_v51, %v1943_v43  ;;  %v6105_v54 = vpack.c.bf16 %v1944_v39, %v1942_v13 }
 0x6b6   : > { %v1953_v0 = vpop.permute.xlu0 %1952 }
 0x6b7   : > { %6104 = vmatprep.subr.bf16.mxu0 %v6103_v33 }
 0x6b8   : > { %6106 = vmatpush1.bf16.msra.mxu0 %v6105_v54  ;;  %v1947_v27 = vld [vmem:[#allocation2 + $0x48] sm:$0xf]  ;;  %v1946_v15 = vld [vmem:[#allocation2 + $0x40] sm:$0xf]  ;;  %v2165_v54 = vrot.slane %v2160_v40, %v7593_v18 }
 0x6b9   : > { %5946 = vmatprep.subr.msk.mxu0 %vm8957_vm0, %v1947_v27  ;;  %v2169_v27 = vrot.slane %v2160_v40, %v7595_v62  ;;  %v5949_v40 = vld [vmem:[%s8880_s5 + $0x4] sm:$0xf] }
 0x6bc   : > { %5947 = vmatpush1.msk.msra.mxu0 %vm8957_vm0, %v1946_v15  ;;  %v2210_v15 = vld [vmem:[#allocation7 + $0x7] ss:$8 sm:$0x3] }
 0x6bd   : > { %5948 = vmatmul.mubr.msk.f32.vlgmr.msra.gmra.mrb[4].mxu0 %vm8956_vm12, %v1948_v12 }
 0x6be   : > { %2346 = vmatprep.mubr.f32.mxu0 %v9038_v57 }
 0x790   : > { %v2031_v53 = vpop.f32.mrb[4].mxu0 }
 0x791   : > { %v2032_v16 = vadd.f32 %v2031_v53, %v1953_v0  ;;  %v2033_v19 = vpop.f32.mrb[5].mxu0 }
 0x792   : > { %v2034_v8 = vadd.f32 %v2033_v19, %v1953_v0  ;;  %v2215_v19 = vrot.slane %v2210_v15, %v7593_v18 }
 0x793   : > { %v2036_v35 = vmax.f32 %v2032_v16, 0.0 }
 0x794   : > { %v2037_v21 = vmax.f32 %v2034_v8, 0.0  ;;  %v2219_v8 = vrot.slane %v2210_v15, %v7595_v62 }
 0x795   : > { %v2150_v3 = vmul.f32 %v2143_v47, %v2036_v35  ;;  %2060 = vrot.lane.b32.xlu1 %v2036_v35, %s8929_s28 }
 0x796   : > { %v2151_v63 = vmul.f32 %v2147_v59, %v2037_v21  ;;  %2062 = vrot.lane.b32.xlu0 %v2037_v21, %s8929_s28 }
 0x797   : > { %2152 = vst [vmem:[#allocation2 + $0x20] sm:$0xf] %v2150_v3 }
 0x798   : > { %2153 = vst [vmem:[#allocation2 + $0x28] sm:$0xf] %v2151_v63 }
 0x799   : > { %2110 = vrot.lane.b32.xlu1 %v2036_v35, %s8935_s15 }
 0x79a   : > { %2112 = vrot.lane.b32.xlu0 %v2037_v21, %s8935_s15 }
 0x79d   : > { %2038 = vrot.lane.b32.xlu1 %v2036_v35, %s8931_s23 }
 0x79e   : > { %2040 = vrot.lane.b32.xlu0 %v2037_v21, %s8931_s23 }
 0x7a1   : > { %2088 = vrot.lane.b32.xlu1 %v2036_v35, %s8933_s26 }
 0x7a2   : > { %2090 = vrot.lane.b32.xlu0 %v2037_v21, %s8933_s26 }
 0x7a5   : > { %2154 = vrot.lane.b32.xlu1 %v2036_v35, %s8937_s30 }
 0x7a6   : > { %2156 = vrot.lane.b32.xlu0 %v2037_v21, %s8937_s30 }
 0x7a9   : > { %2204 = vrot.lane.b32.xlu1 %v2036_v35, %s8939_s24 }
 0x7aa   : > { %2206 = vrot.lane.b32.xlu0 %v2037_v21, %s8939_s24 }
 0x7ad   : > { %2182 = vrot.lane.b32.xlu1 %v2036_v35, %s8954_s7 }
 0x7ae   : > { %2184 = vrot.lane.b32.xlu0 %v2037_v21, %s8954_s7 }
 0x7b1   : > { %2232 = vrot.lane.b32.xlu1 %v2036_v35, %s8952_s8  ;;  %v2188_v35 = vld [vmem:[#allocation7 + $0x6] ss:$8 sm:$0x3] }
 0x7b2   : > { %2234 = vrot.lane.b32.xlu0 %v2037_v21, %s8952_s8  ;;  %v2193_v23 = vrot.slane %v2188_v35, %v7593_v18 }
 0x7b5   : > { %2270 = vperm.xlu1 %6314, %v5950_v14  }
 0x807   : > { %v2061_v30 = vpop.permute.xlu1 %2060 }
 0x808   : > { %v2063_v38 = vpop.permute.xlu0 %2062 }
 0x809   : > { %v2064_v41 = vsel %vm8942_vm4, %v2061_v30, %v2063_v38  ;;  %v2065_v26 = vsel %vm8942_vm4, %v2063_v38, %v2061_v30  ;;  %v2197_v38 = vrot.slane %v2188_v35, %v7595_v62 }
 0x80a   : > { %v2078_v29 = vmul.f32 %v2071_v49, %v2065_v26  ;;  %v2079_v58 = vmul.f32 %v2075_v22, %v2064_v41  ;;  %v2238_v41 = vld [vmem:[#allocation7 + $0x10] ss:$8 sm:$0x3] }
 0x80b   : > { %v2111_v31 = vpop.permute.xlu1 %2110 }
 0x80c   : > { %v2082_v6 = vrot.slane %v2078_v29, 4  ;;  %v2083_v32 = vrot.slane %v2079_v58, 4  ;;  %v2113_v56 = vpop.permute.xlu0 %2112 }
 0x80d   : > { %v2114_v60 = vsel %vm1787_vm5, %v2111_v31, %v2113_v56  ;;  %v2115_v17 = vsel %vm1787_vm5, %v2113_v56, %v2111_v31 }
 0x80e   : > { %2086 = vst [vmem:[#allocation2] sm:$0xf0] %v2082_v6  ;;  %2087 = vst [vmem:[#allocation2 + $0x8] sm:$0xf0] %v2083_v32  ;;  %v2128_v61 = vmul.f32 %v2121_v28, %v2115_v17  ;;  %v2129_v1 = vmul.f32 %v2125_v2, %v2114_v60 }
 0x80f   : > { %v2039_v37 = vpop.permute.xlu1 %2038 }
 0x810   : > { %v2132_v52 = vrot.slane %v2128_v61, 4  ;;  %v2133_v44 = vrot.slane %v2129_v1, 4  ;;  %v2041_v45 = vpop.permute.xlu0 %2040  ;;  %v2243_v1 = vrot.slane %v2238_v41, %v7593_v18 }
 0x811   : > { %v2042_v10 = vsel %vm8943_vm6, %v2039_v37, %v2041_v45  ;;  %v2043_v11 = vsel %vm8943_vm6, %v2041_v45, %v2039_v37 }
 0x812   : > { %2136 = vst [vmem:[#allocation2 + $0x10] sm:$0xf0] %v2132_v52  ;;  %2137 = vst [vmem:[#allocation2 + $0x18] sm:$0xf0] %v2133_v44  ;;  %v2056_v55 = vmul.f32 %v2049_v34, %v2043_v11  ;;  %v2057_v36 = vmul.f32 %v2053_v50, %v2042_v10  ;;  %v2247_v34 = vrot.slane %v2238_v41, %v7595_v62 }
 0x813   : > { %v2089_v9 = vpop.permute.xlu1 %2088 }
 0x814   : > { %2058 = vst [vmem:[#allocation2] sm:$0xf] %v2056_v55  ;;  %2059 = vst [vmem:[#allocation2 + $0x8] sm:$0xf] %v2057_v36  ;;  %v2091_v13 = vpop.permute.xlu0 %2090 }
 0x815   : > { %v2092_v43 = vsel %vm1763_vm7, %v2089_v9, %v2091_v13  ;;  %v2093_v39 = vsel %vm1763_vm7, %v2091_v13, %v2089_v9 }
 0x816   : > { %v2106_v51 = vmul.f32 %v2099_v5, %v2093_v39  ;;  %v2107_v33 = vmul.f32 %v2103_v24, %v2092_v43  ;;  %v2455_v43 = vld [vmem:[#allocation7 + $0x4] ss:$8 sm:$0x3] }
 0x817   : > { %v2155_v12 = vpop.permute.xlu1 %2154  ;;  %v2464_v15 = vrot.slane %v2455_v43, %v7595_v62 }
 0x818   : > { %2108 = vst [vmem:[#allocation2 + $0x10] sm:$0xf] %v2106_v51  ;;  %2109 = vst [vmem:[#allocation2 + $0x18] sm:$0xf] %v2107_v33  ;;  %v2157_v48 = vpop.permute.xlu0 %2156 }
 0x819   : > { %v2158_v0 = vsel %vm1834_vm8, %v2155_v12, %v2157_v48  ;;  %v2159_v53 = vsel %vm1834_vm8, %v2157_v48, %v2155_v12 }
 0x81a   : > { %v2172_v16 = vmul.f32 %v2165_v54, %v2158_v0  ;;  %v2173_v47 = vmul.f32 %v2169_v27, %v2159_v53  ;;  %v2460_v54 = vrot.slane %v2455_v43, %v7593_v18 }
 0x81b   : > { %v2205_v59 = vpop.permute.xlu1 %2204  ;;  %v2254_v49 = vld [vmem:[#allocation2] sm:$0xff]  ;;  %v2255_v26 = vld [vmem:[#allocation2 + $0x8] sm:$0xff] }
 0x81c   : > { %v2176_v21 = vrot.slane %v2172_v16, 4  ;;  %v2177_v3 = vrot.slane %v2173_v47, 4  ;;  %v2207_v63 = vpop.permute.xlu0 %2206 }
 0x81d   : > { %v2208_v14 = vsel %vm1888_vm9, %v2205_v59, %v2207_v63  ;;  %v2209_v7 = vsel %vm1888_vm9, %v2207_v63, %v2205_v59  ;;  %v2433_v59 = vld [vmem:[#allocation7 + $0x3] ss:$8 sm:$0x3] }
 0x81e   : > { %2180 = vst [vmem:[#allocation2 + $0x20] sm:$0xf0] %v2176_v21  ;;  %2181 = vst [vmem:[#allocation2 + $0x28] sm:$0xf0] %v2177_v3  ;;  %v2222_v22 = vmul.f32 %v2215_v19, %v2208_v14  ;;  %v2223_v30 = vmul.f32 %v2219_v8, %v2209_v7  ;;  %v2438_v7 = vrot.slane %v2433_v59, %v7593_v18 }
 0x81f   : > { %v2256_v29 = vld [vmem:[#allocation2 + $0x10] sm:$0xff]  ;;  %v2257_v58 = vld [vmem:[#allocation2 + $0x18] sm:$0xff]  ;;  %v2183_v28 = vpop.permute.xlu1 %2182 }
 0x820   : > { %v2226_v2 = vrot.slane %v2222_v22, 4  ;;  %v2227_v31 = vrot.slane %v2223_v30, 4  ;;  %v2185_v46 = vpop.permute.xlu0 %2184  ;;  %v6107_v6 = vpack.c.bf16 %v2257_v58, %v2255_v26  ;;  %v6109_v32 = vpack.c.bf16 %v2256_v29, %v2254_v49  ;;  %v2361_v30 = vld [vmem:[#allocation7] ss:$8 sm:$0x3] }
 0x821   : > { %v2186_v56 = vsel %vm1864_vm10, %v2183_v28, %v2185_v46  ;;  %v2187_v60 = vsel %vm1864_vm10, %v2185_v46, %v2183_v28  ;;  %v2442_v49 = vrot.slane %v2433_v59, %v7595_v62 }
 0x822   : > { %2230 = vst [vmem:[#allocation2 + $0x30] sm:$0xf0] %v2226_v2  ;;  %2231 = vst [vmem:[#allocation2 + $0x38] sm:$0xf0] %v2227_v31  ;;  %v2200_v17 = vmul.f32 %v2193_v23, %v2186_v56  ;;  %v2201_v61 = vmul.f32 %v2197_v38, %v2187_v60  ;;  %6108 = vmatprep.subr.bf16.mxu0 %v6107_v6  ;;  %v2366_v2 = vrot.slane %v2361_v30, %v7593_v18 }
 0x823   : > { %6110 = vmatpush1.bf16.msra.mxu0 %v6109_v32  ;;  %v2233_v50 = vpop.permute.xlu1 %2232  ;;  %v2370_v31 = vrot.slane %v2361_v30, %v7595_v62  ;;  %v2411_v6 = vld [vmem:[#allocation7 + $0x2] ss:$8 sm:$0x3] }
 0x824   : > { %2202 = vst [vmem:[#allocation2 + $0x30] sm:$0xf] %v2200_v17  ;;  %2203 = vst [vmem:[#allocation2 + $0x38] sm:$0xf] %v2201_v61  ;;  %v2235_v37 = vpop.permute.xlu0 %2234 }
 0x825   : > { %v2236_v20 = vsel %vm1918_vm11, %v2233_v50, %v2235_v37  ;;  %v2237_v52 = vsel %vm1918_vm11, %v2235_v37, %v2233_v50  ;;  %v2258_v10 = vld [vmem:[#allocation2 + $0x20] sm:$0xff]  ;;  %v2259_v11 = vld [vmem:[#allocation2 + $0x28] sm:$0xff]  ;;  %v2416_v50 = vrot.slane %v2411_v6, %v7593_v18  ;;  %v2420_v37 = vrot.slane %v2411_v6, %v7595_v62 }
 0x826   : > { %v2250_v44 = vmul.f32 %v2243_v1, %v2236_v20  ;;  %v2251_v45 = vmul.f32 %v2247_v34, %v2237_v52  ;;  %v2477_v52 = vld [vmem:[#allocation7 + $0x5] ss:$8 sm:$0x3] }
 0x828   : > { %2252 = vst [vmem:[#allocation2 + $0x40] sm:$0xf] %v2250_v44  ;;  %2253 = vst [vmem:[#allocation2 + $0x48] sm:$0xf] %v2251_v45 }
 0x82b   : > { %v2260_v55 = vld [vmem:[#allocation2 + $0x30] sm:$0xff]  ;;  %v2261_v36 = vld [vmem:[#allocation2 + $0x38] sm:$0xff] }
 0x82c   : > { %v6111_v5 = vpack.c.bf16 %v2261_v36, %v2259_v11  ;;  %v6113_v24 = vpack.c.bf16 %v2260_v55, %v2258_v10  ;;  %v2482_v36 = vrot.slane %v2477_v52, %v7593_v18 }
 0x82e   : > { %6112 = vmatprep.subr.bf16.mxu0 %v6111_v5  ;;  %v2486_v5 = vrot.slane %v2477_v52, %v7595_v62  ;;  %v5954_v52 = vld [vmem:[%s8880_s5 + $0x8] sm:$0xf] }
 0x82f   : > { %6114 = vmatpush1.bf16.msra.mxu0 %v6113_v24  ;;  %v2263_v9 = vld [vmem:[#allocation2 + $0x48] sm:$0xf]  ;;  %v2262_v13 = vld [vmem:[#allocation2 + $0x40] sm:$0xf] }
 0x830   : > { %5951 = vmatprep.subr.msk.mxu0 %vm8957_vm0, %v2263_v9  ;;  %v2527_v9 = vld [vmem:[#allocation7 + $0x7] ss:$8 sm:$0x3] }
 0x833   : > { %5952 = vmatpush1.msk.msra.mxu0 %vm8957_vm0, %v2262_v13 }
 0x834   : > { %5953 = vmatmul.mubr.msk.f32.vlgmr.msra.gmra.mrb[6].mxu0 %vm8956_vm12, %v5949_v40  ;;  %v2271_v39 = vpop.permute.xlu1 %2270 }
 0x835   : > { %2663 = vmatprep.mubr.f32.mxu0 %v9038_v57 }
 0x907   : > { %v2348_v51 = vpop.f32.mrb[6].mxu0 }
 0x908   : > { %v2349_v33 = vadd.f32 %v2348_v51, %v2271_v39  ;;  %v2350_v27 = vpop.f32.mrb[7].mxu0 }
 0x909   : > { %v2351_v12 = vadd.f32 %v2350_v27, %v2271_v39 }
 0x90a   : > { %v7786_v48 = vadd.f32 %v2349_v33, %v7600_v25  ;;  %v5955_v25 = vld [vmem:[%s8881_s6 + $0x8] sm:$0xf]  ;;  %v2532_v33 = vrot.slane %v2527_v9, %v7593_v18 }
 0x90b   : > { %v7789_v0 = vadd.f32 %v2351_v12, %v7603_v42  ;;  %v2383_v42 = vld [vmem:[#allocation7 + $0x1] ss:$8 sm:$0x3]  ;;  %v2505_v12 = vld [vmem:[#allocation7 + $0x6] ss:$8 sm:$0x3] }
 0x90c   : > { %v2467_v53 = vmul.f32 %v2460_v54, %v7786_v48  ;;  %2377 = vrot.lane.b32.xlu0 %v7786_v48, %s8929_s28  ;;  %v2388_v47 = vrot.slane %v2383_v42, %v7593_v18  ;;  %v2392_v19 = vrot.slane %v2383_v42, %v7595_v62  ;;  %v2536_v54 = vrot.slane %v2527_v9, %v7595_v62 }
 0x90d   : > { %v2468_v16 = vmul.f32 %v2464_v15, %v7789_v0  ;;  %2379 = vrot.lane.b32.xlu1 %v7789_v0, %s8929_s28  ;;  %v2510_v59 = vrot.slane %v2505_v12, %v7593_v18  ;;  %s6695_s28 = smov 126  }
 0x90e   : > { %2469 = vst [vmem:[#allocation2 + $0x20] sm:$0xf] %v2467_v53 }
 0x90f   : > { %2470 = vst [vmem:[#allocation2 + $0x28] sm:$0xf] %v2468_v16 }
 0x910   : > { %2427 = vrot.lane.b32.xlu0 %v7786_v48, %s8935_s15 }
 0x911   : > { %2429 = vrot.lane.b32.xlu1 %v7789_v0, %s8935_s15  ;;  %s6698_s15 = smov 94  }
 0x914   : > { %2355 = vrot.lane.b32.xlu0 %v7786_v48, %s8931_s23 }
 0x915   : > { %2357 = vrot.lane.b32.xlu1 %v7789_v0, %s8931_s23  ;;  %s6696_s23 = smov 96  }
 0x918   : > { %2405 = vrot.lane.b32.xlu0 %v7786_v48, %s8933_s26 }
 0x919   : > { %2407 = vrot.lane.b32.xlu1 %v7789_v0, %s8933_s26  ;;  %s6697_s26 = smov 98  }
 0x91c   : > { %2471 = vrot.lane.b32.xlu0 %v7786_v48, %s8937_s30 }
 0x91d   : > { %2473 = vrot.lane.b32.xlu1 %v7789_v0, %s8937_s30  ;;  %s9041_s30 = smov 127  }
 0x920   : > { %2521 = vrot.lane.b32.xlu0 %v7786_v48, %s8939_s24 }
 0x921   : > { %2523 = vrot.lane.b32.xlu1 %v7789_v0, %s8939_s24  ;;  %s9042_s24 = smov 1  }
 0x924   : > { %2499 = vrot.lane.b32.xlu0 %v7786_v48, %s8954_s7 }
 0x925   : > { %2501 = vrot.lane.b32.xlu1 %v7789_v0, %s8954_s7 }
 0x928   : > { %2549 = vrot.lane.b32.xlu0 %v7786_v48, %s8952_s8 }
 0x929   : > { %2551 = vrot.lane.b32.xlu1 %v7789_v0, %s8952_s8 }
 0x92c   : > { %2587 = vperm.xlu0 %6313, %v5955_v25  }
 0x97e   : > { %v2378_v8 = vpop.permute.xlu0 %2377 }
 0x97f   : > { %v2380_v35 = vpop.permute.xlu1 %2379 }
 0x980   : > { %v2381_v21 = vsel %vm8942_vm4, %v2378_v8, %v2380_v35  ;;  %v2382_v3 = vsel %vm8942_vm4, %v2380_v35, %v2378_v8  ;;  %v2514_v35 = vrot.slane %v2505_v12, %v7595_v62  ;;  %v2715_v12 = vld [vmem:[#allocation9 + $0x1] ss:$8 sm:$0x3]  ;;  %vm2842_vm4 = vcmp.lt.s32.totalorder %v7642_v4, 98 }
 0x981   : > { %v2395_v63 = vmul.f32 %v2388_v47, %v2382_v3  ;;  %v2396_v14 = vmul.f32 %v2392_v19, %v2381_v21  ;;  %v2555_v21 = vld [vmem:[#allocation7 + $0x10] ss:$8 sm:$0x3] }
 0x982   : > { %v2428_v22 = vpop.permute.xlu0 %2427 }
 0x983   : > { %v2399_v23 = vrot.slane %v2395_v63, 4  ;;  %v2400_v38 = vrot.slane %v2396_v14, 4  ;;  %v2430_v41 = vpop.permute.xlu1 %2429 }
 0x984   : > { %v2431_v26 = vsel %vm1787_vm5, %v2428_v22, %v2430_v41  ;;  %v2432_v29 = vsel %vm1787_vm5, %v2430_v41, %v2428_v22 }
 0x985   : > { %2403 = vst [vmem:[#allocation2] sm:$0xf0] %v2399_v23  ;;  %2404 = vst [vmem:[#allocation2 + $0x8] sm:$0xf0] %v2400_v38  ;;  %v2445_v58 = vmul.f32 %v2438_v7, %v2432_v29  ;;  %v2446_v28 = vmul.f32 %v2442_v49, %v2431_v26 }
 0x986   : > { %v2356_v46 = vpop.permute.xlu0 %2355 }
 0x987   : > { %v2449_v32 = vrot.slane %v2445_v58, 4  ;;  %v2450_v56 = vrot.slane %v2446_v28, 4  ;;  %v2358_v60 = vpop.permute.xlu1 %2357  ;;  %v2560_v28 = vrot.slane %v2555_v21, %v7593_v18 }
 0x988   : > { %v2359_v17 = vsel %vm8943_vm6, %v2356_v46, %v2358_v60  ;;  %v2360_v61 = vsel %vm8943_vm6, %v2358_v60, %v2356_v46  ;;  %vm2896_vm6 = vcmp.lt.s32.totalorder %v7642_v4, 94 }
 0x989   : > { %2453 = vst [vmem:[#allocation2 + $0x10] sm:$0xf0] %v2449_v32  ;;  %2454 = vst [vmem:[#allocation2 + $0x18] sm:$0xf0] %v2450_v56  ;;  %v2373_v1 = vmul.f32 %v2366_v2, %v2360_v61  ;;  %v2374_v34 = vmul.f32 %v2370_v31, %v2359_v17  ;;  %v2564_v2 = vrot.slane %v2555_v21, %v7595_v62 }
 0x98a   : > { %v2406_v20 = vpop.permute.xlu0 %2405 }
 0x98b   : > { %2375 = vst [vmem:[#allocation2] sm:$0xf] %v2373_v1  ;;  %2376 = vst [vmem:[#allocation2 + $0x8] sm:$0xf] %v2374_v34  ;;  %v2408_v44 = vpop.permute.xlu1 %2407 }
 0x98c   : > { %v2409_v45 = vsel %vm1763_vm7, %v2406_v20, %v2408_v44  ;;  %v2410_v10 = vsel %vm1763_vm7, %v2408_v44, %v2406_v20 }
 0x98d   : > { %v2423_v11 = vmul.f32 %v2416_v50, %v2410_v10  ;;  %v2424_v55 = vmul.f32 %v2420_v37, %v2409_v45  ;;  %v2670_v45 = vld [vmem:[%s8889_s14] sm:$0x3]  ;;  %v2792_v10 = vld [vmem:[#allocation9 + $0x4] ss:$8 sm:$0x3] }
 0x98e   : > { %v2472_v24 = vpop.permute.xlu0 %2471  ;;  %v2797_v9 = vrot.slane %v2792_v10, %v7593_v18 }
 0x98f   : > { %2425 = vst [vmem:[#allocation2 + $0x10] sm:$0xf] %v2423_v11  ;;  %2426 = vst [vmem:[#allocation2 + $0x18] sm:$0xf] %v2424_v55  ;;  %v2474_v40 = vpop.permute.xlu1 %2473  ;;  %v2675_v11 = vrot.slane %v2670_v45, %v7593_v18 }
 0x990   : > { %v2475_v13 = vsel %vm1834_vm8, %v2472_v24, %v2474_v40  ;;  %v2476_v43 = vsel %vm1834_vm8, %v2474_v40, %v2472_v24 }
 0x991   : > { %v2489_v39 = vmul.f32 %v2482_v36, %v2475_v13  ;;  %v2490_v51 = vmul.f32 %v2486_v5, %v2476_v43  ;;  %v2679_v5 = vrot.slane %v2670_v45, %v7595_v62  ;;  %v2801_v43 = vrot.slane %v2792_v10, %v7595_v62 }
 0x992   : > { %v2522_v27 = vpop.permute.xlu0 %2521  ;;  %v2571_v47 = vld [vmem:[#allocation2] sm:$0xff]  ;;  %v2572_v14 = vld [vmem:[#allocation2 + $0x8] sm:$0xff] }
 0x993   : > { %v2493_v15 = vrot.slane %v2489_v39, 4  ;;  %v2494_v53 = vrot.slane %v2490_v51, 4  ;;  %v2524_v16 = vpop.permute.xlu1 %2523 }
 0x994   : > { %v2525_v25 = vsel %vm1888_vm9, %v2522_v27, %v2524_v16  ;;  %v2526_v42 = vsel %vm1888_vm9, %v2524_v16, %v2522_v27  ;;  %v5960_v27 = vld [vmem:[%s8881_s6 + $0xc] sm:$0xf] }
 0x995   : > { %2497 = vst [vmem:[#allocation2 + $0x20] sm:$0xf0] %v2493_v15  ;;  %2498 = vst [vmem:[#allocation2 + $0x28] sm:$0xf0] %v2494_v53  ;;  %v2539_v19 = vmul.f32 %v2532_v33, %v2525_v25  ;;  %v2540_v8 = vmul.f32 %v2536_v54, %v2526_v42  ;;  %v2720_v15 = vrot.slane %v2715_v12, %v7593_v18 }
 0x996   : > { %v2573_v3 = vld [vmem:[#allocation2 + $0x10] sm:$0xff]  ;;  %v2500_v63 = vpop.permute.xlu0 %2499  ;;  %v2574_v7 = vld [vmem:[#allocation2 + $0x18] sm:$0xff]  ;;  %v2724_v53 = vrot.slane %v2715_v12, %v7595_v62  ;;  %v2769_v25 = vld [vmem:[#allocation9 + $0x3] ss:$8 sm:$0x3] }
 0x997   : > { %v2543_v49 = vrot.slane %v2539_v19, 4  ;;  %v2544_v22 = vrot.slane %v2540_v8, 4  ;;  %v2502_v30 = vpop.permute.xlu1 %2501  ;;  %v6115_v23 = vpack.c.bf16 %v2574_v7, %v2572_v14  ;;  %v6117_v38 = vpack.c.bf16 %v2573_v3, %v2571_v47 }
 0x998   : > { %v2503_v41 = vsel %vm1864_vm10, %v2500_v63, %v2502_v30  ;;  %v2504_v26 = vsel %vm1864_vm10, %v2502_v30, %v2500_v63  ;;  %v2778_v21 = vrot.slane %v2769_v25, %v7595_v62  ;;  %v2691_v63 = vld [vmem:[#allocation9] ss:$8 sm:$0x3] }
 0x999   : > { %2547 = vst [vmem:[#allocation2 + $0x30] sm:$0xf0] %v2543_v49  ;;  %2548 = vst [vmem:[#allocation2 + $0x38] sm:$0xf0] %v2544_v22  ;;  %v2517_v29 = vmul.f32 %v2510_v59, %v2503_v41  ;;  %v2518_v58 = vmul.f32 %v2514_v35, %v2504_v26  ;;  %6116 = vmatprep.subr.bf16.mxu0 %v6115_v23  ;;  %v2774_v35 = vrot.slane %v2769_v25, %v7593_v18 }
 0x99a   : > { %6118 = vmatpush1.bf16.msra.mxu0 %v6117_v38  ;;  %v2550_v31 = vpop.permute.xlu0 %2549  ;;  %v2696_v41 = vrot.slane %v2691_v63, %v7593_v18  ;;  %v2700_v26 = vrot.slane %v2691_v63, %v7595_v62 }
 0x99b   : > { %2519 = vst [vmem:[#allocation2 + $0x30] sm:$0xf] %v2517_v29  ;;  %2520 = vst [vmem:[#allocation2 + $0x38] sm:$0xf] %v2518_v58  ;;  %v2552_v46 = vpop.permute.xlu1 %2551 }
 0x99c   : > { %v2553_v6 = vsel %vm1918_vm11, %v2550_v31, %v2552_v46  ;;  %v2554_v32 = vsel %vm1918_vm11, %v2552_v46, %v2550_v31  ;;  %v2575_v17 = vld [vmem:[#allocation2 + $0x20] sm:$0xff]  ;;  %v2576_v1 = vld [vmem:[#allocation2 + $0x28] sm:$0xff] }
 0x99d   : > { %v2567_v56 = vmul.f32 %v2560_v28, %v2553_v6  ;;  %v2568_v60 = vmul.f32 %v2564_v2, %v2554_v32  ;;  %v2745_v58 = vld [vmem:[#allocation9 + $0x2] ss:$8 sm:$0x3] }
 0x99f   : > { %2569 = vst [vmem:[#allocation2 + $0x40] sm:$0xf] %v2567_v56  ;;  %2570 = vst [vmem:[#allocation2 + $0x48] sm:$0xf] %v2568_v60  ;;  %v2750_v60 = vrot.slane %v2745_v58, %v7593_v18 }
 0x9a2   : > { %v2577_v61 = vld [vmem:[#allocation2 + $0x30] sm:$0xff]  ;;  %v2578_v34 = vld [vmem:[#allocation2 + $0x38] sm:$0xff] }
 0x9a3   : > { %v6119_v50 = vpack.c.bf16 %v2578_v34, %v2576_v1  ;;  %v6121_v37 = vpack.c.bf16 %v2577_v61, %v2575_v17  ;;  %v2754_v17 = vrot.slane %v2745_v58, %v7595_v62  ;;  %v2816_v1 = vld [vmem:[#allocation9 + $0x5] ss:$8 sm:$0x3] }
 0x9a4   : > { %v2825_v45 = vrot.slane %v2816_v1, %v7595_v62 }
 0x9a5   : > { %6120 = vmatprep.subr.bf16.mxu0 %v6119_v50 }
 0x9a6   : > { %6122 = vmatpush1.bf16.msra.mxu0 %v6121_v37  ;;  %v2580_v20 = vld [vmem:[#allocation2 + $0x48] sm:$0xf]  ;;  %v2579_v44 = vld [vmem:[#allocation2 + $0x40] sm:$0xf] }
 0x9a7   : > { %5956 = vmatprep.subr.msk.mxu0 %vm8957_vm0, %v2580_v20 }
 0x9aa   : > { %5957 = vmatpush1.msk.msra.mxu0 %vm8957_vm0, %v2579_v44  ;;  %v2821_v44 = vrot.slane %v2816_v1, %v7593_v18 }
 0x9ab   : > { %5958 = vmatmul.mubr.msk.f32.vlgmr.msra.gmra.mrb[8].mxu0 %vm8956_vm12, %v5954_v52  ;;  %v2588_v55 = vpop.permute.xlu0 %2587 }
 0x9ac   : > { %3008 = vmatprep.mubr.f32.mxu0 %v9038_v57 }
 0xa7e   : > { %v2665_v36 = vpop.f32.mrb[8].mxu0 }
 0xa7f   : > { %v2666_v24 = vadd.f32 %v2665_v36, %v2588_v55  ;;  %v2667_v40 = vpop.f32.mrb[9].mxu0 }
 0xa80   : > { %v2668_v13 = vadd.f32 %v2667_v40, %v2588_v55 }
 0xa81   : > { %v7890_v39 = vmul.f32 %v2675_v11, %v2666_v24  ;;  %v2870_v11 = vld [vmem:[#allocation9 + $0x7] ss:$8 sm:$0x3] }
 0xa82   : > { %v7892_v51 = vmul.f32 %v2679_v5, %v2668_v13  ;;  %v2875_v40 = vrot.slane %v2870_v11, %v7593_v18  ;;  %v2879_v13 = vrot.slane %v2870_v11, %v7595_v62 }
 0xa83   : > { %v2804_v33 = vmul.f32 %v2797_v9, %v7890_v39  ;;  %2707 = vrot.lane.b32.xlu1 %v7890_v39, %s8946_s9 }
 0xa84   : > { %v2805_v54 = vmul.f32 %v2801_v43, %v7892_v51  ;;  %2709 = vrot.lane.b32.xlu0 %v7892_v51, %s8946_s9 }
 0xa85   : > { %2806 = vst [vmem:[#allocation2 + $0x20] sm:$0xf] %v2804_v33  ;;  %v2846_v33 = vld [vmem:[#allocation9 + $0x6] ss:$8 sm:$0x3] }
 0xa86   : > { %2807 = vst [vmem:[#allocation2 + $0x28] sm:$0xf] %v2805_v54 }
 0xa87   : > { %2761 = vrot.lane.b32.xlu1 %v7890_v39, %s8950_s16 }
 0xa88   : > { %2763 = vrot.lane.b32.xlu0 %v7892_v51, %s8950_s16 }
 0xa8b   : > { %2684 = vrot.lane.b32.xlu1 %v7890_v39, %s8944_s27 }
 0xa8c   : > { %2686 = vrot.lane.b32.xlu0 %v7892_v51, %s8944_s27 }
 0xa8f   : > { %2737 = vrot.lane.b32.xlu1 %v7890_v39, %s8948_s29 }
 0xa90   : > { %2739 = vrot.lane.b32.xlu0 %v7892_v51, %s8948_s29 }
 0xa93   : > { %2808 = vrot.lane.b32.xlu1 %v7890_v39, %s6695_s28 }
 0xa94   : > { %2810 = vrot.lane.b32.xlu0 %v7892_v51, %s6695_s28 }
 0xa97   : > { %2862 = vrot.lane.b32.xlu1 %v7890_v39, %s6696_s23 }
 0xa98   : > { %2864 = vrot.lane.b32.xlu0 %v7892_v51, %s6696_s23 }
 0xa9b   : > { %2838 = vrot.lane.b32.xlu1 %v7890_v39, %s6697_s26 }
 0xa9c   : > { %2840 = vrot.lane.b32.xlu0 %v7892_v51, %s6697_s26 }
 0xa9f   : > { %2892 = vrot.lane.b32.xlu1 %v7890_v39, %s6698_s15 }
 0xaa0   : > { %2894 = vrot.lane.b32.xlu0 %v7892_v51, %s6698_s15 }
 0xaa3   : > { %2932 = vperm.xlu1 %6314, %v5960_v27  }
 0xaf5   : > { %v2708_v16 = vpop.permute.xlu1 %2707 }
 0xaf6   : > { %v2710_v42 = vpop.permute.xlu0 %2709 }
 0xaf7   : > { %v2712_v47 = vsel %vm2711_vm13, %v2708_v16, %v2710_v42  ;;  %v2713_v19 = vsel %vm2711_vm13, %v2710_v42, %v2708_v16  ;;  %v2851_v42 = vrot.slane %v2846_v33, %v7593_v18 }
 0xaf8   : > { %v2727_v8 = vmul.f32 %v2720_v15, %v2713_v19  ;;  %v2728_v59 = vmul.f32 %v2724_v53, %v2712_v47  ;;  %v2855_v47 = vrot.slane %v2846_v33, %v7595_v62 }
 0xaf9   : > { %v2762_v3 = vpop.permute.xlu1 %2761 }
 0xafa   : > { %v2731_v14 = vrot.slane %v2727_v8, 4  ;;  %v2732_v7 = vrot.slane %v2728_v59, 4  ;;  %v2764_v49 = vpop.permute.xlu0 %2763  ;;  %v2900_v8 = vld [vmem:[#allocation9 + $0x10] ss:$8 sm:$0x3] }
 0xafb   : > { %v2766_v22 = vsel %vm2765_vm14, %v2762_v3, %v2764_v49  ;;  %v2767_v30 = vsel %vm2765_vm14, %v2764_v49, %v2762_v3 }
 0xafc   : > { %2735 = vst [vmem:[#allocation2] sm:$0xf0] %v2731_v14  ;;  %2736 = vst [vmem:[#allocation2 + $0x8] sm:$0xf0] %v2732_v7  ;;  %v2781_v23 = vmul.f32 %v2774_v35, %v2767_v30  ;;  %v2782_v38 = vmul.f32 %v2778_v21, %v2766_v22 }
 0xafd   : > { %v2685_v29 = vpop.permute.xlu1 %2684 }
 0xafe   : > { %v2785_v28 = vrot.slane %v2781_v23, 4  ;;  %v2786_v2 = vrot.slane %v2782_v38, 4  ;;  %v2687_v31 = vpop.permute.xlu0 %2686 }
 0xaff   : > { %v2689_v46 = vsel %vm2688_vm15, %v2685_v29, %v2687_v31  ;;  %v2690_v6 = vsel %vm2688_vm15, %v2687_v31, %v2685_v29  ;;  %v2909_v29 = vrot.slane %v2900_v8, %v7595_v62 }
 0xb00   : > { %2789 = vst [vmem:[#allocation2 + $0x10] sm:$0xf0] %v2785_v28  ;;  %2790 = vst [vmem:[#allocation2 + $0x18] sm:$0xf0] %v2786_v2  ;;  %v2703_v32 = vmul.f32 %v2696_v41, %v2690_v6  ;;  %v2704_v56 = vmul.f32 %v2700_v26, %v2689_v46  ;;  %v2905_v26 = vrot.slane %v2900_v8, %v7593_v18 }
 0xb01   : > { %v2738_v61 = vpop.permute.xlu1 %2737 }
 0xb02   : > { %2705 = vst [vmem:[#allocation2] sm:$0xf] %v2703_v32  ;;  %2706 = vst [vmem:[#allocation2 + $0x8] sm:$0xf] %v2704_v56  ;;  %v2740_v34 = vpop.permute.xlu0 %2739 }
 0xb03   : > { %v2742_v50 = vsel %vm2741_vm2, %v2738_v61, %v2740_v34  ;;  %v2743_v37 = vsel %vm2741_vm2, %v2740_v34, %v2738_v61 }
 0xb04   : > { %v2757_v20 = vmul.f32 %v2750_v60, %v2743_v37  ;;  %v2758_v52 = vmul.f32 %v2754_v17, %v2742_v50  ;;  %v5959_v50 = vld [vmem:[%s8880_s5 + $0xc] sm:$0xf] }
 0xb05   : > { %v2809_v10 = vpop.permute.xlu1 %2808 }
 0xb06   : > { %2759 = vst [vmem:[#allocation2 + $0x10] sm:$0xf] %v2757_v20  ;;  %2760 = vst [vmem:[#allocation2 + $0x18] sm:$0xf] %v2758_v52  ;;  %v2811_v55 = vpop.permute.xlu0 %2810 }
 0xb07   : > { %v2813_v36 = vsel %vm2812_vm3, %v2809_v10, %v2811_v55  ;;  %v2814_v5 = vsel %vm2812_vm3, %v2811_v55, %v2809_v10  ;;  %v3117_v20 = vld [vmem:[#allocation9 + $0x4] ss:$8 sm:$0x3] }
 0xb08   : > { %v2828_v24 = vmul.f32 %v2821_v44, %v2813_v36  ;;  %v2829_v9 = vmul.f32 %v2825_v45, %v2814_v5  ;;  %v3122_v10 = vrot.slane %v3117_v20, %v7593_v18  ;;  %v3126_v36 = vrot.slane %v3117_v20, %v7595_v62 }
 0xb09   : > { %v2863_v43 = vpop.permute.xlu1 %2862  ;;  %v2917_v19 = vld [vmem:[#allocation2 + $0x8] sm:$0xff]  ;;  %v2916_v21 = vld [vmem:[#allocation2] sm:$0xff] }
 0xb0a   : > { %v2832_v54 = vrot.slane %v2828_v24, 4  ;;  %v2833_v27 = vrot.slane %v2829_v9, 4  ;;  %v2865_v12 = vpop.permute.xlu0 %2864 }
 0xb0b   : > { %v2867_v15 = vsel %vm2866_vm1, %v2863_v43, %v2865_v12  ;;  %v2868_v53 = vsel %vm2866_vm1, %v2865_v12, %v2863_v43  ;;  %v3045_v43 = vld [vmem:[#allocation9 + $0x1] ss:$8 sm:$0x3]  ;;  %v3095_v12 = vld [vmem:[#allocation9 + $0x3] ss:$8 sm:$0x3] }
 0xb0c   : > { %2836 = vst [vmem:[#allocation2 + $0x20] sm:$0xf0] %v2832_v54  ;;  %2837 = vst [vmem:[#allocation2 + $0x28] sm:$0xf0] %v2833_v27  ;;  %v2882_v16 = vmul.f32 %v2875_v40, %v2867_v15  ;;  %v2883_v25 = vmul.f32 %v2879_v13, %v2868_v53  ;;  %v5965_v13 = vld [vmem:[%s8881_s6 + $0x10] sm:$0xf]  ;;  %v3050_v33 = vrot.slane %v3045_v43, %v7593_v18 }
 0xb0d   : > { %v2839_v59 = vpop.permute.xlu1 %2838  ;;  %v2919_v35 = vld [vmem:[#allocation2 + $0x18] sm:$0xff]  ;;  %v2918_v3 = vld [vmem:[#allocation2 + $0x10] sm:$0xff]  ;;  %v3054_v54 = vrot.slane %v3045_v43, %v7595_v62 }
 0xb0e   : > { %v2886_v63 = vrot.slane %v2882_v16, 4  ;;  %v2887_v14 = vrot.slane %v2883_v25, 4  ;;  %v2841_v7 = vpop.permute.xlu0 %2840  ;;  %v6123_v49 = vpack.c.bf16 %v2919_v35, %v2917_v19  ;;  %v6125_v22 = vpack.c.bf16 %v2918_v3, %v2916_v21 }
 0xb0f   : > { %v2843_v30 = vsel %vm2842_vm4, %v2839_v59, %v2841_v7  ;;  %v2844_v23 = vsel %vm2842_vm4, %v2841_v7, %v2839_v59  ;;  %v3104_v19 = vrot.slane %v3095_v12, %v7595_v62  ;;  %v3023_v59 = vld [vmem:[#allocation9] ss:$8 sm:$0x3] }
 0xb10   : > { %2890 = vst [vmem:[#allocation2 + $0x30] sm:$0xf0] %v2886_v63  ;;  %2891 = vst [vmem:[#allocation2 + $0x38] sm:$0xf0] %v2887_v14  ;;  %v2858_v38 = vmul.f32 %v2851_v42, %v2843_v30  ;;  %v2859_v41 = vmul.f32 %v2855_v47, %v2844_v23  ;;  %6124 = vmatprep.subr.bf16.mxu0 %v6123_v49  ;;  %v3100_v47 = vrot.slane %v3095_v12, %v7593_v18 }
 0xb11   : > { %6126 = vmatpush1.bf16.msra.mxu0 %v6125_v22  ;;  %v2893_v58 = vpop.permute.xlu1 %2892  ;;  %v3028_v22 = vrot.slane %v3023_v59, %v7593_v18  ;;  %v3032_v30 = vrot.slane %v3023_v59, %v7595_v62 }
 0xb12   : > { %2860 = vst [vmem:[#allocation2 + $0x30] sm:$0xf] %v2858_v38  ;;  %2861 = vst [vmem:[#allocation2 + $0x38] sm:$0xf] %v2859_v41  ;;  %v2895_v28 = vpop.permute.xlu0 %2894 }
 0xb13   : > { %v2897_v2 = vsel %vm2896_vm6, %v2893_v58, %v2895_v28  ;;  %v2898_v31 = vsel %vm2896_vm6, %v2895_v28, %v2893_v58  ;;  %v2921_v32 = vld [vmem:[#allocation2 + $0x28] sm:$0xff]  ;;  %v2920_v60 = vld [vmem:[#allocation2 + $0x20] sm:$0xff] }
 0xb14   : > { %v2912_v46 = vmul.f32 %v2905_v26, %v2897_v2  ;;  %v2913_v6 = vmul.f32 %v2909_v29, %v2898_v31  ;;  %v3073_v38 = vld [vmem:[#allocation9 + $0x2] ss:$8 sm:$0x3] }
 0xb16   : > { %2914 = vst [vmem:[#allocation2 + $0x40] sm:$0xf] %v2912_v46  ;;  %2915 = vst [vmem:[#allocation2 + $0x48] sm:$0xf] %v2913_v6  ;;  %v3078_v46 = vrot.slane %v3073_v38, %v7593_v18  ;;  %v3082_v6 = vrot.slane %v3073_v38, %v7595_v62 }
 0xb19   : > { %v2923_v56 = vld [vmem:[#allocation2 + $0x38] sm:$0xff]  ;;  %v2922_v17 = vld [vmem:[#allocation2 + $0x30] sm:$0xff] }
 0xb1a   : > { %v6127_v61 = vpack.c.bf16 %v2923_v56, %v2921_v32  ;;  %v6129_v1 = vpack.c.bf16 %v2922_v17, %v2920_v60  ;;  %v3139_v56 = vld [vmem:[#allocation9 + $0x5] ss:$8 sm:$0x3] }
 0xb1c   : > { %6128 = vmatprep.subr.bf16.mxu0 %v6127_v61 }
 0xb1d   : > { %6130 = vmatpush1.bf16.msra.mxu0 %v6129_v1  ;;  %v2925_v34 = vld [vmem:[#allocation2 + $0x48] sm:$0xf]  ;;  %v2924_v37 = vld [vmem:[#allocation2 + $0x40] sm:$0xf] }
 0xb1e   : > { %5961 = vmatprep.subr.msk.mxu0 %vm8957_vm0, %v2925_v34 }
 0xb21   : > { %5962 = vmatpush1.msk.msra.mxu0 %vm8957_vm0, %v2924_v37  ;;  %v3148_v37 = vrot.slane %v3139_v56, %v7595_v62 }
 0xb22   : > { %5963 = vmatmul.mubr.msk.f32.vlgmr.msra.gmra.mrb[10].mxu0 %vm8956_vm12, %v5959_v50  ;;  %v2933_v52 = vpop.permute.xlu1 %2932  ;;  %v3144_v50 = vrot.slane %v3139_v56, %v7593_v18 }
 0xb23   : > { %3325 = vmatprep.mubr.f32.mxu0 %v9038_v57 }
 0xbf5   : > { %v3010_v44 = vpop.f32.mrb[10].mxu0 }
 0xbf6   : > { %v3011_v45 = vadd.f32 %v3010_v44, %v2933_v52  ;;  %v3012_v11 = vpop.f32.mrb[11].mxu0 }
 0xbf7   : > { %v3013_v55 = vadd.f32 %v3012_v11, %v2933_v52  ;;  %v3189_v52 = vld [vmem:[#allocation9 + $0x7] ss:$8 sm:$0x3] }
 0xbf8   : > { %v3015_v5 = vmax.f32 %v3011_v45, 0.0 }
 0xbf9   : > { %v3016_v24 = vmax.f32 %v3013_v55, 0.0 }
 0xbfa   : > { %v3129_v9 = vmul.f32 %v3122_v10, %v3015_v5  ;;  %3039 = vrot.lane.b32.xlu0 %v3015_v5, %s8946_s9 }
 0xbfb   : > { %v3130_v40 = vmul.f32 %v3126_v36, %v3016_v24  ;;  %3041 = vrot.lane.b32.xlu1 %v3016_v24, %s8946_s9  ;;  %v3194_v36 = vrot.slane %v3189_v52, %v7593_v18 }
 0xbfc   : > { %3131 = vst [vmem:[#allocation2 + $0x20] sm:$0xf] %v3129_v9  ;;  %v3167_v9 = vld [vmem:[#allocation9 + $0x6] ss:$8 sm:$0x3] }
 0xbfd   : > { %3132 = vst [vmem:[#allocation2 + $0x28] sm:$0xf] %v3130_v40 }
 0xbfe   : > { %3089 = vrot.lane.b32.xlu0 %v3015_v5, %s8950_s16 }
 0xbff   : > { %3091 = vrot.lane.b32.xlu1 %v3016_v24, %s8950_s16 }
 0xc02   : > { %3017 = vrot.lane.b32.xlu0 %v3015_v5, %s8944_s27 }
 0xc03   : > { %3019 = vrot.lane.b32.xlu1 %v3016_v24, %s8944_s27 }
 0xc06   : > { %3067 = vrot.lane.b32.xlu0 %v3015_v5, %s8948_s29 }
 0xc07   : > { %3069 = vrot.lane.b32.xlu1 %v3016_v24, %s8948_s29 }
 0xc0a   : > { %3133 = vrot.lane.b32.xlu0 %v3015_v5, %s6695_s28 }
 0xc0b   : > { %3135 = vrot.lane.b32.xlu1 %v3016_v24, %s6695_s28 }
 0xc0e   : > { %3183 = vrot.lane.b32.xlu0 %v3015_v5, %s6696_s23 }
 0xc0f   : > { %3185 = vrot.lane.b32.xlu1 %v3016_v24, %s6696_s23 }
 0xc12   : > { %3161 = vrot.lane.b32.xlu0 %v3015_v5, %s6697_s26 }
 0xc13   : > { %3163 = vrot.lane.b32.xlu1 %v3016_v24, %s6697_s26 }
 0xc16   : > { %3211 = vrot.lane.b32.xlu0 %v3015_v5, %s6698_s15  ;;  %v3198_v5 = vrot.slane %v3189_v52, %v7595_v62 }
 0xc17   : > { %3213 = vrot.lane.b32.xlu1 %v3016_v24, %s6698_s15 }
 0xc1a   : > { %3249 = vperm.xlu0 %6313, %v5965_v13  }
 0xc6c   : > { %v3040_v27 = vpop.permute.xlu0 %3039 }
 0xc6d   : > { %v3042_v15 = vpop.permute.xlu1 %3041 }
 0xc6e   : > { %v3043_v53 = vsel %vm2711_vm13, %v3040_v27, %v3042_v15  ;;  %v3044_v16 = vsel %vm2711_vm13, %v3042_v15, %v3040_v27  ;;  %v3172_v15 = vrot.slane %v3167_v9, %v7593_v18 }
 0xc6f   : > { %v3057_v25 = vmul.f32 %v3050_v33, %v3044_v16  ;;  %v3058_v42 = vmul.f32 %v3054_v54, %v3043_v53  ;;  %v3176_v53 = vrot.slane %v3167_v9, %v7595_v62 }
 0xc70   : > { %v3090_v8 = vpop.permute.xlu0 %3089 }
 0xc71   : > { %v3061_v35 = vrot.slane %v3057_v25, 4  ;;  %v3062_v21 = vrot.slane %v3058_v42, 4  ;;  %v3092_v3 = vpop.permute.xlu1 %3091  ;;  %v3217_v25 = vld [vmem:[#allocation9 + $0x10] ss:$8 sm:$0x3] }
 0xc72   : > { %v3093_v63 = vsel %vm2765_vm14, %v3090_v8, %v3092_v3  ;;  %v3094_v14 = vsel %vm2765_vm14, %v3092_v3, %v3090_v8 }
 0xc73   : > { %3065 = vst [vmem:[#allocation2] sm:$0xf0] %v3061_v35  ;;  %3066 = vst [vmem:[#allocation2 + $0x8] sm:$0xf0] %v3062_v21  ;;  %v3107_v7 = vmul.f32 %v3100_v47, %v3094_v14  ;;  %v3108_v49 = vmul.f32 %v3104_v19, %v3093_v63 }
 0xc74   : > { %v3018_v23 = vpop.permute.xlu0 %3017 }
 0xc75   : > { %v3111_v41 = vrot.slane %v3107_v7, 4  ;;  %v3112_v26 = vrot.slane %v3108_v49, 4  ;;  %v3020_v29 = vpop.permute.xlu1 %3019 }
 0xc76   : > { %v3021_v58 = vsel %vm2688_vm15, %v3018_v23, %v3020_v29  ;;  %v3022_v28 = vsel %vm2688_vm15, %v3020_v29, %v3018_v23  ;;  %v3226_v23 = vrot.slane %v3217_v25, %v7595_v62 }
 0xc77   : > { %3115 = vst [vmem:[#allocation2 + $0x10] sm:$0xf0] %v3111_v41  ;;  %3116 = vst [vmem:[#allocation2 + $0x18] sm:$0xf0] %v3112_v26  ;;  %v3035_v2 = vmul.f32 %v3028_v22, %v3022_v28  ;;  %v3036_v31 = vmul.f32 %v3032_v30, %v3021_v58  ;;  %v3222_v30 = vrot.slane %v3217_v25, %v7593_v18 }
 0xc78   : > { %v3068_v32 = vpop.permute.xlu0 %3067 }
 0xc79   : > { %3037 = vst [vmem:[#allocation2] sm:$0xf] %v3035_v2  ;;  %3038 = vst [vmem:[#allocation2 + $0x8] sm:$0xf] %v3036_v31  ;;  %v3070_v60 = vpop.permute.xlu1 %3069 }
 0xc7a   : > { %v3071_v17 = vsel %vm2741_vm2, %v3068_v32, %v3070_v60  ;;  %v3072_v61 = vsel %vm2741_vm2, %v3070_v60, %v3068_v32 }
 0xc7b   : > { %v3085_v1 = vmul.f32 %v3078_v46, %v3072_v61  ;;  %v3086_v34 = vmul.f32 %v3082_v6, %v3071_v17  ;;  %v5964_v17 = vld [vmem:[%s8880_s5 + $0x10] sm:$0xf] }
 0xc7c   : > { %v3134_v20 = vpop.permute.xlu0 %3133 }
 0xc7d   : > { %3087 = vst [vmem:[#allocation2 + $0x10] sm:$0xf] %v3085_v1  ;;  %3088 = vst [vmem:[#allocation2 + $0x18] sm:$0xf] %v3086_v34  ;;  %v3136_v44 = vpop.permute.xlu1 %3135 }
 0xc7e   : > { %v3137_v45 = vsel %vm2812_vm3, %v3134_v20, %v3136_v44  ;;  %v3138_v10 = vsel %vm2812_vm3, %v3136_v44, %v3134_v20  ;;  %v3434_v1 = vld [vmem:[#allocation9 + $0x4] ss:$8 sm:$0x3] }
 0xc7f   : > { %v3151_v11 = vmul.f32 %v3144_v50, %v3137_v45  ;;  %v3152_v55 = vmul.f32 %v3148_v37, %v3138_v10  ;;  %v3439_v20 = vrot.slane %v3434_v1, %v7593_v18  ;;  %v3443_v45 = vrot.slane %v3434_v1, %v7595_v62 }
 0xc80   : > { %v3184_v24 = vpop.permute.xlu0 %3183  ;;  %v3234_v16 = vld [vmem:[#allocation2 + $0x8] sm:$0xff]  ;;  %v3233_v19 = vld [vmem:[#allocation2] sm:$0xff] }
 0xc81   : > { %v3155_v40 = vrot.slane %v3151_v11, 4  ;;  %v3156_v13 = vrot.slane %v3152_v55, 4  ;;  %v3186_v43 = vpop.permute.xlu1 %3185 }
 0xc82   : > { %v3187_v33 = vsel %vm2866_vm1, %v3184_v24, %v3186_v43  ;;  %v3188_v54 = vsel %vm2866_vm1, %v3186_v43, %v3184_v24 }
 0xc83   : > { %3159 = vst [vmem:[#allocation2 + $0x20] sm:$0xf0] %v3155_v40  ;;  %3160 = vst [vmem:[#allocation2 + $0x28] sm:$0xf0] %v3156_v13  ;;  %v3201_v27 = vmul.f32 %v3194_v36, %v3187_v33  ;;  %v3202_v12 = vmul.f32 %v3198_v5, %v3188_v54 }
 0xc84   : > { %v3162_v42 = vpop.permute.xlu0 %3161  ;;  %v3236_v47 = vld [vmem:[#allocation2 + $0x18] sm:$0xff]  ;;  %v3235_v8 = vld [vmem:[#allocation2 + $0x10] sm:$0xff]  ;;  %v3412_v40 = vld [vmem:[#allocation9 + $0x3] ss:$8 sm:$0x3] }
 0xc85   : > { %v3205_v59 = vrot.slane %v3201_v27, 4  ;;  %v3206_v35 = vrot.slane %v3202_v12, 4  ;;  %v3164_v21 = vpop.permute.xlu1 %3163  ;;  %v6131_v3 = vpack.c.bf16 %v3236_v47, %v3234_v16  ;;  %v6133_v63 = vpack.c.bf16 %v3235_v8, %v3233_v19  ;;  %v3340_v16 = vld [vmem:[#allocation9] ss:$8 sm:$0x3] }
 0xc86   : > { %v3165_v14 = vsel %vm2842_vm4, %v3162_v42, %v3164_v21  ;;  %v3166_v7 = vsel %vm2842_vm4, %v3164_v21, %v3162_v42  ;;  %v3417_v12 = vrot.slane %v3412_v40, %v7593_v18  ;;  %v3345_v21 = vrot.slane %v3340_v16, %v7593_v18 }
 0xc87   : > { %3209 = vst [vmem:[#allocation2 + $0x30] sm:$0xf0] %v3205_v59  ;;  %3210 = vst [vmem:[#allocation2 + $0x38] sm:$0xf0] %v3206_v35  ;;  %v3179_v49 = vmul.f32 %v3172_v15, %v3165_v14  ;;  %v3180_v22 = vmul.f32 %v3176_v53, %v3166_v7  ;;  %6132 = vmatprep.subr.bf16.mxu0 %v6131_v3  ;;  %v3421_v15 = vrot.slane %v3412_v40, %v7595_v62 }
 0xc88   : > { %6134 = vmatpush1.bf16.msra.mxu0 %v6133_v63  ;;  %v3212_v38 = vpop.permute.xlu0 %3211  ;;  %v3349_v3 = vrot.slane %v3340_v16, %v7595_v62  ;;  %v3390_v14 = vld [vmem:[#allocation9 + $0x2] ss:$8 sm:$0x3] }
 0xc89   : > { %3181 = vst [vmem:[#allocation2 + $0x30] sm:$0xf] %v3179_v49  ;;  %3182 = vst [vmem:[#allocation2 + $0x38] sm:$0xf] %v3180_v22  ;;  %v3214_v41 = vpop.permute.xlu1 %3213 }
 0xc8a   : > { %v3215_v26 = vsel %vm2896_vm6, %v3212_v38, %v3214_v41  ;;  %v3216_v29 = vsel %vm2896_vm6, %v3214_v41, %v3212_v38  ;;  %v3238_v2 = vld [vmem:[#allocation2 + $0x28] sm:$0xff]  ;;  %v3237_v46 = vld [vmem:[#allocation2 + $0x20] sm:$0xff] }
 0xc8b   : > { %v3229_v58 = vmul.f32 %v3222_v30, %v3215_v26  ;;  %v3230_v28 = vmul.f32 %v3226_v23, %v3216_v29  ;;  %v3395_v26 = vrot.slane %v3390_v14, %v7593_v18  ;;  %v3399_v29 = vrot.slane %v3390_v14, %v7595_v62 }
 0xc8d   : > { %3231 = vst [vmem:[#allocation2 + $0x40] sm:$0xf] %v3229_v58  ;;  %3232 = vst [vmem:[#allocation2 + $0x48] sm:$0xf] %v3230_v28 }
 0xc8e   : > { %v3456_v28 = vld [vmem:[#allocation9 + $0x5] ss:$8 sm:$0x3] }
 0xc90   : > { %v3240_v31 = vld [vmem:[#allocation2 + $0x38] sm:$0xff]  ;;  %v3239_v6 = vld [vmem:[#allocation2 + $0x30] sm:$0xff] }
 0xc91   : > { %v6135_v32 = vpack.c.bf16 %v3240_v31, %v3238_v2  ;;  %v6137_v56 = vpack.c.bf16 %v3239_v6, %v3237_v46 }
 0xc93   : > { %6136 = vmatprep.subr.bf16.mxu0 %v6135_v32 }
 0xc94   : > { %6138 = vmatpush1.bf16.msra.mxu0 %v6137_v56  ;;  %v3242_v60 = vld [vmem:[#allocation2 + $0x48] sm:$0xf]  ;;  %v3241_v61 = vld [vmem:[#allocation2 + $0x40] sm:$0xf]  ;;  %v3461_v56 = vrot.slane %v3456_v28, %v7593_v18 }
 0xc95   : > { %5966 = vmatprep.subr.msk.mxu0 %vm8957_vm0, %v3242_v60  ;;  %v3465_v60 = vrot.slane %v3456_v28, %v7595_v62 }
 0xc98   : > { %5967 = vmatpush1.msk.msra.mxu0 %vm8957_vm0, %v3241_v61  ;;  %v3506_v61 = vld [vmem:[#allocation9 + $0x7] ss:$8 sm:$0x3] }
 0xc99   : > { %5968 = vmatmul.mubr.msk.f32.vlgmr.msra.gmra.mrb[12].mxu0 %vm8956_vm12, %v5964_v17  ;;  %v3250_v34 = vpop.permute.xlu0 %3249 }
 0xc9a   : > { %3642 = vmatprep.mubr.f32.mxu0 %v9038_v57 }
 0xd6c   : > { %v3327_v50 = vpop.f32.mrb[12].mxu0 }
 0xd6d   : > { %v3328_v37 = vadd.f32 %v3327_v50, %v3250_v34  ;;  %v3329_v52 = vpop.f32.mrb[13].mxu0 }
 0xd6e   : > { %v3330_v44 = vadd.f32 %v3329_v52, %v3250_v34  ;;  %v3511_v52 = vrot.slane %v3506_v61, %v7593_v18 }
 0xd6f   : > { %v8073_v10 = vadd.f32 %v3328_v37, %v7890_v39  ;;  %v5970_v39 = vld [vmem:[%s8881_s6 + $0x14] sm:$0xf] }
 0xd70   : > { %v8076_v11 = vadd.f32 %v3330_v44, %v7892_v51  ;;  %v3362_v51 = vld [vmem:[#allocation9 + $0x1] ss:$8 sm:$0x3]  ;;  %v3515_v44 = vrot.slane %v3506_v61, %v7595_v62 }
 0xd71   : > { %v3446_v55 = vmul.f32 %v3439_v20, %v8073_v10  ;;  %3356 = vrot.lane.b32.xlu1 %v8073_v10, %s8946_s9  ;;  %v3367_v5 = vrot.slane %v3362_v51, %v7593_v18  ;;  %v3371_v24 = vrot.slane %v3362_v51, %v7595_v62 }
 0xd72   : > { %v3447_v36 = vmul.f32 %v3443_v45, %v8076_v11  ;;  %3358 = vrot.lane.b32.xlu0 %v8076_v11, %s8946_s9 }
 0xd73   : > { %3448 = vst [vmem:[#allocation2 + $0x20] sm:$0xf] %v3446_v55  ;;  %v3484_v55 = vld [vmem:[#allocation9 + $0x6] ss:$8 sm:$0x3] }
 0xd74   : > { %3449 = vst [vmem:[#allocation2 + $0x28] sm:$0xf] %v3447_v36 }
 0xd75   : > { %3406 = vrot.lane.b32.xlu1 %v8073_v10, %s8950_s16 }
 0xd76   : > { %3408 = vrot.lane.b32.xlu0 %v8076_v11, %s8950_s16 }
 0xd79   : > { %3334 = vrot.lane.b32.xlu1 %v8073_v10, %s8944_s27 }
 0xd7a   : > { %3336 = vrot.lane.b32.xlu0 %v8076_v11, %s8944_s27 }
 0xd7d   : > { %3384 = vrot.lane.b32.xlu1 %v8073_v10, %s8948_s29 }
 0xd7e   : > { %3386 = vrot.lane.b32.xlu0 %v8076_v11, %s8948_s29 }
 0xd81   : > { %3450 = vrot.lane.b32.xlu1 %v8073_v10, %s6695_s28 }
 0xd82   : > { %3452 = vrot.lane.b32.xlu0 %v8076_v11, %s6695_s28 }
 0xd85   : > { %3500 = vrot.lane.b32.xlu1 %v8073_v10, %s6696_s23 }
 0xd86   : > { %3502 = vrot.lane.b32.xlu0 %v8076_v11, %s6696_s23 }
 0xd89   : > { %3478 = vrot.lane.b32.xlu1 %v8073_v10, %s6697_s26 }
 0xd8a   : > { %3480 = vrot.lane.b32.xlu0 %v8076_v11, %s6697_s26 }
 0xd8d   : > { %3528 = vrot.lane.b32.xlu1 %v8073_v10, %s6698_s15 }
 0xd8e   : > { %3530 = vrot.lane.b32.xlu0 %v8076_v11, %s6698_s15 }
 0xd91   : > { %3566 = vperm.xlu1 %6314, %v5970_v39  }
 0xde3   : > { %v3357_v9 = vpop.permute.xlu1 %3356 }
 0xde4   : > { %v3359_v13 = vpop.permute.xlu0 %3358 }
 0xde5   : > { %v3360_v43 = vsel %vm2711_vm13, %v3357_v9, %v3359_v13  ;;  %v3361_v33 = vsel %vm2711_vm13, %v3359_v13, %v3357_v9  ;;  %v3489_v13 = vrot.slane %v3484_v55, %v7593_v18 }
 0xde6   : > { %v3374_v54 = vmul.f32 %v3367_v5, %v3361_v33  ;;  %v3375_v27 = vmul.f32 %v3371_v24, %v3360_v43  ;;  %v3493_v43 = vrot.slane %v3484_v55, %v7595_v62 }
 0xde7   : > { %v3407_v53 = vpop.permute.xlu1 %3406 }
 0xde8   : > { %v3378_v25 = vrot.slane %v3374_v54, 4  ;;  %v3379_v42 = vrot.slane %v3375_v27, 4  ;;  %v3409_v47 = vpop.permute.xlu0 %3408  ;;  %v3534_v54 = vld [vmem:[#allocation9 + $0x10] ss:$8 sm:$0x3] }
 0xde9   : > { %v3410_v19 = vsel %vm2765_vm14, %v3407_v53, %v3409_v47  ;;  %v3411_v8 = vsel %vm2765_vm14, %v3409_v47, %v3407_v53 }
 0xdea   : > { %3382 = vst [vmem:[#allocation2] sm:$0xf0] %v3378_v25  ;;  %3383 = vst [vmem:[#allocation2 + $0x8] sm:$0xf0] %v3379_v42  ;;  %v3424_v59 = vmul.f32 %v3417_v12, %v3411_v8  ;;  %v3425_v35 = vmul.f32 %v3421_v15, %v3410_v19 }
 0xdeb   : > { %v3335_v63 = vpop.permute.xlu1 %3334 }
 0xdec   : > { %v3428_v7 = vrot.slane %v3424_v59, 4  ;;  %v3429_v49 = vrot.slane %v3425_v35, 4  ;;  %v3337_v22 = vpop.permute.xlu0 %3336 }
 0xded   : > { %v3338_v30 = vsel %vm2688_vm15, %v3335_v63, %v3337_v22  ;;  %v3339_v23 = vsel %vm2688_vm15, %v3337_v22, %v3335_v63  ;;  %v3543_v63 = vrot.slane %v3534_v54, %v7595_v62 }
 0xdee   : > { %3432 = vst [vmem:[#allocation2 + $0x10] sm:$0xf0] %v3428_v7  ;;  %3433 = vst [vmem:[#allocation2 + $0x18] sm:$0xf0] %v3429_v49  ;;  %v3352_v38 = vmul.f32 %v3345_v21, %v3339_v23  ;;  %v3353_v41 = vmul.f32 %v3349_v3, %v3338_v30  ;;  %v3539_v3 = vrot.slane %v3534_v54, %v7593_v18 }
 0xdef   : > { %v3385_v58 = vpop.permute.xlu1 %3384 }
 0xdf0   : > { %3354 = vst [vmem:[#allocation2] sm:$0xf] %v3352_v38  ;;  %3355 = vst [vmem:[#allocation2 + $0x8] sm:$0xf] %v3353_v41  ;;  %v3387_v2 = vpop.permute.xlu0 %3386 }
 0xdf1   : > { %v3388_v31 = vsel %vm2741_vm2, %v3385_v58, %v3387_v2  ;;  %v3389_v46 = vsel %vm2741_vm2, %v3387_v2, %v3385_v58 }
 0xdf2   : > { %v3402_v6 = vmul.f32 %v3395_v26, %v3389_v46  ;;  %v3403_v32 = vmul.f32 %v3399_v29, %v3388_v31  ;;  %v5969_v31 = vld [vmem:[%s8880_s5 + $0x14] sm:$0xf] }
 0xdf3   : > { %v3451_v17 = vpop.permute.xlu1 %3450 }
 0xdf4   : > { %3404 = vst [vmem:[#allocation2 + $0x10] sm:$0xf] %v3402_v6  ;;  %3405 = vst [vmem:[#allocation2 + $0x18] sm:$0xf] %v3403_v32  ;;  %v3453_v1 = vpop.permute.xlu0 %3452 }
 0xdf5   : > { %v3454_v34 = vsel %vm2812_vm3, %v3451_v17, %v3453_v1  ;;  %v3455_v50 = vsel %vm2812_vm3, %v3453_v1, %v3451_v17  ;;  %v3751_v6 = vld [vmem:[#allocation9 + $0x4] ss:$8 sm:$0x3] }
 0xdf6   : > { %v3468_v37 = vmul.f32 %v3461_v56, %v3454_v34  ;;  %v3469_v20 = vmul.f32 %v3465_v60, %v3455_v50  ;;  %v3756_v17 = vrot.slane %v3751_v6, %v7593_v18  ;;  %v3760_v34 = vrot.slane %v3751_v6, %v7595_v62 }
 0xdf7   : > { %v3501_v45 = vpop.permute.xlu1 %3500  ;;  %v3551_v33 = vld [vmem:[#allocation2 + $0x8] sm:$0xff]  ;;  %v3550_v15 = vld [vmem:[#allocation2] sm:$0xff] }
 0xdf8   : > { %v3472_v36 = vrot.slane %v3468_v37, 4  ;;  %v3473_v39 = vrot.slane %v3469_v20, 4  ;;  %v3503_v51 = vpop.permute.xlu0 %3502 }
 0xdf9   : > { %v3504_v5 = vsel %vm2866_vm1, %v3501_v45, %v3503_v51  ;;  %v3505_v24 = vsel %vm2866_vm1, %v3503_v51, %v3501_v45  ;;  %v3679_v45 = vld [vmem:[#allocation9 + $0x1] ss:$8 sm:$0x3]  ;;  %v3729_v51 = vld [vmem:[#allocation9 + $0x3] ss:$8 sm:$0x3] }
 0xdfa   : > { %3476 = vst [vmem:[#allocation2 + $0x20] sm:$0xf0] %v3472_v36  ;;  %3477 = vst [vmem:[#allocation2 + $0x28] sm:$0xf0] %v3473_v39  ;;  %v3518_v9 = vmul.f32 %v3511_v52, %v3504_v5  ;;  %v3519_v40 = vmul.f32 %v3515_v44, %v3505_v24  ;;  %v5975_v44 = vld [vmem:[%s8881_s6 + $0x18] sm:$0xf]  ;;  %v3684_v55 = vrot.slane %v3679_v45, %v7593_v18 }
 0xdfb   : > { %v3479_v27 = vpop.permute.xlu1 %3478  ;;  %v3553_v12 = vld [vmem:[#allocation2 + $0x18] sm:$0xff]  ;;  %v3552_v53 = vld [vmem:[#allocation2 + $0x10] sm:$0xff]  ;;  %v3688_v36 = vrot.slane %v3679_v45, %v7595_v62 }
 0xdfc   : > { %v3522_v16 = vrot.slane %v3518_v9, 4  ;;  %v3523_v25 = vrot.slane %v3519_v40, 4  ;;  %v3481_v42 = vpop.permute.xlu0 %3480  ;;  %v6139_v47 = vpack.c.bf16 %v3553_v12, %v3551_v33  ;;  %v6141_v19 = vpack.c.bf16 %v3552_v53, %v3550_v15 }
 0xdfd   : > { %v3482_v8 = vsel %vm2842_vm4, %v3479_v27, %v3481_v42  ;;  %v3483_v59 = vsel %vm2842_vm4, %v3481_v42, %v3479_v27  ;;  %v3738_v33 = vrot.slane %v3729_v51, %v7595_v62  ;;  %v3657_v27 = vld [vmem:[#allocation9] ss:$8 sm:$0x3] }
 0xdfe   : > { %3526 = vst [vmem:[#allocation2 + $0x30] sm:$0xf0] %v3522_v16  ;;  %3527 = vst [vmem:[#allocation2 + $0x38] sm:$0xf0] %v3523_v25  ;;  %v3496_v35 = vmul.f32 %v3489_v13, %v3482_v8  ;;  %v3497_v21 = vmul.f32 %v3493_v43, %v3483_v59  ;;  %6140 = vmatprep.subr.bf16.mxu0 %v6139_v47  ;;  %v3734_v43 = vrot.slane %v3729_v51, %v7593_v18 }
 0xdff   : > { %6142 = vmatpush1.bf16.msra.mxu0 %v6141_v19  ;;  %v3529_v14 = vpop.permute.xlu1 %3528  ;;  %v3662_v19 = vrot.slane %v3657_v27, %v7593_v18  ;;  %v3666_v8 = vrot.slane %v3657_v27, %v7595_v62 }
 0xe00   : > { %3498 = vst [vmem:[#allocation2 + $0x30] sm:$0xf] %v3496_v35  ;;  %3499 = vst [vmem:[#allocation2 + $0x38] sm:$0xf] %v3497_v21  ;;  %v3531_v7 = vpop.permute.xlu0 %3530 }
 0xe01   : > { %v3532_v49 = vsel %vm2896_vm6, %v3529_v14, %v3531_v7  ;;  %v3533_v22 = vsel %vm2896_vm6, %v3531_v7, %v3529_v14  ;;  %v3555_v38 = vld [vmem:[#allocation2 + $0x28] sm:$0xff]  ;;  %v3554_v26 = vld [vmem:[#allocation2 + $0x20] sm:$0xff] }
 0xe02   : > { %v3546_v30 = vmul.f32 %v3539_v3, %v3532_v49  ;;  %v3547_v23 = vmul.f32 %v3543_v63, %v3533_v22  ;;  %v3707_v35 = vld [vmem:[#allocation9 + $0x2] ss:$8 sm:$0x3] }
 0xe04   : > { %3548 = vst [vmem:[#allocation2 + $0x40] sm:$0xf] %v3546_v30  ;;  %3549 = vst [vmem:[#allocation2 + $0x48] sm:$0xf] %v3547_v23  ;;  %v3712_v30 = vrot.slane %v3707_v35, %v7593_v18  ;;  %v3716_v23 = vrot.slane %v3707_v35, %v7595_v62 }
 0xe07   : > { %v3557_v41 = vld [vmem:[#allocation2 + $0x38] sm:$0xff]  ;;  %v3556_v29 = vld [vmem:[#allocation2 + $0x30] sm:$0xff] }
 0xe08   : > { %v6143_v58 = vpack.c.bf16 %v3557_v41, %v3555_v38  ;;  %v6145_v28 = vpack.c.bf16 %v3556_v29, %v3554_v26  ;;  %v3773_v41 = vld [vmem:[#allocation9 + $0x5] ss:$8 sm:$0x3] }
 0xe0a   : > { %6144 = vmatprep.subr.bf16.mxu0 %v6143_v58 }
 0xe0b   : > { %6146 = vmatpush1.bf16.msra.mxu0 %v6145_v28  ;;  %v3559_v2 = vld [vmem:[#allocation2 + $0x48] sm:$0xf]  ;;  %v3558_v46 = vld [vmem:[#allocation2 + $0x40] sm:$0xf] }
 0xe0c   : > { %5971 = vmatprep.subr.msk.mxu0 %vm8957_vm0, %v3559_v2 }
 0xe0f   : > { %5972 = vmatpush1.msk.msra.mxu0 %vm8957_vm0, %v3558_v46  ;;  %v3782_v46 = vrot.slane %v3773_v41, %v7595_v62 }
 0xe10   : > { %5973 = vmatmul.mubr.msk.f32.vlgmr.msra.gmra.mrb[14].mxu0 %vm8956_vm12, %v5969_v31  ;;  %v3567_v32 = vpop.permute.xlu1 %3566  ;;  %v3778_v31 = vrot.slane %v3773_v41, %v7593_v18 }
 0xee3   : > { %v3644_v56 = vpop.f32.mrb[14].mxu0 }
 0xee4   : > { %v3645_v60 = vadd.f32 %v3644_v56, %v3567_v32  ;;  %v3646_v61 = vpop.f32.mrb[15].mxu0 }
 0xee5   : > { %v3647_v1 = vadd.f32 %v3646_v61, %v3567_v32  ;;  %v3823_v32 = vld [vmem:[#allocation9 + $0x7] ss:$8 sm:$0x3] }
 0xee6   : > { %v3649_v50 = vmax.f32 %v3645_v60, 0.0 }
 0xee7   : > { %v3650_v37 = vmax.f32 %v3647_v1, 0.0 }
 0xee8   : > { %v3763_v20 = vmul.f32 %v3756_v17, %v3649_v50  ;;  %3673 = vrot.lane.b32.xlu0 %v3649_v50, %s8946_s9 }
 0xee9   : > { %v3764_v52 = vmul.f32 %v3760_v34, %v3650_v37  ;;  %3675 = vrot.lane.b32.xlu1 %v3650_v37, %s8946_s9  ;;  %v3828_v34 = vrot.slane %v3823_v32, %v7593_v18  ;;  %s6699_s9 = smov 95  }
 0xeea   : > { %3765 = vst [vmem:[#allocation2 + $0x20] sm:$0xf] %v3763_v20  ;;  %v3801_v20 = vld [vmem:[#allocation9 + $0x6] ss:$8 sm:$0x3] }
 0xeeb   : > { %3766 = vst [vmem:[#allocation2 + $0x28] sm:$0xf] %v3764_v52 }
 0xeec   : > { %3723 = vrot.lane.b32.xlu0 %v3649_v50, %s8950_s16 }
 0xeed   : > { %3725 = vrot.lane.b32.xlu1 %v3650_v37, %s8950_s16  ;;  %s6700_s16 = smov 97  }
 0xef0   : > { %3651 = vrot.lane.b32.xlu0 %v3649_v50, %s8944_s27 }
 0xef1   : > { %3653 = vrot.lane.b32.xlu1 %v3650_v37, %s8944_s27  ;;  %s6701_s27 = smov 99  }
 0xef4   : > { %3701 = vrot.lane.b32.xlu0 %v3649_v50, %s8948_s29 }
 0xef5   : > { %3703 = vrot.lane.b32.xlu1 %v3650_v37, %s8948_s29  ;;  %s9040_s29 = smov 112  }
 0xef8   : > { %3767 = vrot.lane.b32.xlu0 %v3649_v50, %s6695_s28 }
 0xef9   : > { %3769 = vrot.lane.b32.xlu1 %v3650_v37, %s6695_s28 }
 0xefc   : > { %3817 = vrot.lane.b32.xlu0 %v3649_v50, %s6696_s23 }
 0xefd   : > { %3819 = vrot.lane.b32.xlu1 %v3650_v37, %s6696_s23 }
 0xf00   : > { %3795 = vrot.lane.b32.xlu0 %v3649_v50, %s6697_s26 }
 0xf01   : > { %3797 = vrot.lane.b32.xlu1 %v3650_v37, %s6697_s26 }
 0xf04   : > { %3845 = vrot.lane.b32.xlu0 %v3649_v50, %s6698_s15  ;;  %v3832_v50 = vrot.slane %v3823_v32, %v7595_v62 }
 0xf05   : > { %3847 = vrot.lane.b32.xlu1 %v3650_v37, %s6698_s15 }
 0xf08   : > { %3883 = vperm.xlu0 %6313, %v5975_v44  }
 0xf5a   : > { %v3674_v39 = vpop.permute.xlu0 %3673 }
 0xf5b   : > { %v3676_v5 = vpop.permute.xlu1 %3675 }
 0xf5c   : > { %v3677_v24 = vsel %vm2711_vm13, %v3674_v39, %v3676_v5  ;;  %v3678_v9 = vsel %vm2711_vm13, %v3676_v5, %v3674_v39  ;;  %v3806_v5 = vrot.slane %v3801_v20, %v7593_v18 }
 0xf5d   : > { %v3691_v40 = vmul.f32 %v3684_v55, %v3678_v9  ;;  %v3692_v13 = vmul.f32 %v3688_v36, %v3677_v24  ;;  %v3810_v24 = vrot.slane %v3801_v20, %v7595_v62 }
 0xf5e   : > { %v3724_v54 = vpop.permute.xlu0 %3723 }
 0xf5f   : > { %v3695_v12 = vrot.slane %v3691_v40, 4  ;;  %v3696_v15 = vrot.slane %v3692_v13, 4  ;;  %v3726_v53 = vpop.permute.xlu1 %3725  ;;  %v3851_v40 = vld [vmem:[#allocation9 + $0x10] ss:$8 sm:$0x3] }
 0xf60   : > { %v3727_v16 = vsel %vm2765_vm14, %v3724_v54, %v3726_v53  ;;  %v3728_v25 = vsel %vm2765_vm14, %v3726_v53, %v3724_v54 }
 0xf61   : > { %3699 = vst [vmem:[#allocation2] sm:$0xf0] %v3695_v12  ;;  %3700 = vst [vmem:[#allocation2 + $0x8] sm:$0xf0] %v3696_v15  ;;  %v3741_v42 = vmul.f32 %v3734_v43, %v3728_v25  ;;  %v3742_v47 = vmul.f32 %v3738_v33, %v3727_v16 }
 0xf62   : > { %v3652_v59 = vpop.permute.xlu0 %3651 }
 0xf63   : > { %v3745_v21 = vrot.slane %v3741_v42, 4  ;;  %v3746_v3 = vrot.slane %v3742_v47, 4  ;;  %v3654_v63 = vpop.permute.xlu1 %3653 }
 0xf64   : > { %v3655_v14 = vsel %vm2688_vm15, %v3652_v59, %v3654_v63  ;;  %v3656_v7 = vsel %vm2688_vm15, %v3654_v63, %v3652_v59  ;;  %v3860_v59 = vrot.slane %v3851_v40, %v7595_v62 }
 0xf65   : > { %3749 = vst [vmem:[#allocation2 + $0x10] sm:$0xf0] %v3745_v21  ;;  %3750 = vst [vmem:[#allocation2 + $0x18] sm:$0xf0] %v3746_v3  ;;  %v3669_v49 = vmul.f32 %v3662_v19, %v3656_v7  ;;  %v3670_v22 = vmul.f32 %v3666_v8, %v3655_v14  ;;  %v3856_v8 = vrot.slane %v3851_v40, %v7593_v18 }
 0xf66   : > { %v3702_v38 = vpop.permute.xlu0 %3701 }
 0xf67   : > { %3671 = vst [vmem:[#allocation2] sm:$0xf] %v3669_v49  ;;  %3672 = vst [vmem:[#allocation2 + $0x8] sm:$0xf] %v3670_v22  ;;  %v3704_v26 = vpop.permute.xlu1 %3703 }
 0xf68   : > { %v3705_v29 = vsel %vm2741_vm2, %v3702_v38, %v3704_v26  ;;  %v3706_v58 = vsel %vm2741_vm2, %v3704_v26, %v3702_v38 }
 0xf69   : > { %v3719_v28 = vmul.f32 %v3712_v30, %v3706_v58  ;;  %v3720_v2 = vmul.f32 %v3716_v23, %v3705_v29  ;;  %v5974_v29 = vld [vmem:[%s8880_s5 + $0x18] sm:$0xf] }
 0xf6a   : > { %v3768_v6 = vpop.permute.xlu0 %3767 }
 0xf6b   : > { %3721 = vst [vmem:[#allocation2 + $0x10] sm:$0xf] %v3719_v28  ;;  %3722 = vst [vmem:[#allocation2 + $0x18] sm:$0xf] %v3720_v2  ;;  %v3770_v56 = vpop.permute.xlu1 %3769  ;;  %v3968_v28 = vld [vmem:[%s8889_s14] sm:$0x3] }
 0xf6c   : > { %v3771_v60 = vsel %vm2812_vm3, %v3768_v6, %v3770_v56  ;;  %v3772_v17 = vsel %vm2812_vm3, %v3770_v56, %v3768_v6  ;;  %v3973_v32 = vrot.slane %v3968_v28, %v7593_v18 }
 0xf6d   : > { %v3785_v61 = vmul.f32 %v3778_v31, %v3771_v60  ;;  %v3786_v1 = vmul.f32 %v3782_v46, %v3772_v17  ;;  %v5992_v46 = vld [vmem:[%s8888_s13 + $0x16] ss:$8 sm:$0x3]  ;;  %v3977_v17 = vrot.slane %v3968_v28, %v7595_v62 }
 0xf6e   : > { %v3818_v37 = vpop.permute.xlu0 %3817  ;;  %v3868_v9 = vld [vmem:[#allocation2 + $0x8] sm:$0xff]  ;;  %v3867_v33 = vld [vmem:[#allocation2] sm:$0xff] }
 0xf6f   : > { %v3789_v52 = vrot.slane %v3785_v61, 4  ;;  %v3790_v44 = vrot.slane %v3786_v1, 4  ;;  %v3820_v45 = vpop.permute.xlu1 %3819  ;;  %v4357_v1 = vrot.slane %v5992_v46, %v7593_v18 }
 0xf70   : > { %v3821_v55 = vsel %vm2866_vm1, %v3818_v37, %v3820_v45  ;;  %v3822_v36 = vsel %vm2866_vm1, %v3820_v45, %v3818_v37 }
 0xf71   : > { %3793 = vst [vmem:[#allocation2 + $0x20] sm:$0xf0] %v3789_v52  ;;  %3794 = vst [vmem:[#allocation2 + $0x28] sm:$0xf0] %v3790_v44  ;;  %v3835_v39 = vmul.f32 %v3828_v34, %v3821_v55  ;;  %v3836_v51 = vmul.f32 %v3832_v50, %v3822_v36  ;;  %v4361_v50 = vrot.slane %v5992_v46, %v7595_v62 }
 0xf72   : > { %v3796_v13 = vpop.permute.xlu0 %3795  ;;  %v3870_v43 = vld [vmem:[#allocation2 + $0x18] sm:$0xff]  ;;  %v3869_v54 = vld [vmem:[#allocation2 + $0x10] sm:$0xff]  ;;  %v5981_v36 = vld [vmem:[%s8888_s13 + $0x3] ss:$8 sm:$0x3] }
 0xf73   : > { %v3839_v27 = vrot.slane %v3835_v39, 4  ;;  %v3840_v12 = vrot.slane %v3836_v51, 4  ;;  %v3798_v15 = vpop.permute.xlu1 %3797  ;;  %v6147_v53 = vpack.c.bf16 %v3870_v43, %v3868_v9  ;;  %v6149_v16 = vpack.c.bf16 %v3869_v54, %v3867_v33  ;;  %v3988_v33 = vld [vmem:[%s8888_s13] ss:$8 sm:$0x3] }
 0xf74   : > { %v3799_v25 = vsel %vm2842_vm4, %v3796_v13, %v3798_v15  ;;  %v3800_v42 = vsel %vm2842_vm4, %v3798_v15, %v3796_v13  ;;  %v4070_v40 = vrot.slane %v5981_v36, %v7593_v18  ;;  %v4074_v13 = vrot.slane %v5981_v36, %v7595_v62  ;;  %v5985_v46 = vld [vmem:[%s8888_s13 + $0x7] ss:$8 sm:$0x3] }
 0xf75   : > { %3843 = vst [vmem:[#allocation2 + $0x30] sm:$0xf0] %v3839_v27  ;;  %3844 = vst [vmem:[#allocation2 + $0x38] sm:$0xf0] %v3840_v12  ;;  %v3813_v47 = vmul.f32 %v3806_v5, %v3799_v25  ;;  %v3814_v19 = vmul.f32 %v3810_v24, %v3800_v42  ;;  %6148 = vmatprep.subr.bf16.mxu1 %v6147_v53  ;;  %v3993_v42 = vrot.slane %v3988_v33, %v7593_v18 }
 0xf76   : > { %6150 = vmatpush1.bf16.msra.mxu1 %v6149_v16  ;;  %v3846_v35 = vpop.permute.xlu0 %3845 }
 0xf77   : > { %3815 = vst [vmem:[#allocation2 + $0x30] sm:$0xf] %v3813_v47  ;;  %3816 = vst [vmem:[#allocation2 + $0x38] sm:$0xf] %v3814_v19  ;;  %v3848_v21 = vpop.permute.xlu1 %3847  ;;  %v3997_v47 = vrot.slane %v3988_v33, %v7595_v62 }
 0xf78   : > { %v3849_v3 = vsel %vm2896_vm6, %v3846_v35, %v3848_v21  ;;  %v3850_v63 = vsel %vm2896_vm6, %v3848_v21, %v3846_v35  ;;  %v3872_v49 = vld [vmem:[#allocation2 + $0x28] sm:$0xff]  ;;  %v3871_v30 = vld [vmem:[#allocation2 + $0x20] sm:$0xff] }
 0xf79   : > { %v3863_v14 = vmul.f32 %v3856_v8, %v3849_v3  ;;  %v3864_v7 = vmul.f32 %v3860_v59, %v3850_v63  ;;  %v5980_v8 = vld [vmem:[%s8888_s13 + $0x2] ss:$8 sm:$0x3] }
 0xf7b   : > { %3865 = vst [vmem:[#allocation2 + $0x40] sm:$0xf] %v3863_v14  ;;  %3866 = vst [vmem:[#allocation2 + $0x48] sm:$0xf] %v3864_v7 }
 0xf7e   : > { %v3874_v22 = vld [vmem:[#allocation2 + $0x38] sm:$0xff]  ;;  %v3873_v23 = vld [vmem:[#allocation2 + $0x30] sm:$0xff] }
 0xf7f   : > { %v6151_v38 = vpack.c.bf16 %v3874_v22, %v3872_v49  ;;  %v6153_v41 = vpack.c.bf16 %v3873_v23, %v3871_v30  ;;  %v4046_v49 = vrot.slane %v5980_v8, %v7593_v18  ;;  %v4050_v22 = vrot.slane %v5980_v8, %v7595_v62  ;;  %v5983_v23 = vld [vmem:[%s8888_s13 + $0x5] ss:$8 sm:$0x3] }
 0xf80   : > { %v4123_v28 = vrot.slane %v5983_v23, %v7593_v18 }
 0xf81   : > { %6152 = vmatprep.subr.bf16.mxu1 %v6151_v38 }
 0xf82   : > { %6154 = vmatpush1.bf16.msra.mxu1 %v6153_v41  ;;  %v3876_v26 = vld [vmem:[#allocation2 + $0x48] sm:$0xf]  ;;  %v3875_v58 = vld [vmem:[#allocation2 + $0x40] sm:$0xf] }
 0xf83   : > { %5976 = vmatprep.subr.msk.mxu1 %vm8957_vm0, %v3876_v26 }
 0xf86   : > { %5977 = vmatpush1.msk.msra.mxu1 %vm8957_vm0, %v3875_v58  ;;  %vm4061_vm0 = vcmp.lt.s32.totalorder %v7642_v4, 97 }
 0xf87   : > { %5978 = vmatmul.mubr.msk.f32.vlgmr.msra.gmra.mrb[66].mxu1 %vm8956_vm12, %v5974_v29  ;;  %v3884_v2 = vpop.permute.xlu0 %3883  ;;  %vm4008_vm12 = vcmp.lt.s32.totalorder %v7642_v4, 95 }
 0xf88   : > { %5359 = vmatprep.mubr.f32.mxu1 %v9038_v57 }
0x105a   : > { %v3961_v31 = vpop.f32.mrb[66].mxu1 }
0x105b   : > { %v3962_v6 = vadd.f32 %v3961_v31, %v3884_v2  ;;  %v3963_v56 = vpop.f32.mrb[67].mxu1 }
0x105c   : > { %v3964_v60 = vadd.f32 %v3963_v56, %v3884_v2  ;;  %v4127_v2 = vrot.slane %v5983_v23, %v7595_v62  ;;  %v5989_v23 = vld [vmem:[%s8888_s13 + $0x13] ss:$8 sm:$0x3] }
0x105d   : > { %v3966_v61 = vadd.f32 %v3962_v6, %v8073_v10  ;;  %v5979_v10 = vld [vmem:[%s8888_s13 + $0x1] ss:$8 sm:$0x3] }
0x105e   : > { %v3967_v34 = vadd.f32 %v3964_v60, %v8076_v11  ;;  %v4017_v11 = vrot.slane %v5979_v10, %v7593_v18  ;;  %v4021_v45 = vrot.slane %v5979_v10, %v7595_v62 }
0x105f   : > { %v8257_v37 = vmul.f32 %v3973_v32, %v3966_v61  ;;  %v4176_v61 = vrot.slane %v5985_v46, %v7593_v18 }
0x1060   : > { %v8259_v20 = vmul.f32 %v3977_v17, %v3967_v34 }
0x1061   : > { %4004 = vrot.lane.b32.xlu1 %v8257_v37, %s6699_s9  ;;  %v4364_v52 = vmul.f32 %v4357_v1, %v8257_v37  ;;  %v4180_v1 = vrot.slane %v5985_v46, %v7595_v62  ;;  %v5986_v46 = vld [vmem:[%s8888_s13 + $0x10] ss:$8 sm:$0x3] }
0x1062   : > { %4006 = vrot.lane.b32.xlu0 %v8259_v20, %s6699_s9  ;;  %v4365_v44 = vmul.f32 %v4361_v50, %v8259_v20  ;;  %s6705_s9 = smov 3   ;;  %v5982_v50 = vld [vmem:[%s8888_s13 + $0x4] ss:$8 sm:$0x3] }
0x1063   : > { %4366 = vst [vmem:[#allocation3 + $0x70] sm:$0xf] %v4364_v52 }
0x1064   : > { %4367 = vst [vmem:[#allocation3 + $0x78] sm:$0xf] %v4365_v44 }
0x1065   : > { %4057 = vrot.lane.b32.xlu1 %v8257_v37, %s6700_s16 }
0x1066   : > { %4059 = vrot.lane.b32.xlu0 %v8259_v20, %s6700_s16  ;;  %s9043_s16 = smov 15  }
0x1069   : > { %3982 = vrot.lane.b32.xlu1 %v8257_v37, %s6698_s15 }
0x106a   : > { %3984 = vrot.lane.b32.xlu0 %v8259_v20, %s6698_s15  ;;  %s6702_s15 = smov 110  }
0x106d   : > { %4034 = vrot.lane.b32.xlu1 %v8257_v37, %s6696_s23 }
0x106e   : > { %4036 = vrot.lane.b32.xlu0 %v8259_v20, %s6696_s23  ;;  %s6703_s23 = smov 115  }
0x1071   : > { %4110 = vrot.lane.b32.xlu1 %v8257_v37, %s6701_s27 }
0x1072   : > { %4112 = vrot.lane.b32.xlu0 %v8259_v20, %s6701_s27  ;;  %s9044_s27 = smov 2  }
0x1075   : > { %4164 = vrot.lane.b32.xlu1 %v8257_v37, %s8952_s8 }
0x1076   : > { %4166 = vrot.lane.b32.xlu0 %v8259_v20, %s8952_s8  ;;  %s9048_s8 = smov 32  }
0x1079   : > { %4087 = vrot.lane.b32.xlu1 %v8257_v37, %s6697_s26 }
0x107a   : > { %4089 = vrot.lane.b32.xlu0 %v8259_v20, %s6697_s26  ;;  %s6704_s26 = smov 114  }
0x107d   : > { %4140 = vrot.lane.b32.xlu1 %v8257_v37, %s6702_s15 }
0x107e   : > { %4142 = vrot.lane.b32.xlu0 %v8259_v20, %s6702_s15  ;;  %s6706_s15 = smov 14  }
0x1081   : > { %4216 = vrot.lane.b32.xlu1 %v8257_v37, %s8954_s7 }
0x1082   : > { %4218 = vrot.lane.b32.xlu0 %v8259_v20, %s8954_s7  ;;  %s9049_s7 = smov 34  }
0x1085   : > { %4269 = vrot.lane.b32.xlu1 %v8257_v37, %s6703_s23 }
0x1086   : > { %4271 = vrot.lane.b32.xlu0 %v8259_v20, %s6703_s23  ;;  %s6707_s23 = smov 19  }
0x1089   : > { %4193 = vrot.lane.b32.xlu1 %v8257_v37, %s9040_s29 }
0x108a   : > { %4195 = vrot.lane.b32.xlu0 %v8259_v20, %s9040_s29 }
0x108d   : > { %4245 = vrot.lane.b32.xlu1 %v8257_v37, %s6704_s26 }
0x108e   : > { %4247 = vrot.lane.b32.xlu0 %v8259_v20, %s6704_s26  ;;  %s9046_s26 = smov 16  }
0x1091   : > { %4322 = vrot.lane.b32.xlu1 %v8257_v37, %s9041_s30 }
0x1092   : > { %4324 = vrot.lane.b32.xlu0 %v8259_v20, %s9041_s30 }
0x1095   : > { %4368 = vrot.lane.b32.xlu1 %v8257_v37, %s9042_s24 }
0x1096   : > { %4370 = vrot.lane.b32.xlu0 %v8259_v20, %s9042_s24 }
0x1099   : > { %4299 = vrot.lane.b32.xlu1 %v8257_v37, %s6695_s28 }
0x109a   : > { %4301 = vrot.lane.b32.xlu0 %v8259_v20, %s6695_s28  ;;  %s9045_s28 = smov 17  }
0x109d   : > { %4420 = vrot.lane.b32.xlu1 %v8257_v37, %s6705_s9 }
0x109e   : > { %4422 = vrot.lane.b32.xlu0 %v8259_v20, %s6705_s9  ;;  %s6708_s9 = smov 18  }
0x10a1   : > { %4474 = vrot.lane.b32.xlu1 %v8257_v37, %s9043_s16 }
0x10a2   : > { %4476 = vrot.lane.b32.xlu0 %v8259_v20, %s9043_s16 }
0x10a5   : > { %4397 = vrot.lane.b32.xlu1 %v8257_v37, %s9044_s27 }
0x10a6   : > { %4399 = vrot.lane.b32.xlu0 %v8259_v20, %s9044_s27  ;;  %s6709_s27 = smov 31  }
0x10a9   : > { %4450 = vrot.lane.b32.xlu1 %v8257_v37, %s6706_s15 }
0x10aa   : > { %4452 = vrot.lane.b32.xlu0 %v8259_v20, %s6706_s15  ;;  %s6710_s15 = smov 33  }
0x10ad   : > { %4526 = vrot.lane.b32.xlu1 %v8257_v37, %s9045_s28 }
0x10ae   : > { %4528 = vrot.lane.b32.xlu0 %v8259_v20, %s9045_s28 }
0x10b1   : > { %4579 = vrot.lane.b32.xlu1 %v8257_v37, %s6707_s23 }
0x10b2   : > { %4581 = vrot.lane.b32.xlu0 %v8259_v20, %s6707_s23  ;;  %s9047_s23 = smov 30  }
0x10b5   : > { %4503 = vrot.lane.b32.xlu1 %v8257_v37, %s9046_s26 }
0x10b6   : > { %4505 = vrot.lane.b32.xlu0 %v8259_v20, %s9046_s26 }
0x10b9   : > { %4555 = vrot.lane.b32.xlu1 %v8257_v37, %s6708_s9 }
0x10ba   : > { %4557 = vrot.lane.b32.xlu0 %v8259_v20, %s6708_s9  ;;  %s6711_s9 = smov 35  }
0x10bd   : > { %4632 = vrot.lane.b32.xlu1 %v8257_v37, %s6709_s27 }
0x10be   : > { %4634 = vrot.lane.b32.xlu0 %v8259_v20, %s6709_s27 }
0x10c1   : > { %4685 = vrot.lane.b32.xlu1 %v8257_v37, %s6710_s15 }
0x10c2   : > { %4687 = vrot.lane.b32.xlu0 %v8259_v20, %s6710_s15  ;;  %s6712_s15 = smov 47  }
0x10c5   : > { %4609 = vrot.lane.b32.xlu1 %v8257_v37, %s9047_s23 }
0x10c6   : > { %4611 = vrot.lane.b32.xlu0 %v8259_v20, %s9047_s23 }
0x10c9   : > { %4662 = vrot.lane.b32.xlu1 %v8257_v37, %s9048_s8 }
0x10ca   : > { %4664 = vrot.lane.b32.xlu0 %v8259_v20, %s9048_s8 }
0x10cd   : > { %4738 = vrot.lane.b32.xlu1 %v8257_v37, %s6711_s9 }
0x10ce   : > { %4740 = vrot.lane.b32.xlu0 %v8259_v20, %s6711_s9 }
0x10d1   : > { %4792 = vrot.lane.b32.xlu1 %v8257_v37, %s6712_s15 }
0x10d2   : > { %4794 = vrot.lane.b32.xlu0 %v8259_v20, %s6712_s15  ;;  %s6713_s15 = smov 46  }
0x10d3   : > { %v4005_v55 = vpop.permute.xlu1 %4004 }
0x10d4   : > { %v4007_v39 = vpop.permute.xlu0 %4006 }
0x10d5   : > { %v4009_v51 = vsel %vm4008_vm12, %v4005_v55, %v4007_v39  ;;  %v4010_v5 = vsel %vm4008_vm12, %v4007_v39, %v4005_v55  ;;  %4715 = vrot.lane.b32.xlu1 %v8257_v37, %s9049_s7  ;;  %vm4249_vm12 = vcmp.lt.s32.totalorder %v7642_v4, 114 }
0x10d6   : > { %v4024_v24 = vmul.f32 %v4017_v11, %v4009_v51  ;;  %v4025_v9 = vmul.f32 %v4021_v45, %v4010_v5  ;;  %4717 = vrot.lane.b32.xlu0 %v8259_v20, %s9049_s7  ;;  %s6714_s7 = smov 49   ;;  %v4099_v51 = vrot.slane %v5982_v50, %v7593_v18  ;;  %v4103_v5 = vrot.slane %v5982_v50, %v7595_v62 }
0x10d7   : > { %v4058_v43 = vpop.permute.xlu1 %4057  ;;  %v4209_v50 = vrot.slane %v5986_v46, %v7595_v62 }
0x10d8   : > { %v4028_v54 = vrot.slane %v4024_v24, 4  ;;  %v4029_v27 = vrot.slane %v4025_v9, 4  ;;  %v4060_v12 = vpop.permute.xlu0 %4059  ;;  %v5984_v9 = vld [vmem:[%s8888_s13 + $0x6] ss:$8 sm:$0x3] }
0x10d9   : > { %v4062_v15 = vsel %vm4061_vm0, %v4058_v43, %v4060_v12  ;;  %v4063_v53 = vsel %vm4061_vm0, %v4060_v12, %v4058_v43  ;;  %4768 = vrot.lane.b32.xlu1 %v8257_v37, %s6713_s15  ;;  %vm4114_vm0 = vcmp.lt.s32.totalorder %v7642_v4, 99  ;;  %v4157_v8 = vrot.slane %v5984_v9, %v7595_v62 }
0x10da   : > { %4032 = vst [vmem:[#allocation3] sm:$0xf0] %v4028_v54  ;;  %4033 = vst [vmem:[#allocation3 + $0x8] sm:$0xf0] %v4029_v27  ;;  %v4077_v16 = vmul.f32 %v4070_v40, %v4062_v15  ;;  %v4078_v25 = vmul.f32 %v4074_v13, %v4063_v53  ;;  %4770 = vrot.lane.b32.xlu0 %v8259_v20, %s6713_s15  ;;  %s6715_s15 = smov 51  }
0x10db   : > { %v3983_v19 = vpop.permute.xlu1 %3982 }
0x10dc   : > { %v4081_v59 = vrot.slane %v4077_v16, 4  ;;  %v4082_v35 = vrot.slane %v4078_v25, 4  ;;  %v3985_v21 = vpop.permute.xlu0 %3984 }
0x10dd   : > { %v3986_v3 = vsel %vm2896_vm6, %v3983_v19, %v3985_v21  ;;  %v3987_v63 = vsel %vm2896_vm6, %v3985_v21, %v3983_v19  ;;  %4846 = vrot.lane.b32.xlu1 %v8257_v37, %s6714_s7  ;;  %vm4144_vm6 = vcmp.lt.s32.totalorder %v7642_v4, 110 }
0x10de   : > { %4085 = vst [vmem:[#allocation3 + $0x10] sm:$0xf0] %v4081_v59  ;;  %4086 = vst [vmem:[#allocation3 + $0x18] sm:$0xf0] %v4082_v35  ;;  %v4000_v14 = vmul.f32 %v3993_v42, %v3986_v3  ;;  %v4001_v7 = vmul.f32 %v3997_v47, %v3987_v63  ;;  %4848 = vrot.lane.b32.xlu0 %v8259_v20, %s6714_s7  ;;  %s6716_s7 = smov 48   ;;  %v4153_v42 = vrot.slane %v5984_v9, %v7593_v18 }
0x10df   : > { %v4035_v30 = vpop.permute.xlu1 %4034  ;;  %v5987_v35 = vld [vmem:[%s8888_s13 + $0x11] ss:$8 sm:$0x3] }
0x10e0   : > { %4002 = vst [vmem:[#allocation3] sm:$0xf] %v4000_v14  ;;  %4003 = vst [vmem:[#allocation3 + $0x8] sm:$0xf] %v4001_v7  ;;  %v4037_v38 = vpop.permute.xlu0 %4036 }
0x10e1   : > { %v4038_v41 = vsel %vm2866_vm1, %v4035_v30, %v4037_v38  ;;  %v4039_v26 = vsel %vm2866_vm1, %v4037_v38, %v4035_v30  ;;  %4900 = vrot.lane.b32.xlu1 %v8257_v37, %s6715_s15  ;;  %vm4975_vm1 = vcmask 130048  }
0x10e2   : > { %v4053_v29 = vmul.f32 %v4046_v49, %v4038_v41  ;;  %v4054_v58 = vmul.f32 %v4050_v22, %v4039_v26  ;;  %4902 = vrot.lane.b32.xlu0 %v8259_v20, %s6715_s15  ;;  %s6717_s15 = smov 50   ;;  %v4228_v49 = vrot.slane %v5987_v35, %v7593_v18  ;;  %v4232_v22 = vrot.slane %v5987_v35, %v7595_v62 }
0x10e3   : > { %v4111_v31 = vpop.permute.xlu1 %4110 }
0x10e4   : > { %4055 = vst [vmem:[#allocation3 + $0x10] sm:$0xf] %v4053_v29  ;;  %4056 = vst [vmem:[#allocation3 + $0x18] sm:$0xf] %v4054_v58  ;;  %v4113_v6 = vpop.permute.xlu0 %4112 }
0x10e5   : > { %v4115_v32 = vsel %vm4114_vm0, %v4111_v31, %v4113_v6  ;;  %v4116_v56 = vsel %vm4114_vm0, %v4113_v6, %v4111_v31  ;;  %4822 = vrot.lane.b32.xlu1 %v8257_v37, %s6716_s7  ;;  %vm4424_vm0 = vcmp.lt.s32.totalorder %v7642_v4, 3 }
0x10e6   : > { %v4130_v60 = vmul.f32 %v4123_v28, %v4115_v32  ;;  %v4131_v17 = vmul.f32 %v4127_v2, %v4116_v56  ;;  %4824 = vrot.lane.b32.xlu0 %v8259_v20, %s6716_s7  ;;  %s9050_s7 = sld [smem:[#allocation36_spill]]  ;;  %v4282_v28 = vrot.slane %v5989_v23, %v7593_v18  ;;  %v4286_v2 = vrot.slane %v5989_v23, %v7595_v62 }
0x10e7   : > { %v4165_v34 = vpop.permute.xlu1 %4164  ;;  %v4931_v24 = vld [vmem:[#allocation3 + $0x8] sm:$0xff]  ;;  %v4930_v43 = vld [vmem:[#allocation3] sm:$0xff] }
0x10e8   : > { %v4134_v52 = vrot.slane %v4130_v60, 4  ;;  %v4135_v44 = vrot.slane %v4131_v17, 4  ;;  %v4167_v10 = vpop.permute.xlu0 %4166 }
0x10e9   : > { %v4168_v11 = vsel %vm1918_vm11, %v4165_v34, %v4167_v10  ;;  %v4169_v45 = vsel %vm1918_vm11, %v4167_v10, %v4165_v34  ;;  %4876 = vrot.lane.b32.xlu1 %v8257_v37, %s6717_s15  ;;  %v8424_v37 = vld [vmem:[%s9051_s2] sm:$0xff]  ;;  %v4205_v34 = vrot.slane %v5986_v46, %v7593_v18  ;;  %s9077_s2 = sshll.u32 %s6968_s18, 3 }
0x10ea   : > { %4138 = vst [vmem:[#allocation3 + $0x20] sm:$0xf0] %v4134_v52  ;;  %4139 = vst [vmem:[#allocation3 + $0x28] sm:$0xf0] %v4135_v44  ;;  %v4183_v36 = vmul.f32 %v4176_v61, %v4168_v11  ;;  %v4184_v39 = vmul.f32 %v4180_v1, %v4169_v45  ;;  %4878 = vrot.lane.b32.xlu0 %v8259_v20, %s6717_s15  ;;  %v4974_v20 = vcombine.high %v8424_v37, %v8424_v37  ;;  %s539_s15 = scalar_lea.vmem [#allocation10], %s9077_s2 }
0x10eb   : > { %v4088_v40 = vpop.permute.xlu1 %4087  ;;  %v4933_v13 = vld [vmem:[#allocation3 + $0x18] sm:$0xff]  ;;  %v4932_v33 = vld [vmem:[#allocation3 + $0x10] sm:$0xff]  ;;  %v5988_v44 = vld [vmem:[%s8888_s13 + $0x12] ss:$8 sm:$0x3]  ;;  %s5804_s8 = sshll.u32 %s539_s15, 4  ;;  %s8833_s8 = int_to_ptr.vmem [resolvable:$true] %s5804_s8 }
0x10ec   : > { %v4967_v55 = vld [vmem:[%s9050_s7] sm:$0xf]  ;;  %v4187_v54 = vrot.slane %v4183_v36, 4  ;;  %v4188_v27 = vrot.slane %v4184_v39, 4  ;;  %v4090_v12 = vpop.permute.xlu0 %4089  ;;  %v6155_v15 = vpack.c.bf16 %v4933_v13, %v4931_v24  ;;  %v6157_v53 = vpack.c.bf16 %v4932_v33, %v4930_v43  ;;  %6014 = vmatprep.mubr.msk.f32.mxu0 %vm4975_vm1, %v4974_v20  ;;  %s9065_s7 = sld [smem:[#allocation38_spill]] }
0x10ed   : > { %v4091_v16 = vsel %vm2842_vm4, %v4088_v40, %v4090_v12  ;;  %v4092_v25 = vsel %vm2842_vm4, %v4090_v12, %v4088_v40  ;;  %4970 = vperm.xlu1 %6314, %v4967_v55   ;;  %vm4273_vm4 = vcmp.lt.s32.totalorder %v7642_v4, 115  ;;  %v4258_v33 = vrot.slane %v5988_v44, %v7593_v18  ;;  %v5995_v46 = vld [vmem:[%s8888_s13 + $0x21] ss:$8 sm:$0x3] }
0x10ee   : > { %4191 = vst [vmem:[#allocation3 + $0x30] sm:$0xf0] %v4187_v54  ;;  %4192 = vst [vmem:[#allocation3 + $0x38] sm:$0xf0] %v4188_v27  ;;  %v4106_v47 = vmul.f32 %v4099_v51, %v4091_v16  ;;  %v4107_v19 = vmul.f32 %v4103_v5, %v4092_v25  ;;  %6156 = vmatprep.subr.bf16.mxu0 %v6155_v15  ;;  %v4262_v20 = vrot.slane %v5988_v44, %v7595_v62 }
0x10ef   : > { %6158 = vmatpush1.bf16.msra.mxu0 %v6157_v53  ;;  %v4141_v59 = vpop.permute.xlu1 %4140  ;;  %v5991_v27 = vld [vmem:[%s8888_s13 + $0x15] ss:$8 sm:$0x3] }
0x10f0   : > { %4108 = vst [vmem:[#allocation3 + $0x20] sm:$0xf] %v4106_v47  ;;  %4109 = vst [vmem:[#allocation3 + $0x28] sm:$0xf] %v4107_v19  ;;  %v4143_v21 = vpop.permute.xlu0 %4142  ;;  %v4338_v47 = vrot.slane %v5991_v27, %v7595_v62 }
0x10f1   : > { %v4145_v3 = vsel %vm4144_vm6, %v4141_v59, %v4143_v21  ;;  %v4146_v63 = vsel %vm4144_vm6, %v4143_v21, %v4141_v59  ;;  %vm4583_vm6 = vcmp.lt.s32.totalorder %v7642_v4, 19 }
0x10f2   : > { %v4160_v14 = vmul.f32 %v4153_v42, %v4145_v3  ;;  %v4161_v7 = vmul.f32 %v4157_v8, %v4146_v63  ;;  %v4334_v42 = vrot.slane %v5991_v27, %v7593_v18  ;;  %v5993_v8 = vld [vmem:[%s8888_s13 + $0x17] ss:$8 sm:$0x3] }
0x10f3   : > { %v4217_v30 = vpop.permute.xlu1 %4216 }
0x10f4   : > { %4162 = vst [vmem:[#allocation3 + $0x30] sm:$0xf] %v4160_v14  ;;  %4163 = vst [vmem:[#allocation3 + $0x38] sm:$0xf] %v4161_v7  ;;  %v4219_v38 = vpop.permute.xlu0 %4218  ;;  %v4380_v14 = vrot.slane %v5993_v8, %v7593_v18  ;;  %v4384_v7 = vrot.slane %v5993_v8, %v7595_v62 }
0x10f5   : > { %v4220_v41 = vsel %vm1864_vm10, %v4217_v30, %v4219_v38  ;;  %v4221_v26 = vsel %vm1864_vm10, %v4219_v38, %v4217_v30  ;;  %v5996_v8 = vld [vmem:[%s8888_s13 + $0x22] ss:$8 sm:$0x3] }
0x10f6   : > { %v4235_v29 = vmul.f32 %v4228_v49, %v4220_v41  ;;  %v4236_v58 = vmul.f32 %v4232_v22, %v4221_v26  ;;  %v5990_v22 = vld [vmem:[%s8888_s13 + $0x14] ss:$8 sm:$0x3] }
0x10f7   : > { %v4270_v31 = vpop.permute.xlu1 %4269  ;;  %v4935_v52 = vld [vmem:[#allocation3 + $0x28] sm:$0xff]  ;;  %v4934_v45 = vld [vmem:[#allocation3 + $0x20] sm:$0xff] }
0x10f8   : > { %v4239_v6 = vrot.slane %v4235_v29, 4  ;;  %v4240_v32 = vrot.slane %v4236_v58, 4  ;;  %v4272_v56 = vpop.permute.xlu0 %4271 }
0x10f9   : > { %v4274_v60 = vsel %vm4273_vm4, %v4270_v31, %v4272_v56  ;;  %v4275_v17 = vsel %vm4273_vm4, %v4272_v56, %v4270_v31  ;;  %vm9054_vm4 = vcmp.lt.s32.totalorder %v7642_v4, 16 }
0x10fa   : > { %4243 = vst [vmem:[#allocation3 + $0x40] sm:$0xf0] %v4239_v6  ;;  %4244 = vst [vmem:[#allocation3 + $0x48] sm:$0xf0] %v4240_v32  ;;  %v4289_v61 = vmul.f32 %v4282_v28, %v4274_v60  ;;  %v4290_v1 = vmul.f32 %v4286_v2, %v4275_v17  ;;  %v4311_v28 = vrot.slane %v5990_v22, %v7593_v18 }
0x10fb   : > { %v4194_v10 = vpop.permute.xlu1 %4193  ;;  %v4937_v11 = vld [vmem:[#allocation3 + $0x38] sm:$0xff]  ;;  %v4936_v55 = vld [vmem:[#allocation3 + $0x30] sm:$0xff]  ;;  %v4315_v2 = vrot.slane %v5990_v22, %v7595_v62 }
0x10fc   : > { %v4293_v36 = vrot.slane %v4289_v61, 4  ;;  %v4294_v39 = vrot.slane %v4290_v1, 4  ;;  %v4196_v51 = vpop.permute.xlu0 %4195  ;;  %v6159_v5 = vpack.c.bf16 %v4937_v11, %v4935_v52  ;;  %v6161_v24 = vpack.c.bf16 %v4936_v55, %v4934_v45 }
0x10fd   : > { %v4197_v9 = vsel %vm1888_vm9, %v4194_v10, %v4196_v51  ;;  %v4198_v40 = vsel %vm1888_vm9, %v4196_v51, %v4194_v10  ;;  %v4433_v45 = vrot.slane %v5995_v46, %v7593_v18  ;;  %v4437_v55 = vrot.slane %v5995_v46, %v7595_v62 }
0x10fe   : > { %4297 = vst [vmem:[#allocation3 + $0x50] sm:$0xf0] %v4293_v36  ;;  %4298 = vst [vmem:[#allocation3 + $0x58] sm:$0xf0] %v4294_v39  ;;  %v4212_v13 = vmul.f32 %v4205_v34, %v4197_v9  ;;  %v4213_v43 = vmul.f32 %v4209_v50, %v4198_v40  ;;  %6160 = vmatprep.subr.bf16.mxu0 %v6159_v5 }
0x10ff   : > { %6162 = vmatpush1.bf16.msra.mxu0 %v6161_v24  ;;  %v4246_v54 = vpop.permute.xlu1 %4245  ;;  %v5997_v39 = vld [vmem:[%s8888_s13 + $0x23] ss:$8 sm:$0x3] }
0x1100   : > { %4214 = vst [vmem:[#allocation3 + $0x40] sm:$0xf] %v4212_v13  ;;  %4215 = vst [vmem:[#allocation3 + $0x48] sm:$0xf] %v4213_v43  ;;  %v4248_v12 = vpop.permute.xlu0 %4247  ;;  %v4486_v13 = vrot.slane %v5997_v39, %v7593_v18  ;;  %v4490_v43 = vrot.slane %v5997_v39, %v7595_v62 }
0x1101   : > { %v4250_v15 = vsel %vm4249_vm12, %v4246_v54, %v4248_v12  ;;  %v4251_v53 = vsel %vm4249_vm12, %v4248_v12, %v4246_v54  ;;  %vm9055_vm12 = vmmov %vm9054_vm4 }
0x1102   : > { %v4265_v16 = vmul.f32 %v4258_v33, %v4250_v15  ;;  %v4266_v25 = vmul.f32 %v4262_v20, %v4251_v53  ;;  %v5994_v20 = vld [vmem:[%s8888_s13 + $0x20] ss:$8 sm:$0x3] }
0x1103   : > { %v4323_v19 = vpop.permute.xlu1 %4322 }
0x1104   : > { %4267 = vst [vmem:[#allocation3 + $0x50] sm:$0xf] %v4265_v16  ;;  %4268 = vst [vmem:[#allocation3 + $0x58] sm:$0xf] %v4266_v25  ;;  %v4325_v59 = vpop.permute.xlu0 %4324 }
0x1105   : > { %v4326_v35 = vsel %vm1834_vm8, %v4323_v19, %v4325_v59  ;;  %v4327_v21 = vsel %vm1834_vm8, %v4325_v59, %v4323_v19 }
0x1106   : > { %v4341_v3 = vmul.f32 %v4334_v42, %v4326_v35  ;;  %v4342_v63 = vmul.f32 %v4338_v47, %v4327_v21  ;;  %v4409_v42 = vrot.slane %v5994_v20, %v7593_v18  ;;  %v4413_v47 = vrot.slane %v5994_v20, %v7595_v62  ;;  %v6000_v20 = vld [vmem:[%s8888_s13 + $0x26] ss:$8 sm:$0x3] }
0x1107   : > { %v4369_v49 = vpop.permute.xlu1 %4368  ;;  %v4939_v31 = vld [vmem:[#allocation3 + $0x48] sm:$0xff]  ;;  %v4938_v56 = vld [vmem:[#allocation3 + $0x40] sm:$0xff] }
0x1108   : > { %v4345_v30 = vrot.slane %v4341_v3, 4  ;;  %v4346_v23 = vrot.slane %v4342_v63, 4  ;;  %v4371_v38 = vpop.permute.xlu0 %4370 }
0x1109   : > { %v4372_v41 = vsel %vm1787_vm5, %v4369_v49, %v4371_v38  ;;  %v4373_v26 = vsel %vm1787_vm5, %v4371_v38, %v4369_v49 }
0x110a   : > { %4349 = vst [vmem:[#allocation3 + $0x60] sm:$0xf0] %v4345_v30  ;;  %4350 = vst [vmem:[#allocation3 + $0x68] sm:$0xf0] %v4346_v23  ;;  %v4387_v29 = vmul.f32 %v4380_v14, %v4373_v26  ;;  %v4388_v58 = vmul.f32 %v4384_v7, %v4372_v41  ;;  %v4463_v26 = vrot.slane %v5996_v8, %v7593_v18 }
0x110b   : > { %v4300_v6 = vpop.permute.xlu1 %4299  ;;  %v4941_v32 = vld [vmem:[#allocation3 + $0x58] sm:$0xff]  ;;  %v4940_v60 = vld [vmem:[#allocation3 + $0x50] sm:$0xff] }
0x110c   : > { %v4391_v17 = vrot.slane %v4387_v29, 4  ;;  %v4392_v61 = vrot.slane %v4388_v58, 4  ;;  %v4302_v1 = vpop.permute.xlu0 %4301  ;;  %v6163_v34 = vpack.c.bf16 %v4941_v32, %v4939_v31  ;;  %v6165_v50 = vpack.c.bf16 %v4940_v60, %v4938_v56 }
0x110d   : > { %v4303_v52 = vsel %vm2812_vm3, %v4300_v6, %v4302_v1  ;;  %v4304_v44 = vsel %vm2812_vm3, %v4302_v1, %v4300_v6  ;;  %vm4454_vm3 = vcmp.lt.s32.totalorder %v7642_v4, 14  ;;  %v4467_v29 = vrot.slane %v5996_v8, %v7595_v62 }
0x110e   : > { %4395 = vst [vmem:[#allocation3 + $0x70] sm:$0xf0] %v4391_v17  ;;  %4396 = vst [vmem:[#allocation3 + $0x78] sm:$0xf0] %v4392_v61  ;;  %v4318_v10 = vmul.f32 %v4311_v28, %v4303_v52  ;;  %v4319_v11 = vmul.f32 %v4315_v2, %v4304_v44  ;;  %6164 = vmatprep.subr.bf16.mxu0 %v6163_v34 }
0x110f   : > { %6166 = vmatpush1.bf16.msra.mxu0 %v6165_v50  ;;  %v4421_v36 = vpop.permute.xlu1 %4420  ;;  %v5999_v28 = vld [vmem:[%s8888_s13 + $0x25] ss:$8 sm:$0x3]  ;;  %v6001_v61 = vld [vmem:[%s8888_s13 + $0x27] ss:$8 sm:$0x3] }
0x1110   : > { %4320 = vst [vmem:[#allocation3 + $0x60] sm:$0xf] %v4318_v10  ;;  %4321 = vst [vmem:[#allocation3 + $0x68] sm:$0xf] %v4319_v11  ;;  %v4423_v51 = vpop.permute.xlu0 %4422  ;;  %v4538_v56 = vrot.slane %v5999_v28, %v7593_v18  ;;  %v4542_v60 = vrot.slane %v5999_v28, %v7595_v62  ;;  %v4592_v10 = vrot.slane %v6001_v61, %v7593_v18 }
0x1111   : > { %v4425_v5 = vsel %vm4424_vm0, %v4421_v36, %v4423_v51  ;;  %v4426_v24 = vsel %vm4424_vm0, %v4423_v51, %v4421_v36  ;;  %v4596_v11 = vrot.slane %v6001_v61, %v7595_v62  ;;  %vm4559_vm0 = vcmp.lt.s32.totalorder %v7642_v4, 18 }
0x1112   : > { %v4440_v9 = vmul.f32 %v4433_v45, %v4426_v24  ;;  %v4441_v40 = vmul.f32 %v4437_v55, %v4425_v5  ;;  %v5998_v55 = vld [vmem:[%s8888_s13 + $0x24] ss:$8 sm:$0x3] }
0x1113   : > { %v4475_v33 = vpop.permute.xlu1 %4474 }
0x1114   : > { %v4444_v54 = vrot.slane %v4440_v9, 4  ;;  %v4445_v27 = vrot.slane %v4441_v40, 4  ;;  %v4477_v12 = vpop.permute.xlu0 %4476 }
0x1115   : > { %v4478_v15 = vsel %vm1763_vm7, %v4475_v33, %v4477_v12  ;;  %v4479_v53 = vsel %vm1763_vm7, %v4477_v12, %v4475_v33  ;;  %v4945_v19 = vld [vmem:[#allocation3 + $0x78] sm:$0xff]  ;;  %v4944_v3 = vld [vmem:[#allocation3 + $0x70] sm:$0xff] }
0x1116   : > { %4448 = vst [vmem:[#allocation3 + $0x80] sm:$0xf0] %v4444_v54  ;;  %4449 = vst [vmem:[#allocation3 + $0x88] sm:$0xf0] %v4445_v27  ;;  %v4493_v16 = vmul.f32 %v4486_v13, %v4479_v53  ;;  %v4494_v25 = vmul.f32 %v4490_v43, %v4478_v15  ;;  %v4515_v13 = vrot.slane %v5998_v55, %v7593_v18 }
0x1117   : > { %v4398_v59 = vpop.permute.xlu1 %4397  ;;  %v4943_v35 = vld [vmem:[#allocation3 + $0x68] sm:$0xff]  ;;  %v4942_v21 = vld [vmem:[#allocation3 + $0x60] sm:$0xff]  ;;  %v4519_v43 = vrot.slane %v5998_v55, %v7595_v62 }
0x1118   : > { %v4497_v63 = vrot.slane %v4493_v16, 4  ;;  %v4498_v14 = vrot.slane %v4494_v25, 4  ;;  %v4400_v7 = vpop.permute.xlu0 %4399  ;;  %v6167_v49 = vpack.c.bf16 %v4945_v19, %v4943_v35  ;;  %v6169_v22 = vpack.c.bf16 %v4944_v3, %v4942_v21  ;;  %v6004_v55 = vld [vmem:[%s8888_s13 + $0x32] ss:$8 sm:$0x3] }
0x1119   : > { %v4401_v30 = vsel %vm2765_vm14, %v4398_v59, %v4400_v7  ;;  %v4402_v23 = vsel %vm2765_vm14, %v4400_v7, %v4398_v59  ;;  %vm9052_vm14 = vcmp.lt.s32.totalorder %v7642_v4, 17  ;;  %v4568_v21 = vrot.slane %v6000_v20, %v7593_v18 }
0x111a   : > { %4501 = vst [vmem:[#allocation3 + $0x90] sm:$0xf0] %v4497_v63  ;;  %4502 = vst [vmem:[#allocation3 + $0x98] sm:$0xf0] %v4498_v14  ;;  %v4416_v38 = vmul.f32 %v4409_v42, %v4402_v23  ;;  %v4417_v41 = vmul.f32 %v4413_v47, %v4401_v30  ;;  %6168 = vmatprep.subr.bf16.mxu0 %v6167_v49  ;;  %v4572_v3 = vrot.slane %v6000_v20, %v7595_v62 }
0x111b   : > { %v4451_v58 = vpop.permute.xlu1 %4450  ;;  %6170 = vmatpush1.bf16.msra.mxu0 %v6169_v22  ;;  %vm9053_vm1 = vmmov %vm9052_vm14  ;;  %v6003_v14 = vld [vmem:[%s8888_s13 + $0x31] ss:$8 sm:$0x3] }
0x111c   : > { %4418 = vst [vmem:[#allocation3 + $0x80] sm:$0xf] %v4416_v38  ;;  %4419 = vst [vmem:[#allocation3 + $0x88] sm:$0xf] %v4417_v41  ;;  %v4453_v2 = vpop.permute.xlu0 %4452  ;;  %v4645_v38 = vrot.slane %v6003_v14, %v7593_v18  ;;  %v4649_v41 = vrot.slane %v6003_v14, %v7595_v62 }
0x111d   : > { %v4455_v31 = vsel %vm4454_vm3, %v4451_v58, %v4453_v2  ;;  %v4456_v46 = vsel %vm4454_vm3, %v4453_v2, %v4451_v58  ;;  %vm4636_vm3 = vcmp.lt.s32.totalorder %v7642_v4, 31 }
0x111e   : > { %v4470_v6 = vmul.f32 %v4463_v26, %v4456_v46  ;;  %v4471_v32 = vmul.f32 %v4467_v29, %v4455_v31  ;;  %v6005_v29 = vld [vmem:[%s8888_s13 + $0x33] ss:$8 sm:$0x3] }
0x111f   : > { %v4527_v17 = vpop.permute.xlu1 %4526 }
0x1120   : > { %4472 = vst [vmem:[#allocation3 + $0x90] sm:$0xf] %v4470_v6  ;;  %4473 = vst [vmem:[#allocation3 + $0x98] sm:$0xf] %v4471_v32  ;;  %v4529_v1 = vpop.permute.xlu0 %4528  ;;  %v4698_v6 = vrot.slane %v6005_v29, %v7593_v18  ;;  %v4702_v32 = vrot.slane %v6005_v29, %v7595_v62 }
0x1121   : > { %v4530_v34 = vsel %vm9052_vm14, %v4527_v17, %v4529_v1  ;;  %v4531_v50 = vsel %vm9053_vm1, %v4529_v1, %v4527_v17  ;;  %vm4689_vm14 = vcmp.lt.s32.totalorder %v7642_v4, 33  ;;  %vm4772_vm1 = vcmp.lt.s32.totalorder %v7642_v4, 46 }
0x1122   : > { %v4545_v52 = vmul.f32 %v4538_v56, %v4531_v50  ;;  %v4546_v44 = vmul.f32 %v4542_v60, %v4530_v34  ;;  %v6002_v60 = vld [vmem:[%s8888_s13 + $0x30] ss:$8 sm:$0x3] }
0x1123   : > { %v4580_v45 = vpop.permute.xlu1 %4579  ;;  %v4947_v33 = vld [vmem:[#allocation3 + $0x88] sm:$0xff]  ;;  %v4946_v12 = vld [vmem:[#allocation3 + $0x80] sm:$0xff] }
0x1124   : > { %v4549_v36 = vrot.slane %v4545_v52, 4  ;;  %v4550_v39 = vrot.slane %v4546_v44, 4  ;;  %v4582_v51 = vpop.permute.xlu0 %4581 }
0x1125   : > { %v4584_v5 = vsel %vm4583_vm6, %v4580_v45, %v4582_v51  ;;  %v4585_v24 = vsel %vm4583_vm6, %v4582_v51, %v4580_v45  ;;  %vm4904_vm6 = vcmp.lt.s32.totalorder %v7642_v4, 51 }
0x1126   : > { %4553 = vst [vmem:[#allocation3 + $0xa0] sm:$0xf0] %v4549_v36  ;;  %4554 = vst [vmem:[#allocation3 + $0xa8] sm:$0xf0] %v4550_v39  ;;  %v4599_v9 = vmul.f32 %v4592_v10, %v4585_v24  ;;  %v4600_v40 = vmul.f32 %v4596_v11, %v4584_v5  ;;  %v4621_v10 = vrot.slane %v6002_v60, %v7593_v18 }
0x1127   : > { %v4504_v54 = vpop.permute.xlu1 %4503  ;;  %v4949_v27 = vld [vmem:[#allocation3 + $0x98] sm:$0xff]  ;;  %v4948_v15 = vld [vmem:[#allocation3 + $0x90] sm:$0xff]  ;;  %v4625_v11 = vrot.slane %v6002_v60, %v7595_v62  ;;  %v6008_v60 = vld [vmem:[%s8888_s13 + $0x36] ss:$8 sm:$0x3] }
0x1128   : > { %v4603_v53 = vrot.slane %v4599_v9, 4  ;;  %v4604_v16 = vrot.slane %v4600_v40, 4  ;;  %v4506_v25 = vpop.permute.xlu0 %4505  ;;  %v6171_v42 = vpack.c.bf16 %v4949_v27, %v4947_v33  ;;  %v6173_v47 = vpack.c.bf16 %v4948_v15, %v4946_v12 }
0x1129   : > { %v4507_v19 = vsel %vm9054_vm4, %v4504_v54, %v4506_v25  ;;  %v4508_v8 = vsel %vm9055_vm12, %v4506_v25, %v4504_v54  ;;  %v4674_v12 = vrot.slane %v6004_v55, %v7593_v18  ;;  %v4678_v15 = vrot.slane %v6004_v55, %v7595_v62 }
0x112a   : > { %4607 = vst [vmem:[#allocation3 + $0xb0] sm:$0xf0] %v4603_v53  ;;  %4608 = vst [vmem:[#allocation3 + $0xb8] sm:$0xf0] %v4604_v16  ;;  %v4522_v59 = vmul.f32 %v4515_v13, %v4508_v8  ;;  %v4523_v35 = vmul.f32 %v4519_v43, %v4507_v19  ;;  %6172 = vmatprep.subr.bf16.mxu0 %v6171_v42  ;;  %vm4826_vm4 = vcmp.lt.s32.totalorder %v7642_v4, 48  ;;  %vm4880_vm12 = vcmp.lt.s32.totalorder %v7642_v4, 50 }
0x112b   : > { %v4556_v63 = vpop.permute.xlu1 %4555  ;;  %6174 = vmatpush1.bf16.msra.mxu0 %v6173_v47  ;;  %v6007_v16 = vld [vmem:[%s8888_s13 + $0x35] ss:$8 sm:$0x3] }
0x112c   : > { %4524 = vst [vmem:[#allocation3 + $0xa0] sm:$0xf] %v4522_v59  ;;  %4525 = vst [vmem:[#allocation3 + $0xa8] sm:$0xf] %v4523_v35  ;;  %v4558_v7 = vpop.permute.xlu0 %4557  ;;  %v4751_v59 = vrot.slane %v6007_v16, %v7593_v18  ;;  %v4755_v35 = vrot.slane %v6007_v16, %v7595_v62 }
0x112d   : > { %v4560_v49 = vsel %vm4559_vm0, %v4556_v63, %v4558_v7  ;;  %v4561_v22 = vsel %vm4559_vm0, %v4558_v7, %v4556_v63  ;;  %vm9058_vm0 = vcmp.lt.s32.totalorder %v7642_v4, 16 }
0x112e   : > { %v4575_v30 = vmul.f32 %v4568_v21, %v4561_v22  ;;  %v4576_v23 = vmul.f32 %v4572_v3, %v4560_v49  ;;  %v6009_v3 = vld [vmem:[%s8888_s13 + $0x37] ss:$8 sm:$0x3] }
0x112f   : > { %v4633_v26 = vpop.permute.xlu1 %4632 }
0x1130   : > { %4577 = vst [vmem:[#allocation3 + $0xb0] sm:$0xf] %v4575_v30  ;;  %4578 = vst [vmem:[#allocation3 + $0xb8] sm:$0xf] %v4576_v23  ;;  %v4635_v58 = vpop.permute.xlu0 %4634  ;;  %v4805_v30 = vrot.slane %v6009_v3, %v7593_v18  ;;  %v4809_v23 = vrot.slane %v6009_v3, %v7595_v62 }
0x1131   : > { %v4637_v28 = vsel %vm4636_vm3, %v4633_v26, %v4635_v58  ;;  %v4638_v2 = vsel %vm4636_vm3, %v4635_v58, %v4633_v26  ;;  %vm9059_vm3 = vmmov %vm9058_vm0 }
0x1132   : > { %v4652_v31 = vmul.f32 %v4645_v38, %v4638_v2  ;;  %v4653_v46 = vmul.f32 %v4649_v41, %v4637_v28  ;;  %v6006_v41 = vld [vmem:[%s8888_s13 + $0x34] ss:$8 sm:$0x3] }
0x1133   : > { %v4686_v56 = vpop.permute.xlu1 %4685  ;;  %v4951_v45 = vld [vmem:[#allocation3 + $0xa8] sm:$0xff]  ;;  %v4950_v51 = vld [vmem:[#allocation3 + $0xa0] sm:$0xff] }
0x1134   : > { %v4656_v17 = vrot.slane %v4652_v31, 4  ;;  %v4657_v61 = vrot.slane %v4653_v46, 4  ;;  %v4688_v1 = vpop.permute.xlu0 %4687 }
0x1135   : > { %v4690_v34 = vsel %vm4689_vm14, %v4686_v56, %v4688_v1  ;;  %v4691_v50 = vsel %vm4689_vm14, %v4688_v1, %v4686_v56  ;;  %vm9060_vm14 = vcmp.lt.s32.totalorder %v7642_v4, 17 }
0x1136   : > { %4660 = vst [vmem:[#allocation3 + $0xc0] sm:$0xf0] %v4656_v17  ;;  %4661 = vst [vmem:[#allocation3 + $0xc8] sm:$0xf0] %v4657_v61  ;;  %v4705_v52 = vmul.f32 %v4698_v6, %v4691_v50  ;;  %v4706_v44 = vmul.f32 %v4702_v32, %v4690_v34  ;;  %v4727_v6 = vrot.slane %v6006_v41, %v7593_v18 }
0x1137   : > { %v4610_v36 = vpop.permute.xlu1 %4609  ;;  %v4953_v39 = vld [vmem:[#allocation3 + $0xb8] sm:$0xff]  ;;  %v4952_v5 = vld [vmem:[#allocation3 + $0xb0] sm:$0xff]  ;;  %v4731_v32 = vrot.slane %v6006_v41, %v7595_v62 }
0x1138   : > { %v4709_v24 = vrot.slane %v4705_v52, 4  ;;  %v4710_v9 = vrot.slane %v4706_v44, 4  ;;  %v4612_v40 = vpop.permute.xlu0 %4611  ;;  %v6175_v13 = vpack.c.bf16 %v4953_v39, %v4951_v45  ;;  %v6177_v43 = vpack.c.bf16 %v4952_v5, %v4950_v51  ;;  %v6012_v41 = vld [vmem:[%s8888_s13 + $0x42] ss:$8 sm:$0x3] }
0x1139   : > { %v4613_v33 = vsel %vm2741_vm2, %v4610_v36, %v4612_v40  ;;  %v4614_v20 = vsel %vm2741_vm2, %v4612_v40, %v4610_v36  ;;  %vm4742_vm2 = vcmp.lt.s32.totalorder %v7642_v4, 35  ;;  %v4781_v51 = vrot.slane %v6008_v60, %v7593_v18 }
0x113a   : > { %4713 = vst [vmem:[#allocation3 + $0xd0] sm:$0xf0] %v4709_v24  ;;  %4714 = vst [vmem:[#allocation3 + $0xd8] sm:$0xf0] %v4710_v9  ;;  %v4628_v54 = vmul.f32 %v4621_v10, %v4614_v20  ;;  %v4629_v27 = vmul.f32 %v4625_v11, %v4613_v33  ;;  %6176 = vmatprep.subr.bf16.mxu0 %v6175_v13  ;;  %v4785_v5 = vrot.slane %v6008_v60, %v7595_v62 }
0x113b   : > { %v4663_v53 = vpop.permute.xlu1 %4662  ;;  %6178 = vmatpush1.bf16.msra.mxu0 %v6177_v43  ;;  %v6011_v9 = vld [vmem:[%s8888_s13 + $0x41] ss:$8 sm:$0x3] }
0x113c   : > { %4630 = vst [vmem:[#allocation3 + $0xc0] sm:$0xf] %v4628_v54  ;;  %4631 = vst [vmem:[#allocation3 + $0xc8] sm:$0xf] %v4629_v27  ;;  %v4665_v25 = vpop.permute.xlu0 %4664  ;;  %v4859_v54 = vrot.slane %v6011_v9, %v7593_v18  ;;  %v4863_v27 = vrot.slane %v6011_v9, %v7595_v62 }
0x113d   : > { %v4666_v42 = vsel %vm2711_vm13, %v4663_v53, %v4665_v25  ;;  %v4667_v47 = vsel %vm2711_vm13, %v4665_v25, %v4663_v53  ;;  %vm4796_vm13 = vcmp.lt.s32.totalorder %v7642_v4, 47  ;;  %v5151_v9 = vld [vmem:[#allocation7 + $0x4] ss:$8 sm:$0x3] }
0x113e   : > { %v4681_v19 = vmul.f32 %v4674_v12, %v4667_v47  ;;  %v4682_v8 = vmul.f32 %v4678_v15, %v4666_v42  ;;  %v6013_v15 = vld [vmem:[%s8888_s13 + $0x43] ss:$8 sm:$0x3] }
0x113f   : > { %v4739_v21 = vpop.permute.xlu1 %4738 }
0x1140   : > { %4683 = vst [vmem:[#allocation3 + $0xd0] sm:$0xf] %v4681_v19  ;;  %4684 = vst [vmem:[#allocation3 + $0xd8] sm:$0xf] %v4682_v8  ;;  %v4741_v63 = vpop.permute.xlu0 %4740  ;;  %v4913_v19 = vrot.slane %v6013_v15, %v7593_v18  ;;  %v4917_v8 = vrot.slane %v6013_v15, %v7595_v62 }
0x1141   : > { %v4743_v14 = vsel %vm4742_vm2, %v4739_v21, %v4741_v63  ;;  %v4744_v7 = vsel %vm4742_vm2, %v4741_v63, %v4739_v21  ;;  %vm9061_vm2 = vmmov %vm9060_vm14 }
0x1142   : > { %v4758_v49 = vmul.f32 %v4751_v59, %v4744_v7  ;;  %v4759_v22 = vmul.f32 %v4755_v35, %v4743_v14  ;;  %v6010_v35 = vld [vmem:[%s8888_s13 + $0x40] ss:$8 sm:$0x3] }
0x1143   : > { %v4793_v38 = vpop.permute.xlu1 %4792  ;;  %v4955_v56 = vld [vmem:[#allocation3 + $0xc8] sm:$0xff]  ;;  %v4954_v1 = vld [vmem:[#allocation3 + $0xc0] sm:$0xff] }
0x1144   : > { %v4762_v26 = vrot.slane %v4758_v49, 4  ;;  %v4763_v29 = vrot.slane %v4759_v22, 4  ;;  %v4795_v58 = vpop.permute.xlu0 %4794 }
0x1145   : > { %v4797_v28 = vsel %vm4796_vm13, %v4793_v38, %v4795_v58  ;;  %v4798_v2 = vsel %vm4796_vm13, %v4795_v58, %v4793_v38  ;;  %vm9062_vm13 = vcmask 1043456  }
0x1146   : > { %4766 = vst [vmem:[#allocation3 + $0xe0] sm:$0xf0] %v4762_v26  ;;  %4767 = vst [vmem:[#allocation3 + $0xe8] sm:$0xf0] %v4763_v29  ;;  %v4812_v31 = vmul.f32 %v4805_v30, %v4798_v2  ;;  %v4813_v46 = vmul.f32 %v4809_v23, %v4797_v28  ;;  %v4835_v30 = vrot.slane %v6010_v35, %v7593_v18 }
0x1147   : > { %v4716_v17 = vpop.permute.xlu1 %4715  ;;  %v4957_v61 = vld [vmem:[#allocation3 + $0xd8] sm:$0xff]  ;;  %v4956_v34 = vld [vmem:[#allocation3 + $0xd0] sm:$0xff]  ;;  %v4839_v23 = vrot.slane %v6010_v35, %v7595_v62 }
0x1148   : > { %v4816_v50 = vrot.slane %v4812_v31, 4  ;;  %v4817_v52 = vrot.slane %v4813_v46, 4  ;;  %v4718_v44 = vpop.permute.xlu0 %4717  ;;  %v6179_v10 = vpack.c.bf16 %v4957_v61, %v4955_v56  ;;  %v6181_v11 = vpack.c.bf16 %v4956_v34, %v4954_v1 }
0x1149   : > { %v4719_v45 = vsel %vm2688_vm15, %v4716_v17, %v4718_v44  ;;  %v4720_v55 = vsel %vm2688_vm15, %v4718_v44, %v4716_v17  ;;  %vm4850_vm15 = vcmp.lt.s32.totalorder %v7642_v4, 49  ;;  %v4889_v1 = vrot.slane %v6012_v41, %v7593_v18  ;;  %v6020_v4 = vld [vmem:[%s8880_s5 + $0x20] sm:$0xf] }
0x114a   : > { %4820 = vst [vmem:[#allocation3 + $0xf0] sm:$0xf0] %v4816_v50  ;;  %4821 = vst [vmem:[#allocation3 + $0xf8] sm:$0xf0] %v4817_v52  ;;  %v4734_v36 = vmul.f32 %v4727_v6, %v4720_v55  ;;  %v4735_v39 = vmul.f32 %v4731_v32, %v4719_v45  ;;  %6180 = vmatprep.subr.bf16.mxu0 %v6179_v10  ;;  %v4893_v34 = vrot.slane %v6012_v41, %v7595_v62 }
0x114b   : > { %v4769_v24 = vpop.permute.xlu1 %4768  ;;  %6182 = vmatpush1.bf16.msra.mxu0 %v6181_v11 }
0x114c   : > { %4736 = vst [vmem:[#allocation3 + $0xe0] sm:$0xf] %v4734_v36  ;;  %4737 = vst [vmem:[#allocation3 + $0xe8] sm:$0xf] %v4735_v39  ;;  %v4771_v40 = vpop.permute.xlu0 %4770 }
0x114d   : > { %v4773_v13 = vsel %vm4772_vm1, %v4769_v24, %v4771_v40  ;;  %v4774_v43 = vsel %vm4772_vm1, %v4771_v40, %v4769_v24  ;;  %vm9063_vm1 = vmmov %vm9062_vm13 }
0x114e   : > { %v4788_v33 = vmul.f32 %v4781_v51, %v4774_v43  ;;  %v4789_v20 = vmul.f32 %v4785_v5, %v4773_v13 }
0x114f   : > { %v4847_v12 = vpop.permute.xlu1 %4846 }
0x1150   : > { %4790 = vst [vmem:[#allocation3 + $0xf0] sm:$0xf] %v4788_v33  ;;  %4791 = vst [vmem:[#allocation3 + $0xf8] sm:$0xf] %v4789_v20  ;;  %v4849_v53 = vpop.permute.xlu0 %4848  ;;  %v5156_v33 = vrot.slane %v5151_v9, %v7593_v18 }
0x1151   : > { %v4851_v16 = vsel %vm4850_vm15, %v4847_v12, %v4849_v53  ;;  %v4852_v25 = vsel %vm4850_vm15, %v4849_v53, %v4847_v12  ;;  %vm9064_vm15 = vcmask 293888  }
0x1152   : > { %v4866_v42 = vmul.f32 %v4859_v54, %v4852_v25  ;;  %v4867_v47 = vmul.f32 %v4863_v27, %v4851_v16  ;;  %v5160_v27 = vrot.slane %v5151_v9, %v7595_v62 }
0x1153   : > { %v4901_v59 = vpop.permute.xlu1 %4900  ;;  %v4959_v38 = vld [vmem:[#allocation3 + $0xe8] sm:$0xff]  ;;  %v4958_v58 = vld [vmem:[#allocation3 + $0xe0] sm:$0xff] }
0x1154   : > { %v4870_v21 = vrot.slane %v4866_v42, 4  ;;  %v4871_v3 = vrot.slane %v4867_v47, 4  ;;  %v4903_v63 = vpop.permute.xlu0 %4902  ;;  %v5129_v47 = vld [vmem:[#allocation7 + $0x3] ss:$8 sm:$0x3] }
0x1155   : > { %v4905_v14 = vsel %vm4904_vm6, %v4901_v59, %v4903_v63  ;;  %v4906_v7 = vsel %vm4904_vm6, %v4903_v63, %v4901_v59  ;;  %v5138_v63 = vrot.slane %v5129_v47, %v7595_v62  ;;  %vm9066_vm6 = vmmov %vm9058_vm0 }
0x1156   : > { %4874 = vst [vmem:[#allocation3 + $0x100] sm:$0xf0] %v4870_v21  ;;  %4875 = vst [vmem:[#allocation3 + $0x108] sm:$0xf0] %v4871_v3  ;;  %v4920_v49 = vmul.f32 %v4913_v19, %v4906_v7  ;;  %v4921_v22 = vmul.f32 %v4917_v8, %v4905_v14  ;;  %v5134_v3 = vrot.slane %v5129_v47, %v7593_v18 }
0x1157   : > { %v4823_v26 = vpop.permute.xlu1 %4822  ;;  %v4961_v29 = vld [vmem:[#allocation3 + $0xf8] sm:$0xff]  ;;  %v4960_v28 = vld [vmem:[#allocation3 + $0xf0] sm:$0xff] }
0x1158   : > { %v4924_v2 = vrot.slane %v4920_v49, 4  ;;  %v4925_v31 = vrot.slane %v4921_v22, 4  ;;  %v4825_v46 = vpop.permute.xlu0 %4824  ;;  %v6183_v6 = vpack.c.bf16 %v4961_v29, %v4959_v38  ;;  %v6185_v32 = vpack.c.bf16 %v4960_v28, %v4958_v58  ;;  %v5057_v7 = vld [vmem:[#allocation7] ss:$8 sm:$0x3] }
0x1159   : > { %v4827_v56 = vsel %vm4826_vm4, %v4823_v26, %v4825_v46  ;;  %v4828_v60 = vsel %vm4826_vm4, %v4825_v46, %v4823_v26  ;;  %v5062_v29 = vrot.slane %v5057_v7, %v7593_v18  ;;  %v5066_v58 = vrot.slane %v5057_v7, %v7595_v62  ;;  %vm9067_vm4 = vmmov %vm9058_vm0 }
0x115a   : > { %4928 = vst [vmem:[#allocation3 + $0x110] sm:$0xf0] %v4924_v2  ;;  %4929 = vst [vmem:[#allocation3 + $0x118] sm:$0xf0] %v4925_v31  ;;  %v4842_v17 = vmul.f32 %v4835_v30, %v4828_v60  ;;  %v4843_v61 = vmul.f32 %v4839_v23, %v4827_v56  ;;  %6184 = vmatprep.subr.bf16.mxu0 %v6183_v6 }
0x115b   : > { %v4877_v50 = vpop.permute.xlu1 %4876  ;;  %6186 = vmatpush1.bf16.msra.mxu0 %v6185_v32  ;;  %v5107_v2 = vld [vmem:[#allocation7 + $0x2] ss:$8 sm:$0x3] }
0x115c   : > { %4844 = vst [vmem:[#allocation3 + $0x100] sm:$0xf] %v4842_v17  ;;  %4845 = vst [vmem:[#allocation3 + $0x108] sm:$0xf] %v4843_v61  ;;  %v4879_v52 = vpop.permute.xlu0 %4878  ;;  %v5112_v61 = vrot.slane %v5107_v2, %v7593_v18 }
0x115d   : > { %v4881_v44 = vsel %vm4880_vm12, %v4877_v50, %v4879_v52  ;;  %v4882_v10 = vsel %vm4880_vm12, %v4879_v52, %v4877_v50  ;;  %v5173_v50 = vld [vmem:[#allocation7 + $0x5] ss:$8 sm:$0x3]  ;;  %vm9068_vm12 = vmmov %vm9061_vm2 }
0x115e   : > { %v4896_v11 = vmul.f32 %v4889_v1, %v4882_v10  ;;  %v4897_v45 = vmul.f32 %v4893_v34, %v4881_v44  ;;  %v5116_v1 = vrot.slane %v5107_v2, %v7595_v62 }
0x1160   : > { %4898 = vst [vmem:[#allocation3 + $0x110] sm:$0xf] %v4896_v11  ;;  %4899 = vst [vmem:[#allocation3 + $0x118] sm:$0xf] %v4897_v45 }
0x1163   : > { %v4963_v55 = vld [vmem:[#allocation3 + $0x108] sm:$0xff]  ;;  %v4962_v39 = vld [vmem:[#allocation3 + $0x100] sm:$0xff] }
0x1167   : > { %v4965_v36 = vld [vmem:[#allocation3 + $0x118] sm:$0xff]  ;;  %v4964_v51 = vld [vmem:[#allocation3 + $0x110] sm:$0xff] }
0x1168   : > { %v6187_v5 = vpack.c.bf16 %v4965_v36, %v4963_v55  ;;  %v6189_v24 = vpack.c.bf16 %v4964_v51, %v4962_v39  ;;  %v5178_v55 = vrot.slane %v5173_v50, %v7593_v18  ;;  %v5182_v36 = vrot.slane %v5173_v50, %v7595_v62  ;;  %v5223_v51 = vld [vmem:[#allocation7 + $0x7] ss:$8 sm:$0x3]  ;;  %v6015_v50 = vld [vmem:[%s8880_s5 + $0x1c] sm:$0xf] }
0x116a   : > { %6188 = vmatprep.subr.bf16.mxu0 %v6187_v5 }
0x116b   : > { %6190 = vmatpush1.bf16.msra.mxu0 %v6189_v24 }
0x116c   : > { %v4971_v40 = vpop.permute.xlu1 %4970 }
0x116e   : > { %5043 = vmatmul.mubr.f32.vlgmr.msra.gmra.mrb[16].mxu0 %v8424_v37 }
0x1241   : > { %v5044_v13 = vpop.f32.mrb[16].mxu0 }
0x1242   : > { %v5045_v43 = vadd.f32 %v5044_v13, %v4971_v40  ;;  %v5046_v20 = vpop.f32.mrb[17].mxu0 }
0x1243   : > { %v5047_v54 = vadd.f32 %v5046_v20, %v4971_v40 }
0x1244   : > { %v8641_v12 = vadd.f32 %v5045_v43, %v7786_v48  ;;  %v6016_v48 = vld [vmem:[%s8881_s6 + $0x1c] sm:$0xf]  ;;  %v5228_v43 = vrot.slane %v5223_v51, %v7593_v18 }
0x1245   : > { %v8644_v15 = vadd.f32 %v5047_v54, %v7789_v0  ;;  %v5079_v0 = vld [vmem:[#allocation7 + $0x1] ss:$8 sm:$0x3]  ;;  %v5201_v54 = vld [vmem:[#allocation7 + $0x6] ss:$8 sm:$0x3] }
0x1246   : > { %v5163_v53 = vmul.f32 %v5156_v33, %v8641_v12  ;;  %5073 = vrot.lane.b32.xlu0 %v8641_v12, %s9046_s26  ;;  %v5084_v16 = vrot.slane %v5079_v0, %v7593_v18  ;;  %v5088_v25 = vrot.slane %v5079_v0, %v7595_v62  ;;  %v5232_v33 = vrot.slane %v5223_v51, %v7595_v62 }
0x1247   : > { %v5164_v37 = vmul.f32 %v5160_v27, %v8644_v15  ;;  %5075 = vrot.lane.b32.xlu1 %v8644_v15, %s9046_s26  ;;  %v5210_v47 = vrot.slane %v5201_v54, %v7595_v62 }
0x1248   : > { %5165 = vst [vmem:[#allocation2 + $0x20] sm:$0xf] %v5163_v53 }
0x1249   : > { %5166 = vst [vmem:[#allocation2 + $0x28] sm:$0xf] %v5164_v37 }
0x124a   : > { %5123 = vrot.lane.b32.xlu0 %v8641_v12, %s9042_s24 }
0x124b   : > { %5125 = vrot.lane.b32.xlu1 %v8644_v15, %s9042_s24 }
0x124e   : > { %5051 = vrot.lane.b32.xlu0 %v8641_v12, %s9045_s28 }
0x124f   : > { %5053 = vrot.lane.b32.xlu1 %v8644_v15, %s9045_s28 }
0x1252   : > { %5101 = vrot.lane.b32.xlu0 %v8641_v12, %s9043_s16 }
0x1253   : > { %5103 = vrot.lane.b32.xlu1 %v8644_v15, %s9043_s16 }
0x1256   : > { %5167 = vrot.lane.b32.xlu0 %v8641_v12, %s9041_s30 }
0x1257   : > { %5169 = vrot.lane.b32.xlu1 %v8644_v15, %s9041_s30 }
0x125a   : > { %5217 = vrot.lane.b32.xlu0 %v8641_v12, %s9040_s29 }
0x125b   : > { %5219 = vrot.lane.b32.xlu1 %v8644_v15, %s9040_s29 }
0x125e   : > { %5195 = vrot.lane.b32.xlu0 %v8641_v12, %s9056_s0 }
0x125f   : > { %5197 = vrot.lane.b32.xlu1 %v8644_v15, %s9056_s0 }
0x1262   : > { %5245 = vrot.lane.b32.xlu0 %v8641_v12, %s9057_s1 }
0x1263   : > { %5247 = vrot.lane.b32.xlu1 %v8644_v15, %s9057_s1 }
0x1266   : > { %5283 = vperm.xlu0 %6313, %v6016_v48  }
0x12b8   : > { %v5074_v42 = vpop.permute.xlu0 %5073 }
0x12b9   : > { %v5076_v19 = vpop.permute.xlu1 %5075 }
0x12ba   : > { %v5077_v8 = vsel %vm9058_vm0, %v5074_v42, %v5076_v19  ;;  %v5078_v59 = vsel %vm9059_vm3, %v5076_v19, %v5074_v42  ;;  %v5206_v42 = vrot.slane %v5201_v54, %v7593_v18  ;;  %vm9069_vm0 = vmmov %vm9061_vm2 }
0x12bb   : > { %v5091_v35 = vmul.f32 %v5084_v16, %v5078_v59  ;;  %v5092_v21 = vmul.f32 %v5088_v25, %v5077_v8  ;;  %v5251_v8 = vld [vmem:[#allocation7 + $0x10] ss:$8 sm:$0x3] }
0x12bc   : > { %v5124_v14 = vpop.permute.xlu0 %5123 }
0x12bd   : > { %v5095_v49 = vrot.slane %v5091_v35, 4  ;;  %v5096_v22 = vrot.slane %v5092_v21, 4  ;;  %v5126_v30 = vpop.permute.xlu1 %5125 }
0x12be   : > { %v5127_v23 = vsel %vm1787_vm5, %v5124_v14, %v5126_v30  ;;  %v5128_v38 = vsel %vm1787_vm5, %v5126_v30, %v5124_v14 }
0x12bf   : > { %5099 = vst [vmem:[#allocation2] sm:$0xf0] %v5095_v49  ;;  %5100 = vst [vmem:[#allocation2 + $0x8] sm:$0xf0] %v5096_v22  ;;  %v5141_v41 = vmul.f32 %v5134_v3, %v5128_v38  ;;  %v5142_v26 = vmul.f32 %v5138_v63, %v5127_v23 }
0x12c0   : > { %v5052_v28 = vpop.permute.xlu0 %5051 }
0x12c1   : > { %v5145_v31 = vrot.slane %v5141_v41, 4  ;;  %v5146_v46 = vrot.slane %v5142_v26, 4  ;;  %v5054_v6 = vpop.permute.xlu1 %5053  ;;  %v5256_v26 = vrot.slane %v5251_v8, %v7593_v18 }
0x12c2   : > { %v5055_v32 = vsel %vm9060_vm14, %v5052_v28, %v5054_v6  ;;  %v5056_v56 = vsel %vm9061_vm2, %v5054_v6, %v5052_v28 }
0x12c3   : > { %5149 = vst [vmem:[#allocation2 + $0x10] sm:$0xf0] %v5145_v31  ;;  %5150 = vst [vmem:[#allocation2 + $0x18] sm:$0xf0] %v5146_v46  ;;  %v5069_v60 = vmul.f32 %v5062_v29, %v5056_v56  ;;  %v5070_v17 = vmul.f32 %v5066_v58, %v5055_v32  ;;  %v5260_v29 = vrot.slane %v5251_v8, %v7595_v62 }
0x12c4   : > { %v5102_v34 = vpop.permute.xlu0 %5101  ;;  %v5374_v8 = vld [vmem:[#allocation7] ss:$8 sm:$0x3] }
0x12c5   : > { %5071 = vst [vmem:[#allocation2] sm:$0xf] %v5069_v60  ;;  %5072 = vst [vmem:[#allocation2 + $0x8] sm:$0xf] %v5070_v17  ;;  %v5104_v52 = vpop.permute.xlu1 %5103 }
0x12c6   : > { %v5105_v44 = vsel %vm1763_vm7, %v5102_v34, %v5104_v52  ;;  %v5106_v10 = vsel %vm1763_vm7, %v5104_v52, %v5102_v34 }
0x12c7   : > { %v5119_v11 = vmul.f32 %v5112_v61, %v5106_v10  ;;  %v5120_v45 = vmul.f32 %v5116_v1, %v5105_v44  ;;  %v5468_v44 = vld [vmem:[#allocation7 + $0x4] ss:$8 sm:$0x3] }
0x12c8   : > { %v5168_v39 = vpop.permute.xlu0 %5167  ;;  %v5477_v51 = vrot.slane %v5468_v44, %v7595_v62 }
0x12c9   : > { %5121 = vst [vmem:[#allocation2 + $0x10] sm:$0xf] %v5119_v11  ;;  %5122 = vst [vmem:[#allocation2 + $0x18] sm:$0xf] %v5120_v45  ;;  %v5170_v5 = vpop.permute.xlu1 %5169 }
0x12ca   : > { %v5171_v24 = vsel %vm1834_vm8, %v5168_v39, %v5170_v5  ;;  %v5172_v9 = vsel %vm1834_vm8, %v5170_v5, %v5168_v39 }
0x12cb   : > { %v5185_v40 = vmul.f32 %v5178_v55, %v5171_v24  ;;  %v5186_v13 = vmul.f32 %v5182_v36, %v5172_v9  ;;  %v5473_v55 = vrot.slane %v5468_v44, %v7593_v18  ;;  %v5540_v44 = vld [vmem:[#allocation7 + $0x7] ss:$8 sm:$0x3] }
0x12cc   : > { %v5218_v20 = vpop.permute.xlu0 %5217  ;;  %v5268_v19 = vld [vmem:[#allocation2 + $0x8] sm:$0xff]  ;;  %v5267_v21 = vld [vmem:[#allocation2] sm:$0xff] }
0x12cd   : > { %v5189_v27 = vrot.slane %v5185_v40, 4  ;;  %v5190_v53 = vrot.slane %v5186_v13, 4  ;;  %v5220_v37 = vpop.permute.xlu1 %5219  ;;  %v6021_v13 = vld [vmem:[%s8881_s6 + $0x20] sm:$0xf] }
0x12ce   : > { %v5221_v48 = vsel %vm1888_vm9, %v5218_v20, %v5220_v37  ;;  %v5222_v0 = vsel %vm1888_vm9, %v5220_v37, %v5218_v20 }
0x12cf   : > { %5193 = vst [vmem:[#allocation2 + $0x20] sm:$0xf0] %v5189_v27  ;;  %5194 = vst [vmem:[#allocation2 + $0x28] sm:$0xf0] %v5190_v53  ;;  %v5235_v16 = vmul.f32 %v5228_v43, %v5221_v48  ;;  %v5236_v25 = vmul.f32 %v5232_v33, %v5222_v0  ;;  %v5686_v43 = vld [vmem:[%s9065_s7] sm:$0xf] }
0x12d0   : > { %v5196_v59 = vpop.permute.xlu0 %5195  ;;  %v5270_v35 = vld [vmem:[#allocation2 + $0x18] sm:$0xff]  ;;  %v5269_v3 = vld [vmem:[#allocation2 + $0x10] sm:$0xff]  ;;  %v5396_v33 = vld [vmem:[#allocation7 + $0x1] ss:$8 sm:$0x3]  ;;  %s6604_s7 = scalar_lea.vmem %s8833_s8, 128 }
0x12d1   : > { %v5239_v63 = vrot.slane %v5235_v16, 4  ;;  %v5240_v14 = vrot.slane %v5236_v25, 4  ;;  %v5198_v7 = vpop.permute.xlu1 %5197  ;;  %v6191_v49 = vpack.c.bf16 %v5270_v35, %v5268_v19  ;;  %v6193_v22 = vpack.c.bf16 %v5269_v3, %v5267_v21  ;;  %v5446_v53 = vld [vmem:[#allocation7 + $0x3] ss:$8 sm:$0x3]  ;;  %p6605_p11 = scmp.ne.s32.totalorder %s8833_s8, %s6604_s7 }
0x12d2   : > { %v5199_v30 = vsel %vm1864_vm10, %v5196_v59, %v5198_v7  ;;  %v5200_v23 = vsel %vm1864_vm10, %v5198_v7, %v5196_v59  ;;  %v5401_v20 = vrot.slane %v5396_v33, %v7593_v18  ;;  %v5405_v54 = vrot.slane %v5396_v33, %v7595_v62 }
0x12d3   : > { %5243 = vst [vmem:[#allocation2 + $0x30] sm:$0xf0] %v5239_v63  ;;  %5244 = vst [vmem:[#allocation2 + $0x38] sm:$0xf0] %v5240_v14  ;;  %v5213_v38 = vmul.f32 %v5206_v42, %v5199_v30  ;;  %v5214_v41 = vmul.f32 %v5210_v47, %v5200_v23  ;;  %6192 = vmatprep.subr.bf16.mxu1 %v6191_v49  ;;  %v5451_v42 = vrot.slane %v5446_v53, %v7593_v18  ;;  %p6606_p1 = pnand %p6605_p11, %p9079_p0 }
0x12d4   : > { %6194 = vmatpush1.bf16.msra.mxu1 %v6193_v22  ;;  %v5246_v58 = vpop.permute.xlu0 %5245  ;;  %v5455_v47 = vrot.slane %v5446_v53, %v7595_v62  ;;  %v5379_v49 = vrot.slane %v5374_v8, %v7593_v18  ;;  %v5383_v22 = vrot.slane %v5374_v8, %v7595_v62  ;;  %v5424_v23 = vld [vmem:[#allocation7 + $0x2] ss:$8 sm:$0x3] }
0x12d5   : > { %5215 = vst [vmem:[#allocation2 + $0x30] sm:$0xf] %v5213_v38  ;;  %5216 = vst [vmem:[#allocation2 + $0x38] sm:$0xf] %v5214_v41  ;;  %v5248_v28 = vpop.permute.xlu1 %5247  ;;  %p6607_p3 = pneg %p6606_p1 }
0x12d6   : > { %v5249_v2 = vsel %vm1918_vm11, %v5246_v58, %v5248_v28  ;;  %v5250_v31 = vsel %vm1918_vm11, %v5248_v28, %v5246_v58  ;;  %v5272_v32 = vld [vmem:[#allocation2 + $0x28] sm:$0xff]  ;;  %v5271_v60 = vld [vmem:[#allocation2 + $0x20] sm:$0xff] }
0x12d7   : > { %v5263_v46 = vmul.f32 %v5256_v26, %v5249_v2  ;;  %v5264_v6 = vmul.f32 %v5260_v29, %v5250_v31  ;;  %v5429_v31 = vrot.slane %v5424_v23, %v7593_v18 }
0x12d9   : > { %5265 = vst [vmem:[#allocation2 + $0x40] sm:$0xf] %v5263_v46  ;;  %5266 = vst [vmem:[#allocation2 + $0x48] sm:$0xf] %v5264_v6  ;;  %v5433_v46 = vrot.slane %v5424_v23, %v7595_v62 }
0x12dc   : > { %v5274_v56 = vld [vmem:[#allocation2 + $0x38] sm:$0xff]  ;;  %v5273_v17 = vld [vmem:[#allocation2 + $0x30] sm:$0xff] }
0x12dd   : > { %v6195_v61 = vpack.c.bf16 %v5274_v56, %v5272_v32  ;;  %v6197_v1 = vpack.c.bf16 %v5273_v17, %v5271_v60  ;;  %v5490_v32 = vld [vmem:[#allocation7 + $0x5] ss:$8 sm:$0x3] }
0x12df   : > { %6196 = vmatprep.subr.bf16.mxu1 %v6195_v61 }
0x12e0   : > { %6198 = vmatpush1.bf16.msra.mxu1 %v6197_v1  ;;  %v5276_v34 = vld [vmem:[#allocation2 + $0x48] sm:$0xf]  ;;  %v5275_v52 = vld [vmem:[#allocation2 + $0x40] sm:$0xf] }
0x12e1   : > { %6017 = vmatprep.subr.msk.mxu1 %vm9062_vm13, %v5276_v34  ;;  %v5495_v34 = vrot.slane %v5490_v32, %v7593_v18 }
0x12e4   : > { %6018 = vmatpush1.msk.msra.mxu1 %vm9063_vm1, %v5275_v52 }
0x12e5   : > { %6019 = vmatmul.mubr.msk.f32.vlgmr.msra.gmra.mrb[68].mxu1 %vm9064_vm15, %v6015_v50  ;;  %v5284_v10 = vpop.permute.xlu0 %5283  ;;  %v5499_v50 = vrot.slane %v5490_v32, %v7595_v62 }
0x12e6   : > { %5676 = vmatprep.mubr.f32.mxu1 %v9038_v57 }
0x13b8   : > { %v5361_v11 = vpop.f32.mrb[68].mxu1 }
0x13b9   : > { %v5362_v45 = vadd.f32 %v5361_v11, %v5284_v10  ;;  %v5363_v36 = vpop.f32.mrb[69].mxu1 }
0x13ba   : > { %v5364_v39 = vadd.f32 %v5363_v36, %v5284_v10 }
0x13bb   : > { %v5366_v5 = vmax.f32 %v5362_v45, 0.0 }
0x13bc   : > { %v5367_v24 = vmax.f32 %v5364_v39, 0.0  ;;  %v5545_v39 = vrot.slane %v5540_v44, %v7593_v18 }
0x13bd   : > { %v5480_v9 = vmul.f32 %v5473_v55, %v5366_v5  ;;  %5390 = vrot.lane.b32.xlu1 %v5366_v5, %s9046_s26 }
0x13be   : > { %v5481_v40 = vmul.f32 %v5477_v51, %v5367_v24  ;;  %5392 = vrot.lane.b32.xlu0 %v5367_v24, %s9046_s26  ;;  %v5549_v51 = vrot.slane %v5540_v44, %v7595_v62  ;;  %s5790_s26 = scalar_lea.sflag [#allocation6], %s6968_s18 }
0x13bf   : > { %5482 = vst [vmem:[#allocation2 + $0x20] sm:$0xf] %v5480_v9 }
0x13c0   : > { %5483 = vst [vmem:[#allocation2 + $0x28] sm:$0xf] %v5481_v40 }
0x13c1   : > { %5440 = vrot.lane.b32.xlu1 %v5366_v5, %s9042_s24 }
0x13c2   : > { %5442 = vrot.lane.b32.xlu0 %v5367_v24, %s9042_s24 }
0x13c5   : > { %5368 = vrot.lane.b32.xlu1 %v5366_v5, %s9045_s28 }
0x13c6   : > { %5370 = vrot.lane.b32.xlu0 %v5367_v24, %s9045_s28  ;;  %s9078_s28 = sld [smem:[#allocation39_spill]] }
0x13c9   : > { %5418 = vrot.lane.b32.xlu1 %v5366_v5, %s9043_s16 }
0x13ca   : > { %5420 = vrot.lane.b32.xlu0 %v5367_v24, %s9043_s16 }
0x13cd   : > { %5484 = vrot.lane.b32.xlu1 %v5366_v5, %s9041_s30 }
0x13ce   : > { %5486 = vrot.lane.b32.xlu0 %v5367_v24, %s9041_s30 }
0x13d1   : > { %5534 = vrot.lane.b32.xlu1 %v5366_v5, %s9040_s29 }
0x13d2   : > { %5536 = vrot.lane.b32.xlu0 %v5367_v24, %s9040_s29 }
0x13d5   : > { %5512 = vrot.lane.b32.xlu1 %v5366_v5, %s9056_s0 }
0x13d6   : > { %5514 = vrot.lane.b32.xlu0 %v5367_v24, %s9056_s0  ;;  %s9073_s0 = sld [smem:[#allocation37_spill]] }
0x13d9   : > { %5562 = vrot.lane.b32.xlu1 %v5366_v5, %s9057_s1 }
0x13da   : > { %5564 = vrot.lane.b32.xlu0 %v5367_v24, %s9057_s1  ;;  %v5518_v24 = vld [vmem:[#allocation7 + $0x6] ss:$8 sm:$0x3]  ;;  %s6034_s1 = sshll.u32 %s6820_s22, 7  ;;  %s6718_s22 = smov [#allocation10]  }
0x13db   : > { %v5527_v53 = vrot.slane %v5518_v24, %v7595_v62  ;;  %s8831_s16 = scalar_lea.hbm %s9078_s28, %s6034_s1  ;;  %s6608_s29 = sshll.u32 %s6718_s22, 4  ;;  %s6609_s29 = int_to_ptr.vmem [resolvable:$false] %s6608_s29 }
0x13dc   : > { %s6610_s30 = scalar_lea.vmem %s6609_s29, 256  ;;  %p6611_p7 = scmp.lt.s32.totalorder %s8833_s8, %s6609_s29 }
0x13dd   : > { %5600 = vperm.xlu1 %6314, %v6021_v13   ;;  %p6612_p9 = scmp.lt.s32.totalorder %s6610_s30, %s6604_s7 }
0x13de   : > { %5689 = vperm.xlu0 %6313, %v5686_v43  }
0x13df   : > { %p6613_p12 = por %p6612_p9, %p6611_p7 }
0x13e1   : > { %p6614_p2 = pnand %p6613_p12, %p6607_p3 }
0x142f   : > { %v5391_v27 = vpop.permute.xlu1 %5390 }
0x1430   : > { %v5393_v37 = vpop.permute.xlu0 %5392 }
0x1431   : > { %v5394_v48 = vsel %vm9066_vm6, %v5391_v27, %v5393_v37  ;;  %v5395_v0 = vsel %vm9067_vm4, %v5393_v37, %v5391_v27  ;;  %v5523_v27 = vrot.slane %v5518_v24, %v7593_v18 }
0x1432   : > { %v5408_v16 = vmul.f32 %v5401_v20, %v5395_v0  ;;  %v5409_v25 = vmul.f32 %v5405_v54, %v5394_v48  ;;  %v5568_v48 = vld [vmem:[#allocation7 + $0x10] ss:$8 sm:$0x3] }
0x1433   : > { %v5441_v19 = vpop.permute.xlu1 %5440 }
0x1434   : > { %v5412_v59 = vrot.slane %v5408_v16, 4  ;;  %v5413_v35 = vrot.slane %v5409_v25, 4  ;;  %v5443_v21 = vpop.permute.xlu0 %5442 }
0x1435   : > { %v5444_v3 = vsel %vm1787_vm5, %v5441_v19, %v5443_v21  ;;  %v5445_v63 = vsel %vm1787_vm5, %v5443_v21, %v5441_v19  ;;  %vm9070_vm5 = vmmov %vm9063_vm1 }
0x1436   : > { %5416 = vst [vmem:[#allocation2] sm:$0xf0] %v5412_v59  ;;  %5417 = vst [vmem:[#allocation2 + $0x8] sm:$0xf0] %v5413_v35  ;;  %v5458_v14 = vmul.f32 %v5451_v42, %v5445_v63  ;;  %v5459_v7 = vmul.f32 %v5455_v47, %v5444_v3 }
0x1437   : > { %v5369_v30 = vpop.permute.xlu1 %5368 }
0x1438   : > { %v5462_v38 = vrot.slane %v5458_v14, 4  ;;  %v5463_v41 = vrot.slane %v5459_v7, 4  ;;  %v5371_v26 = vpop.permute.xlu0 %5370  ;;  %v5573_v7 = vrot.slane %v5568_v48, %v7593_v18 }
0x1439   : > { %v5372_v29 = vsel %vm9068_vm12, %v5369_v30, %v5371_v26  ;;  %v5373_v58 = vsel %vm9069_vm0, %v5371_v26, %v5369_v30 }
0x143a   : > { %5466 = vst [vmem:[#allocation2 + $0x10] sm:$0xf0] %v5462_v38  ;;  %5467 = vst [vmem:[#allocation2 + $0x18] sm:$0xf0] %v5463_v41  ;;  %v5386_v28 = vmul.f32 %v5379_v49, %v5373_v58  ;;  %v5387_v2 = vmul.f32 %v5383_v22, %v5372_v29  ;;  %v5577_v49 = vrot.slane %v5568_v48, %v7595_v62 }
0x143b   : > { %v5419_v6 = vpop.permute.xlu1 %5418 }
0x143c   : > { %5388 = vst [vmem:[#allocation2] sm:$0xf] %v5386_v28  ;;  %5389 = vst [vmem:[#allocation2 + $0x8] sm:$0xf] %v5387_v2  ;;  %v5421_v56 = vpop.permute.xlu0 %5420 }
0x143d   : > { %v5422_v60 = vsel %vm1763_vm7, %v5419_v6, %v5421_v56  ;;  %v5423_v17 = vsel %vm1763_vm7, %v5421_v56, %v5419_v6  ;;  %vm9071_vm7 = vmmov %vm9063_vm1 }
0x143e   : > { %v5436_v61 = vmul.f32 %v5429_v31, %v5423_v17  ;;  %v5437_v1 = vmul.f32 %v5433_v46, %v5422_v60 }
0x143f   : > { %v5485_v52 = vpop.permute.xlu1 %5484 }
0x1440   : > { %5438 = vst [vmem:[#allocation2 + $0x10] sm:$0xf] %v5436_v61  ;;  %5439 = vst [vmem:[#allocation2 + $0x18] sm:$0xf] %v5437_v1  ;;  %v5487_v10 = vpop.permute.xlu0 %5486 }
0x1441   : > { %v5488_v11 = vsel %vm1834_vm8, %v5485_v52, %v5487_v10  ;;  %v5489_v45 = vsel %vm1834_vm8, %v5487_v10, %v5485_v52  ;;  %vm9072_vm8 = vmmov %vm9064_vm15 }
0x1442   : > { %v5502_v55 = vmul.f32 %v5495_v34, %v5488_v11  ;;  %v5503_v36 = vmul.f32 %v5499_v50, %v5489_v45  ;;  %v5685_v34 = vld [vmem:[%s9073_s0] sm:$0xf] }
0x1443   : > { %v5535_v5 = vpop.permute.xlu1 %5534  ;;  %v5585_v37 = vld [vmem:[#allocation2 + $0x8] sm:$0xff]  ;;  %v5584_v25 = vld [vmem:[#allocation2] sm:$0xff] }
0x1444   : > { %v5506_v9 = vrot.slane %v5502_v55, 4  ;;  %v5507_v40 = vrot.slane %v5503_v36, 4  ;;  %v5537_v13 = vpop.permute.xlu0 %5536 }
0x1445   : > { %v5538_v43 = vsel %vm1888_vm9, %v5535_v5, %v5537_v13  ;;  %v5539_v33 = vsel %vm1888_vm9, %v5537_v13, %v5535_v5  ;;  %vm9074_vm9 = vmmov %vm9063_vm1 }
0x1446   : > { %5510 = vst [vmem:[#allocation2 + $0x20] sm:$0xf0] %v5506_v9  ;;  %5511 = vst [vmem:[#allocation2 + $0x28] sm:$0xf0] %v5507_v40  ;;  %v5552_v20 = vmul.f32 %v5545_v39, %v5538_v43  ;;  %v5553_v54 = vmul.f32 %v5549_v51, %v5539_v33 }
0x1447   : > { %v5513_v0 = vpop.permute.xlu1 %5512  ;;  %v5587_v16 = vld [vmem:[#allocation2 + $0x18] sm:$0xff]  ;;  %v5586_v42 = vld [vmem:[#allocation2 + $0x10] sm:$0xff] }
0x1448   : > { %v5556_v47 = vrot.slane %v5552_v20, 4  ;;  %v5557_v19 = vrot.slane %v5553_v54, 4  ;;  %v5515_v8 = vpop.permute.xlu0 %5514  ;;  %v6199_v59 = vpack.c.bf16 %v5587_v16, %v5585_v37  ;;  %v6201_v35 = vpack.c.bf16 %v5586_v42, %v5584_v25 }
0x1449   : > { %v5516_v21 = vsel %vm1864_vm10, %v5513_v0, %v5515_v8  ;;  %v5517_v3 = vsel %vm1864_vm10, %v5515_v8, %v5513_v0  ;;  %vm9075_vm10 = vmmov %vm9063_vm1 }
0x144a   : > { %5560 = vst [vmem:[#allocation2 + $0x30] sm:$0xf0] %v5556_v47  ;;  %5561 = vst [vmem:[#allocation2 + $0x38] sm:$0xf0] %v5557_v19  ;;  %v5530_v63 = vmul.f32 %v5523_v27, %v5516_v21  ;;  %v5531_v14 = vmul.f32 %v5527_v53, %v5517_v3  ;;  %6200 = vmatprep.subr.bf16.mxu1 %v6199_v59 }
0x144b   : > { %6202 = vmatpush1.bf16.msra.mxu1 %v6201_v35  ;;  %v5563_v22 = vpop.permute.xlu1 %5562 }
0x144c   : > { %5532 = vst [vmem:[#allocation2 + $0x30] sm:$0xf] %v5530_v63  ;;  %5533 = vst [vmem:[#allocation2 + $0x38] sm:$0xf] %v5531_v14  ;;  %v5565_v30 = vpop.permute.xlu0 %5564 }
0x144d   : > { %v5566_v23 = vsel %vm1918_vm11, %v5563_v22, %v5565_v30  ;;  %v5567_v38 = vsel %vm1918_vm11, %v5565_v30, %v5563_v22  ;;  %v5589_v29 = vld [vmem:[#allocation2 + $0x28] sm:$0xff]  ;;  %v5588_v18 = vld [vmem:[#allocation2 + $0x20] sm:$0xff]  ;;  %vm9076_vm11 = vcmask 31744  }
0x144e   : > { %v5580_v41 = vmul.f32 %v5573_v7, %v5566_v23  ;;  %v5581_v26 = vmul.f32 %v5577_v49, %v5567_v38 }
0x1450   : > { %5582 = vst [vmem:[#allocation2 + $0x40] sm:$0xf] %v5580_v41  ;;  %5583 = vst [vmem:[#allocation2 + $0x48] sm:$0xf] %v5581_v26 }
0x1453   : > { %v5591_v58 = vld [vmem:[#allocation2 + $0x38] sm:$0xff]  ;;  %v5590_v28 = vld [vmem:[#allocation2 + $0x30] sm:$0xff] }
0x1454   : > { %v6203_v62 = vpack.c.bf16 %v5591_v58, %v5589_v29  ;;  %v6205_v2 = vpack.c.bf16 %v5590_v28, %v5588_v18 }
0x1456   : > { %6204 = vmatprep.subr.bf16.mxu1 %v6203_v62 }
0x1457   : > { %6206 = vmatpush1.bf16.msra.mxu1 %v6205_v2  ;;  %v5593_v31 = vld [vmem:[#allocation2 + $0x48] sm:$0xf]  ;;  %v5592_v46 = vld [vmem:[#allocation2 + $0x40] sm:$0xf] }
0x1458   : > { %6022 = vmatprep.subr.msk.mxu1 %vm9070_vm5, %v5593_v31 }
0x145b   : > { %6023 = vmatpush1.msk.msra.mxu1 %vm9071_vm7, %v5592_v46 }
0x145c   : > { %6024 = vmatmul.mubr.msk.f32.vlgmr.msra.gmra.mrb[70].mxu1 %vm9072_vm8, %v6020_v4  ;;  %v5601_v6 = vpop.permute.xlu1 %5600 }
0x145d   : > { %5765 = vmatprep.mubr.f32.mxu1 %v9038_v57  ;;  %v5690_v57 = vpop.permute.xlu0 %5689 }
0x152f   : > { %v5678_v32 = vpop.f32.mrb[70].mxu1 }
0x1530   : > { %v5679_v56 = vadd.f32 %v5678_v32, %v5601_v6  ;;  %v5680_v60 = vpop.f32.mrb[71].mxu1 }
0x1531   : > { %v5681_v17 = vadd.f32 %v5680_v60, %v5601_v6 }
0x1532   : > { %v5683_v1 = vadd.f32 %v5679_v56, %v8641_v12 }
0x1533   : > { %v5684_v61 = vadd.f32 %v5681_v17, %v8644_v15 }
0x1535   : > { %6025 = vmatprep.subr.msk.mxu1 %vm9074_vm9, %v5684_v61 }
0x1536   : > { %6026 = vmatpush1.msk.msra.mxu1 %vm9075_vm10, %v5683_v1 }
0x1537   : > { %6027 = vmatmul.mubr.msk.f32.vlgmr.msra.gmra.mrb[72].mxu1 %vm9076_vm11, %v5685_v34 }
0x160a   : > { %v5767_v50 = vpop.f32.mrb[72].mxu1 }
0x160b   : > { %v5768_v52 = vadd.f32 %v5767_v50, %v5690_v57  ;;  %v5769_v44 = vpop.f32.mrb[73].mxu1 }
0x160c   : > { %v5770_v10 = vadd.f32 %v5769_v44, %v5690_v57 }
0x160d   : > { %v5772_v15 = vsub.f32 0.0, %v5768_v52 }
0x160e   : > { %v5773_v11 = vsub.f32 0.0, %v5770_v10 }
0x160f   : > { %v5774_v12 = vmul.f32 1.442695, %v5772_v15 }
0x1610   : > { %v5776_v45 = vmul.f32 1.442695, %v5773_v11 }
0x1611   : > { %6509 = vpow2.f32 %v5774_v12 }
0x1612   : > { %6511 = vpow2.f32 %v5776_v45 }
0x161b   : > { %v6510_v55 = vpop.eup %6509 }
0x161c   : > { %v6512_v36 = vpop.eup %6511  ;;  %v5778_v39 = vadd.f32 1.0, %v6510_v55 }
0x161d   : > { %v5779_v51 = vadd.f32 1.0, %v6512_v36 }
0x161e   : > { %6513 = vrcp.f32 %v5778_v39 }
0x161f   : > { %6515 = vrcp.f32 %v5779_v51 }
0x1628   : > { %v6514_v5 = vpop.eup %6513 }
0x1629   : > { %v6516_v24 = vpop.eup %6515 }
0x162a   : > { %v5786_v9 = vcombine.low %v6514_v5, %v6516_v24 }
0x162c   : > { %5788 = vst [vmem:[%s539_s15] sm:$0xff] %v5786_v9 }
0x162d   : > { %6617 = shalt.err (!%p6614_p2)
}
0x162e   : > { %s6618_s18 = scalar_lea.hbm %s8831_s16, 128  ;;  %s6622_s0 = scalar_lea.hbm %s9078_s28, 256 }
0x162f   : > { %p6619_p13 = scmp.ne.s32.totalorder %s8831_s16, %s6618_s18  ;;  %p6623_p4 = scmp.lt.u32.totalorder %s8831_s16, %s9078_s28 }
0x1630   : > { %p6624_p5 = scmp.lt.u32.totalorder %s6622_s0, %s6618_s18  ;;  %p6626_p11 = scmp.lt.u32.totalorder %s6618_s18, %s8831_s16 }
0x1631   : > { %p6620_p6 = pnand %p6619_p13, %p9079_p0 }
0x1632   : > { %p6625_p8 = por %p6624_p5, %p6623_p4 }
0x1633   : > { %p6621_p10 = pneg %p6620_p6 }
0x1634   : > { %p6627_p1 = por %p6626_p11, %p6625_p8 }
0x1636   : > { %p6628_p3 = pnand %p6627_p1, %p6621_p10 }
0x1638   : > { %6631 = shalt.err (!%p6628_p3)
}
0x1639   : > { %6217 = dma.vmem_to_hbm [thread:$0]  (%p9079_p0), %s8833_s8, 128, %s8831_s16, %s5790_s26  }
0x163a PF: > { %s9080_s15 = sld [smem:[#allocation14_spill]]  ;;  %s9081_s23 = sld [smem:[#allocation15_spill]] }
0x163b   : > { %p9083_p9 = scmp.ge.s32.totalorder %s6674_s21, 2 }
0x1640   : > { %s5816_s24 = sand.u32 1, %s9080_s15   ;;  %p9082_p7 = scmp.ne.s32.totalorder %s9081_s23, 0 }
0x1641   : > { %s5817_s7 = scalar_lea.sflag [#allocation6], %s5816_s24 }
0x1642   : > { %p6231_p12 = pnand %p9083_p9, %p9082_p7 }
0x1644   : > { %6657 = dma.done.wait (!%p6231_p12), %s5817_s7, 128  }
0x1645   : > { %6659 = vsyncadd (!%p6231_p12), %s5817_s7, 4294967168  ;;  %p29_p2 = scmp.ge.s32.totalorder %s6909_s10, 4   ;;  %s9084_s18 = smov %s6666_s19 }
0x1646   : > { %s9085_s19 = smov %s6670_s20  ;;  %s9086_s20 = smov %s6925_s17 }
0x1647   : > { %s9087_s21 = smov %s6909_s10  ;;  %31 = sbr.rel (!%p29_p2) target bundleno = 15 (0xf), region = 200 }
0x164e   :  { %5822 = vsyncpa [#allocation5], 1 }
0x164f   :  { %5824 = vsyncpa [#allocation5 + $0x1], 1 }
0x1650   :  { %5825 = vsyncpa [#allocation8], 1 }
0x1651   :  { %5826 = vsyncpa [#allocation6], 1 }
0x1652   :  { %5828 = vsyncpa [#allocation6 + $0x1], 1 }

</bundles_post_ra>
